<compile_context>
chip_gen: v5e
topology: v5e:2x2
jax: 0.10.0
libtpu: 0.0.40
codegen_flags: <defaults>
</compile_context>

<pallas_src>
import functools

import jax
import jax.numpy as jnp
from jax.experimental import pallas as pl
from jax.experimental.pallas import tpu as pltpu

LANE = 128


def _rup(n, m):
    return (n + m - 1) // m * m


# --------------------------------------------------------------------------- kernels
def adaptive_block_kernel(x_ref, w_ref, shift_ref, o_ref, acc_ref, *, ksize, wp):
    """Fused Conv2d('same') + folded-BN + ReLU + MaxPool2d(2) on flattened rows.

    x_ref:     (n_x, Cin_p)        spatially zero-padded input, flattened to rows
    w_ref:     (K*K, Cin_p, Cout_p) BN-scale-folded conv weights (one slab per tap)
    shift_ref: (1, Cout_p)          folded conv-bias + BN shift
    o_ref:     (n_out, Cout_p)      pooled output; valid rows at b*Hp*Wp + 2i*Wp + 2j
    acc_ref:   (m_acc, Cout_p)      f32 VMEM scratch holding the conv+ReLU result
    """
    m_acc = acc_ref.shape[0]
    n_out = o_ref.shape[0]

    # Convolution: each tap is one big MXU matmul over ALL batch/spatial rows.
    acc = None
    for kk in range(ksize * ksize):
        off = (kk // ksize) * wp + (kk % ksize)           # static row offset of this tap
        contrib = jnp.dot(x_ref[pl.ds(off, m_acc), :].astype(jnp.float32),
                          w_ref[kk],
                          preferred_element_type=jnp.float32)
        acc = contrib if acc is None else acc + contrib

    # Folded BatchNorm shift + ReLU (BN scale already folded into the weights).
    acc_ref[...] = jnp.maximum(acc + shift_ref[...], 0.0)

    # 2x2 / stride-2 max pool: in flat row space the four window elements of the
    # pooled value at row r are conv rows r, r+1, r+Wp, r+Wp+1.
    p = jnp.maximum(
        jnp.maximum(acc_ref[pl.ds(0, n_out), :], acc_ref[pl.ds(1, n_out), :]),
        jnp.maximum(acc_ref[pl.ds(wp, n_out), :], acc_ref[pl.ds(wp + 1, n_out), :]))
    o_ref[...] = p.astype(o_ref.dtype)


def classifier_kernel(x_ref, pool_ref, w_ref, b_ref, o_ref):
    """AdaptiveAvgPool2d((1,1)) + Flatten + Linear, fused.

    The global average pool is expressed as a (B, B*S) pooling-matrix matmul so the
    whole kernel is two lane-dense 2-D MXU matmuls.
    """
    pooled = jnp.dot(pool_ref[...], x_ref[...].astype(jnp.float32),
                     preferred_element_type=jnp.float32)            # (B, C_p)
    o_ref[...] = (jnp.dot(pooled, w_ref[...], preferred_element_type=jnp.float32)
                  + b_ref[...]).astype(o_ref.dtype)


# --------------------------------------------------------------------------- wrappers
def adaptive_block(x_nhwc, w_fold, shift, *, ksize):
    """x_nhwc: (B, H, W, Cin_p) channel-padded. Returns (B, H//2, W//2, Cout_p)."""
    B, H, W, cin_p = x_nhwc.shape
    cout_p = w_fold.shape[-1]
    pad = ksize // 2
    Hp, Wp = H + 2 * pad, W + 2 * pad

    n_valid = B * Hp * Wp                                  # output rows (pooled grid lives here)
    m_acc = _rup(n_valid + Wp + 1, 8)                      # conv rows needed by the pool reads
    n_x = _rup(m_acc + (ksize - 1) * (Wp + 1), 8)          # input rows needed by the taps

    # Spatial 'same' padding + flatten to rows + tail slack (layout plumbing in XLA).
    xp = jnp.pad(x_nhwc, ((0, 0), (pad, pad), (pad, pad), (0, 0)))
    x_flat = jnp.pad(xp.reshape(B * Hp * Wp, cin_p), ((0, n_x - B * Hp * Wp), (0, 0)))

    kern = functools.partial(adaptive_block_kernel, ksize=ksize, wp=Wp)
    out_flat = pl.pallas_call(
        kern,
        out_shape=jax.ShapeDtypeStruct((n_valid, cout_p), x_nhwc.dtype),
        grid=(1,),
        in_specs=[
            pl.BlockSpec((n_x, cin_p), lambda i: (0, 0)),
            pl.BlockSpec((ksize * ksize, cin_p, cout_p), lambda i: (0, 0, 0)),
            pl.BlockSpec((1, cout_p), lambda i: (0, 0)),
        ],
        out_specs=pl.BlockSpec((n_valid, cout_p), lambda i: (0, 0)),
        scratch_shapes=[pltpu.VMEM((m_acc, cout_p), jnp.float32)],
        compiler_params=pltpu.CompilerParams(dimension_semantics=("arbitrary",)),
    )(x_flat, w_fold, shift)

    # Gather the valid pooled rows r = b*Hp*Wp + 2i*Wp + 2j (cheap XLA layout plumbing).
    Ho, Wo = H // 2, W // 2
    return out_flat.reshape(B, Hp, Wp, cout_p)[:, : 2 * Ho : 2, : 2 * Wo : 2, :]


def classifier(x_flat, pool_mat, w, b):
    n_rows, cin_p = x_flat.shape
    B = pool_mat.shape[0]
    n_p = w.shape[-1]
    return pl.pallas_call(
        classifier_kernel,
        out_shape=jax.ShapeDtypeStruct((B, n_p), x_flat.dtype),
        grid=(1,),
        in_specs=[
            pl.BlockSpec((n_rows, cin_p), lambda i: (0, 0)),
            pl.BlockSpec((B, n_rows), lambda i: (0, 0)),
            pl.BlockSpec((cin_p, n_p), lambda i: (0, 0)),
            pl.BlockSpec((1, n_p), lambda i: (0, 0)),
        ],
        out_specs=pl.BlockSpec((B, n_p), lambda i: (0, 0)),
        compiler_params=pltpu.CompilerParams(dimension_semantics=("arbitrary",)),
    )(x_flat, pool_mat, w, b)


def make_forward(config):
    ksizes = tuple(int(k) for k in config["kernel_sizes"])

    @jax.jit
    def forward(x_nchw, kp):
        # NCHW -> NHWC with channels zero-padded to a multiple of 128 (lane-dense).
        x = jnp.transpose(x_nchw, (0, 2, 3, 1))
        cin = x.shape[-1]
        x = jnp.pad(x, ((0, 0), (0, 0), (0, 0), (0, _rup(cin, LANE) - cin)))
        for blk, k in zip(kp["blocks"], ksizes):
            x = adaptive_block(x, blk["w"], blk["shift"], ksize=k)
        B, Ho, Wo, cp = x.shape
        s = Ho * Wo
        x_flat = x.reshape(B * s, cp)
        pool_mat = jnp.repeat(jnp.eye(B, dtype=jnp.float32), s, axis=1) / float(s)
        logits_p = classifier(x_flat, pool_mat, kp["fc_w"], kp["fc_b"])
        return logits_p[:, :2]

    return forward


# --------------------------------------------------------------------------- params
def fold_conv_bn(conv_w, conv_b, gamma, beta, mean, var, cin_p, cout_p, eps=1e-5):
    """PyTorch (Cout,Cin,K,K) conv + eval-mode BN -> ((K*K, cin_p, cout_p), (1, cout_p))."""
    cout, cin, K, _ = conv_w.shape
    s = gamma / jnp.sqrt(var + eps)                                   # (Cout,)
    w = jnp.transpose(conv_w, (2, 3, 1, 0)) * s                       # (K,K,Cin,Cout)
    w = jnp.pad(w.reshape(K * K, cin, cout),
                ((0, 0), (0, cin_p - cin), (0, cout_p - cout)))
    shift = jnp.pad(beta + (conv_b - mean) * s, (0, cout_p - cout))[None, :]
    return w.astype(jnp.float32), shift.astype(jnp.float32)


def fold_linear(w, b, cin_p, nout_p):
    nout, cin = w.shape
    wt = jnp.pad(w.T, ((0, cin_p - cin), (0, nout_p - nout)))
    bp = jnp.pad(b, (0, nout_p - nout))[None, :]
    return wt.astype(jnp.float32), bp.astype(jnp.float32)


def init_raw_params(key, config, in_channels=1):
    raw = {"blocks": []}
    cin = in_channels
    for cout, k in zip(config["filters"], config["kernel_sizes"]):
        key, kw, kb, kg, kbe, km, kv = jax.random.split(key, 7)
        bound = 1.0 / jnp.sqrt(cin * k * k)
        raw["blocks"].append(dict(
            conv_w=jax.random.uniform(kw, (cout, cin, k, k), jnp.float32, -bound, bound),
            conv_b=jax.random.uniform(kb, (cout,), jnp.float32, -bound, bound),
            gamma=1.0 + 0.1 * jax.random.normal(kg, (cout,), jnp.float32),
            beta=0.1 * jax.random.normal(kbe, (cout,), jnp.float32),
            mean=0.1 * jax.random.normal(km, (cout,), jnp.float32),
            var=jnp.abs(jax.random.normal(kv, (cout,), jnp.float32)) + 0.5))
        cin = cout
    key, kw, kb = jax.random.split(key, 3)
    bound = 1.0 / jnp.sqrt(cin)
    raw["fc_w"] = jax.random.uniform(kw, (2, cin), jnp.float32, -bound, bound)
    raw["fc_b"] = jax.random.uniform(kb, (2,), jnp.float32, -bound, bound)
    return raw


def build_kernel_params(raw, in_channels=1):
    cin_p = _rup(in_channels, LANE)
    blocks = []
    for b in raw["blocks"]:
        cout_p = _rup(b["conv_w"].shape[0], LANE)
        w, shift = fold_conv_bn(b["conv_w"], b["conv_b"], b["gamma"], b["beta"],
                                b["mean"], b["var"], cin_p, cout_p)
        blocks.append(dict(w=w, shift=shift))
        cin_p = cout_p
    fc_w, fc_b = fold_linear(raw["fc_w"], raw["fc_b"], cin_p, LANE)
    return dict(blocks=blocks, fc_w=fc_w, fc_b=fc_b)


# --------------------------------------------------------------------------- reference
def forward_ref(x_nchw, raw):
    """Pure-JAX eval-mode reference (no Pallas) for correctness checking."""
    x = jnp.transpose(x_nchw, (0, 2, 3, 1))
    for b in raw["blocks"]:
        k = b["conv_w"].shape[-1]
        pad = k // 2
        w = jnp.transpose(b["conv_w"], (2, 3, 1, 0))
        B, H, W, _ = x.shape
        xp = jnp.pad(x, ((0, 0), (pad, pad), (pad, pad), (0, 0)))
        out = jnp.zeros((B, H, W, w.shape[-1]), jnp.float32) + b["conv_b"]
        for ky in range(k):
            for kx in range(k):
                out = out + jnp.einsum("bhwc,co->bhwo",
                                       xp[:, ky:ky + H, kx:kx + W, :], w[ky, kx])
        s = b["gamma"] / jnp.sqrt(b["var"] + 1e-5)
        out = jnp.maximum((out - b["mean"]) * s + b["beta"], 0.0)
        Ho, Wo = H // 2, W // 2
        x = out[:, :2 * Ho, :2 * Wo, :].reshape(B, Ho, 2, Wo, 2, -1).max(axis=(2, 4))
    pooled = jnp.mean(x, axis=(1, 2))
    return pooled @ raw["fc_w"].T + raw["fc_b"]


# --------------------------------------------------------------------------- main
if __name__ == "__main__":
    config = {"filters": [8, 16], "kernel_sizes": [3, 3]}
    B, C_IN, H, W = 2, 1, 16, 16

    key = jax.random.PRNGKey(0)
    kx, kparam = jax.random.split(key)
    x = jax.random.normal(kx, (B, C_IN, H, W), jnp.float32)

    raw = init_raw_params(kparam, config, in_channels=C_IN)
    kernel_params = build_kernel_params(raw, in_channels=C_IN)

    forward = make_forward(config)
    logits = jax.block_until_ready(forward(x, kernel_params))

    ref = forward_ref(x, raw)
    assert logits.shape == (B, 2) and logits.dtype == jnp.float32
    assert jnp.allclose(logits, ref, atol=1e-4, rtol=1e-4), "mismatch vs JAX reference"

    print("KERNEL_OK")
</pallas_src>

<mosaic_0001>
module attributes {stable_mosaic.version = 11 : i64} {
  func.func @adaptive_block_kernel(%arg0: i32, %arg1: memref<712x128xf32, #tpu.memory_space<vmem>>, %arg2: memref<9x128x128xf32, #tpu.memory_space<vmem>>, %arg3: memref<1x128xf32, #tpu.memory_space<vmem>>, %arg4: memref<648x128xf32, #tpu.memory_space<vmem>>, %arg5: memref<672x128xf32, #tpu.memory_space<vmem>>) attributes {dimension_semantics = [#tpu.dimension_semantics<arbitrary>], iteration_bounds = array<i64: 1>, scalar_prefetch = 0 : i64, scratch_operands = 1 : i64, tpu.core_type = #tpu.core_type<tc>, window_params = [{pipeline_mode = #tpu.pipeline_mode<synchronous>, transform_indices = @transform_0, window_bounds = array<i64: 712, 128>}, {pipeline_mode = #tpu.pipeline_mode<synchronous>, transform_indices = @transform_1, window_bounds = array<i64: 9, 128, 128>}, {pipeline_mode = #tpu.pipeline_mode<synchronous>, transform_indices = @transform_2, window_bounds = array<i64: 1, 128>}, {pipeline_mode = #tpu.pipeline_mode<synchronous>, transform_indices = @transform_3, window_bounds = array<i64: 648, 128>}]} {
    %c0 = arith.constant 0 : index
    %c0_0 = arith.constant 0 : index
    %0 = vector.load %arg1[%c0, %c0_0] : memref<712x128xf32, #tpu.memory_space<vmem>>, vector<672x128xf32>
    %c0_1 = arith.constant 0 : index
    %c0_2 = arith.constant 0 : index
    %c0_3 = arith.constant 0 : index
    %1 = vector.load %arg2[%c0_1, %c0_2, %c0_3] : memref<9x128x128xf32, #tpu.memory_space<vmem>>, vector<1x128x128xf32>
    %2 = vector.shape_cast %1 : vector<1x128x128xf32> to vector<128x128xf32>
    %cst = arith.constant dense<0.000000e+00> : vector<672x128xf32>
    %3 = tpu.matmul %0, %2, %cst {dimension_numbers = #tpu.dot_dimension_numbers<[1], [0], [0], [1], [0, 0, 1, 1], [], []>} : vector<672x128xf32>, vector<128x128xf32>, vector<672x128xf32> -> vector<672x128xf32>
    %c1 = arith.constant 1 : index
    %c0_4 = arith.constant 0 : index
    %4 = vector.load %arg1[%c1, %c0_4] : memref<712x128xf32, #tpu.memory_space<vmem>>, vector<672x128xf32>
    %c1_5 = arith.constant 1 : index
    %c0_6 = arith.constant 0 : index
    %c0_7 = arith.constant 0 : index
    %5 = vector.load %arg2[%c1_5, %c0_6, %c0_7] : memref<9x128x128xf32, #tpu.memory_space<vmem>>, vector<1x128x128xf32>
    %6 = vector.shape_cast %5 : vector<1x128x128xf32> to vector<128x128xf32>
    %cst_8 = arith.constant dense<0.000000e+00> : vector<672x128xf32>
    %7 = tpu.matmul %4, %6, %cst_8 {dimension_numbers = #tpu.dot_dimension_numbers<[1], [0], [0], [1], [0, 0, 1, 1], [], []>} : vector<672x128xf32>, vector<128x128xf32>, vector<672x128xf32> -> vector<672x128xf32>
    %8 = arith.addf %3, %7 : vector<672x128xf32>
    %c2 = arith.constant 2 : index
    %c0_9 = arith.constant 0 : index
    %9 = vector.load %arg1[%c2, %c0_9] : memref<712x128xf32, #tpu.memory_space<vmem>>, vector<672x128xf32>
    %c2_10 = arith.constant 2 : index
    %c0_11 = arith.constant 0 : index
    %c0_12 = arith.constant 0 : index
    %10 = vector.load %arg2[%c2_10, %c0_11, %c0_12] : memref<9x128x128xf32, #tpu.memory_space<vmem>>, vector<1x128x128xf32>
    %11 = vector.shape_cast %10 : vector<1x128x128xf32> to vector<128x128xf32>
    %cst_13 = arith.constant dense<0.000000e+00> : vector<672x128xf32>
    %12 = tpu.matmul %9, %11, %cst_13 {dimension_numbers = #tpu.dot_dimension_numbers<[1], [0], [0], [1], [0, 0, 1, 1], [], []>} : vector<672x128xf32>, vector<128x128xf32>, vector<672x128xf32> -> vector<672x128xf32>
    %13 = arith.addf %8, %12 : vector<672x128xf32>
    %c18 = arith.constant 18 : index
    %c0_14 = arith.constant 0 : index
    %14 = vector.load %arg1[%c18, %c0_14] : memref<712x128xf32, #tpu.memory_space<vmem>>, vector<672x128xf32>
    %c3 = arith.constant 3 : index
    %c0_15 = arith.constant 0 : index
    %c0_16 = arith.constant 0 : index
    %15 = vector.load %arg2[%c3, %c0_15, %c0_16] : memref<9x128x128xf32, #tpu.memory_space<vmem>>, vector<1x128x128xf32>
    %16 = vector.shape_cast %15 : vector<1x128x128xf32> to vector<128x128xf32>
    %cst_17 = arith.constant dense<0.000000e+00> : vector<672x128xf32>
    %17 = tpu.matmul %14, %16, %cst_17 {dimension_numbers = #tpu.dot_dimension_numbers<[1], [0], [0], [1], [0, 0, 1, 1], [], []>} : vector<672x128xf32>, vector<128x128xf32>, vector<672x128xf32> -> vector<672x128xf32>
    %18 = arith.addf %13, %17 : vector<672x128xf32>
    %c19 = arith.constant 19 : index
    %c0_18 = arith.constant 0 : index
    %19 = vector.load %arg1[%c19, %c0_18] : memref<712x128xf32, #tpu.memory_space<vmem>>, vector<672x128xf32>
    %c4 = arith.constant 4 : index
    %c0_19 = arith.constant 0 : index
    %c0_20 = arith.constant 0 : index
    %20 = vector.load %arg2[%c4, %c0_19, %c0_20] : memref<9x128x128xf32, #tpu.memory_space<vmem>>, vector<1x128x128xf32>
    %21 = vector.shape_cast %20 : vector<1x128x128xf32> to vector<128x128xf32>
    %cst_21 = arith.constant dense<0.000000e+00> : vector<672x128xf32>
    %22 = tpu.matmul %19, %21, %cst_21 {dimension_numbers = #tpu.dot_dimension_numbers<[1], [0], [0], [1], [0, 0, 1, 1], [], []>} : vector<672x128xf32>, vector<128x128xf32>, vector<672x128xf32> -> vector<672x128xf32>
    %23 = arith.addf %18, %22 : vector<672x128xf32>
    %c20 = arith.constant 20 : index
    %c0_22 = arith.constant 0 : index
    %24 = vector.load %arg1[%c20, %c0_22] : memref<712x128xf32, #tpu.memory_space<vmem>>, vector<672x128xf32>
    %c5 = arith.constant 5 : index
    %c0_23 = arith.constant 0 : index
    %c0_24 = arith.constant 0 : index
    %25 = vector.load %arg2[%c5, %c0_23, %c0_24] : memref<9x128x128xf32, #tpu.memory_space<vmem>>, vector<1x128x128xf32>
    %26 = vector.shape_cast %25 : vector<1x128x128xf32> to vector<128x128xf32>
    %cst_25 = arith.constant dense<0.000000e+00> : vector<672x128xf32>
    %27 = tpu.matmul %24, %26, %cst_25 {dimension_numbers = #tpu.dot_dimension_numbers<[1], [0], [0], [1], [0, 0, 1, 1], [], []>} : vector<672x128xf32>, vector<128x128xf32>, vector<672x128xf32> -> vector<672x128xf32>
    %28 = arith.addf %23, %27 : vector<672x128xf32>
    %c36 = arith.constant 36 : index
    %c0_26 = arith.constant 0 : index
    %29 = vector.load %arg1[%c36, %c0_26] : memref<712x128xf32, #tpu.memory_space<vmem>>, vector<672x128xf32>
    %c6 = arith.constant 6 : index
    %c0_27 = arith.constant 0 : index
    %c0_28 = arith.constant 0 : index
    %30 = vector.load %arg2[%c6, %c0_27, %c0_28] : memref<9x128x128xf32, #tpu.memory_space<vmem>>, vector<1x128x128xf32>
    %31 = vector.shape_cast %30 : vector<1x128x128xf32> to vector<128x128xf32>
    %cst_29 = arith.constant dense<0.000000e+00> : vector<672x128xf32>
    %32 = tpu.matmul %29, %31, %cst_29 {dimension_numbers = #tpu.dot_dimension_numbers<[1], [0], [0], [1], [0, 0, 1, 1], [], []>} : vector<672x128xf32>, vector<128x128xf32>, vector<672x128xf32> -> vector<672x128xf32>
    %33 = arith.addf %28, %32 : vector<672x128xf32>
    %c37 = arith.constant 37 : index
    %c0_30 = arith.constant 0 : index
    %34 = vector.load %arg1[%c37, %c0_30] : memref<712x128xf32, #tpu.memory_space<vmem>>, vector<672x128xf32>
    %c7 = arith.constant 7 : index
    %c0_31 = arith.constant 0 : index
    %c0_32 = arith.constant 0 : index
    %35 = vector.load %arg2[%c7, %c0_31, %c0_32] : memref<9x128x128xf32, #tpu.memory_space<vmem>>, vector<1x128x128xf32>
    %36 = vector.shape_cast %35 : vector<1x128x128xf32> to vector<128x128xf32>
    %cst_33 = arith.constant dense<0.000000e+00> : vector<672x128xf32>
    %37 = tpu.matmul %34, %36, %cst_33 {dimension_numbers = #tpu.dot_dimension_numbers<[1], [0], [0], [1], [0, 0, 1, 1], [], []>} : vector<672x128xf32>, vector<128x128xf32>, vector<672x128xf32> -> vector<672x128xf32>
    %38 = arith.addf %33, %37 : vector<672x128xf32>
    %c38 = arith.constant 38 : index
    %c0_34 = arith.constant 0 : index
    %39 = vector.load %arg1[%c38, %c0_34] : memref<712x128xf32, #tpu.memory_space<vmem>>, vector<672x128xf32>
    %c8 = arith.constant 8 : index
    %c0_35 = arith.constant 0 : index
    %c0_36 = arith.constant 0 : index
    %40 = vector.load %arg2[%c8, %c0_35, %c0_36] : memref<9x128x128xf32, #tpu.memory_space<vmem>>, vector<1x128x128xf32>
    %41 = vector.shape_cast %40 : vector<1x128x128xf32> to vector<128x128xf32>
    %cst_37 = arith.constant dense<0.000000e+00> : vector<672x128xf32>
    %42 = tpu.matmul %39, %41, %cst_37 {dimension_numbers = #tpu.dot_dimension_numbers<[1], [0], [0], [1], [0, 0, 1, 1], [], []>} : vector<672x128xf32>, vector<128x128xf32>, vector<672x128xf32> -> vector<672x128xf32>
    %43 = arith.addf %38, %42 : vector<672x128xf32>
    %c0_38 = arith.constant 0 : index
    %c0_39 = arith.constant 0 : index
    %44 = vector.load %arg3[%c0_38, %c0_39] : memref<1x128xf32, #tpu.memory_space<vmem>>, vector<1x128xf32>
    %45 = vector.broadcast %44 : vector<1x128xf32> to vector<672x128xf32>
    %46 = arith.addf %43, %45 : vector<672x128xf32>
    %cst_40 = arith.constant 0.000000e+00 : f32
    %47 = vector.broadcast %cst_40 : f32 to vector<672x128xf32>
    %48 = arith.maximumf %46, %47 : vector<672x128xf32>
    %c0_41 = arith.constant 0 : index
    %c0_42 = arith.constant 0 : index
    %49 = vector.load %arg5[%c0_41, %c0_42] : memref<672x128xf32, #tpu.memory_space<vmem>>, vector<672x128xf32>
    tpu.vector_store %arg5[%c0_41, %c0_42], %48 {strides = array<i32>} : memref<672x128xf32, #tpu.memory_space<vmem>>, vector<672x128xf32>,
    %c0_43 = arith.constant 0 : index
    %c0_44 = arith.constant 0 : index
    %50 = vector.load %arg5[%c0_43, %c0_44] : memref<672x128xf32, #tpu.memory_space<vmem>>, vector<648x128xf32>
    %c1_45 = arith.constant 1 : index
    %c0_46 = arith.constant 0 : index
    %51 = vector.load %arg5[%c1_45, %c0_46] : memref<672x128xf32, #tpu.memory_space<vmem>>, vector<648x128xf32>
    %52 = arith.maximumf %50, %51 : vector<648x128xf32>
    %c18_47 = arith.constant 18 : index
    %c0_48 = arith.constant 0 : index
    %53 = vector.load %arg5[%c18_47, %c0_48] : memref<672x128xf32, #tpu.memory_space<vmem>>, vector<648x128xf32>
    %c19_49 = arith.constant 19 : index
    %c0_50 = arith.constant 0 : index
    %54 = vector.load %arg5[%c19_49, %c0_50] : memref<672x128xf32, #tpu.memory_space<vmem>>, vector<648x128xf32>
    %55 = arith.maximumf %53, %54 : vector<648x128xf32>
    %56 = arith.maximumf %52, %55 : vector<648x128xf32>
    %c0_51 = arith.constant 0 : index
    %c0_52 = arith.constant 0 : index
    %57 = vector.load %arg4[%c0_51, %c0_52] : memref<648x128xf32, #tpu.memory_space<vmem>>, vector<648x128xf32>
    tpu.vector_store %arg4[%c0_51, %c0_52], %56 {strides = array<i32>} : memref<648x128xf32, #tpu.memory_space<vmem>>, vector<648x128xf32>,
    return
  }
  func.func @transform_0(%arg0: i32) -> (i32, i32) {
    %c0_i32 = arith.constant 0 : i32
    %c0_i32_0 = arith.constant 0 : i32
    %c0_i32_1 = arith.constant 0 : i32
    return %c0_i32, %c0_i32_0 : i32, i32
  }
  func.func @transform_1(%arg0: i32) -> (i32, i32, i32) {
    %c0_i32 = arith.constant 0 : i32
    %c0_i32_0 = arith.constant 0 : i32
    %c0_i32_1 = arith.constant 0 : i32
    %c0_i32_2 = arith.constant 0 : i32
    return %c0_i32, %c0_i32_0, %c0_i32_1 : i32, i32, i32
  }
  func.func @transform_2(%arg0: i32) -> (i32, i32) {
    %c0_i32 = arith.constant 0 : i32
    %c0_i32_0 = arith.constant 0 : i32
    %c0_i32_1 = arith.constant 0 : i32
    return %c0_i32, %c0_i32_0 : i32, i32
  }
  func.func @transform_3(%arg0: i32) -> (i32, i32) {
    %c0_i32 = arith.constant 0 : i32
    %c0_i32_0 = arith.constant 0 : i32
    %c0_i32_1 = arith.constant 0 : i32
    return %c0_i32, %c0_i32_0 : i32, i32
  }
}

module attributes {stable_mosaic.version = 11 : i64} {
  func.func @adaptive_block_kernel(%arg0: i32, %arg1: memref<240x128xf32, #tpu.memory_space<vmem>>, %arg2: memref<9x128x128xf32, #tpu.memory_space<vmem>>, %arg3: memref<1x128xf32, #tpu.memory_space<vmem>>, %arg4: memref<200x128xf32, #tpu.memory_space<vmem>>, %arg5: memref<216x128xf32, #tpu.memory_space<vmem>>) attributes {dimension_semantics = [#tpu.dimension_semantics<arbitrary>], iteration_bounds = array<i64: 1>, scalar_prefetch = 0 : i64, scratch_operands = 1 : i64, tpu.core_type = #tpu.core_type<tc>, window_params = [{pipeline_mode = #tpu.pipeline_mode<synchronous>, transform_indices = @transform_0, window_bounds = array<i64: 240, 128>}, {pipeline_mode = #tpu.pipeline_mode<synchronous>, transform_indices = @transform_1, window_bounds = array<i64: 9, 128, 128>}, {pipeline_mode = #tpu.pipeline_mode<synchronous>, transform_indices = @transform_2, window_bounds = array<i64: 1, 128>}, {pipeline_mode = #tpu.pipeline_mode<synchronous>, transform_indices = @transform_3, window_bounds = array<i64: 200, 128>}]} {
    %c0 = arith.constant 0 : index
    %c0_0 = arith.constant 0 : index
    %0 = vector.load %arg1[%c0, %c0_0] : memref<240x128xf32, #tpu.memory_space<vmem>>, vector<216x128xf32>
    %c0_1 = arith.constant 0 : index
    %c0_2 = arith.constant 0 : index
    %c0_3 = arith.constant 0 : index
    %1 = vector.load %arg2[%c0_1, %c0_2, %c0_3] : memref<9x128x128xf32, #tpu.memory_space<vmem>>, vector<1x128x128xf32>
    %2 = vector.shape_cast %1 : vector<1x128x128xf32> to vector<128x128xf32>
    %cst = arith.constant dense<0.000000e+00> : vector<216x128xf32>
    %3 = tpu.matmul %0, %2, %cst {dimension_numbers = #tpu.dot_dimension_numbers<[1], [0], [0], [1], [0, 0, 1, 1], [], []>} : vector<216x128xf32>, vector<128x128xf32>, vector<216x128xf32> -> vector<216x128xf32>
    %c1 = arith.constant 1 : index
    %c0_4 = arith.constant 0 : index
    %4 = vector.load %arg1[%c1, %c0_4] : memref<240x128xf32, #tpu.memory_space<vmem>>, vector<216x128xf32>
    %c1_5 = arith.constant 1 : index
    %c0_6 = arith.constant 0 : index
    %c0_7 = arith.constant 0 : index
    %5 = vector.load %arg2[%c1_5, %c0_6, %c0_7] : memref<9x128x128xf32, #tpu.memory_space<vmem>>, vector<1x128x128xf32>
    %6 = vector.shape_cast %5 : vector<1x128x128xf32> to vector<128x128xf32>
    %cst_8 = arith.constant dense<0.000000e+00> : vector<216x128xf32>
    %7 = tpu.matmul %4, %6, %cst_8 {dimension_numbers = #tpu.dot_dimension_numbers<[1], [0], [0], [1], [0, 0, 1, 1], [], []>} : vector<216x128xf32>, vector<128x128xf32>, vector<216x128xf32> -> vector<216x128xf32>
    %8 = arith.addf %3, %7 : vector<216x128xf32>
    %c2 = arith.constant 2 : index
    %c0_9 = arith.constant 0 : index
    %9 = vector.load %arg1[%c2, %c0_9] : memref<240x128xf32, #tpu.memory_space<vmem>>, vector<216x128xf32>
    %c2_10 = arith.constant 2 : index
    %c0_11 = arith.constant 0 : index
    %c0_12 = arith.constant 0 : index
    %10 = vector.load %arg2[%c2_10, %c0_11, %c0_12] : memref<9x128x128xf32, #tpu.memory_space<vmem>>, vector<1x128x128xf32>
    %11 = vector.shape_cast %10 : vector<1x128x128xf32> to vector<128x128xf32>
    %cst_13 = arith.constant dense<0.000000e+00> : vector<216x128xf32>
    %12 = tpu.matmul %9, %11, %cst_13 {dimension_numbers = #tpu.dot_dimension_numbers<[1], [0], [0], [1], [0, 0, 1, 1], [], []>} : vector<216x128xf32>, vector<128x128xf32>, vector<216x128xf32> -> vector<216x128xf32>
    %13 = arith.addf %8, %12 : vector<216x128xf32>
    %c10 = arith.constant 10 : index
    %c0_14 = arith.constant 0 : index
    %14 = vector.load %arg1[%c10, %c0_14] : memref<240x128xf32, #tpu.memory_space<vmem>>, vector<216x128xf32>
    %c3 = arith.constant 3 : index
    %c0_15 = arith.constant 0 : index
    %c0_16 = arith.constant 0 : index
    %15 = vector.load %arg2[%c3, %c0_15, %c0_16] : memref<9x128x128xf32, #tpu.memory_space<vmem>>, vector<1x128x128xf32>
    %16 = vector.shape_cast %15 : vector<1x128x128xf32> to vector<128x128xf32>
    %cst_17 = arith.constant dense<0.000000e+00> : vector<216x128xf32>
    %17 = tpu.matmul %14, %16, %cst_17 {dimension_numbers = #tpu.dot_dimension_numbers<[1], [0], [0], [1], [0, 0, 1, 1], [], []>} : vector<216x128xf32>, vector<128x128xf32>, vector<216x128xf32> -> vector<216x128xf32>
    %18 = arith.addf %13, %17 : vector<216x128xf32>
    %c11 = arith.constant 11 : index
    %c0_18 = arith.constant 0 : index
    %19 = vector.load %arg1[%c11, %c0_18] : memref<240x128xf32, #tpu.memory_space<vmem>>, vector<216x128xf32>
    %c4 = arith.constant 4 : index
    %c0_19 = arith.constant 0 : index
    %c0_20 = arith.constant 0 : index
    %20 = vector.load %arg2[%c4, %c0_19, %c0_20] : memref<9x128x128xf32, #tpu.memory_space<vmem>>, vector<1x128x128xf32>
    %21 = vector.shape_cast %20 : vector<1x128x128xf32> to vector<128x128xf32>
    %cst_21 = arith.constant dense<0.000000e+00> : vector<216x128xf32>
    %22 = tpu.matmul %19, %21, %cst_21 {dimension_numbers = #tpu.dot_dimension_numbers<[1], [0], [0], [1], [0, 0, 1, 1], [], []>} : vector<216x128xf32>, vector<128x128xf32>, vector<216x128xf32> -> vector<216x128xf32>
    %23 = arith.addf %18, %22 : vector<216x128xf32>
    %c12 = arith.constant 12 : index
    %c0_22 = arith.constant 0 : index
    %24 = vector.load %arg1[%c12, %c0_22] : memref<240x128xf32, #tpu.memory_space<vmem>>, vector<216x128xf32>
    %c5 = arith.constant 5 : index
    %c0_23 = arith.constant 0 : index
    %c0_24 = arith.constant 0 : index
    %25 = vector.load %arg2[%c5, %c0_23, %c0_24] : memref<9x128x128xf32, #tpu.memory_space<vmem>>, vector<1x128x128xf32>
    %26 = vector.shape_cast %25 : vector<1x128x128xf32> to vector<128x128xf32>
    %cst_25 = arith.constant dense<0.000000e+00> : vector<216x128xf32>
    %27 = tpu.matmul %24, %26, %cst_25 {dimension_numbers = #tpu.dot_dimension_numbers<[1], [0], [0], [1], [0, 0, 1, 1], [], []>} : vector<216x128xf32>, vector<128x128xf32>, vector<216x128xf32> -> vector<216x128xf32>
    %28 = arith.addf %23, %27 : vector<216x128xf32>
    %c20 = arith.constant 20 : index
    %c0_26 = arith.constant 0 : index
    %29 = vector.load %arg1[%c20, %c0_26] : memref<240x128xf32, #tpu.memory_space<vmem>>, vector<216x128xf32>
    %c6 = arith.constant 6 : index
    %c0_27 = arith.constant 0 : index
    %c0_28 = arith.constant 0 : index
    %30 = vector.load %arg2[%c6, %c0_27, %c0_28] : memref<9x128x128xf32, #tpu.memory_space<vmem>>, vector<1x128x128xf32>
    %31 = vector.shape_cast %30 : vector<1x128x128xf32> to vector<128x128xf32>
    %cst_29 = arith.constant dense<0.000000e+00> : vector<216x128xf32>
    %32 = tpu.matmul %29, %31, %cst_29 {dimension_numbers = #tpu.dot_dimension_numbers<[1], [0], [0], [1], [0, 0, 1, 1], [], []>} : vector<216x128xf32>, vector<128x128xf32>, vector<216x128xf32> -> vector<216x128xf32>
    %33 = arith.addf %28, %32 : vector<216x128xf32>
    %c21 = arith.constant 21 : index
    %c0_30 = arith.constant 0 : index
    %34 = vector.load %arg1[%c21, %c0_30] : memref<240x128xf32, #tpu.memory_space<vmem>>, vector<216x128xf32>
    %c7 = arith.constant 7 : index
    %c0_31 = arith.constant 0 : index
    %c0_32 = arith.constant 0 : index
    %35 = vector.load %arg2[%c7, %c0_31, %c0_32] : memref<9x128x128xf32, #tpu.memory_space<vmem>>, vector<1x128x128xf32>
    %36 = vector.shape_cast %35 : vector<1x128x128xf32> to vector<128x128xf32>
    %cst_33 = arith.constant dense<0.000000e+00> : vector<216x128xf32>
    %37 = tpu.matmul %34, %36, %cst_33 {dimension_numbers = #tpu.dot_dimension_numbers<[1], [0], [0], [1], [0, 0, 1, 1], [], []>} : vector<216x128xf32>, vector<128x128xf32>, vector<216x128xf32> -> vector<216x128xf32>
    %38 = arith.addf %33, %37 : vector<216x128xf32>
    %c22 = arith.constant 22 : index
    %c0_34 = arith.constant 0 : index
    %39 = vector.load %arg1[%c22, %c0_34] : memref<240x128xf32, #tpu.memory_space<vmem>>, vector<216x128xf32>
    %c8 = arith.constant 8 : index
    %c0_35 = arith.constant 0 : index
    %c0_36 = arith.constant 0 : index
    %40 = vector.load %arg2[%c8, %c0_35, %c0_36] : memref<9x128x128xf32, #tpu.memory_space<vmem>>, vector<1x128x128xf32>
    %41 = vector.shape_cast %40 : vector<1x128x128xf32> to vector<128x128xf32>
    %cst_37 = arith.constant dense<0.000000e+00> : vector<216x128xf32>
    %42 = tpu.matmul %39, %41, %cst_37 {dimension_numbers = #tpu.dot_dimension_numbers<[1], [0], [0], [1], [0, 0, 1, 1], [], []>} : vector<216x128xf32>, vector<128x128xf32>, vector<216x128xf32> -> vector<216x128xf32>
    %43 = arith.addf %38, %42 : vector<216x128xf32>
    %c0_38 = arith.constant 0 : index
    %c0_39 = arith.constant 0 : index
    %44 = vector.load %arg3[%c0_38, %c0_39] : memref<1x128xf32, #tpu.memory_space<vmem>>, vector<1x128xf32>
    %45 = vector.broadcast %44 : vector<1x128xf32> to vector<216x128xf32>
    %46 = arith.addf %43, %45 : vector<216x128xf32>
    %cst_40 = arith.constant 0.000000e+00 : f32
    %47 = vector.broadcast %cst_40 : f32 to vector<216x128xf32>
    %48 = arith.maximumf %46, %47 : vector<216x128xf32>
    %c0_41 = arith.constant 0 : index
    %c0_42 = arith.constant 0 : index
    %49 = vector.load %arg5[%c0_41, %c0_42] : memref<216x128xf32, #tpu.memory_space<vmem>>, vector<216x128xf32>
    tpu.vector_store %arg5[%c0_41, %c0_42], %48 {strides = array<i32>} : memref<216x128xf32, #tpu.memory_space<vmem>>, vector<216x128xf32>,
    %c0_43 = arith.constant 0 : index
    %c0_44 = arith.constant 0 : index
    %50 = vector.load %arg5[%c0_43, %c0_44] : memref<216x128xf32, #tpu.memory_space<vmem>>, vector<200x128xf32>
    %c1_45 = arith.constant 1 : index
    %c0_46 = arith.constant 0 : index
    %51 = vector.load %arg5[%c1_45, %c0_46] : memref<216x128xf32, #tpu.memory_space<vmem>>, vector<200x128xf32>
    %52 = arith.maximumf %50, %51 : vector<200x128xf32>
    %c10_47 = arith.constant 10 : index
    %c0_48 = arith.constant 0 : index
    %53 = vector.load %arg5[%c10_47, %c0_48] : memref<216x128xf32, #tpu.memory_space<vmem>>, vector<200x128xf32>
    %c11_49 = arith.constant 11 : index
    %c0_50 = arith.constant 0 : index
    %54 = vector.load %arg5[%c11_49, %c0_50] : memref<216x128xf32, #tpu.memory_space<vmem>>, vector<200x128xf32>
    %55 = arith.maximumf %53, %54 : vector<200x128xf32>
    %56 = arith.maximumf %52, %55 : vector<200x128xf32>
    %c0_51 = arith.constant 0 : index
    %c0_52 = arith.constant 0 : index
    %57 = vector.load %arg4[%c0_51, %c0_52] : memref<200x128xf32, #tpu.memory_space<vmem>>, vector<200x128xf32>
    tpu.vector_store %arg4[%c0_51, %c0_52], %56 {strides = array<i32>} : memref<200x128xf32, #tpu.memory_space<vmem>>, vector<200x128xf32>,
    return
  }
  func.func @transform_0(%arg0: i32) -> (i32, i32) {
    %c0_i32 = arith.constant 0 : i32
    %c0_i32_0 = arith.constant 0 : i32
    %c0_i32_1 = arith.constant 0 : i32
    return %c0_i32, %c0_i32_0 : i32, i32
  }
  func.func @transform_1(%arg0: i32) -> (i32, i32, i32) {
    %c0_i32 = arith.constant 0 : i32
    %c0_i32_0 = arith.constant 0 : i32
    %c0_i32_1 = arith.constant 0 : i32
    %c0_i32_2 = arith.constant 0 : i32
    return %c0_i32, %c0_i32_0, %c0_i32_1 : i32, i32, i32
  }
  func.func @transform_2(%arg0: i32) -> (i32, i32) {
    %c0_i32 = arith.constant 0 : i32
    %c0_i32_0 = arith.constant 0 : i32
    %c0_i32_1 = arith.constant 0 : i32
    return %c0_i32, %c0_i32_0 : i32, i32
  }
  func.func @transform_3(%arg0: i32) -> (i32, i32) {
    %c0_i32 = arith.constant 0 : i32
    %c0_i32_0 = arith.constant 0 : i32
    %c0_i32_1 = arith.constant 0 : i32
    return %c0_i32, %c0_i32_0 : i32, i32
  }
}

module attributes {stable_mosaic.version = 11 : i64} {
  func.func @classifier_kernel(%arg0: i32, %arg1: memref<32x128xf32, #tpu.memory_space<vmem>>, %arg2: memref<2x32xf32, #tpu.memory_space<vmem>>, %arg3: memref<128x128xf32, #tpu.memory_space<vmem>>, %arg4: memref<1x128xf32, #tpu.memory_space<vmem>>, %arg5: memref<2x128xf32, #tpu.memory_space<vmem>>) attributes {dimension_semantics = [#tpu.dimension_semantics<arbitrary>], iteration_bounds = array<i64: 1>, scalar_prefetch = 0 : i64, scratch_operands = 0 : i64, tpu.core_type = #tpu.core_type<tc>, window_params = [{pipeline_mode = #tpu.pipeline_mode<synchronous>, transform_indices = @transform_0, window_bounds = array<i64: 32, 128>}, {pipeline_mode = #tpu.pipeline_mode<synchronous>, transform_indices = @transform_1, window_bounds = array<i64: 2, 32>}, {pipeline_mode = #tpu.pipeline_mode<synchronous>, transform_indices = @transform_2, window_bounds = array<i64: 128, 128>}, {pipeline_mode = #tpu.pipeline_mode<synchronous>, transform_indices = @transform_3, window_bounds = array<i64: 1, 128>}, {pipeline_mode = #tpu.pipeline_mode<synchronous>, transform_indices = @transform_4, window_bounds = array<i64: 2, 128>}]} {
    %c0 = arith.constant 0 : index
    %c0_0 = arith.constant 0 : index
    %0 = vector.load %arg2[%c0, %c0_0] : memref<2x32xf32, #tpu.memory_space<vmem>>, vector<2x32xf32>
    %c0_1 = arith.constant 0 : index
    %c0_2 = arith.constant 0 : index
    %1 = vector.load %arg1[%c0_1, %c0_2] : memref<32x128xf32, #tpu.memory_space<vmem>>, vector<32x128xf32>
    %cst = arith.constant dense<0.000000e+00> : vector<2x128xf32>
    %2 = tpu.matmul %0, %1, %cst {dimension_numbers = #tpu.dot_dimension_numbers<[1], [0], [0], [1], [0, 0, 1, 1], [], []>} : vector<2x32xf32>, vector<32x128xf32>, vector<2x128xf32> -> vector<2x128xf32>
    %c0_3 = arith.constant 0 : index
    %c0_4 = arith.constant 0 : index
    %3 = vector.load %arg3[%c0_3, %c0_4] : memref<128x128xf32, #tpu.memory_space<vmem>>, vector<128x128xf32>
    %cst_5 = arith.constant dense<0.000000e+00> : vector<2x128xf32>
    %4 = tpu.matmul %2, %3, %cst_5 {dimension_numbers = #tpu.dot_dimension_numbers<[1], [0], [0], [1], [0, 0, 1, 1], [], []>} : vector<2x128xf32>, vector<128x128xf32>, vector<2x128xf32> -> vector<2x128xf32>
    %c0_6 = arith.constant 0 : index
    %c0_7 = arith.constant 0 : index
    %5 = vector.load %arg4[%c0_6, %c0_7] : memref<1x128xf32, #tpu.memory_space<vmem>>, vector<1x128xf32>
    %6 = vector.broadcast %5 : vector<1x128xf32> to vector<2x128xf32>
    %7 = arith.addf %4, %6 : vector<2x128xf32>
    %c0_8 = arith.constant 0 : index
    %c0_9 = arith.constant 0 : index
    %8 = vector.load %arg5[%c0_8, %c0_9] : memref<2x128xf32, #tpu.memory_space<vmem>>, vector<2x128xf32>
    tpu.vector_store %arg5[%c0_8, %c0_9], %7 {strides = array<i32>} : memref<2x128xf32, #tpu.memory_space<vmem>>, vector<2x128xf32>,
    return
  }
  func.func @transform_0(%arg0: i32) -> (i32, i32) {
    %c0_i32 = arith.constant 0 : i32
    %c0_i32_0 = arith.constant 0 : i32
    %c0_i32_1 = arith.constant 0 : i32
    return %c0_i32, %c0_i32_0 : i32, i32
  }
  func.func @transform_1(%arg0: i32) -> (i32, i32) {
    %c0_i32 = arith.constant 0 : i32
    %c0_i32_0 = arith.constant 0 : i32
    %c0_i32_1 = arith.constant 0 : i32
    return %c0_i32, %c0_i32_0 : i32, i32
  }
  func.func @transform_2(%arg0: i32) -> (i32, i32) {
    %c0_i32 = arith.constant 0 : i32
    %c0_i32_0 = arith.constant 0 : i32
    %c0_i32_1 = arith.constant 0 : i32
    return %c0_i32, %c0_i32_0 : i32, i32
  }
  func.func @transform_3(%arg0: i32) -> (i32, i32) {
    %c0_i32 = arith.constant 0 : i32
    %c0_i32_0 = arith.constant 0 : i32
    %c0_i32_1 = arith.constant 0 : i32
    return %c0_i32, %c0_i32_0 : i32, i32
  }
  func.func @transform_4(%arg0: i32) -> (i32, i32) {
    %c0_i32 = arith.constant 0 : i32
    %c0_i32_0 = arith.constant 0 : i32
    %c0_i32_1 = arith.constant 0 : i32
    return %c0_i32, %c0_i32_0 : i32, i32
  }
}

</mosaic_0001>

<bundles_post_ra>
// kernel: forward.5
= control target key start
LH: loop header
LB: loop body
LE: loop exit
PB: predicated region body
PF: predicated region fallthrough
CT: control target
= control target key end

     0   :  { %vm23_vm0 = vcmask 261120   ;;  %s228_s0 = inlined_call_operand.vmem [shape: f32[32,128], index: 0, kind: input, shape index: {}]   ;;  %s229_s1 = inlined_call_operand.vmem [shape: f32[2,32], index: 1, kind: input, shape index: {}]   ;;  %s230_s2 = inlined_call_operand.vmem [shape: f32[128,128], index: 2, kind: input, shape index: {}]   ;;  %s231_s3 = inlined_call_operand.vmem [shape: f32[1,128], index: 3, kind: input, shape index: {}]   ;;  %s232_s4 = inlined_call_operand.hbm [shape: f32[2,128], index: 4, kind: output, shape index: {}]  }
   0x1   :  { %v22_v0 = vld [vmem:[%s228_s0 + $0x18] sm:$0xff]  ;;  %v21_v1 = vld [vmem:[%s228_s0 + $0x10] sm:$0xff]  ;;  %v20_v3 = vld [vmem:[%s228_s0 + $0x8] sm:$0xff] }
   0x2   :  { %39 = vmatpush.msra.mxu0 %v22_v0  ;;  %v62_v2 = vld [vmem:[%s230_s2 + $0x78] sm:$0xff]  ;;  %v61_v4 = vld [vmem:[%s230_s2 + $0x70] sm:$0xff]  ;;  %v60_v5 = vld [vmem:[%s230_s2 + $0x68] sm:$0xff] }
   0x3   :  { %67 = vmatpush.msra.mxu1 %v62_v2  ;;  %v19_v6 = vld [vmem:[%s228_s0] sm:$0xff]  ;;  %v58_v9 = vld [vmem:[%s230_s2 + $0x58] sm:$0xff] }
   0x4   :  { %40 = vmatpush.msra.mxu0 %v21_v1  ;;  %v18_v7 = vld [vmem:[%s229_s1] sm:$0x3] }
   0x5   :  { %68 = vmatpush.msra.mxu1 %v61_v4  ;;  %v59_v8 = vld [vmem:[%s230_s2 + $0x60] sm:$0xff] }
   0x6   :  { %41 = vmatpush.msra.mxu0 %v20_v3 }
   0x7   :  { %69 = vmatpush.msra.mxu1 %v60_v5 }
   0x8   :  { %42 = vmatpush.msra.mxu0 %v19_v6 }
   0x9   :  { %9 = vsyncpa [#allocation3], 0  ;;  %104 = vmatmul.msk.f32.vlgmr.msra.gmra.mxu0 %vm23_vm0, %v18_v7  ;;  %70 = vmatpush.msra.mxu1 %v59_v8  ;;  %v57_v10 = vld [vmem:[%s230_s2 + $0x50] sm:$0xff]  ;;  %v56_v11 = vld [vmem:[%s230_s2 + $0x48] sm:$0xff]  ;;  %s133_s5 = smov [#allocation2]   ;;  %s95_s0 = sshll.u32 %s232_s4, 4  ;;  %s96_s0 = int_to_ptr.hbm [resolvable:$true] %s95_s0 }
   0xa   :  { %v55_v12 = vld [vmem:[%s230_s2 + $0x40] sm:$0xff]  ;;  %v54_v13 = vld [vmem:[%s230_s2 + $0x38] sm:$0xff]  ;;  %v53_v14 = vld [vmem:[%s230_s2 + $0x30] sm:$0xff]  ;;  %s93_s6 = sshll.u32 %s133_s5, 4  ;;  %s94_s6 = int_to_ptr.vmem [resolvable:$true] %s93_s6 }
   0xb   :  { %71 = vmatpush.msra.mxu1 %v58_v9  ;;  %v52_v15 = vld [vmem:[%s230_s2 + $0x28] sm:$0xff]  ;;  %v51_v16 = vld [vmem:[%s230_s2 + $0x20] sm:$0xff]  ;;  %v50_v17 = vld [vmem:[%s230_s2 + $0x18] sm:$0xff] }
   0xc   :  { %v49_v18 = vld [vmem:[%s230_s2 + $0x10] sm:$0xff]  ;;  %v48_v19 = vld [vmem:[%s230_s2 + $0x8] sm:$0xff]  ;;  %v47_v20 = vld [vmem:[%s230_s2] sm:$0xff] }
   0xd   :  { %72 = vmatpush.msra.mxu1 %v57_v10  ;;  %v106_v22 = vld [vmem:[%s231_s3] ss:$0 sm:$0xff] }
   0xf   :  { %73 = vmatpush.msra.mxu1 %v56_v11 }
  0x11   :  { %74 = vmatpush.msra.mxu1 %v55_v12 }
  0x13   :  { %75 = vmatpush.msra.mxu1 %v54_v13 }
  0x15   :  { %76 = vmatpush.msra.mxu1 %v53_v14 }
  0x17   :  { %77 = vmatpush.msra.mxu1 %v52_v15 }
  0x19   :  { %78 = vmatpush.msra.mxu1 %v51_v16 }
  0x1b   :  { %79 = vmatpush.msra.mxu1 %v50_v17 }
  0x1d   :  { %80 = vmatpush.msra.mxu1 %v49_v18 }
  0x1f   :  { %81 = vmatpush.msra.mxu1 %v48_v19 }
  0x21   :  { %82 = vmatpush.msra.mxu1 %v47_v20 }
  0x86   :  { %v44_v21 = vpop.f32.mrf.mxu0 }
  0x87   :  { %83 = vmatmul.f32.vlgmr.msra.gmra.mxu1 %v44_v21 }
 0x104   :  { %v84_v23 = vpop.f32.mrf.mxu1 }
 0x105   :  { %v85_v24 = vadd.f32 %v106_v22, %v84_v23 }
 0x107   :  { %87 = vst [vmem:[#allocation2] sm:$0x3] %v85_v24 }
 0x108   :  { %98 = dma.vmem_to_hbm [thread:$0]  %s94_s6, 32, %s96_s0, [#allocation3]  }
 0x109   :  { %131 = dma.done.wait [#allocation3], 32  }
 0x10a   :  { %132 = vsyncadd [#allocation3], 4294967264 }
 0x10b   :  { %103 = vsyncpa [#allocation3], 1 }

// kernel: forward.4
= control target key start
LH: loop header
LB: loop body
LE: loop exit
PB: predicated region body
PF: predicated region fallthrough
CT: control target
= control target key end

     0   :  { %s3342_s1 = inlined_call_operand.vmem [shape: f32[9,128,128], index: 1, kind: input, shape index: {}]   ;;  %s3343_s0 = inlined_call_operand.vmem [shape: f32[240,128], index: 0, kind: input, shape index: {}]   ;;  %s3344_s2 = inlined_call_operand.vmem [shape: f32[1,128], index: 2, kind: input, shape index: {}]   ;;  %s3345_s3 = inlined_call_operand.vmem [shape: f32[200,128], index: 3, kind: output, shape index: {}]  }
   0x1   :  { %v1784_v0 = vld [vmem:[%s3342_s1 + $0xf8] sm:$0xff]  ;;  %v1783_v1 = vld [vmem:[%s3342_s1 + $0xf0] sm:$0xff]  ;;  %v1782_v2 = vld [vmem:[%s3342_s1 + $0xe8] sm:$0xff] }
   0x2   :  { %1897 = vmatpush.msra.mxu1 %v1784_v0  ;;  %1898 = vmatpush.msra.mxu2 %v1784_v0  ;;  %v1781_v3 = vld [vmem:[%s3342_s1 + $0xe0] sm:$0xff]  ;;  %v1780_v4 = vld [vmem:[%s3342_s1 + $0xd8] sm:$0xff]  ;;  %v1779_v5 = vld [vmem:[%s3342_s1 + $0xd0] sm:$0xff] }
   0x3   :  { %101 = vmatpush.msra.mxu0 %v1784_v0  ;;  %1899 = vmatpush.msra.mxu3 %v1784_v0  ;;  %v1778_v6 = vld [vmem:[%s3342_s1 + $0xc8] sm:$0xff]  ;;  %v1777_v7 = vld [vmem:[%s3342_s1 + $0xc0] sm:$0xff]  ;;  %v1776_v8 = vld [vmem:[%s3342_s1 + $0xb8] sm:$0xff] }
   0x4   :  { %1900 = vmatpush.msra.mxu1 %v1783_v1  ;;  %1901 = vmatpush.msra.mxu2 %v1783_v1  ;;  %v1775_v9 = vld [vmem:[%s3342_s1 + $0xb0] sm:$0xff]  ;;  %v1774_v10 = vld [vmem:[%s3342_s1 + $0xa8] sm:$0xff]  ;;  %v1773_v11 = vld [vmem:[%s3342_s1 + $0xa0] sm:$0xff] }
   0x5   :  { %102 = vmatpush.msra.mxu0 %v1783_v1  ;;  %1902 = vmatpush.msra.mxu3 %v1783_v1  ;;  %v1772_v12 = vld [vmem:[%s3342_s1 + $0x98] sm:$0xff]  ;;  %v1771_v13 = vld [vmem:[%s3342_s1 + $0x90] sm:$0xff]  ;;  %v1770_v14 = vld [vmem:[%s3342_s1 + $0x88] sm:$0xff] }
   0x6   :  { %1903 = vmatpush.msra.mxu1 %v1782_v2  ;;  %1904 = vmatpush.msra.mxu2 %v1782_v2  ;;  %v1769_v15 = vld [vmem:[%s3342_s1 + $0x80] sm:$0xff]  ;;  %v71_v17 = vld [vmem:[%s3343_s0 + $0x71] sm:$0xff]  ;;  %v78_v23 = vld [vmem:[%s3343_s0 + $0xa9] sm:$0xff] }
   0x7   :  { %103 = vmatpush.msra.mxu0 %v1782_v2  ;;  %1905 = vmatpush.msra.mxu3 %v1782_v2  ;;  %v64_v16 = vld [vmem:[%s3343_s0 + $0x39] sm:$0xff]  ;;  %v1799_v20 = vld [vmem:[%s3342_s1 + $0x170] sm:$0xff]  ;;  %v57_v22 = vld [vmem:[%s3343_s0 + $0x1] sm:$0xff] }
   0x8   :  { %1906 = vmatpush.msra.mxu1 %v1781_v3  ;;  %1907 = vmatpush.msra.mxu2 %v1781_v3  ;;  %v1800_v18 = vld [vmem:[%s3342_s1 + $0x178] sm:$0xff]  ;;  %v55_v21 = vld [vmem:[%s3342_s1 + $0x70] sm:$0xff]  ;;  %v1798_v24 = vld [vmem:[%s3342_s1 + $0x168] sm:$0xff] }
   0x9   :  { %104 = vmatpush.msra.mxu0 %v1781_v3  ;;  %1908 = vmatpush.msra.mxu3 %v1781_v3  ;;  %v56_v19 = vld [vmem:[%s3342_s1 + $0x78] sm:$0xff]  ;;  %v54_v27 = vld [vmem:[%s3342_s1 + $0x68] sm:$0xff]  ;;  %v1797_v28 = vld [vmem:[%s3342_s1 + $0x160] sm:$0xff] }
   0xa   :  { %1909 = vmatpush.msra.mxu1 %v1780_v4  ;;  %1910 = vmatpush.msra.mxu2 %v1780_v4  ;;  %v1816_v25 = vld [vmem:[%s3342_s1 + $0x1f8] sm:$0xff]  ;;  %v1815_v29 = vld [vmem:[%s3342_s1 + $0x1f0] sm:$0xff]  ;;  %v65_v30 = vld [vmem:[%s3343_s0 + $0x41] sm:$0xff] }
   0xb   :  { %105 = vmatpush.msra.mxu0 %v1780_v4  ;;  %1911 = vmatpush.msra.mxu3 %v1780_v4  ;;  %v1832_v26 = vld [vmem:[%s3342_s1 + $0x278] sm:$0xff]  ;;  %v1831_v33 = vld [vmem:[%s3342_s1 + $0x270] sm:$0xff]  ;;  %v53_v34 = vld [vmem:[%s3342_s1 + $0x60] sm:$0xff] }
   0xc   :  { %1912 = vmatpush.msra.mxu1 %v1779_v5  ;;  %1913 = vmatpush.msra.mxu2 %v1779_v5  ;;  %v72_v31 = vld [vmem:[%s3343_s0 + $0x79] sm:$0xff]  ;;  %v1814_v35 = vld [vmem:[%s3342_s1 + $0x1e8] sm:$0xff]  ;;  %v1795_v37 = vld [vmem:[%s3342_s1 + $0x150] sm:$0xff] }
   0xd   :  { %106 = vmatpush.msra.mxu0 %v1779_v5  ;;  %1914 = vmatpush.msra.mxu3 %v1779_v5  ;;  %v1796_v32 = vld [vmem:[%s3342_s1 + $0x158] sm:$0xff]  ;;  %v1830_v36 = vld [vmem:[%s3342_s1 + $0x268] sm:$0xff]  ;;  %v1813_v41 = vld [vmem:[%s3342_s1 + $0x1e0] sm:$0xff] }
   0xe   :  { %1915 = vmatpush.msra.mxu1 %v1778_v6  ;;  %1916 = vmatpush.msra.mxu2 %v1778_v6  ;;  %v58_v38 = vld [vmem:[%s3343_s0 + $0x9] sm:$0xff]  ;;  %v79_v39 = vld [vmem:[%s3343_s0 + $0xb1] sm:$0xff]  ;;  %v1829_v43 = vld [vmem:[%s3342_s1 + $0x260] sm:$0xff] }
   0xf   :  { %107 = vmatpush.msra.mxu0 %v1778_v6  ;;  %1917 = vmatpush.msra.mxu3 %v1778_v6  ;;  %v52_v40 = vld [vmem:[%s3342_s1 + $0x58] sm:$0xff]  ;;  %v1794_v42 = vld [vmem:[%s3342_s1 + $0x148] sm:$0xff]  ;;  %v51_v44 = vld [vmem:[%s3342_s1 + $0x50] sm:$0xff] }
  0x10   :  { %1918 = vmatpush.msra.mxu1 %v1777_v7  ;;  %1919 = vmatpush.msra.mxu2 %v1777_v7  ;;  %v1812_v45 = vld [vmem:[%s3342_s1 + $0x1d8] sm:$0xff]  ;;  %v66_v46 = vld [vmem:[%s3343_s0 + $0x49] sm:$0xff]  ;;  %v73_v47 = vld [vmem:[%s3343_s0 + $0x81] sm:$0xff] }
  0x11   :  { %108 = vmatpush.msra.mxu0 %v1777_v7  ;;  %1920 = vmatpush.msra.mxu3 %v1777_v7  ;;  %v1828_v48 = vld [vmem:[%s3342_s1 + $0x258] sm:$0xff]  ;;  %v50_v49 = vld [vmem:[%s3342_s1 + $0x48] sm:$0xff]  ;;  %v1793_v50 = vld [vmem:[%s3342_s1 + $0x140] sm:$0xff] }
  0x12   :  { %1921 = vmatpush.msra.mxu1 %v1776_v8  ;;  %1922 = vmatpush.msra.mxu2 %v1776_v8  ;;  %v1811_v51 = vld [vmem:[%s3342_s1 + $0x1d0] sm:$0xff]  ;;  %v49_v53 = vld [vmem:[%s3342_s1 + $0x40] sm:$0xff]  ;;  %v1792_v56 = vld [vmem:[%s3342_s1 + $0x138] sm:$0xff] }
  0x13   :  { %109 = vmatpush.msra.mxu0 %v1776_v8  ;;  %1923 = vmatpush.msra.mxu3 %v1776_v8  ;;  %v1827_v52 = vld [vmem:[%s3342_s1 + $0x250] sm:$0xff]  ;;  %v80_v55 = vld [vmem:[%s3343_s0 + $0xb9] sm:$0xff]  ;;  %v1810_v57 = vld [vmem:[%s3342_s1 + $0x1c8] sm:$0xff] }
  0x14   :  { %1924 = vmatpush.msra.mxu1 %v1775_v9  ;;  %1925 = vmatpush.msra.mxu2 %v1775_v9  ;;  %v59_v54 = vld [vmem:[%s3343_s0 + $0x11] sm:$0xff]  ;;  %v1826_v58 = vld [vmem:[%s3342_s1 + $0x248] sm:$0xff]  ;;  %v1809_v60 = vld [vmem:[%s3342_s1 + $0x1c0] sm:$0xff] }
  0x15   :  { %110 = vmatpush.msra.mxu0 %v1775_v9  ;;  %1926 = vmatpush.msra.mxu3 %v1775_v9  ;;  %v48_v59 = vld [vmem:[%s3342_s1 + $0x38] sm:$0xff]  ;;  %v1791_v61 = vld [vmem:[%s3342_s1 + $0x130] sm:$0xff]  ;;  %v1790_v1 = vld [vmem:[%s3342_s1 + $0x128] sm:$0xff] }
  0x16   :  { %1927 = vmatpush.msra.mxu1 %v1774_v10  ;;  %1928 = vmatpush.msra.mxu2 %v1774_v10  ;;  %v67_v62 = vld [vmem:[%s3343_s0 + $0x51] sm:$0xff]  ;;  %v74_v63 = vld [vmem:[%s3343_s0 + $0x89] sm:$0xff]  ;;  %v1825_v2 = vld [vmem:[%s3342_s1 + $0x240] sm:$0xff] }
  0x17   :  { %111 = vmatpush.msra.mxu0 %v1774_v10  ;;  %1929 = vmatpush.msra.mxu3 %v1774_v10  ;;  %v1808_v0 = vld [vmem:[%s3342_s1 + $0x1b8] sm:$0xff]  ;;  %v47_v3 = vld [vmem:[%s3342_s1 + $0x30] sm:$0xff]  ;;  %v1789_v5 = vld [vmem:[%s3342_s1 + $0x120] sm:$0xff] }
  0x18   :  { %1930 = vmatpush.msra.mxu1 %v1773_v11  ;;  %1931 = vmatpush.msra.mxu2 %v1773_v11  ;;  %v1807_v4 = vld [vmem:[%s3342_s1 + $0x1b0] sm:$0xff]  ;;  %v60_v6 = vld [vmem:[%s3343_s0 + $0x19] sm:$0xff]  ;;  %v81_v7 = vld [vmem:[%s3343_s0 + $0xc1] sm:$0xff] }
  0x19   :  { %112 = vmatpush.msra.mxu0 %v1773_v11  ;;  %1932 = vmatpush.msra.mxu3 %v1773_v11  ;;  %v1824_v8 = vld [vmem:[%s3342_s1 + $0x238] sm:$0xff]  ;;  %v46_v9 = vld [vmem:[%s3342_s1 + $0x28] sm:$0xff] }
  0x1a   :  { %1933 = vmatpush.msra.mxu1 %v1772_v12  ;;  %1934 = vmatpush.msra.mxu2 %v1772_v12  ;;  %v1806_v10 = vld [vmem:[%s3342_s1 + $0x1a8] sm:$0xff]  ;;  %v1788_v11 = vld [vmem:[%s3342_s1 + $0x118] sm:$0xff] }
  0x1b   :  { %113 = vmatpush.msra.mxu0 %v1772_v12  ;;  %1935 = vmatpush.msra.mxu3 %v1772_v12  ;;  %v1823_v12 = vld [vmem:[%s3342_s1 + $0x230] sm:$0xff] }
  0x1c   :  { %1936 = vmatpush.msra.mxu1 %v1771_v13  ;;  %1937 = vmatpush.msra.mxu2 %v1771_v13 }
  0x1d   :  { %114 = vmatpush.msra.mxu0 %v1771_v13  ;;  %1938 = vmatpush.msra.mxu3 %v1771_v13  ;;  %v45_v13 = vld [vmem:[%s3342_s1 + $0x20] sm:$0xff] }
  0x1e   :  { %1939 = vmatpush.msra.mxu1 %v1770_v14  ;;  %1940 = vmatpush.msra.mxu2 %v1770_v14 }
  0x1f   :  { %115 = vmatpush.msra.mxu0 %v1770_v14  ;;  %1941 = vmatpush.msra.mxu3 %v1770_v14  ;;  %v68_v14 = vld [vmem:[%s3343_s0 + $0x59] sm:$0xff] }
  0x20   :  { %1942 = vmatpush.msra.mxu1 %v1769_v15  ;;  %1943 = vmatpush.msra.mxu2 %v1769_v15 }
  0x21   :  { %138 = vmatmul.f32.vlgmr.msra.gmra.mxu1 %v64_v16  ;;  %159 = vmatmul.f32.vlgmr.msra.gmra.mxu2 %v71_v17  ;;  %v1805_v16 = vld [vmem:[%s3342_s1 + $0x1a0] sm:$0xff]  ;;  %v1822_v17 = vld [vmem:[%s3342_s1 + $0x228] sm:$0xff] }
  0x22   :  { %341 = vmatpush.msrb.mxu2 %v1800_v18  ;;  %199 = vmatpush.msrb.mxu1 %v56_v19  ;;  %v44_v18 = vld [vmem:[%s3342_s1 + $0x18] sm:$0xff]  ;;  %v1787_v19 = vld [vmem:[%s3342_s1 + $0x110] sm:$0xff] }
  0x23   :  { %116 = vmatpush.msra.mxu0 %v1769_v15  ;;  %1944 = vmatpush.msra.mxu3 %v1769_v15  ;;  %v75_v15 = vld [vmem:[%s3343_s0 + $0x91] sm:$0xff] }
  0x24   :  { %342 = vmatpush.msrb.mxu2 %v1799_v20  ;;  %200 = vmatpush.msrb.mxu1 %v55_v21  ;;  %v1804_v20 = vld [vmem:[%s3342_s1 + $0x198] sm:$0xff]  ;;  %v1821_v21 = vld [vmem:[%s3342_s1 + $0x220] sm:$0xff] }
  0x25   :  { %117 = vmatmul.f32.vlgmr.msra.gmra.mxu0 %v57_v22  ;;  %180 = vmatmul.f32.vlgmr.msra.gmra.mxu3 %v78_v23  ;;  %v61_v22 = vld [vmem:[%s3343_s0 + $0x21] sm:$0xff]  ;;  %v82_v23 = vld [vmem:[%s3343_s0 + $0xc9] sm:$0xff] }
  0x26   :  { %343 = vmatpush.msrb.mxu2 %v1798_v24  ;;  %510 = vmatpush.msrb.mxu3 %v1816_v25  ;;  %v1786_v24 = vld [vmem:[%s3342_s1 + $0x108] sm:$0xff]  ;;  %v1803_v25 = vld [vmem:[%s3342_s1 + $0x190] sm:$0xff] }
  0x27   :  { %679 = vmatpush.msrb.mxu0 %v1832_v26  ;;  %201 = vmatpush.msrb.mxu1 %v54_v27  ;;  %v43_v26 = vld [vmem:[%s3342_s1 + $0x10] sm:$0xff]  ;;  %v1820_v27 = vld [vmem:[%s3342_s1 + $0x218] sm:$0xff] }
  0x28   :  { %344 = vmatpush.msrb.mxu2 %v1797_v28  ;;  %511 = vmatpush.msrb.mxu3 %v1815_v29  ;;  %v1802_v28 = vld [vmem:[%s3342_s1 + $0x188] sm:$0xff]  ;;  %v1785_v29 = vld [vmem:[%s3342_s1 + $0x100] sm:$0xff] }
  0x29   :  { %141 = vmatmul.f32.gmra.mxu1 %v65_v30  ;;  %162 = vmatmul.f32.gmra.mxu2 %v72_v31  ;;  %v69_v30 = vld [vmem:[%s3343_s0 + $0x61] sm:$0xff]  ;;  %v76_v31 = vld [vmem:[%s3343_s0 + $0x99] sm:$0xff] }
  0x2a   :  { %345 = vmatpush.msrb.mxu2 %v1796_v32  ;;  %680 = vmatpush.msrb.mxu0 %v1831_v33  ;;  %v42_v32 = vld [vmem:[%s3342_s1 + $0x8] sm:$0xff]  ;;  %v1801_v33 = vld [vmem:[%s3342_s1 + $0x180] sm:$0xff] }
  0x2b   :  { %202 = vmatpush.msrb.mxu1 %v53_v34  ;;  %512 = vmatpush.msrb.mxu3 %v1814_v35  ;;  %v1819_v34 = vld [vmem:[%s3342_s1 + $0x210] sm:$0xff]  ;;  %v1864_v35 = vld [vmem:[%s3342_s1 + $0x378] sm:$0xff] }
  0x2c   :  { %681 = vmatpush.msrb.mxu0 %v1830_v36  ;;  %346 = vmatpush.msrb.mxu2 %v1795_v37  ;;  %v41_v36 = vld [vmem:[%s3342_s1] sm:$0xff]  ;;  %v1880_v37 = vld [vmem:[%s3342_s1 + $0x3f8] sm:$0xff] }
  0x2d   :  { %120 = vmatmul.f32.gmra.mxu0 %v58_v38  ;;  %183 = vmatmul.f32.gmra.mxu3 %v79_v39  ;;  %v62_v38 = vld [vmem:[%s3343_s0 + $0x29] sm:$0xff]  ;;  %v83_v39 = vld [vmem:[%s3343_s0 + $0xd1] sm:$0xff] }
  0x2e   :  { %203 = vmatpush.msrb.mxu1 %v52_v40  ;;  %513 = vmatpush.msrb.mxu3 %v1813_v41  ;;  %v1818_v40 = vld [vmem:[%s3342_s1 + $0x208] sm:$0xff]  ;;  %v1848_v41 = vld [vmem:[%s3342_s1 + $0x2f8] sm:$0xff] }
  0x2f   :  { %347 = vmatpush.msrb.mxu2 %v1794_v42  ;;  %682 = vmatpush.msrb.mxu0 %v1829_v43  ;;  %v1863_v42 = vld [vmem:[%s3342_s1 + $0x370] sm:$0xff] }
  0x30   :  { %204 = vmatpush.msrb.mxu1 %v51_v44  ;;  %514 = vmatpush.msrb.mxu3 %v1812_v45  ;;  %v1879_v43 = vld [vmem:[%s3342_s1 + $0x3f0] sm:$0xff]  ;;  %v1817_v44 = vld [vmem:[%s3342_s1 + $0x200] sm:$0xff] }
  0x31   :  { %144 = vmatmul.f32.gmra.mxu1 %v66_v46  ;;  %165 = vmatmul.f32.gmra.mxu2 %v73_v47  ;;  %v1847_v45 = vld [vmem:[%s3342_s1 + $0x2f0] sm:$0xff]  ;;  %v77_v47 = vld [vmem:[%s3343_s0 + $0xa1] sm:$0xff] }
  0x32   :  { %683 = vmatpush.msrb.mxu0 %v1828_v48  ;;  %205 = vmatpush.msrb.mxu1 %v50_v49  ;;  %v70_v46 = vld [vmem:[%s3343_s0 + $0x69] sm:$0xff]  ;;  %v1896_v48 = vld [vmem:[%s3342_s1 + $0x478] sm:$0xff] }
  0x33   :  { %348 = vmatpush.msrb.mxu2 %v1793_v50  ;;  %515 = vmatpush.msrb.mxu3 %v1811_v51  ;;  %v63_v49 = vld [vmem:[%s3343_s0 + $0x31] sm:$0xff] }
  0x34   :  { %684 = vmatpush.msrb.mxu0 %v1827_v52  ;;  %206 = vmatpush.msrb.mxu1 %v49_v53  ;;  %v466_v50 = vld [vmem:[%s3343_s0 + $0xa] sm:$0xff] }
  0x35   :  { %123 = vmatmul.f32.gmra.mxu0 %v59_v54  ;;  %186 = vmatmul.f32.gmra.mxu3 %v80_v55  ;;  %v1895_v51 = vld [vmem:[%s3342_s1 + $0x470] sm:$0xff]  ;;  %v1862_v52 = vld [vmem:[%s3342_s1 + $0x368] sm:$0xff]  ;;  %v14_v55 = vld [vmem:[%s3343_s0] sm:$0xff] }
  0x36   :  { %349 = vmatpush.msrb.mxu2 %v1792_v56  ;;  %516 = vmatpush.msrb.mxu3 %v1810_v57  ;;  %v1878_v53 = vld [vmem:[%s3342_s1 + $0x3e8] sm:$0xff] }
  0x37   :  { %685 = vmatpush.msrb.mxu0 %v1826_v58  ;;  %207 = vmatpush.msrb.mxu1 %v48_v59  ;;  %v1846_v54 = vld [vmem:[%s3342_s1 + $0x2e8] sm:$0xff]  ;;  %v467_v58 = vld [vmem:[%s3343_s0 + $0x12] sm:$0xff] }
  0x38   :  { %517 = vmatpush.msrb.mxu3 %v1809_v60  ;;  %350 = vmatpush.msrb.mxu2 %v1791_v61  ;;  %v297_v56 = vld [vmem:[%s3343_s0 + $0x2] sm:$0xff]  ;;  %v635_v59 = vld [vmem:[%s3343_s0 + $0xb] sm:$0xff]  ;;  %v468_v61 = vld [vmem:[%s3343_s0 + $0x1a] sm:$0xff] }
  0x39   :  { %147 = vmatmul.f32.gmra.mxu1 %v67_v62  ;;  %168 = vmatmul.f32.gmra.mxu2 %v74_v63  ;;  %v1894_v57 = vld [vmem:[%s3342_s1 + $0x468] sm:$0xff]  ;;  %v1861_v62 = vld [vmem:[%s3342_s1 + $0x360] sm:$0xff]  ;;  %v636_v63 = vld [vmem:[%s3343_s0 + $0x13] sm:$0xff] }
  0x3a   :  { %518 = vmatpush.msrb.mxu3 %v1808_v0  ;;  %351 = vmatpush.msrb.mxu2 %v1790_v1  ;;  %v15_v60 = vld [vmem:[%s3343_s0 + $0x8] sm:$0xff]  ;;  %v1877_v0 = vld [vmem:[%s3342_s1 + $0x3e0] sm:$0xff] }
  0x3b   :  { %686 = vmatpush.msrb.mxu0 %v1825_v2  ;;  %208 = vmatpush.msrb.mxu1 %v47_v3  ;;  %v1845_v1 = vld [vmem:[%s3342_s1 + $0x2e0] sm:$0xff]  ;;  %v16_v2 = vld [vmem:[%s3343_s0 + $0x10] sm:$0xff] }
  0x3c   :  { %519 = vmatpush.msrb.mxu3 %v1807_v4  ;;  %352 = vmatpush.msrb.mxu2 %v1789_v5  ;;  %v1893_v3 = vld [vmem:[%s3342_s1 + $0x460] sm:$0xff] }
  0x3d   :  { %126 = vmatmul.f32.gmra.mxu0 %v60_v6  ;;  %189 = vmatmul.f32.gmra.mxu3 %v81_v7  ;;  %v469_v4 = vld [vmem:[%s3343_s0 + $0x22] sm:$0xff]  ;;  %v1860_v6 = vld [vmem:[%s3342_s1 + $0x358] sm:$0xff] }
  0x3e   :  { %687 = vmatpush.msrb.mxu0 %v1824_v8  ;;  %209 = vmatpush.msrb.mxu1 %v46_v9  ;;  %v637_v5 = vld [vmem:[%s3343_s0 + $0x1b] sm:$0xff]  ;;  %v470_v9 = vld [vmem:[%s3343_s0 + $0x2a] sm:$0xff] }
  0x3f   :  { %520 = vmatpush.msrb.mxu3 %v1806_v10  ;;  %353 = vmatpush.msrb.mxu2 %v1788_v11  ;;  %v17_v7 = vld [vmem:[%s3343_s0 + $0x18] sm:$0xff]  ;;  %v638_v10 = vld [vmem:[%s3343_s0 + $0x23] sm:$0xff] }
  0x40   :  { %688 = vmatpush.msrb.mxu0 %v1823_v12  ;;  %210 = vmatpush.msrb.mxu1 %v45_v13  ;;  %v1876_v8 = vld [vmem:[%s3342_s1 + $0x3d8] sm:$0xff]  ;;  %v18_v12 = vld [vmem:[%s3343_s0 + $0x20] sm:$0xff] }
  0x41   :  { %150 = vmatmul.f32.gmra.mxu1 %v68_v14  ;;  %171 = vmatmul.f32.gmra.mxu2 %v75_v15  ;;  %v1844_v11 = vld [vmem:[%s3342_s1 + $0x2d8] sm:$0xff]  ;;  %v639_v15 = vld [vmem:[%s3343_s0 + $0x2b] sm:$0xff] }
  0x42   :  { %521 = vmatpush.msrb.mxu3 %v1805_v16  ;;  %689 = vmatpush.msrb.mxu0 %v1822_v17  ;;  %v1892_v13 = vld [vmem:[%s3342_s1 + $0x458] sm:$0xff]  ;;  %v1859_v16 = vld [vmem:[%s3342_s1 + $0x350] sm:$0xff]  ;;  %v19_v17 = vld [vmem:[%s3343_s0 + $0x28] sm:$0xff] }
  0x43   :  { %211 = vmatpush.msrb.mxu1 %v44_v18  ;;  %354 = vmatpush.msrb.mxu2 %v1787_v19  ;;  %v471_v14 = vld [vmem:[%s3343_s0 + $0x32] sm:$0xff] }
  0x44   :  { %522 = vmatpush.msrb.mxu3 %v1804_v20  ;;  %690 = vmatpush.msrb.mxu0 %v1821_v21  ;;  %v1875_v18 = vld [vmem:[%s3342_s1 + $0x3d0] sm:$0xff]  ;;  %v472_v20 = vld [vmem:[%s3343_s0 + $0x3a] sm:$0xff] }
  0x45   :  { %129 = vmatmul.f32.gmra.mxu0 %v61_v22  ;;  %192 = vmatmul.f32.gmra.mxu3 %v82_v23  ;;  %v1843_v19 = vld [vmem:[%s3342_s1 + $0x2d0] sm:$0xff] }
  0x46   :  { %355 = vmatpush.msrb.mxu2 %v1786_v24  ;;  %523 = vmatpush.msrb.mxu3 %v1803_v25  ;;  %v640_v21 = vld [vmem:[%s3343_s0 + $0x33] sm:$0xff]  ;;  %v1858_v24 = vld [vmem:[%s3342_s1 + $0x348] sm:$0xff] }
  0x47   :  { %212 = vmatpush.msrb.mxu1 %v43_v26  ;;  %691 = vmatpush.msrb.mxu0 %v1820_v27  ;;  %v20_v22 = vld [vmem:[%s3343_s0 + $0x30] sm:$0xff]  ;;  %v473_v25 = vld [vmem:[%s3343_s0 + $0x42] sm:$0xff] }
  0x48   :  { %524 = vmatpush.msrb.mxu3 %v1802_v28  ;;  %356 = vmatpush.msrb.mxu2 %v1785_v29  ;;  %v1891_v23 = vld [vmem:[%s3342_s1 + $0x450] sm:$0xff]  ;;  %v641_v26 = vld [vmem:[%s3343_s0 + $0x3b] sm:$0xff]  ;;  %v1874_v27 = vld [vmem:[%s3342_s1 + $0x3c8] sm:$0xff] }
  0x49   :  { %153 = vmatmul.f32.gmra.mxu1 %v69_v30  ;;  %174 = vmatmul.f32.gmra.mxu2 %v76_v31  ;;  %v21_v28 = vld [vmem:[%s3343_s0 + $0x38] sm:$0xff]  ;;  %v1842_v29 = vld [vmem:[%s3342_s1 + $0x2c8] sm:$0xff] }
  0x4a   :  { %213 = vmatpush.msrb.mxu1 %v42_v32  ;;  %525 = vmatpush.msrb.mxu3 %v1801_v33  ;;  %v474_v30 = vld [vmem:[%s3343_s0 + $0x4a] sm:$0xff]  ;;  %v22_v33 = vld [vmem:[%s3343_s0 + $0x40] sm:$0xff] }
  0x4b   :  { %692 = vmatpush.msrb.mxu0 %v1819_v34  ;;  %1017 = vmatpush.msra.mxu2 %v1864_v35  ;;  %v642_v31 = vld [vmem:[%s3343_s0 + $0x43] sm:$0xff] }
  0x4c   :  { %214 = vmatpush.msrb.mxu1 %v41_v36  ;;  %1186 = vmatpush.msra.mxu3 %v1880_v37  ;;  %v1890_v32 = vld [vmem:[%s3342_s1 + $0x448] sm:$0xff]  ;;  %v1857_v34 = vld [vmem:[%s3342_s1 + $0x340] sm:$0xff]  ;;  %v475_v36 = vld [vmem:[%s3343_s0 + $0x52] sm:$0xff] }
  0x4d   :  { %132 = vmatmul.f32.gmra.mxu0 %v62_v38  ;;  %195 = vmatmul.f32.gmra.mxu3 %v83_v39  ;;  %v1873_v35 = vld [vmem:[%s3342_s1 + $0x3c0] sm:$0xff]  ;;  %v643_v37 = vld [vmem:[%s3343_s0 + $0x4b] sm:$0xff] }
  0x4e   :  { %693 = vmatpush.msrb.mxu0 %v1818_v40  ;;  %848 = vmatpush.msra.mxu1 %v1848_v41  ;;  %v1841_v38 = vld [vmem:[%s3342_s1 + $0x2c0] sm:$0xff]  ;;  %v23_v40 = vld [vmem:[%s3343_s0 + $0x48] sm:$0xff] }
  0x4f   :  { %1018 = vmatpush.msra.mxu2 %v1863_v42  ;;  %1187 = vmatpush.msra.mxu3 %v1879_v43  ;;  %v1889_v41 = vld [vmem:[%s3342_s1 + $0x440] sm:$0xff] }
  0x50   :  { %694 = vmatpush.msrb.mxu0 %v1817_v44  ;;  %849 = vmatpush.msra.mxu1 %v1847_v45  ;;  %v476_v43 = vld [vmem:[%s3343_s0 + $0x5a] sm:$0xff] }
  0x51   :  { %156 = vmatmul.f32.gmra.mxu1 %v70_v46  ;;  %177 = vmatmul.f32.gmra.mxu2 %v77_v47  ;;  %v644_v44 = vld [vmem:[%s3343_s0 + $0x53] sm:$0xff] }
  0x52   :  { %1355 = vmatpush.msra.mxu0 %v1896_v48  ;;  %1019 = vmatpush.msra.mxu2 %v1862_v52  ;;  %v1856_v46 = vld [vmem:[%s3342_s1 + $0x338] sm:$0xff]  ;;  %v24_v48 = vld [vmem:[%s3343_s0 + $0x50] sm:$0xff] }
  0x53   :  { %1188 = vmatpush.msra.mxu3 %v1878_v53  ;;  %850 = vmatpush.msra.mxu1 %v1846_v54  ;;  %v477_v53 = vld [vmem:[%s3343_s0 + $0x62] sm:$0xff] }
  0x54   :  { %1356 = vmatpush.msra.mxu0 %v1895_v51  ;;  %1020 = vmatpush.msra.mxu2 %v1861_v62  ;;  %v1840_v51 = vld [vmem:[%s3342_s1 + $0x2b8] sm:$0xff]  ;;  %v478_v62 = vld [vmem:[%s3343_s0 + $0x6a] sm:$0xff] }
  0x55   :  { %135 = vmatmul.f32.gmra.mxu0 %v63_v49  ;;  %526 = vmatmul.f32.vlgmr.msrb.gmra.mxu3 %v466_v50  ;;  %v1872_v49 = vld [vmem:[%s3342_s1 + $0x3b8] sm:$0xff] }
  0x56   :  { %1357 = vmatpush.msra.mxu0 %v1894_v57  ;;  %1189 = vmatpush.msra.mxu3 %v1877_v0  ;;  %v645_v54 = vld [vmem:[%s3343_s0 + $0x5b] sm:$0xff] }
  0x57   :  { %851 = vmatpush.msra.mxu1 %v1845_v1  ;;  %1021 = vmatpush.msra.mxu2 %v1860_v6  ;;  %v25_v57 = vld [vmem:[%s3343_s0 + $0x58] sm:$0xff]  ;;  %v1871_v1 = vld [vmem:[%s3342_s1 + $0x3b0] sm:$0xff] }
  0x58   :  { %1358 = vmatpush.msra.mxu0 %v1893_v3  ;;  %1190 = vmatpush.msra.mxu3 %v1876_v8  ;;  %v26_v3 = vld [vmem:[%s3343_s0 + $0x60] sm:$0xff]  ;;  %v647_v8 = vld [vmem:[%s3343_s0 + $0x6b] sm:$0xff] }
  0x59   :  { %215 = vmatmul.f32.vlgmr.msrb.gmra.mxu1 %v14_v55  ;;  %357 = vmatmul.f32.vlgmr.msrb.gmra.mxu2 %v297_v56 }
  0x5a   :  { %852 = vmatpush.msra.mxu1 %v1844_v11  ;;  %1359 = vmatpush.msra.mxu0 %v1892_v13 }
  0x5b   :  { %1022 = vmatpush.msra.mxu2 %v1859_v16  ;;  %1191 = vmatpush.msra.mxu3 %v1875_v18  ;;  %v648_v18 = vld [vmem:[%s3343_s0 + $0x73] sm:$0xff] }
  0x5c   :  { %853 = vmatpush.msra.mxu1 %v1843_v19  ;;  %1360 = vmatpush.msra.mxu0 %v1891_v23 }
  0x5d   :  { %529 = vmatmul.f32.gmra.mxu3 %v467_v58  ;;  %695 = vmatmul.f32.vlgmr.msrb.gmra.mxu0 %v635_v59 }
  0x5e   :  { %1023 = vmatpush.msra.mxu2 %v1858_v24  ;;  %1192 = vmatpush.msra.mxu3 %v1874_v27  ;;  %v1886_v24 = vld [vmem:[%s3342_s1 + $0x428] sm:$0xff]  ;;  %v649_v27 = vld [vmem:[%s3343_s0 + $0x7b] sm:$0xff] }
  0x5f   :  { %854 = vmatpush.msra.mxu1 %v1842_v29  ;;  %1361 = vmatpush.msra.mxu0 %v1890_v32 }
  0x60   :  { %1024 = vmatpush.msra.mxu2 %v1857_v34  ;;  %1193 = vmatpush.msra.mxu3 %v1873_v35  ;;  %v1837_v34 = vld [vmem:[%s3342_s1 + $0x2a0] sm:$0xff] }
  0x61   :  { %218 = vmatmul.f32.gmra.mxu1 %v15_v60  ;;  %360 = vmatmul.f32.gmra.mxu2 %v466_v50  ;;  %v1855_v60 = vld [vmem:[%s3342_s1 + $0x330] sm:$0xff] }
  0x62   :  { %855 = vmatpush.msra.mxu1 %v1841_v38  ;;  %1362 = vmatpush.msra.mxu0 %v1889_v41  ;;  %v30_v41 = vld [vmem:[%s3343_s0 + $0x80] sm:$0xff] }
  0x63   :  { %1025 = vmatpush.msra.mxu2 %v1856_v46  ;;  %1194 = vmatpush.msra.mxu3 %v1872_v49  ;;  %v651_v49 = vld [vmem:[%s3343_s0 + $0x8b] sm:$0xff] }
  0x64   :  { %856 = vmatpush.msra.mxu1 %v1840_v51  ;;  %v1852_v51 = vld [vmem:[%s3342_s1 + $0x318] sm:$0xff] }
  0x65   :  { %532 = vmatmul.f32.gmra.mxu3 %v468_v61  ;;  %698 = vmatmul.f32.gmra.mxu0 %v636_v63  ;;  %v646_v63 = vld [vmem:[%s3343_s0 + $0x63] sm:$0xff] }
  0x66   :  { %1026 = vmatpush.msra.mxu2 %v1855_v60  ;;  %1195 = vmatpush.msra.mxu3 %v1871_v1 }
  0x69   :  { %221 = vmatmul.f32.gmra.mxu1 %v16_v2  ;;  %363 = vmatmul.f32.gmra.mxu2 %v467_v58  ;;  %v1888_v58 = vld [vmem:[%s3342_s1 + $0x438] sm:$0xff] }
  0x6a   :  { %1363 = vmatpush.msra.mxu0 %v1888_v58  ;;  %v1868_v58 = vld [vmem:[%s3342_s1 + $0x398] sm:$0xff] }
  0x6d   :  { %535 = vmatmul.f32.gmra.mxu3 %v469_v4  ;;  %701 = vmatmul.f32.gmra.mxu0 %v637_v5 }
  0x71   :  { %224 = vmatmul.f32.gmra.mxu1 %v17_v7  ;;  %366 = vmatmul.f32.gmra.mxu2 %v468_v61  ;;  %v479_v7 = vld [vmem:[%s3343_s0 + $0x72] sm:$0xff] }
  0x75   :  { %538 = vmatmul.f32.gmra.mxu3 %v470_v9  ;;  %704 = vmatmul.f32.gmra.mxu0 %v638_v10  ;;  %v1887_v10 = vld [vmem:[%s3342_s1 + $0x430] sm:$0xff] }
  0x76   :  { %1364 = vmatpush.msra.mxu0 %v1887_v10 }
  0x78   :  { %1365 = vmatpush.msra.mxu0 %v1886_v24 }
  0x79   :  { %227 = vmatmul.f32.gmra.mxu1 %v18_v12  ;;  %369 = vmatmul.f32.gmra.mxu2 %v469_v4  ;;  %v1839_v4 = vld [vmem:[%s3342_s1 + $0x2b0] sm:$0xff]  ;;  %v27_v12 = vld [vmem:[%s3343_s0 + $0x68] sm:$0xff] }
  0x7a   :  { %857 = vmatpush.msra.mxu1 %v1839_v4 }
  0x7d   :  { %541 = vmatmul.f32.gmra.mxu3 %v471_v14  ;;  %707 = vmatmul.f32.gmra.mxu0 %v639_v15  ;;  %v1870_v15 = vld [vmem:[%s3342_s1 + $0x3a8] sm:$0xff] }
  0x7e   :  { %1196 = vmatpush.msra.mxu3 %v1870_v15  ;;  %v1884_v15 = vld [vmem:[%s3342_s1 + $0x418] sm:$0xff] }
  0x81   :  { %230 = vmatmul.f32.gmra.mxu1 %v19_v17  ;;  %372 = vmatmul.f32.gmra.mxu2 %v470_v9  ;;  %v480_v17 = vld [vmem:[%s3343_s0 + $0x7a] sm:$0xff] }
  0x85   :  { %544 = vmatmul.f32.gmra.mxu3 %v472_v20  ;;  %710 = vmatmul.f32.gmra.mxu0 %v640_v21 }
  0x89   :  { %233 = vmatmul.f32.gmra.mxu1 %v20_v22  ;;  %375 = vmatmul.f32.gmra.mxu2 %v471_v14  ;;  %v1854_v14 = vld [vmem:[%s3342_s1 + $0x328] sm:$0xff]  ;;  %v28_v22 = vld [vmem:[%s3343_s0 + $0x70] sm:$0xff] }
  0x8a   :  { %1027 = vmatpush.msra.mxu2 %v1854_v14 }
  0x8d   :  { %547 = vmatmul.f32.gmra.mxu3 %v473_v25  ;;  %713 = vmatmul.f32.gmra.mxu0 %v641_v26  ;;  %v481_v26 = vld [vmem:[%s3343_s0 + $0x82] sm:$0xff] }
  0x91   :  { %236 = vmatmul.f32.gmra.mxu1 %v21_v28  ;;  %378 = vmatmul.f32.gmra.mxu2 %v472_v20  ;;  %v1838_v20 = vld [vmem:[%s3342_s1 + $0x2a8] sm:$0xff] }
  0x92   :  { %858 = vmatpush.msra.mxu1 %v1838_v20 }
  0x94   :  { %859 = vmatpush.msra.mxu1 %v1837_v34 }
  0x95   :  { %550 = vmatmul.f32.gmra.mxu3 %v474_v30  ;;  %716 = vmatmul.f32.gmra.mxu0 %v642_v31  ;;  %v1853_v31 = vld [vmem:[%s3342_s1 + $0x320] sm:$0xff] }
  0x96   :  { %1028 = vmatpush.msra.mxu2 %v1853_v31  ;;  %v1867_v31 = vld [vmem:[%s3342_s1 + $0x390] sm:$0xff] }
  0x98   :  { %1029 = vmatpush.msra.mxu2 %v1852_v51  ;;  %v654_v51 = vld [vmem:[%s3343_s0 + $0xa3] sm:$0xff] }
  0x99   :  { %239 = vmatmul.f32.gmra.mxu1 %v22_v33  ;;  %381 = vmatmul.f32.gmra.mxu2 %v473_v25  ;;  %v1869_v33 = vld [vmem:[%s3342_s1 + $0x3a0] sm:$0xff] }
  0x9a   :  { %1197 = vmatpush.msra.mxu3 %v1869_v33 }
  0x9c   :  { %1198 = vmatpush.msra.mxu3 %v1868_v58 }
  0x9d   :  { %553 = vmatmul.f32.gmra.mxu3 %v475_v36  ;;  %719 = vmatmul.f32.gmra.mxu0 %v643_v37  ;;  %v650_v37 = vld [vmem:[%s3343_s0 + $0x83] sm:$0xff] }
  0x9e   :  { %v2468_v39 = vpop.f32.mrf.mxu1  ;;  %1199 = vmatpush.msra.mxu3 %v1867_v31 }
  0xa1   :  { %242 = vmatmul.f32.gmra.mxu1 %v23_v40  ;;  %384 = vmatmul.f32.gmra.mxu2 %v474_v30  ;;  %v29_v30 = vld [vmem:[%s3343_s0 + $0x78] sm:$0xff] }
  0xa2   :  { %v2476_v42 = vpop.f32.mrf.mxu0 }
  0xa4   :  { %v2484_v45 = vpop.f32.mrf.mxu2 }
  0xa5   :  { %556 = vmatmul.f32.gmra.mxu3 %v476_v43  ;;  %722 = vmatmul.f32.gmra.mxu0 %v644_v44  ;;  %v1885_v44 = vld [vmem:[%s3342_s1 + $0x420] sm:$0xff] }
  0xa6   :  { %v2489_v47 = vpop.f32.mrf.mxu1  ;;  %1366 = vmatpush.msra.mxu0 %v1885_v44 }
  0xa8   :  { %v2497_v50 = vpop.f32.mrf.mxu3  ;;  %1367 = vmatpush.msra.mxu0 %v1884_v15 }
  0xa9   :  { %245 = vmatmul.f32.gmra.mxu1 %v24_v48  ;;  %387 = vmatmul.f32.gmra.mxu2 %v475_v36  ;;  %v482_v36 = vld [vmem:[%s3343_s0 + $0x8a] sm:$0xff]  ;;  %v483_v48 = vld [vmem:[%s3343_s0 + $0x92] sm:$0xff] }
  0xaa   :  { %v2502_v52 = vpop.f32.mrf.mxu0 }
  0xac   :  { %v2510_v55 = vpop.f32.mrf.mxu2 }
  0xad   :  { %559 = vmatmul.f32.gmra.mxu3 %v477_v53  ;;  %725 = vmatmul.f32.gmra.mxu0 %v645_v54 }
  0xae   :  { %v2512_v56 = vpop.f32.mrf.mxu1 }
  0xb0   :  { %v2520_v59 = vpop.f32.mrf.mxu3 }
  0xb1   :  { %248 = vmatmul.f32.gmra.mxu1 %v25_v57  ;;  %390 = vmatmul.f32.gmra.mxu2 %v476_v43 }
  0xb2   :  { %v2525_v61 = vpop.f32.mrf.mxu0 }
  0xb4   :  { %v2533_v0 = vpop.f32.mrf.mxu2 }
  0xb5   :  { %562 = vmatmul.f32.gmra.mxu3 %v478_v62  ;;  %728 = vmatmul.f32.gmra.mxu0 %v646_v63 }
  0xb6   :  { %v2538_v2 = vpop.f32.mrf.mxu1 }
  0xb8   :  { %v2546_v5 = vpop.f32.mrf.mxu3 }
  0xb9   :  { %251 = vmatmul.f32.gmra.mxu1 %v26_v3  ;;  %393 = vmatmul.f32.gmra.mxu2 %v477_v53 }
  0xba   :  { %v2548_v6 = vpop.f32.mrf.mxu0 }
  0xbc   :  { %v2556_v9 = vpop.f32.mrf.mxu2 }
  0xbd   :  { %565 = vmatmul.f32.gmra.mxu3 %v479_v7  ;;  %731 = vmatmul.f32.gmra.mxu0 %v647_v8  ;;  %v652_v8 = vld [vmem:[%s3343_s0 + $0x93] sm:$0xff] }
  0xbe   :  { %v2561_v11 = vpop.f32.mrf.mxu1 }
  0xc0   :  { %v2566_v13 = vpop.f32.mrf.mxu3 }
  0xc1   :  { %254 = vmatmul.f32.gmra.mxu1 %v27_v12  ;;  %396 = vmatmul.f32.gmra.mxu2 %v478_v62  ;;  %v31_v62 = vld [vmem:[%s3343_s0 + $0x88] sm:$0xff] }
  0xc2   :  { %v2574_v16 = vpop.f32.mrf.mxu0 }
  0xc4   :  { %v2582_v19 = vpop.f32.mrf.mxu2 }
  0xc5   :  { %568 = vmatmul.f32.gmra.mxu3 %v480_v17  ;;  %734 = vmatmul.f32.gmra.mxu0 %v648_v18  ;;  %v32_v18 = vld [vmem:[%s3343_s0 + $0x90] sm:$0xff] }
  0xc6   :  { %v2587_v21 = vpop.f32.mrf.mxu1 }
  0xc8   :  { %v2592_v23 = vpop.f32.mrf.mxu3 }
  0xc9   :  { %257 = vmatmul.f32.gmra.mxu1 %v28_v22  ;;  %399 = vmatmul.f32.gmra.mxu2 %v479_v7  ;;  %v484_v7 = vld [vmem:[%s3343_s0 + $0x9a] sm:$0xff] }
  0xca   :  { %v2597_v25 = vpop.f32.mrf.mxu0 }
  0xcc   :  { %v2605_v28 = vpop.f32.mrf.mxu2 }
  0xcd   :  { %571 = vmatmul.f32.gmra.mxu3 %v481_v26  ;;  %737 = vmatmul.f32.gmra.mxu0 %v649_v27  ;;  %v485_v27 = vld [vmem:[%s3343_s0 + $0xa2] sm:$0xff] }
  0xce   :  { %v2607_v29 = vpop.f32.mrf.mxu1 }
  0xd0   :  { %v2615_v32 = vpop.f32.mrf.mxu3 }
  0xd1   :  { %260 = vmatmul.f32.gmra.mxu1 %v29_v30  ;;  %402 = vmatmul.f32.gmra.mxu2 %v480_v17  ;;  %v653_v30 = vld [vmem:[%s3343_s0 + $0x9b] sm:$0xff] }
  0xd2   :  { %v2623_v35 = vpop.f32.mrf.mxu0 }
  0xd4   :  { %v2631_v38 = vpop.f32.mrf.mxu2 }
  0xd5   :  { %574 = vmatmul.f32.gmra.mxu3 %v482_v36  ;;  %740 = vmatmul.f32.gmra.mxu0 %v650_v37  ;;  %v1835_v37 = vld [vmem:[%s3342_s1 + $0x290] sm:$0xff] }
  0xd6   :  { %v216_v40 = vpop.f32.mrf.mxu1 }
  0xd7   :  { %v217_v53 = vadd.f32 %v216_v40, %v2476_v42  ;;  %v1836_v42 = vld [vmem:[%s3342_s1 + $0x298] sm:$0xff] }
  0xd8   :  { %v527_v43 = vpop.f32.mrf.mxu3  ;;  %860 = vmatpush.msra.mxu1 %v1836_v42 }
  0xd9   :  { %263 = vmatmul.f32.gmra.mxu1 %v30_v41  ;;  %405 = vmatmul.f32.gmra.mxu2 %v481_v26  ;;  %v33_v41 = vld [vmem:[%s3343_s0 + $0x98] sm:$0xff] }
  0xda   :  { %v696_v46 = vpop.f32.mrf.mxu0  ;;  %861 = vmatpush.msra.mxu1 %v1835_v37 }
  0xdc   :  { %v358_v54 = vpop.f32.mrf.mxu2 }
  0xdd   :  { %v439_v57 = vadd.f32 %v358_v54, %v217_v53  ;;  %577 = vmatmul.f32.gmra.mxu3 %v483_v48  ;;  %743 = vmatmul.f32.gmra.mxu0 %v651_v49  ;;  %v486_v49 = vld [vmem:[%s3343_s0 + $0xaa] sm:$0xff] }
  0xde   :  { %v219_v60 = vpop.f32.mrf.mxu1 }
  0xdf   :  { %v608_v63 = vadd.f32 %v527_v43, %v439_v57  ;;  %v220_v10 = vadd.f32 %v219_v60, %v2502_v52  ;;  %v1851_v52 = vld [vmem:[%s3342_s1 + $0x310] sm:$0xff]  ;;  %v34_v60 = vld [vmem:[%s3343_s0 + $0xa0] sm:$0xff] }
  0xe0   :  { %v530_v1 = vpop.f32.mrf.mxu3  ;;  %1030 = vmatpush.msra.mxu2 %v1851_v52 }
  0xe1   :  { %v2658_v3 = vadd.f32 %v696_v46, %v608_v63  ;;  %266 = vmatmul.f32.gmra.mxu1 %v31_v62  ;;  %408 = vmatmul.f32.gmra.mxu2 %v482_v36  ;;  %v1850_v63 = vld [vmem:[%s3342_s1 + $0x308] sm:$0xff] }
  0xe2   :  { %v699_v4 = vpop.f32.mrf.mxu0  ;;  %1031 = vmatpush.msra.mxu2 %v1850_v63  ;;  %v1881_v63 = vld [vmem:[%s3342_s1 + $0x400] sm:$0xff] }
  0xe4   :  { %v361_v12 = vpop.f32.mrf.mxu2 }
  0xe5   :  { %v440_v14 = vadd.f32 %v361_v12, %v220_v10  ;;  %580 = vmatmul.f32.gmra.mxu3 %v484_v7  ;;  %746 = vmatmul.f32.gmra.mxu0 %v652_v8  ;;  %v487_v8 = vld [vmem:[%s3343_s0 + $0xb2] sm:$0xff] }
  0xe6   :  { %v222_v17 = vpop.f32.mrf.mxu1  ;;  %v655_v10 = vld [vmem:[%s3343_s0 + $0xab] sm:$0xff] }
  0xe7   :  { %v609_v20 = vadd.f32 %v530_v1, %v440_v14  ;;  %v223_v33 = vadd.f32 %v222_v17, %v2525_v61  ;;  %v1883_v61 = vld [vmem:[%s3342_s1 + $0x410] sm:$0xff] }
  0xe8   :  { %v533_v22 = vpop.f32.mrf.mxu3  ;;  %1368 = vmatpush.msra.mxu0 %v1883_v61  ;;  %v1833_v61 = vld [vmem:[%s3342_s1 + $0x280] sm:$0xff] }
  0xe9   :  { %v2673_v24 = vadd.f32 %v699_v4, %v609_v20  ;;  %269 = vmatmul.f32.gmra.mxu1 %v32_v18  ;;  %411 = vmatmul.f32.gmra.mxu2 %v483_v48  ;;  %v1834_v4 = vld [vmem:[%s3342_s1 + $0x288] sm:$0xff] }
  0xea   :  { %v702_v26 = vpop.f32.mrf.mxu0  ;;  %862 = vmatpush.msra.mxu1 %v1834_v4  ;;  %v35_v18 = vld [vmem:[%s3343_s0 + $0xa8] sm:$0xff] }
  0xeb   :  { %v490_v4 = vld [vmem:[%s3343_s0 + $0xca] sm:$0xff] }
  0xec   :  { %v364_v34 = vpop.f32.mrf.mxu2  ;;  %863 = vmatpush.msra.mxu1 %v1833_v61 }
  0xed   :  { %v441_v36 = vadd.f32 %v364_v34, %v223_v33  ;;  %583 = vmatmul.f32.gmra.mxu3 %v485_v27  ;;  %749 = vmatmul.f32.gmra.mxu0 %v653_v30  ;;  %v656_v30 = vld [vmem:[%s3343_s0 + $0xb3] sm:$0xff] }
  0xee   :  { %v225_v40 = vpop.f32.mrf.mxu1 }
  0xef   :  { %v610_v43 = vadd.f32 %v533_v22, %v441_v36  ;;  %v226_v53 = vadd.f32 %v225_v40, %v2548_v6  ;;  %v1866_v6 = vld [vmem:[%s3342_s1 + $0x388] sm:$0xff]  ;;  %v1849_v36 = vld [vmem:[%s3342_s1 + $0x300] sm:$0xff]  ;;  %v36_v40 = vld [vmem:[%s3343_s0 + $0xb0] sm:$0xff] }
  0xf0   :  { %v536_v44 = vpop.f32.mrf.mxu3  ;;  %1200 = vmatpush.msra.mxu3 %v1866_v6  ;;  %1032 = vmatpush.msra.mxu2 %v1849_v36 }
  0xf1   :  { %v2694_v46 = vadd.f32 %v702_v26, %v610_v43  ;;  %272 = vmatmul.f32.gmra.mxu1 %v33_v41  ;;  %414 = vmatmul.f32.gmra.mxu2 %v484_v7  ;;  %v1882_v26 = vld [vmem:[%s3342_s1 + $0x408] sm:$0xff]  ;;  %v1865_v43 = vld [vmem:[%s3342_s1 + $0x380] sm:$0xff] }
  0xf2   :  { %v705_v48 = vpop.f32.mrf.mxu0  ;;  %1369 = vmatpush.msra.mxu0 %v1882_v26  ;;  %1201 = vmatpush.msra.mxu3 %v1865_v43  ;;  %v659_v26 = vld [vmem:[%s3343_s0 + $0xcb] sm:$0xff] }
  0xf4   :  { %v367_v54 = vpop.f32.mrf.mxu2  ;;  %1370 = vmatpush.msra.mxu0 %v1881_v63 }
  0xf5   :  { %v442_v57 = vadd.f32 %v367_v54, %v226_v53  ;;  %586 = vmatmul.f32.gmra.mxu3 %v486_v49  ;;  %752 = vmatmul.f32.gmra.mxu0 %v654_v51  ;;  %v657_v51 = vld [vmem:[%s3343_s0 + $0xbb] sm:$0xff] }
  0xf6   :  { %v228_v58 = vpop.f32.mrf.mxu1 }
  0xf7   :  { %v611_v62 = vadd.f32 %v536_v44, %v442_v57  ;;  %v229_v12 = vadd.f32 %v228_v58, %v2574_v16 }
  0xf8   :  { %v539_v42 = vpop.f32.mrf.mxu3 }
  0xf9   :  { %v2712_v1 = vadd.f32 %v705_v48, %v611_v62  ;;  %275 = vmatmul.f32.gmra.mxu1 %v34_v60  ;;  %417 = vmatmul.f32.gmra.mxu2 %v485_v27  ;;  %v488_v27 = vld [vmem:[%s3343_s0 + $0xba] sm:$0xff] }
  0xfa   :  { %v708_v7 = vpop.f32.mrf.mxu0  ;;  %v37_v60 = vld [vmem:[%s3343_s0 + $0xb8] sm:$0xff] }
  0xfc   :  { %v370_v14 = vpop.f32.mrf.mxu2 }
  0xfd   :  { %v443_v15 = vadd.f32 %v370_v14, %v229_v12  ;;  %589 = vmatmul.f32.gmra.mxu3 %v487_v8  ;;  %755 = vmatmul.f32.gmra.mxu0 %v655_v10 }
  0xfe   :  { %v231_v17 = vpop.f32.mrf.mxu1 }
  0xff   :  { %v612_v20 = vadd.f32 %v539_v42, %v443_v15  ;;  %v232_v31 = vadd.f32 %v231_v17, %v2597_v25  ;;  %v38_v15 = vld [vmem:[%s3343_s0 + $0xc0] sm:$0xff] }
 0x100   :  { %v542_v22 = vpop.f32.mrf.mxu3 }
 0x101   :  { %v2730_v52 = vadd.f32 %v708_v7, %v612_v20  ;;  %278 = vmatmul.f32.gmra.mxu1 %v35_v18  ;;  %420 = vmatmul.f32.gmra.mxu2 %v486_v49  ;;  %v489_v49 = vld [vmem:[%s3343_s0 + $0xc2] sm:$0xff] }
 0x102   :  { %v711_v16 = vpop.f32.mrf.mxu0  ;;  %v658_v7 = vld [vmem:[%s3343_s0 + $0xc3] sm:$0xff] }
 0x104   :  { %v373_v33 = vpop.f32.mrf.mxu2 }
 0x105   :  { %v444_v34 = vadd.f32 %v373_v33, %v232_v31  ;;  %592 = vmatmul.f32.gmra.mxu3 %v488_v27  ;;  %758 = vmatmul.f32.gmra.mxu0 %v656_v30  ;;  %v39_v33 = vld [vmem:[%s3343_s0 + $0xc8] sm:$0xff] }
 0x106   :  { %v234_v37 = vpop.f32.mrf.mxu1 }
 0x107   :  { %v613_v41 = vadd.f32 %v542_v22, %v444_v34  ;;  %v235_v53 = vadd.f32 %v234_v37, %v2623_v35 }
 0x108   :  { %v545_v25 = vpop.f32.mrf.mxu3 }
 0x109   :  { %v2751_v44 = vadd.f32 %v711_v16, %v613_v41  ;;  %281 = vmatmul.f32.gmra.mxu1 %v36_v40  ;;  %423 = vmatmul.f32.gmra.mxu2 %v487_v8  ;;  %v660_v41 = vld [vmem:[%s3343_s0 + $0xd3] sm:$0xff] }
 0x10a   :  { %v714_v48 = vpop.f32.mrf.mxu0 }
 0x10c   :  { %v376_v54 = vpop.f32.mrf.mxu2 }
 0x10d   :  { %v445_v57 = vadd.f32 %v376_v54, %v235_v53  ;;  %595 = vmatmul.f32.gmra.mxu3 %v489_v49  ;;  %761 = vmatmul.f32.gmra.mxu0 %v657_v51 }
 0x10e   :  { %v237_v58 = vpop.f32.mrf.mxu1 }
 0x10f   :  { %v614_v62 = vadd.f32 %v545_v25, %v445_v57  ;;  %v238_v8 = vadd.f32 %v237_v58, %v2468_v39  ;;  %v491_v39 = vld [vmem:[%s3343_s0 + $0xd2] sm:$0xff] }
 0x110   :  { %v548_v42 = vpop.f32.mrf.mxu3  ;;  %v1142_v58 = vld [vmem:[%s3343_s0 + $0x15] sm:$0xff] }
 0x111   :  { %v2769_v6 = vadd.f32 %v714_v48, %v614_v62  ;;  %284 = vmatmul.f32.gmra.mxu1 %v37_v60  ;;  %426 = vmatmul.f32.gmra.mxu2 %v488_v27 }
 0x112   :  { %v717_v35 = vpop.f32.mrf.mxu0 }
 0x114   :  { %v379_v10 = vpop.f32.mrf.mxu2 }
 0x115   :  { %v446_v12 = vadd.f32 %v379_v10, %v238_v8  ;;  %598 = vmatmul.f32.gmra.mxu3 %v490_v4  ;;  %764 = vmatmul.f32.gmra.mxu0 %v658_v7 }
 0x116   :  { %v240_v14 = vpop.f32.mrf.mxu1 }
 0x117   :  { %v615_v17 = vadd.f32 %v548_v42, %v446_v12  ;;  %v241_v16 = vadd.f32 %v240_v14, %v2489_v47  ;;  %v492_v47 = vld [vmem:[%s3343_s0 + $0xda] sm:$0xff] }
 0x118   :  { %v551_v18 = vpop.f32.mrf.mxu3  ;;  %v1143_v12 = vld [vmem:[%s3343_s0 + $0x1d] sm:$0xff] }
 0x119   :  { %v2781_v20 = vadd.f32 %v717_v35, %v615_v17  ;;  %287 = vmatmul.f32.gmra.mxu1 %v38_v15  ;;  %429 = vmatmul.f32.gmra.mxu2 %v489_v49  ;;  %v40_v49 = vld [vmem:[%s3343_s0 + $0xd0] sm:$0xff] }
 0x11a   :  { %v720_v22 = vpop.f32.mrf.mxu0  ;;  %v804_v35 = vld [vmem:[%s3343_s0 + $0xc] sm:$0xff]  ;;  %v1311_v14 = vld [vmem:[%s3343_s0 + $0x16] sm:$0xff] }
 0x11c   :  { %v382_v27 = vpop.f32.mrf.mxu2 }
 0x11d   :  { %v447_v30 = vadd.f32 %v382_v27, %v241_v16  ;;  %601 = vmatmul.f32.gmra.mxu3 %v491_v39  ;;  %767 = vmatmul.f32.gmra.mxu0 %v659_v26 }
 0x11e   :  { %v243_v31 = vpop.f32.mrf.mxu1 }
 0x11f   :  { %v616_v34 = vadd.f32 %v551_v18, %v447_v30  ;;  %v244_v43 = vadd.f32 %v243_v31, %v2512_v56  ;;  %v661_v56 = vld [vmem:[%s3343_s0 + $0xdb] sm:$0xff] }
 0x120   :  { %v554_v36 = vpop.f32.mrf.mxu3  ;;  %v1312_v31 = vld [vmem:[%s3343_s0 + $0x1e] sm:$0xff] }
 0x121   :  { %v2793_v37 = vadd.f32 %v720_v22, %v616_v34  ;;  %290 = vmatmul.f32.gmra.mxu1 %v39_v33  ;;  %432 = vmatmul.f32.gmra.mxu2 %v490_v4  ;;  %v973_v4 = vld [vmem:[%s3343_s0 + $0x14] sm:$0xff] }
 0x122   :  { %v723_v40 = vpop.f32.mrf.mxu0 }
 0x124   :  { %v385_v25 = vpop.f32.mrf.mxu2 }
 0x125   :  { %v448_v61 = vadd.f32 %v385_v25, %v244_v43  ;;  %604 = vmatmul.f32.gmra.mxu3 %v492_v47  ;;  %770 = vmatmul.f32.gmra.mxu0 %v660_v41  ;;  %v975_v47 = vld [vmem:[%s3343_s0 + $0x24] sm:$0xff] }
 0x126   :  { %v246_v48 = vpop.f32.mrf.mxu1 }
 0x127   :  { %v617_v51 = vadd.f32 %v554_v36, %v448_v61  ;;  %v247_v60 = vadd.f32 %v246_v48, %v2538_v2  ;;  %v1313_v48 = vld [vmem:[%s3343_s0 + $0x26] sm:$0xff] }
 0x128   :  { %v557_v53 = vpop.f32.mrf.mxu3 }
 0x129   :  { %v2805_v54 = vadd.f32 %v723_v40, %v617_v51  ;;  %293 = vmatmul.f32.gmra.mxu1 %v40_v49  ;;  %435 = vmatmul.f32.gmra.mxu2 %v491_v39  ;;  %v974_v39 = vld [vmem:[%s3343_s0 + $0x1c] sm:$0xff] }
 0x12a   :  { %v726_v57 = vpop.f32.mrf.mxu0 }
 0x12c   :  { %v388_v62 = vpop.f32.mrf.mxu2 }
 0x12d   :  { %v449_v63 = vadd.f32 %v388_v62, %v247_v60  ;;  %773 = vmatmul.f32.gmra.mxu0 %v661_v56  ;;  %1202 = vmatmul.f32.vlgmr.msra.gmra.mxu3 %v1142_v58  ;;  %v976_v56 = vld [vmem:[%s3343_s0 + $0x2c] sm:$0xff] }
 0x12e   :  { %v249_v42 = vpop.f32.mrf.mxu1 }
 0x12f   :  { %v618_v7 = vadd.f32 %v557_v53, %v449_v63  ;;  %v250_v15 = vadd.f32 %v249_v42, %v2561_v11  ;;  %v1144_v11 = vld [vmem:[%s3343_s0 + $0x25] sm:$0xff]  ;;  %v1314_v42 = vld [vmem:[%s3343_s0 + $0x2e] sm:$0xff] }
 0x130   :  { %v560_v8 = vpop.f32.mrf.mxu3 }
 0x131   :  { %v2820_v10 = vadd.f32 %v726_v57, %v618_v7  ;;  %864 = vmatmul.f32.vlgmr.msra.gmra.mxu1 %v804_v35  ;;  %1033 = vmatmul.f32.vlgmr.msra.gmra.mxu2 %v973_v4 }
 0x132   :  { %v729_v2 = vpop.f32.mrf.mxu0 }
 0x134   :  { %v391_v17 = vpop.f32.mrf.mxu2 }
 0x135   :  { %v450_v18 = vadd.f32 %v391_v17, %v250_v15  ;;  %1205 = vmatmul.f32.gmra.mxu3 %v1143_v12  ;;  %1371 = vmatmul.f32.vlgmr.msra.gmra.mxu0 %v1311_v14 }
 0x136   :  { %v252_v22 = vpop.f32.mrf.mxu1 }
 0x137   :  { %v619_v26 = vadd.f32 %v560_v8, %v450_v18  ;;  %v253_v33 = vadd.f32 %v252_v22, %v2587_v21  ;;  %v1145_v21 = vld [vmem:[%s3343_s0 + $0x2d] sm:$0xff]  ;;  %v1315_v18 = vld [vmem:[%s3343_s0 + $0x36] sm:$0xff] }
 0x138   :  { %v563_v16 = vpop.f32.mrf.mxu3 }
 0x139   :  { %v2832_v27 = vadd.f32 %v729_v2, %v619_v26  ;;  %867 = vmatmul.f32.gmra.mxu1 %v973_v4  ;;  %1036 = vmatmul.f32.gmra.mxu2 %v974_v39  ;;  %v977_v2 = vld [vmem:[%s3343_s0 + $0x34] sm:$0xff] }
 0x13a   :  { %v732_v30 = vpop.f32.mrf.mxu0 }
 0x13c   :  { %v394_v34 = vpop.f32.mrf.mxu2 }
 0x13d   :  { %v451_v36 = vadd.f32 %v394_v34, %v253_v33  ;;  %1208 = vmatmul.f32.gmra.mxu3 %v1144_v11  ;;  %1374 = vmatmul.f32.gmra.mxu0 %v1312_v31 }
 0x13e   :  { %v255_v40 = vpop.f32.mrf.mxu1 }
 0x13f   :  { %v620_v41 = vadd.f32 %v563_v16, %v451_v36  ;;  %v256_v49 = vadd.f32 %v255_v40, %v2607_v29  ;;  %v1146_v29 = vld [vmem:[%s3343_s0 + $0x35] sm:$0xff]  ;;  %v1316_v36 = vld [vmem:[%s3343_s0 + $0x3e] sm:$0xff] }
 0x140   :  { %v566_v43 = vpop.f32.mrf.mxu3 }
 0x141   :  { %v2844_v25 = vadd.f32 %v732_v30, %v620_v41  ;;  %870 = vmatmul.f32.gmra.mxu1 %v974_v39  ;;  %1039 = vmatmul.f32.gmra.mxu2 %v975_v47  ;;  %v978_v30 = vld [vmem:[%s3343_s0 + $0x3c] sm:$0xff] }
 0x142   :  { %v735_v61 = vpop.f32.mrf.mxu0 }
 0x144   :  { %v397_v51 = vpop.f32.mrf.mxu2 }
 0x145   :  { %v452_v53 = vadd.f32 %v397_v51, %v256_v49  ;;  %1211 = vmatmul.f32.gmra.mxu3 %v1145_v21  ;;  %1377 = vmatmul.f32.gmra.mxu0 %v1313_v48 }
 0x146   :  { %v258_v57 = vpop.f32.mrf.mxu1 }
 0x147   :  { %v621_v58 = vadd.f32 %v566_v43, %v452_v53  ;;  %v259_v35 = vadd.f32 %v258_v57, %v2484_v45  ;;  %v1147_v45 = vld [vmem:[%s3343_s0 + $0x3d] sm:$0xff]  ;;  %v1317_v53 = vld [vmem:[%s3343_s0 + $0x46] sm:$0xff] }
 0x148   :  { %v569_v60 = vpop.f32.mrf.mxu3 }
 0x149   :  { %v2856_v62 = vadd.f32 %v735_v61, %v621_v58  ;;  %873 = vmatmul.f32.gmra.mxu1 %v975_v47  ;;  %1042 = vmatmul.f32.gmra.mxu2 %v976_v56  ;;  %v979_v61 = vld [vmem:[%s3343_s0 + $0x44] sm:$0xff] }
 0x14a   :  { %v738_v63 = vpop.f32.mrf.mxu0 }
 0x14c   :  { %v400_v4 = vpop.f32.mrf.mxu2 }
 0x14d   :  { %v453_v7 = vadd.f32 %v400_v4, %v259_v35  ;;  %1214 = vmatmul.f32.gmra.mxu3 %v1146_v29  ;;  %1380 = vmatmul.f32.gmra.mxu0 %v1314_v42 }
 0x14e   :  { %v261_v8 = vpop.f32.mrf.mxu1 }
 0x14f   :  { %v622_v12 = vadd.f32 %v569_v60, %v453_v7  ;;  %v262_v22 = vadd.f32 %v261_v8, %v2510_v55  ;;  %v1148_v55 = vld [vmem:[%s3343_s0 + $0x45] sm:$0xff]  ;;  %v1318_v7 = vld [vmem:[%s3343_s0 + $0x4e] sm:$0xff] }
 0x150   :  { %v572_v14 = vpop.f32.mrf.mxu3 }
 0x151   :  { %v2868_v15 = vadd.f32 %v738_v63, %v622_v12  ;;  %876 = vmatmul.f32.gmra.mxu1 %v976_v56  ;;  %1045 = vmatmul.f32.gmra.mxu2 %v977_v2  ;;  %v980_v63 = vld [vmem:[%s3343_s0 + $0x4c] sm:$0xff] }
 0x152   :  { %v741_v17 = vpop.f32.mrf.mxu0 }
 0x154   :  { %v403_v39 = vpop.f32.mrf.mxu2 }
 0x155   :  { %v454_v26 = vadd.f32 %v403_v39, %v262_v22  ;;  %1217 = vmatmul.f32.gmra.mxu3 %v1147_v45  ;;  %1383 = vmatmul.f32.gmra.mxu0 %v1315_v18 }
 0x156   :  { %v264_v16 = vpop.f32.mrf.mxu1 }
 0x157   :  { %v623_v11 = vadd.f32 %v572_v14, %v454_v26  ;;  %v265_v40 = vadd.f32 %v264_v16, %v2533_v0  ;;  %v1149_v0 = vld [vmem:[%s3343_s0 + $0x4d] sm:$0xff]  ;;  %v1319_v26 = vld [vmem:[%s3343_s0 + $0x56] sm:$0xff] }
 0x158   :  { %v575_v31 = vpop.f32.mrf.mxu3 }
 0x159   :  { %v2880_v33 = vadd.f32 %v741_v17, %v623_v11  ;;  %879 = vmatmul.f32.gmra.mxu1 %v977_v2  ;;  %1048 = vmatmul.f32.gmra.mxu2 %v978_v30  ;;  %v981_v17 = vld [vmem:[%s3343_s0 + $0x54] sm:$0xff] }
 0x15a   :  { %v744_v34 = vpop.f32.mrf.mxu0 }
 0x15c   :  { %v406_v47 = vpop.f32.mrf.mxu2 }
 0x15d   :  { %v455_v41 = vadd.f32 %v406_v47, %v265_v40  ;;  %1220 = vmatmul.f32.gmra.mxu3 %v1148_v55  ;;  %1386 = vmatmul.f32.gmra.mxu0 %v1316_v36 }
 0x15e   :  { %v267_v43 = vpop.f32.mrf.mxu1 }
 0x15f   :  { %v624_v21 = vadd.f32 %v575_v31, %v455_v41  ;;  %v268_v57 = vadd.f32 %v267_v43, %v2556_v9  ;;  %v1150_v9 = vld [vmem:[%s3343_s0 + $0x55] sm:$0xff]  ;;  %v1320_v41 = vld [vmem:[%s3343_s0 + $0x5e] sm:$0xff] }
 0x160   :  { %v578_v48 = vpop.f32.mrf.mxu3 }
 0x161   :  { %v2892_v49 = vadd.f32 %v744_v34, %v624_v21  ;;  %882 = vmatmul.f32.gmra.mxu1 %v978_v30  ;;  %1051 = vmatmul.f32.gmra.mxu2 %v979_v61  ;;  %v982_v34 = vld [vmem:[%s3343_s0 + $0x5c] sm:$0xff] }
 0x162   :  { %v747_v51 = vpop.f32.mrf.mxu0 }
 0x164   :  { %v409_v56 = vpop.f32.mrf.mxu2 }
 0x165   :  { %v456_v58 = vadd.f32 %v409_v56, %v268_v57  ;;  %1223 = vmatmul.f32.gmra.mxu3 %v1149_v0  ;;  %1389 = vmatmul.f32.gmra.mxu0 %v1317_v53 }
 0x166   :  { %v270_v60 = vpop.f32.mrf.mxu1 }
 0x167   :  { %v625_v29 = vadd.f32 %v578_v48, %v456_v58  ;;  %v271_v8 = vadd.f32 %v270_v60, %v2582_v19  ;;  %v1151_v19 = vld [vmem:[%s3343_s0 + $0x5d] sm:$0xff]  ;;  %v1321_v58 = vld [vmem:[%s3343_s0 + $0x66] sm:$0xff] }
 0x168   :  { %v581_v42 = vpop.f32.mrf.mxu3 }
 0x169   :  { %v2904_v35 = vadd.f32 %v747_v51, %v625_v29  ;;  %885 = vmatmul.f32.gmra.mxu1 %v979_v61  ;;  %1054 = vmatmul.f32.gmra.mxu2 %v980_v63  ;;  %v983_v51 = vld [vmem:[%s3343_s0 + $0x64] sm:$0xff] }
 0x16a   :  { %v750_v4 = vpop.f32.mrf.mxu0 }
 0x16c   :  { %v412_v2 = vpop.f32.mrf.mxu2 }
 0x16d   :  { %v457_v12 = vadd.f32 %v412_v2, %v271_v8  ;;  %1226 = vmatmul.f32.gmra.mxu3 %v1150_v9  ;;  %1392 = vmatmul.f32.gmra.mxu0 %v1318_v7 }
 0x16e   :  { %v273_v14 = vpop.f32.mrf.mxu1 }
 0x16f   :  { %v626_v45 = vadd.f32 %v581_v42, %v457_v12  ;;  %v274_v16 = vadd.f32 %v273_v14, %v2605_v28  ;;  %v1152_v28 = vld [vmem:[%s3343_s0 + $0x65] sm:$0xff]  ;;  %v1322_v12 = vld [vmem:[%s3343_s0 + $0x6e] sm:$0xff] }
 0x170   :  { %v584_v18 = vpop.f32.mrf.mxu3 }
 0x171   :  { %v2916_v22 = vadd.f32 %v750_v4, %v626_v45  ;;  %888 = vmatmul.f32.gmra.mxu1 %v980_v63  ;;  %1057 = vmatmul.f32.gmra.mxu2 %v981_v17  ;;  %v984_v4 = vld [vmem:[%s3343_s0 + $0x6c] sm:$0xff] }
 0x172   :  { %v753_v39 = vpop.f32.mrf.mxu0 }
 0x174   :  { %v415_v30 = vpop.f32.mrf.mxu2 }
 0x175   :  { %v458_v11 = vadd.f32 %v415_v30, %v274_v16  ;;  %1229 = vmatmul.f32.gmra.mxu3 %v1151_v19  ;;  %1395 = vmatmul.f32.gmra.mxu0 %v1319_v26 }
 0x176   :  { %v276_v31 = vpop.f32.mrf.mxu1 }
 0x177   :  { %v627_v55 = vadd.f32 %v584_v18, %v458_v11  ;;  %v277_v43 = vadd.f32 %v276_v31, %v2631_v38  ;;  %v1153_v38 = vld [vmem:[%s3343_s0 + $0x6d] sm:$0xff]  ;;  %v1323_v11 = vld [vmem:[%s3343_s0 + $0x76] sm:$0xff] }
 0x178   :  { %v587_v36 = vpop.f32.mrf.mxu3 }
 0x179   :  { %v2928_v40 = vadd.f32 %v753_v39, %v627_v55  ;;  %891 = vmatmul.f32.gmra.mxu1 %v981_v17  ;;  %1060 = vmatmul.f32.gmra.mxu2 %v982_v34  ;;  %v985_v39 = vld [vmem:[%s3343_s0 + $0x74] sm:$0xff] }
 0x17a   :  { %v756_v47 = vpop.f32.mrf.mxu0 }
 0x17c   :  { %v418_v61 = vpop.f32.mrf.mxu2 }
 0x17d   :  { %v459_v21 = vadd.f32 %v418_v61, %v277_v43  ;;  %1232 = vmatmul.f32.gmra.mxu3 %v1152_v28  ;;  %1398 = vmatmul.f32.gmra.mxu0 %v1320_v41 }
 0x17e   :  { %v279_v48 = vpop.f32.mrf.mxu1 }
 0x17f   :  { %v628_v0 = vadd.f32 %v587_v36, %v459_v21  ;;  %v280_v60 = vadd.f32 %v279_v48, %v2497_v50  ;;  %v1154_v50 = vld [vmem:[%s3343_s0 + $0x75] sm:$0xff]  ;;  %v1324_v21 = vld [vmem:[%s3343_s0 + $0x7e] sm:$0xff] }
 0x180   :  { %v590_v53 = vpop.f32.mrf.mxu3 }
 0x181   :  { %v2940_v57 = vadd.f32 %v756_v47, %v628_v0  ;;  %894 = vmatmul.f32.gmra.mxu1 %v982_v34  ;;  %1063 = vmatmul.f32.gmra.mxu2 %v983_v51  ;;  %v986_v47 = vld [vmem:[%s3343_s0 + $0x7c] sm:$0xff] }
 0x182   :  { %v759_v56 = vpop.f32.mrf.mxu0 }
 0x184   :  { %v421_v63 = vpop.f32.mrf.mxu2 }
 0x185   :  { %v460_v29 = vadd.f32 %v421_v63, %v280_v60  ;;  %1235 = vmatmul.f32.gmra.mxu3 %v1153_v38  ;;  %1401 = vmatmul.f32.gmra.mxu0 %v1321_v58 }
 0x186   :  { %v282_v42 = vpop.f32.mrf.mxu1 }
 0x187   :  { %v629_v9 = vadd.f32 %v590_v53, %v460_v29  ;;  %v283_v14 = vadd.f32 %v282_v42, %v2520_v59  ;;  %v1155_v59 = vld [vmem:[%s3343_s0 + $0x7d] sm:$0xff]  ;;  %v1325_v29 = vld [vmem:[%s3343_s0 + $0x86] sm:$0xff] }
 0x188   :  { %v593_v7 = vpop.f32.mrf.mxu3 }
 0x189   :  { %v2952_v8 = vadd.f32 %v759_v56, %v629_v9  ;;  %897 = vmatmul.f32.gmra.mxu1 %v983_v51  ;;  %1066 = vmatmul.f32.gmra.mxu2 %v984_v4  ;;  %v987_v56 = vld [vmem:[%s3343_s0 + $0x84] sm:$0xff] }
 0x18a   :  { %v762_v2 = vpop.f32.mrf.mxu0 }
 0x18c   :  { %v424_v17 = vpop.f32.mrf.mxu2 }
 0x18d   :  { %v461_v45 = vadd.f32 %v424_v17, %v283_v14  ;;  %1238 = vmatmul.f32.gmra.mxu3 %v1154_v50  ;;  %1404 = vmatmul.f32.gmra.mxu0 %v1322_v12 }
 0x18e   :  { %v285_v18 = vpop.f32.mrf.mxu1 }
 0x18f   :  { %v630_v19 = vadd.f32 %v593_v7, %v461_v45  ;;  %v286_v31 = vadd.f32 %v285_v18, %v2546_v5  ;;  %v1156_v5 = vld [vmem:[%s3343_s0 + $0x85] sm:$0xff]  ;;  %v1326_v45 = vld [vmem:[%s3343_s0 + $0x8e] sm:$0xff] }
 0x190   :  { %v596_v26 = vpop.f32.mrf.mxu3 }
 0x191   :  { %v2964_v16 = vadd.f32 %v762_v2, %v630_v19  ;;  %900 = vmatmul.f32.gmra.mxu1 %v984_v4  ;;  %1069 = vmatmul.f32.gmra.mxu2 %v985_v39  ;;  %v988_v2 = vld [vmem:[%s3343_s0 + $0x8c] sm:$0xff] }
 0x192   :  { %v765_v30 = vpop.f32.mrf.mxu0 }
 0x194   :  { %v427_v34 = vpop.f32.mrf.mxu2 }
 0x195   :  { %v462_v55 = vadd.f32 %v427_v34, %v286_v31  ;;  %1241 = vmatmul.f32.gmra.mxu3 %v1155_v59  ;;  %1407 = vmatmul.f32.gmra.mxu0 %v1323_v11 }
 0x196   :  { %v288_v36 = vpop.f32.mrf.mxu1 }
 0x197   :  { %v631_v28 = vadd.f32 %v596_v26, %v462_v55  ;;  %v289_v48 = vadd.f32 %v288_v36, %v2566_v13  ;;  %v1157_v13 = vld [vmem:[%s3343_s0 + $0x8d] sm:$0xff]  ;;  %v1327_v55 = vld [vmem:[%s3343_s0 + $0x96] sm:$0xff] }
 0x198   :  { %v599_v41 = vpop.f32.mrf.mxu3 }
 0x199   :  { %v2976_v43 = vadd.f32 %v765_v30, %v631_v28  ;;  %903 = vmatmul.f32.gmra.mxu1 %v985_v39  ;;  %1072 = vmatmul.f32.gmra.mxu2 %v986_v47  ;;  %v989_v30 = vld [vmem:[%s3343_s0 + $0x94] sm:$0xff] }
 0x19a   :  { %v768_v61 = vpop.f32.mrf.mxu0 }
 0x19c   :  { %v430_v51 = vpop.f32.mrf.mxu2 }
 0x19d   :  { %v463_v0 = vadd.f32 %v430_v51, %v289_v48  ;;  %1244 = vmatmul.f32.gmra.mxu3 %v1156_v5  ;;  %1410 = vmatmul.f32.gmra.mxu0 %v1324_v21  ;;  %v3027_v21 = vld [vmem:[%s3344_s2] ss:$0 sm:$0xff] }
 0x19e   :  { %v291_v53 = vpop.f32.mrf.mxu1 }
 0x19f   :  { %v632_v38 = vadd.f32 %v599_v41, %v463_v0  ;;  %v292_v42 = vadd.f32 %v291_v53, %v2592_v23  ;;  %v1158_v23 = vld [vmem:[%s3343_s0 + $0x95] sm:$0xff]  ;;  %v1160_v0 = vld [vmem:[%s3343_s0 + $0xa5] sm:$0xff] }
 0x1a0   :  { %v602_v58 = vpop.f32.mrf.mxu3  ;;  %v1328_v53 = vld [vmem:[%s3343_s0 + $0x9e] sm:$0xff] }
 0x1a1   :  { %v2988_v60 = vadd.f32 %v768_v61, %v632_v38  ;;  %906 = vmatmul.f32.gmra.mxu1 %v986_v47  ;;  %1075 = vmatmul.f32.gmra.mxu2 %v987_v56  ;;  %v990_v61 = vld [vmem:[%s3343_s0 + $0x9c] sm:$0xff] }
 0x1a2   :  { %v771_v63 = vpop.f32.mrf.mxu0 }
 0x1a4   :  { %v433_v4 = vpop.f32.mrf.mxu2 }
 0x1a5   :  { %v464_v9 = vadd.f32 %v433_v4, %v292_v42  ;;  %1247 = vmatmul.f32.gmra.mxu3 %v1157_v13  ;;  %1413 = vmatmul.f32.gmra.mxu0 %v1325_v29  ;;  %v991_v42 = vld [vmem:[%s3343_s0 + $0xa4] sm:$0xff] }
 0x1a6   :  { %v294_v7 = vpop.f32.mrf.mxu1 }
 0x1a7   :  { %v633_v50 = vadd.f32 %v602_v58, %v464_v9  ;;  %v295_v18 = vadd.f32 %v294_v7, %v2615_v32  ;;  %v1159_v32 = vld [vmem:[%s3343_s0 + $0x9d] sm:$0xff] }
 0x1a8   :  { %v605_v12 = vpop.f32.mrf.mxu3 }
 0x1a9   :  { %v3000_v14 = vadd.f32 %v771_v63, %v633_v50  ;;  %909 = vmatmul.f32.gmra.mxu1 %v987_v56  ;;  %1078 = vmatmul.f32.gmra.mxu2 %v988_v2  ;;  %v1329_v50 = vld [vmem:[%s3343_s0 + $0xa6] sm:$0xff] }
 0x1aa   :  { %v774_v17 = vpop.f32.mrf.mxu0 }
 0x1ac   :  { %v436_v39 = vpop.f32.mrf.mxu2 }
 0x1ad   :  { %v465_v19 = vadd.f32 %v436_v39, %v295_v18  ;;  %1250 = vmatmul.f32.gmra.mxu3 %v1158_v23  ;;  %1416 = vmatmul.f32.gmra.mxu0 %v1326_v45 }
 0x1ae   :  { %v865_v26 = vpop.f32.mrf.mxu1 }
 0x1af   :  { %v634_v59 = vadd.f32 %v605_v12, %v465_v19  ;;  %v946_v36 = vadd.f32 %v865_v26, %v2658_v3  ;;  %v992_v19 = vld [vmem:[%s3343_s0 + $0xac] sm:$0xff] }
 0x1b0   :  { %v1203_v11 = vpop.f32.mrf.mxu3 }
 0x1b1   :  { %v3012_v31 = vadd.f32 %v774_v17, %v634_v59  ;;  %912 = vmatmul.f32.gmra.mxu1 %v988_v2  ;;  %1081 = vmatmul.f32.gmra.mxu2 %v989_v30  ;;  %v1161_v2 = vld [vmem:[%s3343_s0 + $0xad] sm:$0xff] }
 0x1b2   :  { %v1372_v34 = vpop.f32.mrf.mxu0 }
 0x1b4   :  { %v1034_v47 = vpop.f32.mrf.mxu2 }
 0x1b5   :  { %v1115_v28 = vadd.f32 %v1034_v47, %v946_v36  ;;  %1253 = vmatmul.f32.gmra.mxu3 %v1159_v32  ;;  %1419 = vmatmul.f32.gmra.mxu0 %v1327_v55 }
 0x1b6   :  { %v868_v41 = vpop.f32.mrf.mxu1 }
 0x1b7   :  { %v1284_v5 = vadd.f32 %v1203_v11, %v1115_v28  ;;  %v947_v56 = vadd.f32 %v868_v41, %v2673_v24  ;;  %v1162_v11 = vld [vmem:[%s3343_s0 + $0xb5] sm:$0xff] }
 0x1b8   :  { %v1206_v48 = vpop.f32.mrf.mxu3 }
 0x1b9   :  { %v1453_v51 = vadd.f32 %v1372_v34, %v1284_v5  ;;  %915 = vmatmul.f32.gmra.mxu1 %v989_v30  ;;  %1084 = vmatmul.f32.gmra.mxu2 %v990_v61  ;;  %v1330_v34 = vld [vmem:[%s3343_s0 + $0xae] sm:$0xff] }
 0x1ba   :  { %v1375_v3 = vpop.f32.mrf.mxu0 }
 0x1bb   :  { %v3037_v38 = vadd.f32 %v3027_v21, %v1453_v51 }
 0x1bc   :  { %v1037_v58 = vpop.f32.mrf.mxu2 }
 0x1bd   :  { %v1511_v63 = vmax.f32 %v3037_v38, 0.0  ;;  %v1116_v13 = vadd.f32 %v1037_v58, %v947_v56  ;;  %1256 = vmatmul.f32.gmra.mxu3 %v1160_v0  ;;  %1422 = vmatmul.f32.gmra.mxu0 %v1328_v53  ;;  %v1331_v0 = vld [vmem:[%s3343_s0 + $0xb6] sm:$0xff]  ;;  %v1332_v38 = vld [vmem:[%s3343_s0 + $0xbe] sm:$0xff] }
 0x1be   :  { %v871_v29 = vpop.f32.mrf.mxu1 }
 0x1bf   :  { %1538 = vst [vmem:[#allocation2] sm:$0xff] %v1511_v63  ;;  %v1285_v4 = vadd.f32 %v1206_v48, %v1116_v13  ;;  %v948_v12 = vadd.f32 %v871_v29, %v2694_v46 }
 0x1c0   :  { %v1209_v9 = vpop.f32.mrf.mxu3 }
 0x1c1   :  { %v1454_v24 = vadd.f32 %v1375_v3, %v1285_v4  ;;  %918 = vmatmul.f32.gmra.mxu1 %v990_v61  ;;  %1087 = vmatmul.f32.gmra.mxu2 %v991_v42  ;;  %v993_v61 = vld [vmem:[%s3343_s0 + $0xb4] sm:$0xff]  ;;  %v1163_v3 = vld [vmem:[%s3343_s0 + $0xbd] sm:$0xff] }
 0x1c2   :  { %v1378_v7 = vpop.f32.mrf.mxu0 }
 0x1c3   :  { %v3053_v17 = vadd.f32 %v3027_v21, %v1454_v24 }
 0x1c4   :  { %v1040_v23 = vpop.f32.mrf.mxu2 }
 0x1c5   :  { %v1512_v45 = vmax.f32 %v3053_v17, 0.0  ;;  %v1117_v18 = vadd.f32 %v1040_v23, %v948_v12  ;;  %1259 = vmatmul.f32.gmra.mxu3 %v1161_v2  ;;  %1425 = vmatmul.f32.gmra.mxu0 %v1329_v50  ;;  %v1333_v17 = vld [vmem:[%s3343_s0 + $0xc6] sm:$0xff] }
 0x1c6   :  { %v874_v39 = vpop.f32.mrf.mxu1 }
 0x1c7   :  { %1539 = vst [vmem:[#allocation2 + $0x8] sm:$0xff] %v1512_v45  ;;  %v1286_v26 = vadd.f32 %v1209_v9, %v1117_v18  ;;  %v949_v32 = vadd.f32 %v874_v39, %v2712_v1 }
 0x1c8   :  { %v1212_v30 = vpop.f32.mrf.mxu3 }
 0x1c9   :  { %v1455_v46 = vadd.f32 %v1378_v7, %v1286_v26  ;;  %921 = vmatmul.f32.gmra.mxu1 %v991_v42  ;;  %1090 = vmatmul.f32.gmra.mxu2 %v992_v19  ;;  %v994_v7 = vld [vmem:[%s3343_s0 + $0xbc] sm:$0xff] }
 0x1ca   :  { %v1381_v59 = vpop.f32.mrf.mxu0 }
 0x1cb   :  { %v3069_v55 = vadd.f32 %v3027_v21, %v1455_v46 }
 0x1cc   :  { %v1043_v36 = vpop.f32.mrf.mxu2 }
 0x1cd   :  { %v1513_v47 = vmax.f32 %v3069_v55, 0.0  ;;  %v1118_v28 = vadd.f32 %v1043_v36, %v949_v32  ;;  %1262 = vmatmul.f32.gmra.mxu3 %v1162_v11  ;;  %1428 = vmatmul.f32.gmra.mxu0 %v1330_v34  ;;  %v1334_v55 = vld [vmem:[%s3343_s0 + $0xce] sm:$0xff] }
 0x1ce   :  { %v877_v41 = vpop.f32.mrf.mxu1  ;;  %v1590_v58 = vld [vmem:[#allocation2 + $0x1] sm:$0xff] }
 0x1cf   :  { %1540 = vst [vmem:[#allocation2 + $0x10] sm:$0xff] %v1513_v47  ;;  %v1287_v5 = vadd.f32 %v1212_v30, %v1118_v28  ;;  %v950_v53 = vadd.f32 %v877_v41, %v2730_v52  ;;  %v1615_v52 = vmax.f32 %v1511_v63, %v1590_v58  ;;  %v995_v28 = vld [vmem:[%s3343_s0 + $0xc4] sm:$0xff] }
 0x1d0   :  { %v1215_v48 = vpop.f32.mrf.mxu3 }
 0x1d1   :  { %v1456_v1 = vadd.f32 %v1381_v59, %v1287_v5  ;;  %924 = vmatmul.f32.gmra.mxu1 %v992_v19  ;;  %1093 = vmatmul.f32.gmra.mxu2 %v993_v61  ;;  %v1164_v19 = vld [vmem:[%s3343_s0 + $0xc5] sm:$0xff] }
 0x1d2   :  { %v1384_v51 = vpop.f32.mrf.mxu0 }
 0x1d3   :  { %v3085_v56 = vadd.f32 %v3027_v21, %v1456_v1 }
 0x1d4   :  { %v1046_v13 = vpop.f32.mrf.mxu2 }
 0x1d5   :  { %v1514_v29 = vmax.f32 %v3085_v56, 0.0  ;;  %v1119_v42 = vadd.f32 %v1046_v13, %v950_v53  ;;  %1265 = vmatmul.f32.gmra.mxu3 %v1163_v3  ;;  %1431 = vmatmul.f32.gmra.mxu0 %v1331_v0  ;;  %v1165_v3 = vld [vmem:[%s3343_s0 + $0xcd] sm:$0xff]  ;;  %v1335_v56 = vld [vmem:[%s3343_s0 + $0xd6] sm:$0xff] }
 0x1d6   :  { %v1640_v4 = vld [vmem:[#allocation2 + $0xa] sm:$0xff]  ;;  %v880_v24 = vpop.f32.mrf.mxu1 }
 0x1d7   :  { %v1665_v9 = vld [vmem:[#allocation2 + $0xb] sm:$0xff]  ;;  %1541 = vst [vmem:[#allocation2 + $0x18] sm:$0xff] %v1514_v29  ;;  %v1288_v50 = vadd.f32 %v1215_v48, %v1119_v42  ;;  %v951_v63 = vadd.f32 %v880_v24, %v2751_v44 }
 0x1d8   :  { %v1690_v2 = vmax.f32 %v1640_v4, %v1665_v9  ;;  %v1218_v12 = vpop.f32.mrf.mxu3  ;;  %v1591_v30 = vld [vmem:[#allocation2 + $0x9] sm:$0xff] }
 0x1d9   :  { %v1457_v18 = vadd.f32 %v1384_v51, %v1288_v50  ;;  %927 = vmatmul.f32.gmra.mxu1 %v993_v61  ;;  %1096 = vmatmul.f32.gmra.mxu2 %v994_v7  ;;  %v1616_v44 = vmax.f32 %v1512_v45, %v1591_v30 }
 0x1da   :  { %v1715_v23 = vmax.f32 %v1615_v52, %v1690_v2  ;;  %v1387_v39 = vpop.f32.mrf.mxu0 }
 0x1db   :  { %v3106_v26 = vadd.f32 %v3027_v21, %v1457_v18 }
 0x1dc   :  { %1740 = vst [vmem:[%s3345_s3] sm:$0xff] %v1715_v23  ;;  %v1049_v46 = vpop.f32.mrf.mxu2 }
 0x1dd   :  { %v1515_v59 = vmax.f32 %v3106_v26, 0.0  ;;  %v1120_v11 = vadd.f32 %v1049_v46, %v951_v63  ;;  %1268 = vmatmul.f32.gmra.mxu3 %v1164_v19  ;;  %1434 = vmatmul.f32.gmra.mxu0 %v1332_v38  ;;  %v1336_v26 = vld [vmem:[%s3343_s0 + $0xde] sm:$0xff] }
 0x1de   :  { %v1641_v34 = vld [vmem:[#allocation2 + $0x12] sm:$0xff]  ;;  %v883_v36 = vpop.f32.mrf.mxu1 }
 0x1df   :  { %v1666_v32 = vld [vmem:[#allocation2 + $0x13] sm:$0xff]  ;;  %1542 = vst [vmem:[#allocation2 + $0x20] sm:$0xff] %v1515_v59  ;;  %v1289_v61 = vadd.f32 %v1218_v12, %v1120_v11  ;;  %v952_v45 = vadd.f32 %v883_v36, %v2769_v6 }
 0x1e0   :  { %v1691_v41 = vmax.f32 %v1641_v34, %v1666_v32  ;;  %v1221_v5 = vpop.f32.mrf.mxu3  ;;  %v1592_v53 = vld [vmem:[#allocation2 + $0x11] sm:$0xff] }
 0x1e1   :  { %v1458_v1 = vadd.f32 %v1387_v39, %v1289_v61  ;;  %930 = vmatmul.f32.gmra.mxu1 %v994_v7  ;;  %1099 = vmatmul.f32.gmra.mxu2 %v995_v28  ;;  %v996_v7 = vld [vmem:[%s3343_s0 + $0xcc] sm:$0xff]  ;;  %v1617_v6 = vmax.f32 %v1513_v47, %v1592_v53  ;;  %v1166_v39 = vld [vmem:[%s3343_s0 + $0xd5] sm:$0xff] }
 0x1e2   :  { %v1716_v48 = vmax.f32 %v1616_v44, %v1691_v41  ;;  %v1390_v51 = vpop.f32.mrf.mxu0  ;;  %v997_v36 = vld [vmem:[%s3343_s0 + $0xd4] sm:$0xff] }
 0x1e3   :  { %v3127_v0 = vadd.f32 %v3027_v21, %v1458_v1  ;;  %v1167_v1 = vld [vmem:[%s3343_s0 + $0xdd] sm:$0xff] }
 0x1e4   :  { %1741 = vst [vmem:[%s3345_s3 + $0x8] sm:$0xff] %v1716_v48  ;;  %v1052_v58 = vpop.f32.mrf.mxu2 }
 0x1e5   :  { %v1516_v13 = vmax.f32 %v3127_v0, 0.0  ;;  %v1121_v42 = vadd.f32 %v1052_v58, %v952_v45  ;;  %1271 = vmatmul.f32.gmra.mxu3 %v1165_v3  ;;  %1437 = vmatmul.f32.gmra.mxu0 %v1333_v17 }
 0x1e6   :  { %v1642_v4 = vld [vmem:[#allocation2 + $0x1a] sm:$0xff]  ;;  %v886_v24 = vpop.f32.mrf.mxu1 }
 0x1e7   :  { %v1667_v9 = vld [vmem:[#allocation2 + $0x1b] sm:$0xff]  ;;  %1543 = vst [vmem:[#allocation2 + $0x28] sm:$0xff] %v1516_v13  ;;  %v1290_v2 = vadd.f32 %v1221_v5, %v1121_v42  ;;  %v953_v47 = vadd.f32 %v886_v24, %v2781_v20 }
 0x1e8   :  { %v1692_v52 = vmax.f32 %v1642_v4, %v1667_v9  ;;  %v1224_v50 = vpop.f32.mrf.mxu3  ;;  %v1593_v38 = vld [vmem:[#allocation2 + $0x19] sm:$0xff] }
 0x1e9   :  { %v1459_v23 = vadd.f32 %v1390_v51, %v1290_v2  ;;  %933 = vmatmul.f32.gmra.mxu1 %v995_v28  ;;  %1102 = vmatmul.f32.gmra.mxu2 %v996_v7  ;;  %v1618_v20 = vmax.f32 %v1514_v29, %v1593_v38  ;;  %v998_v9 = vld [vmem:[%s3343_s0 + $0xdc] sm:$0xff] }
 0x1ea   :  { %v1717_v12 = vmax.f32 %v1617_v6, %v1692_v52  ;;  %v1393_v18 = vpop.f32.mrf.mxu0 }
 0x1eb   :  { %v3148_v19 = vadd.f32 %v3027_v21, %v1459_v23 }
 0x1ec   :  { %1742 = vst [vmem:[%s3345_s3 + $0x10] sm:$0xff] %v1717_v12  ;;  %v1055_v63 = vpop.f32.mrf.mxu2  ;;  %v1168_v12 = vld [vmem:[%s3343_s0 + $0xe5] sm:$0xff] }
 0x1ed   :  { %v1517_v30 = vmax.f32 %v3148_v19, 0.0  ;;  %v1122_v46 = vadd.f32 %v1055_v63, %v953_v47  ;;  %1274 = vmatmul.f32.gmra.mxu3 %v1166_v39  ;;  %1440 = vmatmul.f32.gmra.mxu0 %v1334_v55 }
 0x1ee   :  { %v1643_v11 = vld [vmem:[#allocation2 + $0x22] sm:$0xff]  ;;  %v889_v32 = vpop.f32.mrf.mxu1 }
 0x1ef   :  { %v1668_v34 = vld [vmem:[#allocation2 + $0x23] sm:$0xff]  ;;  %1544 = vst [vmem:[#allocation2 + $0x30] sm:$0xff] %v1517_v30  ;;  %v1291_v44 = vadd.f32 %v1224_v50, %v1122_v46  ;;  %v954_v29 = vadd.f32 %v889_v32, %v2793_v37 }
 0x1f0   :  { %v1693_v28 = vmax.f32 %v1643_v11, %v1668_v34  ;;  %v1227_v41 = vpop.f32.mrf.mxu3  ;;  %v1594_v3 = vld [vmem:[#allocation2 + $0x21] sm:$0xff] }
 0x1f1   :  { %v1460_v5 = vadd.f32 %v1393_v18, %v1291_v44  ;;  %936 = vmatmul.f32.gmra.mxu1 %v996_v7  ;;  %1105 = vmatmul.f32.gmra.mxu2 %v997_v36  ;;  %v1619_v37 = vmax.f32 %v1515_v59, %v1594_v3  ;;  %v999_v11 = vld [vmem:[%s3343_s0 + $0xe4] sm:$0xff] }
 0x1f2   :  { %v1718_v61 = vmax.f32 %v1618_v20, %v1693_v28  ;;  %v1396_v48 = vpop.f32.mrf.mxu0 }
 0x1f3   :  { %v3169_v51 = vadd.f32 %v3027_v21, %v1460_v5 }
 0x1f4   :  { %1743 = vst [vmem:[%s3345_s3 + $0x18] sm:$0xff] %v1718_v61  ;;  %v1058_v17 = vpop.f32.mrf.mxu2 }
 0x1f5   :  { %v1518_v45 = vmax.f32 %v3169_v51, 0.0  ;;  %v1123_v53 = vadd.f32 %v1058_v17, %v954_v29  ;;  %1277 = vmatmul.f32.gmra.mxu3 %v1167_v1  ;;  %1443 = vmatmul.f32.gmra.mxu0 %v1335_v56 }
 0x1f6   :  { %v1644_v58 = vld [vmem:[#allocation2 + $0x2a] sm:$0xff]  ;;  %v892_v4 = vpop.f32.mrf.mxu1 }
 0x1f7   :  { %v1669_v42 = vld [vmem:[#allocation2 + $0x2b] sm:$0xff]  ;;  %1545 = vst [vmem:[#allocation2 + $0x38] sm:$0xff] %v1518_v45  ;;  %v1292_v7 = vadd.f32 %v1227_v41, %v1123_v53  ;;  %v955_v59 = vadd.f32 %v892_v4, %v2805_v54 }
 0x1f8   :  { %v1694_v24 = vmax.f32 %v1644_v58, %v1669_v42  ;;  %v1230_v6 = vpop.f32.mrf.mxu3  ;;  %v1595_v18 = vld [vmem:[#allocation2 + $0x29] sm:$0xff] }
 0x1f9   :  { %v1461_v2 = vadd.f32 %v1396_v48, %v1292_v7  ;;  %939 = vmatmul.f32.gmra.mxu1 %v997_v36  ;;  %1108 = vmatmul.f32.gmra.mxu2 %v998_v9  ;;  %v1620_v54 = vmax.f32 %v1516_v13, %v1595_v18  ;;  %v1337_v41 = vld [vmem:[%s3343_s0 + $0xe6] sm:$0xff] }
 0x1fa   :  { %v1719_v52 = vmax.f32 %v1619_v37, %v1694_v24  ;;  %v1399_v50 = vpop.f32.mrf.mxu0 }
 0x1fb   :  { %v3190_v23 = vadd.f32 %v3027_v21, %v1461_v2 }
 0x1fc   :  { %1744 = vst [vmem:[%s3345_s3 + $0x20] sm:$0xff] %v1719_v52  ;;  %v1061_v39 = vpop.f32.mrf.mxu2 }
 0x1fd   :  { %v1519_v55 = vmax.f32 %v3190_v23, 0.0  ;;  %v1124_v47 = vadd.f32 %v1061_v39, %v955_v59  ;;  %1280 = vmatmul.f32.gmra.mxu3 %v1168_v12  ;;  %1446 = vmatmul.f32.gmra.mxu0 %v1336_v26 }
 0x1fe   :  { %v1645_v38 = vld [vmem:[#allocation2 + $0x32] sm:$0xff]  ;;  %v895_v46 = vpop.f32.mrf.mxu1 }
 0x1ff   :  { %v1670_v63 = vld [vmem:[#allocation2 + $0x33] sm:$0xff]  ;;  %1546 = vst [vmem:[#allocation2 + $0x40] sm:$0xff] %v1519_v55  ;;  %v1293_v32 = vadd.f32 %v1230_v6, %v1124_v47  ;;  %v956_v0 = vadd.f32 %v895_v46, %v2820_v10 }
 0x200   :  { %v1695_v34 = vmax.f32 %v1645_v38, %v1670_v63  ;;  %v1233_v36 = vpop.f32.mrf.mxu3  ;;  %v1596_v61 = vld [vmem:[#allocation2 + $0x31] sm:$0xff] }
 0x201   :  { %v1462_v28 = vadd.f32 %v1399_v50, %v1293_v32  ;;  %942 = vmatmul.f32.gmra.mxu1 %v998_v9  ;;  %1111 = vmatmul.f32.gmra.mxu2 %v999_v11  ;;  %v1621_v17 = vmax.f32 %v1517_v30, %v1596_v61 }
 0x202   :  { %v1720_v20 = vmax.f32 %v1620_v54, %v1695_v34  ;;  %v1402_v44 = vpop.f32.mrf.mxu0 }
 0x203   :  { %v3208_v13 = vadd.f32 %v3027_v21, %v1462_v28 }
 0x204   :  { %1745 = vst [vmem:[%s3345_s3 + $0x28] sm:$0xff] %v1720_v20  ;;  %v1064_v5 = vpop.f32.mrf.mxu2 }
 0x205   :  { %v1520_v48 = vmax.f32 %v3208_v13, 0.0  ;;  %v1125_v1 = vadd.f32 %v1064_v5, %v956_v0  ;;  %1449 = vmatmul.f32.gmra.mxu0 %v1337_v41 }
 0x206   :  { %v1646_v56 = vld [vmem:[#allocation2 + $0x3a] sm:$0xff]  ;;  %v898_v3 = vpop.f32.mrf.mxu1 }
 0x207   :  { %v1671_v29 = vld [vmem:[#allocation2 + $0x3b] sm:$0xff]  ;;  %1547 = vst [vmem:[#allocation2 + $0x48] sm:$0xff] %v1520_v48  ;;  %v1294_v58 = vadd.f32 %v1233_v36, %v1125_v1  ;;  %v957_v37 = vadd.f32 %v898_v3, %v2832_v27 }
 0x208   :  { %v1696_v53 = vmax.f32 %v1646_v56, %v1671_v29  ;;  %v1236_v42 = vpop.f32.mrf.mxu3  ;;  %v1597_v7 = vld [vmem:[#allocation2 + $0x39] sm:$0xff] }
 0x209   :  { %v1463_v4 = vadd.f32 %v1402_v44, %v1294_v58  ;;  %v1622_v12 = vmax.f32 %v1518_v45, %v1597_v7 }
 0x20a   :  { %v1721_v10 = vmax.f32 %v1621_v17, %v1696_v53  ;;  %v1405_v9 = vpop.f32.mrf.mxu0 }
 0x20b   :  { %v3218_v24 = vadd.f32 %v3027_v21, %v1463_v4 }
 0x20c   :  { %1746 = vst [vmem:[%s3345_s3 + $0x30] sm:$0xff] %v1721_v10  ;;  %v1067_v6 = vpop.f32.mrf.mxu2 }
 0x20d   :  { %v1521_v19 = vmax.f32 %v3218_v24, 0.0  ;;  %v1126_v30 = vadd.f32 %v1067_v6, %v957_v37 }
 0x20e   :  { %v1647_v52 = vld [vmem:[#allocation2 + $0x42] sm:$0xff]  ;;  %v901_v50 = vpop.f32.mrf.mxu1 }
 0x20f   :  { %v1672_v2 = vld [vmem:[#allocation2 + $0x43] sm:$0xff]  ;;  %1548 = vst [vmem:[#allocation2 + $0x50] sm:$0xff] %v1521_v19  ;;  %v1295_v59 = vadd.f32 %v1236_v42, %v1126_v30  ;;  %v958_v38 = vadd.f32 %v901_v50, %v2844_v25 }
 0x210   :  { %v1697_v26 = vmax.f32 %v1647_v52, %v1672_v2  ;;  %v1239_v18 = vpop.f32.mrf.mxu3  ;;  %v1598_v46 = vld [vmem:[#allocation2 + $0x41] sm:$0xff] }
 0x211   :  { %v1464_v27 = vadd.f32 %v1405_v9, %v1295_v59  ;;  %v1623_v36 = vmax.f32 %v1519_v55, %v1598_v46 }
 0x212   :  { %v1722_v39 = vmax.f32 %v1622_v12, %v1697_v26  ;;  %v1408_v47 = vpop.f32.mrf.mxu0 }
 0x213   :  { %v3228_v63 = vadd.f32 %v3027_v21, %v1464_v27 }
 0x214   :  { %1747 = vst [vmem:[%s3345_s3 + $0x38] sm:$0xff] %v1722_v39  ;;  %v1070_v11 = vpop.f32.mrf.mxu2 }
 0x215   :  { %v1522_v51 = vmax.f32 %v3228_v63, 0.0  ;;  %v1127_v45 = vadd.f32 %v1070_v11, %v958_v38 }
 0x216   :  { %v1648_v54 = vld [vmem:[#allocation2 + $0x4a] sm:$0xff]  ;;  %v904_v32 = vpop.f32.mrf.mxu1 }
 0x217   :  { %v1673_v34 = vld [vmem:[#allocation2 + $0x4b] sm:$0xff]  ;;  %1549 = vst [vmem:[#allocation2 + $0x58] sm:$0xff] %v1522_v51  ;;  %v1296_v28 = vadd.f32 %v1239_v18, %v1127_v45  ;;  %v959_v13 = vadd.f32 %v904_v32, %v2856_v62 }
 0x218   :  { %v1698_v20 = vmax.f32 %v1648_v54, %v1673_v34  ;;  %v1242_v44 = vpop.f32.mrf.mxu3  ;;  %v1599_v5 = vld [vmem:[#allocation2 + $0x49] sm:$0xff] }
 0x219   :  { %v1465_v25 = vadd.f32 %v1408_v47, %v1296_v28  ;;  %v1624_v17 = vmax.f32 %v1520_v48, %v1599_v5 }
 0x21a   :  { %v1723_v41 = vmax.f32 %v1623_v36, %v1698_v20  ;;  %v1411_v0 = vpop.f32.mrf.mxu0 }
 0x21b   :  { %v3238_v61 = vadd.f32 %v3027_v21, %v1465_v25 }
 0x21c   :  { %1748 = vst [vmem:[%s3345_s3 + $0x40] sm:$0xff] %v1723_v41  ;;  %v1073_v1 = vpop.f32.mrf.mxu2 }
 0x21d   :  { %v1523_v23 = vmax.f32 %v3238_v61, 0.0  ;;  %v1128_v55 = vadd.f32 %v1073_v1, %v959_v13 }
 0x21e   :  { %v1649_v56 = vld [vmem:[#allocation2 + $0x52] sm:$0xff]  ;;  %v907_v3 = vpop.f32.mrf.mxu1 }
 0x21f   :  { %v1674_v29 = vld [vmem:[#allocation2 + $0x53] sm:$0xff]  ;;  %1550 = vst [vmem:[#allocation2 + $0x60] sm:$0xff] %v1523_v23  ;;  %v1297_v58 = vadd.f32 %v1242_v44, %v1128_v55  ;;  %v960_v62 = vadd.f32 %v907_v3, %v2868_v15 }
 0x220   :  { %v1699_v53 = vmax.f32 %v1649_v56, %v1674_v29  ;;  %v1245_v42 = vpop.f32.mrf.mxu3  ;;  %v1600_v24 = vld [vmem:[#allocation2 + $0x51] sm:$0xff] }
 0x221   :  { %v1466_v4 = vadd.f32 %v1411_v0, %v1297_v58  ;;  %v1625_v50 = vmax.f32 %v1521_v19, %v1600_v24 }
 0x222   :  { %v1724_v10 = vmax.f32 %v1624_v17, %v1699_v53  ;;  %v1414_v9 = vpop.f32.mrf.mxu0 }
 0x223   :  { %v3246_v37 = vadd.f32 %v3027_v21, %v1466_v4 }
 0x224   :  { %1749 = vst [vmem:[%s3345_s3 + $0x48] sm:$0xff] %v1724_v10  ;;  %v1076_v7 = vpop.f32.mrf.mxu2 }
 0x225   :  { %v1524_v48 = vmax.f32 %v3246_v37, 0.0  ;;  %v1129_v6 = vadd.f32 %v1076_v7, %v960_v62 }
 0x226   :  { %v1650_v30 = vld [vmem:[#allocation2 + $0x5a] sm:$0xff]  ;;  %v910_v2 = vpop.f32.mrf.mxu1 }
 0x227   :  { %v1675_v52 = vld [vmem:[#allocation2 + $0x5b] sm:$0xff]  ;;  %1551 = vst [vmem:[#allocation2 + $0x68] sm:$0xff] %v1524_v48  ;;  %v1298_v26 = vadd.f32 %v1245_v42, %v1129_v6  ;;  %v961_v15 = vadd.f32 %v910_v2, %v2880_v33 }
 0x228   :  { %v1700_v12 = vmax.f32 %v1650_v30, %v1675_v52  ;;  %v1248_v59 = vpop.f32.mrf.mxu3  ;;  %v1601_v38 = vld [vmem:[#allocation2 + $0x59] sm:$0xff] }
 0x229   :  { %v1467_v39 = vadd.f32 %v1414_v9, %v1298_v26  ;;  %v1626_v34 = vmax.f32 %v1522_v51, %v1601_v38 }
 0x22a   :  { %v1725_v18 = vmax.f32 %v1625_v50, %v1700_v12  ;;  %v1417_v27 = vpop.f32.mrf.mxu0 }
 0x22b   :  { %v3254_v47 = vadd.f32 %v3027_v21, %v1467_v39 }
 0x22c   :  { %1750 = vst [vmem:[%s3345_s3 + $0x50] sm:$0xff] %v1725_v18  ;;  %v1079_v63 = vpop.f32.mrf.mxu2 }
 0x22d   :  { %v1525_v19 = vmax.f32 %v3254_v47, 0.0  ;;  %v1130_v46 = vadd.f32 %v1079_v63, %v961_v15 }
 0x22e   :  { %v1651_v11 = vld [vmem:[#allocation2 + $0x62] sm:$0xff]  ;;  %v913_v54 = vpop.f32.mrf.mxu1 }
 0x22f   :  { %v1676_v45 = vld [vmem:[#allocation2 + $0x63] sm:$0xff]  ;;  %1552 = vst [vmem:[#allocation2 + $0x70] sm:$0xff] %v1525_v19  ;;  %v1299_v36 = vadd.f32 %v1248_v59, %v1130_v46  ;;  %v962_v33 = vadd.f32 %v913_v54, %v2892_v49 }
 0x230   :  { %v1701_v32 = vmax.f32 %v1651_v11, %v1676_v45  ;;  %v1251_v20 = vpop.f32.mrf.mxu3  ;;  %v1602_v0 = vld [vmem:[#allocation2 + $0x61] sm:$0xff] }
 0x231   :  { %v1468_v44 = vadd.f32 %v1417_v27, %v1299_v36  ;;  %v1627_v56 = vmax.f32 %v1523_v23, %v1602_v0 }
 0x232   :  { %v1726_v28 = vmax.f32 %v1626_v34, %v1701_v32  ;;  %v1420_v41 = vpop.f32.mrf.mxu0 }
 0x233   :  { %v3262_v25 = vadd.f32 %v3027_v21, %v1468_v44 }
 0x234   :  { %1751 = vst [vmem:[%s3345_s3 + $0x58] sm:$0xff] %v1726_v28  ;;  %v1082_v13 = vpop.f32.mrf.mxu2 }
 0x235   :  { %v1526_v51 = vmax.f32 %v3262_v25, 0.0  ;;  %v1131_v61 = vadd.f32 %v1082_v13, %v962_v33 }
 0x236   :  { %v1652_v5 = vld [vmem:[#allocation2 + $0x6a] sm:$0xff]  ;;  %v916_v55 = vpop.f32.mrf.mxu1 }
 0x237   :  { %v1677_v1 = vld [vmem:[#allocation2 + $0x6b] sm:$0xff]  ;;  %1553 = vst [vmem:[#allocation2 + $0x78] sm:$0xff] %v1526_v51  ;;  %v1300_v3 = vadd.f32 %v1251_v20, %v1131_v61  ;;  %v963_v49 = vadd.f32 %v916_v55, %v2904_v35 }
 0x238   :  { %v1702_v29 = vmax.f32 %v1652_v5, %v1677_v1  ;;  %v1254_v17 = vpop.f32.mrf.mxu3  ;;  %v1603_v4 = vld [vmem:[#allocation2 + $0x69] sm:$0xff] }
 0x239   :  { %v1469_v58 = vadd.f32 %v1420_v41, %v1300_v3  ;;  %v1628_v6 = vmax.f32 %v1524_v48, %v1603_v4 }
 0x23a   :  { %v1727_v53 = vmax.f32 %v1627_v56, %v1702_v29  ;;  %v1423_v42 = vpop.f32.mrf.mxu0 }
 0x23b   :  { %v3270_v10 = vadd.f32 %v3027_v21, %v1469_v58 }
 0x23c   :  { %1752 = vst [vmem:[%s3345_s3 + $0x60] sm:$0xff] %v1727_v53  ;;  %v1085_v9 = vpop.f32.mrf.mxu2 }
 0x23d   :  { %v1527_v23 = vmax.f32 %v3270_v10, 0.0  ;;  %v1132_v62 = vadd.f32 %v1085_v9, %v963_v49 }
 0x23e   :  { %v1653_v37 = vld [vmem:[#allocation2 + $0x72] sm:$0xff]  ;;  %v919_v7 = vpop.f32.mrf.mxu1 }
 0x23f   :  { %v1678_v24 = vld [vmem:[#allocation2 + $0x73] sm:$0xff]  ;;  %1554 = vst [vmem:[#allocation2 + $0x80] sm:$0xff] %v1527_v23  ;;  %v1301_v52 = vadd.f32 %v1254_v17, %v1132_v62  ;;  %v964_v35 = vadd.f32 %v919_v7, %v2916_v22 }
 0x240   :  { %v1703_v30 = vmax.f32 %v1653_v37, %v1678_v24  ;;  %v1257_v2 = vpop.f32.mrf.mxu3  ;;  %v1604_v18 = vld [vmem:[#allocation2 + $0x71] sm:$0xff] }
 0x241   :  { %v1470_v12 = vadd.f32 %v1423_v42, %v1301_v52  ;;  %v1629_v63 = vmax.f32 %v1525_v19, %v1604_v18 }
 0x242   :  { %v1728_v50 = vmax.f32 %v1628_v6, %v1703_v30  ;;  %v1426_v26 = vpop.f32.mrf.mxu0 }
 0x243   :  { %v3278_v59 = vadd.f32 %v3027_v21, %v1470_v12 }
 0x244   :  { %1753 = vst [vmem:[%s3345_s3 + $0x68] sm:$0xff] %v1728_v50  ;;  %v1088_v39 = vpop.f32.mrf.mxu2 }
 0x245   :  { %v1528_v48 = vmax.f32 %v3278_v59, 0.0  ;;  %v1133_v27 = vadd.f32 %v1088_v39, %v964_v35 }
 0x246   :  { %v1654_v15 = vld [vmem:[#allocation2 + $0x7a] sm:$0xff]  ;;  %v922_v38 = vpop.f32.mrf.mxu1 }
 0x247   :  { %v1679_v47 = vld [vmem:[#allocation2 + $0x7b] sm:$0xff]  ;;  %1555 = vst [vmem:[#allocation2 + $0x88] sm:$0xff] %v1528_v48  ;;  %v1302_v11 = vadd.f32 %v1257_v2, %v1133_v27  ;;  %v965_v22 = vadd.f32 %v922_v38, %v2928_v40 }
 0x248   :  { %v1704_v46 = vmax.f32 %v1654_v15, %v1679_v47  ;;  %v1260_v45 = vpop.f32.mrf.mxu3  ;;  %v1605_v20 = vld [vmem:[#allocation2 + $0x79] sm:$0xff] }
 0x249   :  { %v1471_v34 = vadd.f32 %v1426_v26, %v1302_v11  ;;  %v1630_v0 = vmax.f32 %v1526_v51, %v1605_v20 }
 0x24a   :  { %v1729_v54 = vmax.f32 %v1629_v63, %v1704_v46  ;;  %v1429_v32 = vpop.f32.mrf.mxu0 }
 0x24b   :  { %v3286_v36 = vadd.f32 %v3027_v21, %v1471_v34 }
 0x24c   :  { %1754 = vst [vmem:[%s3345_s3 + $0x70] sm:$0xff] %v1729_v54  ;;  %v1091_v28 = vpop.f32.mrf.mxu2 }
 0x24d   :  { %v1529_v19 = vmax.f32 %v3286_v36, 0.0  ;;  %v1134_v44 = vadd.f32 %v1091_v28, %v965_v22 }
 0x24e   :  { %v1655_v41 = vld [vmem:[#allocation2 + $0x82] sm:$0xff]  ;;  %v925_v25 = vpop.f32.mrf.mxu1 }
 0x24f   :  { %v1680_v33 = vld [vmem:[#allocation2 + $0x83] sm:$0xff]  ;;  %1556 = vst [vmem:[#allocation2 + $0x90] sm:$0xff] %v1529_v19  ;;  %v1303_v61 = vadd.f32 %v1260_v45, %v1134_v44  ;;  %v966_v40 = vadd.f32 %v925_v25, %v2940_v57 }
 0x250   :  { %v1705_v13 = vmax.f32 %v1655_v41, %v1680_v33  ;;  %v1263_v5 = vpop.f32.mrf.mxu3  ;;  %v1606_v3 = vld [vmem:[#allocation2 + $0x81] sm:$0xff] }
 0x251   :  { %v1472_v55 = vadd.f32 %v1429_v32, %v1303_v61  ;;  %v1631_v10 = vmax.f32 %v1527_v23, %v1606_v3 }
 0x252   :  { %v1730_v1 = vmax.f32 %v1630_v0, %v1705_v13  ;;  %v1432_v56 = vpop.f32.mrf.mxu0 }
 0x253   :  { %v3294_v29 = vadd.f32 %v3027_v21, %v1472_v55 }
 0x254   :  { %1755 = vst [vmem:[%s3345_s3 + $0x78] sm:$0xff] %v1730_v1  ;;  %v1094_v17 = vpop.f32.mrf.mxu2 }
 0x255   :  { %v1530_v51 = vmax.f32 %v3294_v29, 0.0  ;;  %v1135_v53 = vadd.f32 %v1094_v17, %v966_v40 }
 0x256   :  { %v1656_v58 = vld [vmem:[#allocation2 + $0x8a] sm:$0xff]  ;;  %v928_v49 = vpop.f32.mrf.mxu1 }
 0x257   :  { %v1681_v42 = vld [vmem:[#allocation2 + $0x8b] sm:$0xff]  ;;  %1557 = vst [vmem:[#allocation2 + $0x98] sm:$0xff] %v1530_v51  ;;  %v1304_v9 = vadd.f32 %v1263_v5, %v1135_v53  ;;  %v967_v57 = vadd.f32 %v928_v49, %v2952_v8 }
 0x258   :  { %v1706_v4 = vmax.f32 %v1656_v58, %v1681_v42  ;;  %v1266_v62 = vpop.f32.mrf.mxu3  ;;  %v1607_v30 = vld [vmem:[#allocation2 + $0x89] sm:$0xff] }
 0x259   :  { %v1473_v24 = vadd.f32 %v1432_v56, %v1304_v9  ;;  %v1632_v35 = vmax.f32 %v1528_v48, %v1607_v30 }
 0x25a   :  { %v1731_v37 = vmax.f32 %v1631_v10, %v1706_v4  ;;  %v1435_v7 = vpop.f32.mrf.mxu0 }
 0x25b   :  { %v3302_v6 = vadd.f32 %v3027_v21, %v1473_v24 }
 0x25c   :  { %1756 = vst [vmem:[%s3345_s3 + $0x80] sm:$0xff] %v1731_v37  ;;  %v1097_v52 = vpop.f32.mrf.mxu2 }
 0x25d   :  { %v1531_v23 = vmax.f32 %v3302_v6, 0.0  ;;  %v1136_v2 = vadd.f32 %v1097_v52, %v967_v57 }
 0x25e   :  { %v1657_v50 = vld [vmem:[#allocation2 + $0x92] sm:$0xff]  ;;  %v931_v26 = vpop.f32.mrf.mxu1 }
 0x25f   :  { %v1682_v12 = vld [vmem:[#allocation2 + $0x93] sm:$0xff]  ;;  %1558 = vst [vmem:[#allocation2 + $0xa0] sm:$0xff] %v1531_v23  ;;  %v1305_v18 = vadd.f32 %v1266_v62, %v1136_v2  ;;  %v968_v8 = vadd.f32 %v931_v26, %v2964_v16 }
 0x260   :  { %v1707_v59 = vmax.f32 %v1657_v50, %v1682_v12  ;;  %v1269_v39 = vpop.f32.mrf.mxu3  ;;  %v1608_v63 = vld [vmem:[#allocation2 + $0x91] sm:$0xff] }
 0x261   :  { %v1474_v15 = vadd.f32 %v1435_v7, %v1305_v18  ;;  %v1633_v32 = vmax.f32 %v1529_v19, %v1608_v63 }
 0x262   :  { %v1732_v27 = vmax.f32 %v1632_v35, %v1707_v59  ;;  %v1438_v47 = vpop.f32.mrf.mxu0 }
 0x263   :  { %v1505_v38 = vadd.f32 %v3027_v21, %v1474_v15 }
 0x264   :  { %1757 = vst [vmem:[%s3345_s3 + $0x88] sm:$0xff] %v1732_v27  ;;  %v1100_v46 = vpop.f32.mrf.mxu2 }
 0x265   :  { %v1532_v11 = vmax.f32 %v1505_v38, 0.0  ;;  %v1137_v45 = vadd.f32 %v1100_v46, %v968_v8 }
 0x266   :  { %v1658_v48 = vld [vmem:[#allocation2 + $0x9a] sm:$0xff]  ;;  %v934_v34 = vpop.f32.mrf.mxu1 }
 0x267   :  { %v1683_v54 = vld [vmem:[#allocation2 + $0x9b] sm:$0xff]  ;;  %1559 = vst [vmem:[#allocation2 + $0xa8] sm:$0xff] %v1532_v11  ;;  %v1306_v36 = vadd.f32 %v1269_v39, %v1137_v45  ;;  %v969_v16 = vadd.f32 %v934_v34, %v2976_v43 }
 0x268   :  { %v1708_v22 = vmax.f32 %v1658_v48, %v1683_v54  ;;  %v1272_v20 = vpop.f32.mrf.mxu3  ;;  %v1609_v25 = vld [vmem:[#allocation2 + $0x99] sm:$0xff] }
 0x269   :  { %v1475_v44 = vadd.f32 %v1438_v47, %v1306_v36  ;;  %v1634_v55 = vmax.f32 %v1530_v51, %v1609_v25 }
 0x26a   :  { %v1733_v28 = vmax.f32 %v1633_v32, %v1708_v22  ;;  %v1441_v41 = vpop.f32.mrf.mxu0 }
 0x26b   :  { %v1506_v33 = vadd.f32 %v3027_v21, %v1475_v44 }
 0x26c   :  { %1758 = vst [vmem:[%s3345_s3 + $0x90] sm:$0xff] %v1733_v28  ;;  %v1103_v0 = vpop.f32.mrf.mxu2 }
 0x26d   :  { %v1533_v13 = vmax.f32 %v1506_v33, 0.0  ;;  %v1138_v61 = vadd.f32 %v1103_v0, %v969_v16 }
 0x26e   :  { %v1659_v19 = vld [vmem:[#allocation2 + $0xa2] sm:$0xff]  ;;  %v937_v1 = vpop.f32.mrf.mxu1 }
 0x26f   :  { %v1684_v5 = vld [vmem:[#allocation2 + $0xa3] sm:$0xff]  ;;  %1560 = vst [vmem:[#allocation2 + $0xb0] sm:$0xff] %v1533_v13  ;;  %v1307_v40 = vadd.f32 %v1272_v20, %v1138_v61  ;;  %v970_v43 = vadd.f32 %v937_v1, %v2988_v60 }
 0x270   :  { %v1709_v56 = vmax.f32 %v1659_v19, %v1684_v5  ;;  %v1275_v29 = vpop.f32.mrf.mxu3  ;;  %v1610_v42 = vld [vmem:[#allocation2 + $0xa1] sm:$0xff] }
 0x271   :  { %v1476_v17 = vadd.f32 %v1441_v41, %v1307_v40  ;;  %v1635_v37 = vmax.f32 %v1531_v23, %v1610_v42 }
 0x272   :  { %v1734_v3 = vmax.f32 %v1634_v55, %v1709_v56  ;;  %v1444_v53 = vpop.f32.mrf.mxu0 }
 0x273   :  { %v1507_v58 = vadd.f32 %v3027_v21, %v1476_v17 }
 0x274   :  { %1759 = vst [vmem:[%s3345_s3 + $0x98] sm:$0xff] %v1734_v3  ;;  %v1106_v49 = vpop.f32.mrf.mxu2 }
 0x275   :  { %v1534_v10 = vmax.f32 %v1507_v58, 0.0  ;;  %v1139_v4 = vadd.f32 %v1106_v49, %v970_v43 }
 0x276   :  { %v1660_v51 = vld [vmem:[#allocation2 + $0xaa] sm:$0xff]  ;;  %v940_v62 = vpop.f32.mrf.mxu1 }
 0x277   :  { %v1685_v9 = vld [vmem:[#allocation2 + $0xab] sm:$0xff]  ;;  %1561 = vst [vmem:[#allocation2 + $0xb8] sm:$0xff] %v1534_v10  ;;  %v1308_v7 = vadd.f32 %v1275_v29, %v1139_v4  ;;  %v971_v60 = vadd.f32 %v940_v62, %v3000_v14 }
 0x278   :  { %v1710_v24 = vmax.f32 %v1660_v51, %v1685_v9  ;;  %v1278_v30 = vpop.f32.mrf.mxu3  ;;  %v1611_v2 = vld [vmem:[#allocation2 + $0xa9] sm:$0xff] }
 0x279   :  { %v1477_v6 = vadd.f32 %v1444_v53, %v1308_v7  ;;  %v1636_v18 = vmax.f32 %v1532_v11, %v1611_v2 }
 0x27a   :  { %v1735_v57 = vmax.f32 %v1635_v37, %v1710_v24  ;;  %v1447_v12 = vpop.f32.mrf.mxu0 }
 0x27b   :  { %v1508_v52 = vadd.f32 %v3027_v21, %v1477_v6 }
 0x27c   :  { %1760 = vst [vmem:[%s3345_s3 + $0xa0] sm:$0xff] %v1735_v57  ;;  %v1109_v50 = vpop.f32.mrf.mxu2 }
 0x27d   :  { %v1535_v26 = vmax.f32 %v1508_v52, 0.0  ;;  %v1140_v35 = vadd.f32 %v1109_v50, %v971_v60 }
 0x27e   :  { %v1661_v23 = vld [vmem:[#allocation2 + $0xb2] sm:$0xff]  ;;  %v943_v15 = vpop.f32.mrf.mxu1 }
 0x27f   :  { %v1686_v59 = vld [vmem:[#allocation2 + $0xb3] sm:$0xff]  ;;  %1562 = vst [vmem:[#allocation2 + $0xc0] sm:$0xff] %v1535_v26  ;;  %v1309_v27 = vadd.f32 %v1278_v30, %v1140_v35  ;;  %v972_v14 = vadd.f32 %v943_v15, %v3012_v31  ;;  %v1946_v31 = vld [vmem:[%s3344_s2] ss:$0 sm:$0xff] }
 0x280   :  { %v1711_v39 = vmax.f32 %v1661_v23, %v1686_v59  ;;  %v1612_v63 = vld [vmem:[#allocation2 + $0xb1] sm:$0xff]  ;;  %v1281_v45 = vpop.f32.mrf.mxu3 }
 0x281   :  { %v1478_v8 = vadd.f32 %v1447_v12, %v1309_v27  ;;  %v1637_v22 = vmax.f32 %v1533_v13, %v1612_v63 }
 0x282   :  { %v1736_v47 = vmax.f32 %v1636_v18, %v1711_v39  ;;  %v1450_v32 = vpop.f32.mrf.mxu0 }
 0x283   :  { %v1509_v38 = vadd.f32 %v3027_v21, %v1478_v8 }
 0x284   :  { %1761 = vst [vmem:[%s3345_s3 + $0xa8] sm:$0xff] %v1736_v47  ;;  %v1112_v46 = vpop.f32.mrf.mxu2 }
 0x285   :  { %v1536_v48 = vmax.f32 %v1509_v38, 0.0  ;;  %v1141_v54 = vadd.f32 %v1112_v46, %v972_v14 }
 0x286   :  { %v1662_v11 = vld [vmem:[#allocation2 + $0xba] sm:$0xff] }
 0x287   :  { %v1687_v34 = vld [vmem:[#allocation2 + $0xbb] sm:$0xff]  ;;  %1563 = vst [vmem:[#allocation2 + $0xc8] sm:$0xff] %v1536_v48  ;;  %v1310_v20 = vadd.f32 %v1281_v45, %v1141_v54 }
 0x288   :  { %v1712_v36 = vmax.f32 %v1662_v11, %v1687_v34  ;;  %v1613_v41 = vld [vmem:[#allocation2 + $0xb9] sm:$0xff] }
 0x289   :  { %v1479_v44 = vadd.f32 %v1450_v32, %v1310_v20  ;;  %v1638_v0 = vmax.f32 %v1534_v10, %v1613_v41 }
 0x28a   :  { %v1737_v28 = vmax.f32 %v1637_v22, %v1712_v36 }
 0x28b   :  { %v1510_v21 = vadd.f32 %v1946_v31, %v1479_v44 }
 0x28c   :  { %1762 = vst [vmem:[%s3345_s3 + $0xb0] sm:$0xff] %v1737_v28 }
 0x28d   :  { %v1537_v16 = vmax.f32 %v1510_v21, 0.0 }
 0x28e   :  { %v1663_v33 = vld [vmem:[#allocation2 + $0xc2] sm:$0xff] }
 0x28f   :  { %v1688_v25 = vld [vmem:[#allocation2 + $0xc3] sm:$0xff]  ;;  %1564 = vst [vmem:[#allocation2 + $0xd0] sm:$0xff] %v1537_v16 }
 0x290   :  { %v1713_v13 = vmax.f32 %v1663_v33, %v1688_v25  ;;  %v1614_v19 = vld [vmem:[#allocation2 + $0xc1] sm:$0xff] }
 0x291   :  { %v1639_v55 = vmax.f32 %v1535_v26, %v1614_v19 }
 0x292   :  { %v1738_v61 = vmax.f32 %v1638_v0, %v1713_v13 }
 0x294   :  { %1763 = vst [vmem:[%s3345_s3 + $0xb8] sm:$0xff] %v1738_v61 }
 0x296   :  { %v1664_v5 = vld [vmem:[#allocation2 + $0xca] sm:$0xff] }
 0x297   :  { %v1689_v1 = vld [vmem:[#allocation2 + $0xcb] sm:$0xff] }
 0x298   :  { %v1714_v56 = vmax.f32 %v1664_v5, %v1689_v1 }
 0x29a   :  { %v1739_v40 = vmax.f32 %v1639_v55, %v1714_v56 }
 0x29c   :  { %1764 = vst [vmem:[%s3345_s3 + $0xc0] sm:$0xff] %v1739_v40 }

// kernel: forward.3
= control target key start
LH: loop header
LB: loop body
LE: loop exit
PB: predicated region body
PF: predicated region fallthrough
CT: control target
= control target key end

     0   :  { %s8661_s1 = inlined_call_operand.vmem [shape: f32[9,128,128], index: 1, kind: input, shape index: {}]   ;;  %s8662_s0 = inlined_call_operand.vmem [shape: f32[712,128], index: 0, kind: input, shape index: {}]   ;;  %s8663_s2 = inlined_call_operand.vmem [shape: f32[1,128], index: 2, kind: input, shape index: {}]   ;;  %s8664_s3 = inlined_call_operand.vmem [shape: f32[648,128], index: 3, kind: output, shape index: {}]  }
   0x1   :  { %v4854_v0 = vld [vmem:[%s8661_s1 + $0xf8] sm:$0xff]  ;;  %v4853_v1 = vld [vmem:[%s8661_s1 + $0xf0] sm:$0xff]  ;;  %v4852_v2 = vld [vmem:[%s8661_s1 + $0xe8] sm:$0xff] }
   0x2   :  { %4967 = vmatpush.msra.mxu1 %v4854_v0  ;;  %4968 = vmatpush.msra.mxu2 %v4854_v0  ;;  %v4851_v3 = vld [vmem:[%s8661_s1 + $0xe0] sm:$0xff]  ;;  %v4850_v4 = vld [vmem:[%s8661_s1 + $0xd8] sm:$0xff]  ;;  %v4849_v5 = vld [vmem:[%s8661_s1 + $0xd0] sm:$0xff] }
   0x3   :  { %4969 = vmatpush.msra.mxu3 %v4854_v0  ;;  %215 = vmatpush.msra.mxu0 %v4854_v0  ;;  %v4848_v6 = vld [vmem:[%s8661_s1 + $0xc8] sm:$0xff]  ;;  %v4847_v7 = vld [vmem:[%s8661_s1 + $0xc0] sm:$0xff]  ;;  %v4846_v8 = vld [vmem:[%s8661_s1 + $0xb8] sm:$0xff] }
   0x4   :  { %4970 = vmatpush.msra.mxu1 %v4853_v1  ;;  %4971 = vmatpush.msra.mxu2 %v4853_v1  ;;  %v4845_v9 = vld [vmem:[%s8661_s1 + $0xb0] sm:$0xff]  ;;  %v4844_v10 = vld [vmem:[%s8661_s1 + $0xa8] sm:$0xff]  ;;  %v4843_v11 = vld [vmem:[%s8661_s1 + $0xa0] sm:$0xff] }
   0x5   :  { %4972 = vmatpush.msra.mxu3 %v4853_v1  ;;  %216 = vmatpush.msra.mxu0 %v4853_v1  ;;  %v4842_v12 = vld [vmem:[%s8661_s1 + $0x98] sm:$0xff]  ;;  %v4841_v13 = vld [vmem:[%s8661_s1 + $0x90] sm:$0xff]  ;;  %v4840_v14 = vld [vmem:[%s8661_s1 + $0x88] sm:$0xff] }
   0x6   :  { %4973 = vmatpush.msra.mxu1 %v4852_v2  ;;  %4974 = vmatpush.msra.mxu2 %v4852_v2  ;;  %v4839_v15 = vld [vmem:[%s8661_s1 + $0x80] sm:$0xff]  ;;  %v135_v16 = vld [vmem:[%s8662_s0 + $0xa9] sm:$0xff]  ;;  %v156_v17 = vld [vmem:[%s8662_s0 + $0x151] sm:$0xff] }
   0x7   :  { %4975 = vmatpush.msra.mxu3 %v4852_v2  ;;  %217 = vmatpush.msra.mxu0 %v4852_v2  ;;  %v4870_v18 = vld [vmem:[%s8661_s1 + $0x178] sm:$0xff]  ;;  %v114_v22 = vld [vmem:[%s8662_s0 + $0x1] sm:$0xff]  ;;  %v4869_v23 = vld [vmem:[%s8661_s1 + $0x170] sm:$0xff] }
   0x8   :  { %4976 = vmatpush.msra.mxu1 %v4851_v3  ;;  %4977 = vmatpush.msra.mxu2 %v4851_v3  ;;  %v177_v19 = vld [vmem:[%s8662_s0 + $0x1f9] sm:$0xff]  ;;  %v4885_v25 = vld [vmem:[%s8661_s1 + $0x1f0] sm:$0xff]  ;;  %v4868_v27 = vld [vmem:[%s8661_s1 + $0x168] sm:$0xff] }
   0x9   :  { %4978 = vmatpush.msra.mxu3 %v4851_v3  ;;  %218 = vmatpush.msra.mxu0 %v4851_v3  ;;  %v113_v20 = vld [vmem:[%s8661_s1 + $0x78] sm:$0xff]  ;;  %v112_v26 = vld [vmem:[%s8661_s1 + $0x70] sm:$0xff]  ;;  %v4884_v29 = vld [vmem:[%s8661_s1 + $0x1e8] sm:$0xff] }
   0xa   :  { %4979 = vmatpush.msra.mxu1 %v4850_v4  ;;  %4980 = vmatpush.msra.mxu2 %v4850_v4  ;;  %v4886_v21 = vld [vmem:[%s8661_s1 + $0x1f8] sm:$0xff]  ;;  %v4901_v28 = vld [vmem:[%s8661_s1 + $0x270] sm:$0xff]  ;;  %v111_v32 = vld [vmem:[%s8661_s1 + $0x68] sm:$0xff] }
   0xb   :  { %4981 = vmatpush.msra.mxu3 %v4850_v4  ;;  %219 = vmatpush.msra.mxu0 %v4850_v4  ;;  %v4902_v24 = vld [vmem:[%s8661_s1 + $0x278] sm:$0xff]  ;;  %v4900_v33 = vld [vmem:[%s8661_s1 + $0x268] sm:$0xff]  ;;  %v4867_v35 = vld [vmem:[%s8661_s1 + $0x160] sm:$0xff] }
   0xc   :  { %4982 = vmatpush.msra.mxu1 %v4849_v5  ;;  %4983 = vmatpush.msra.mxu2 %v4849_v5  ;;  %v136_v30 = vld [vmem:[%s8662_s0 + $0xb1] sm:$0xff]  ;;  %v157_v31 = vld [vmem:[%s8662_s0 + $0x159] sm:$0xff]  ;;  %v178_v34 = vld [vmem:[%s8662_s0 + $0x201] sm:$0xff] }
   0xd   :  { %4984 = vmatpush.msra.mxu3 %v4849_v5  ;;  %220 = vmatpush.msra.mxu0 %v4849_v5  ;;  %v4883_v36 = vld [vmem:[%s8661_s1 + $0x1e0] sm:$0xff]  ;;  %v115_v38 = vld [vmem:[%s8662_s0 + $0x9] sm:$0xff]  ;;  %v4866_v39 = vld [vmem:[%s8661_s1 + $0x158] sm:$0xff] }
   0xe   :  { %4985 = vmatpush.msra.mxu1 %v4848_v6  ;;  %4986 = vmatpush.msra.mxu2 %v4848_v6  ;;  %v110_v37 = vld [vmem:[%s8661_s1 + $0x60] sm:$0xff]  ;;  %v4882_v41 = vld [vmem:[%s8661_s1 + $0x1d8] sm:$0xff]  ;;  %v179_v45 = vld [vmem:[%s8662_s0 + $0x209] sm:$0xff] }
   0xf   :  { %4987 = vmatpush.msra.mxu3 %v4848_v6  ;;  %221 = vmatpush.msra.mxu0 %v4848_v6  ;;  %v4899_v40 = vld [vmem:[%s8661_s1 + $0x260] sm:$0xff]  ;;  %v109_v42 = vld [vmem:[%s8661_s1 + $0x58] sm:$0xff]  ;;  %v4865_v48 = vld [vmem:[%s8661_s1 + $0x150] sm:$0xff] }
  0x10   :  { %4988 = vmatpush.msra.mxu1 %v4847_v7  ;;  %4989 = vmatpush.msra.mxu2 %v4847_v7  ;;  %v137_v43 = vld [vmem:[%s8662_s0 + $0xb9] sm:$0xff]  ;;  %v158_v44 = vld [vmem:[%s8662_s0 + $0x161] sm:$0xff]  ;;  %v116_v46 = vld [vmem:[%s8662_s0 + $0x11] sm:$0xff] }
  0x11   :  { %4990 = vmatpush.msra.mxu3 %v4847_v7  ;;  %222 = vmatpush.msra.mxu0 %v4847_v7  ;;  %v4898_v47 = vld [vmem:[%s8661_s1 + $0x258] sm:$0xff]  ;;  %v4881_v49 = vld [vmem:[%s8661_s1 + $0x1d0] sm:$0xff]  ;;  %v138_v50 = vld [vmem:[%s8662_s0 + $0xc1] sm:$0xff] }
  0x12   :  { %4991 = vmatpush.msra.mxu1 %v4846_v8  ;;  %4992 = vmatpush.msra.mxu2 %v4846_v8  ;;  %v159_v51 = vld [vmem:[%s8662_s0 + $0x169] sm:$0xff]  ;;  %v180_v52 = vld [vmem:[%s8662_s0 + $0x211] sm:$0xff]  ;;  %v117_v54 = vld [vmem:[%s8662_s0 + $0x19] sm:$0xff] }
  0x13   :  { %4993 = vmatpush.msra.mxu3 %v4846_v8  ;;  %223 = vmatpush.msra.mxu0 %v4846_v8  ;;  %v108_v53 = vld [vmem:[%s8661_s1 + $0x50] sm:$0xff]  ;;  %v4864_v55 = vld [vmem:[%s8661_s1 + $0x148] sm:$0xff]  ;;  %v181_v59 = vld [vmem:[%s8662_s0 + $0x219] sm:$0xff] }
  0x14   :  { %4994 = vmatpush.msra.mxu1 %v4845_v9  ;;  %4995 = vmatpush.msra.mxu2 %v4845_v9  ;;  %v4897_v56 = vld [vmem:[%s8661_s1 + $0x250] sm:$0xff]  ;;  %v4880_v60 = vld [vmem:[%s8661_s1 + $0x1c8] sm:$0xff]  ;;  %v161_v0 = vld [vmem:[%s8662_s0 + $0x179] sm:$0xff] }
  0x15   :  { %4996 = vmatpush.msra.mxu3 %v4845_v9  ;;  %224 = vmatpush.msra.mxu0 %v4845_v9  ;;  %v139_v57 = vld [vmem:[%s8662_s0 + $0xc9] sm:$0xff]  ;;  %v160_v58 = vld [vmem:[%s8662_s0 + $0x171] sm:$0xff]  ;;  %v118_v61 = vld [vmem:[%s8662_s0 + $0x21] sm:$0xff] }
  0x16   :  { %4997 = vmatpush.msra.mxu1 %v4844_v10  ;;  %4998 = vmatpush.msra.mxu2 %v4844_v10  ;;  %v107_v62 = vld [vmem:[%s8661_s1 + $0x48] sm:$0xff]  ;;  %v140_v63 = vld [vmem:[%s8662_s0 + $0xd1] sm:$0xff]  ;;  %v4863_v4 = vld [vmem:[%s8661_s1 + $0x140] sm:$0xff] }
  0x17   :  { %4999 = vmatpush.msra.mxu3 %v4844_v10  ;;  %225 = vmatpush.msra.mxu0 %v4844_v10  ;;  %v182_v1 = vld [vmem:[%s8662_s0 + $0x221] sm:$0xff]  ;;  %v119_v3 = vld [vmem:[%s8662_s0 + $0x29] sm:$0xff]  ;;  %v141_v7 = vld [vmem:[%s8662_s0 + $0xd9] sm:$0xff] }
  0x18   :  { %5000 = vmatpush.msra.mxu1 %v4843_v11  ;;  %5001 = vmatpush.msra.mxu2 %v4843_v11  ;;  %v4896_v2 = vld [vmem:[%s8661_s1 + $0x248] sm:$0xff]  ;;  %v4879_v5 = vld [vmem:[%s8661_s1 + $0x1c0] sm:$0xff]  ;;  %v120_v10 = vld [vmem:[%s8662_s0 + $0x31] sm:$0xff] }
  0x19   :  { %5002 = vmatpush.msra.mxu3 %v4843_v11  ;;  %226 = vmatpush.msra.mxu0 %v4843_v11  ;;  %v106_v6 = vld [vmem:[%s8661_s1 + $0x40] sm:$0xff]  ;;  %v183_v9 = vld [vmem:[%s8662_s0 + $0x229] sm:$0xff]  ;;  %v4862_v11 = vld [vmem:[%s8661_s1 + $0x138] sm:$0xff] }
  0x1a   :  { %5003 = vmatpush.msra.mxu1 %v4842_v12  ;;  %5004 = vmatpush.msra.mxu2 %v4842_v12  ;;  %v162_v8 = vld [vmem:[%s8662_s0 + $0x181] sm:$0xff] }
  0x1b   :  { %5005 = vmatpush.msra.mxu3 %v4842_v12  ;;  %227 = vmatpush.msra.mxu0 %v4842_v12  ;;  %v4895_v12 = vld [vmem:[%s8661_s1 + $0x240] sm:$0xff] }
  0x1c   :  { %5006 = vmatpush.msra.mxu1 %v4841_v13  ;;  %5007 = vmatpush.msra.mxu2 %v4841_v13 }
  0x1d   :  { %5008 = vmatpush.msra.mxu3 %v4841_v13  ;;  %228 = vmatpush.msra.mxu0 %v4841_v13  ;;  %v4878_v13 = vld [vmem:[%s8661_s1 + $0x1b8] sm:$0xff] }
  0x1e   :  { %5009 = vmatpush.msra.mxu1 %v4840_v14  ;;  %5010 = vmatpush.msra.mxu2 %v4840_v14 }
  0x1f   :  { %5011 = vmatpush.msra.mxu3 %v4840_v14  ;;  %229 = vmatpush.msra.mxu0 %v4840_v14  ;;  %v142_v14 = vld [vmem:[%s8662_s0 + $0xe1] sm:$0xff] }
  0x20   :  { %5012 = vmatpush.msra.mxu1 %v4839_v15  ;;  %5013 = vmatpush.msra.mxu2 %v4839_v15 }
  0x21   :  { %294 = vmatmul.f32.vlgmr.msra.gmra.mxu1 %v135_v16  ;;  %357 = vmatmul.f32.vlgmr.msra.gmra.mxu2 %v156_v17  ;;  %v184_v16 = vld [vmem:[%s8662_s0 + $0x231] sm:$0xff] }
  0x22   :  { %854 = vmatpush.msrb.mxu2 %v4870_v18  ;;  %5014 = vmatpush.msra.mxu3 %v4839_v15  ;;  %v105_v17 = vld [vmem:[%s8661_s1 + $0x38] sm:$0xff] }
  0x23   :  { %420 = vmatmul.f32.vlgmr.msra.gmra.mxu3 %v177_v19  ;;  %484 = vmatpush.msrb.mxu1 %v113_v20  ;;  %v121_v18 = vld [vmem:[%s8662_s0 + $0x39] sm:$0xff]  ;;  %v4861_v20 = vld [vmem:[%s8661_s1 + $0x130] sm:$0xff] }
  0x24   :  { %1308 = vmatpush.msrb.mxu3 %v4886_v21  ;;  %230 = vmatpush.msra.mxu0 %v4839_v15  ;;  %v163_v15 = vld [vmem:[%s8662_s0 + $0x189] sm:$0xff]  ;;  %v4894_v19 = vld [vmem:[%s8661_s1 + $0x238] sm:$0xff] }
  0x25   :  { %231 = vmatmul.f32.vlgmr.msra.gmra.mxu0 %v114_v22  ;;  %855 = vmatpush.msrb.mxu2 %v4869_v23  ;;  %v143_v21 = vld [vmem:[%s8662_s0 + $0xe9] sm:$0xff]  ;;  %v164_v22 = vld [vmem:[%s8662_s0 + $0x191] sm:$0xff]  ;;  %v185_v23 = vld [vmem:[%s8662_s0 + $0x239] sm:$0xff] }
  0x26   :  { %1762 = vmatpush.msrb.mxu0 %v4902_v24  ;;  %1309 = vmatpush.msrb.mxu3 %v4885_v25  ;;  %v4877_v24 = vld [vmem:[%s8661_s1 + $0x1b0] sm:$0xff]  ;;  %v122_v25 = vld [vmem:[%s8662_s0 + $0x41] sm:$0xff] }
  0x27   :  { %485 = vmatpush.msrb.mxu1 %v112_v26  ;;  %856 = vmatpush.msrb.mxu2 %v4868_v27  ;;  %v104_v26 = vld [vmem:[%s8661_s1 + $0x30] sm:$0xff] }
  0x28   :  { %1763 = vmatpush.msrb.mxu0 %v4901_v28  ;;  %1310 = vmatpush.msrb.mxu3 %v4884_v29  ;;  %v144_v27 = vld [vmem:[%s8662_s0 + $0xf1] sm:$0xff]  ;;  %v165_v28 = vld [vmem:[%s8662_s0 + $0x199] sm:$0xff]  ;;  %v186_v29 = vld [vmem:[%s8662_s0 + $0x241] sm:$0xff] }
  0x29   :  { %297 = vmatmul.f32.gmra.mxu1 %v136_v30  ;;  %360 = vmatmul.f32.gmra.mxu2 %v157_v31  ;;  %v4860_v30 = vld [vmem:[%s8661_s1 + $0x128] sm:$0xff]  ;;  %v4893_v31 = vld [vmem:[%s8661_s1 + $0x230] sm:$0xff] }
  0x2a   :  { %486 = vmatpush.msrb.mxu1 %v111_v32  ;;  %1764 = vmatpush.msrb.mxu0 %v4900_v33  ;;  %v123_v32 = vld [vmem:[%s8662_s0 + $0x49] sm:$0xff] }
  0x2b   :  { %423 = vmatmul.f32.gmra.mxu3 %v178_v34  ;;  %857 = vmatpush.msrb.mxu2 %v4867_v35  ;;  %v4876_v33 = vld [vmem:[%s8661_s1 + $0x1a8] sm:$0xff]  ;;  %v145_v35 = vld [vmem:[%s8662_s0 + $0xf9] sm:$0xff] }
  0x2c   :  { %1311 = vmatpush.msrb.mxu3 %v4883_v36  ;;  %487 = vmatpush.msrb.mxu1 %v110_v37  ;;  %v103_v34 = vld [vmem:[%s8661_s1 + $0x28] sm:$0xff] }
  0x2d   :  { %234 = vmatmul.f32.gmra.mxu0 %v115_v38  ;;  %858 = vmatpush.msrb.mxu2 %v4866_v39  ;;  %v166_v36 = vld [vmem:[%s8662_s0 + $0x1a1] sm:$0xff]  ;;  %v187_v37 = vld [vmem:[%s8662_s0 + $0x249] sm:$0xff]  ;;  %v124_v38 = vld [vmem:[%s8662_s0 + $0x51] sm:$0xff] }
  0x2e   :  { %1765 = vmatpush.msrb.mxu0 %v4899_v40  ;;  %1312 = vmatpush.msrb.mxu3 %v4882_v41  ;;  %v4892_v39 = vld [vmem:[%s8661_s1 + $0x228] sm:$0xff]  ;;  %v4859_v40 = vld [vmem:[%s8661_s1 + $0x120] sm:$0xff] }
  0x2f   :  { %488 = vmatpush.msrb.mxu1 %v109_v42  ;;  %859 = vmatpush.msrb.mxu2 %v4865_v48  ;;  %v4875_v41 = vld [vmem:[%s8661_s1 + $0x1a0] sm:$0xff]  ;;  %v168_v48 = vld [vmem:[%s8662_s0 + $0x1b1] sm:$0xff] }
  0x30   :  { %1766 = vmatpush.msrb.mxu0 %v4898_v47  ;;  %1313 = vmatpush.msrb.mxu3 %v4881_v49  ;;  %v146_v42 = vld [vmem:[%s8662_s0 + $0x101] sm:$0xff]  ;;  %v147_v47 = vld [vmem:[%s8662_s0 + $0x109] sm:$0xff]  ;;  %v4858_v49 = vld [vmem:[%s8661_s1 + $0x118] sm:$0xff] }
  0x31   :  { %300 = vmatmul.f32.gmra.mxu1 %v137_v43  ;;  %363 = vmatmul.f32.gmra.mxu2 %v158_v44  ;;  %v167_v43 = vld [vmem:[%s8662_s0 + $0x1a9] sm:$0xff]  ;;  %v188_v44 = vld [vmem:[%s8662_s0 + $0x251] sm:$0xff] }
  0x32   :  { %489 = vmatpush.msrb.mxu1 %v108_v53  ;;  %860 = vmatpush.msrb.mxu2 %v4864_v55  ;;  %v126_v53 = vld [vmem:[%s8662_s0 + $0x61] sm:$0xff]  ;;  %v148_v55 = vld [vmem:[%s8662_s0 + $0x111] sm:$0xff] }
  0x33   :  { %426 = vmatmul.f32.gmra.mxu3 %v179_v45  ;;  %1767 = vmatpush.msrb.mxu0 %v4897_v56  ;;  %v102_v45 = vld [vmem:[%s8661_s1 + $0x20] sm:$0xff] }
  0x34   :  { %1314 = vmatpush.msrb.mxu3 %v4880_v60  ;;  %490 = vmatpush.msrb.mxu1 %v107_v62  ;;  %v169_v56 = vld [vmem:[%s8662_s0 + $0x1b9] sm:$0xff]  ;;  %v127_v60 = vld [vmem:[%s8662_s0 + $0x69] sm:$0xff] }
  0x35   :  { %237 = vmatmul.f32.gmra.mxu0 %v116_v46  ;;  %861 = vmatpush.msrb.mxu2 %v4863_v4  ;;  %v125_v46 = vld [vmem:[%s8662_s0 + $0x59] sm:$0xff]  ;;  %v4889_v4 = vld [vmem:[%s8661_s1 + $0x210] sm:$0xff] }
  0x36   :  { %1768 = vmatpush.msrb.mxu0 %v4896_v2  ;;  %1315 = vmatpush.msrb.mxu3 %v4879_v5  ;;  %v149_v62 = vld [vmem:[%s8662_s0 + $0x119] sm:$0xff]  ;;  %v128_v2 = vld [vmem:[%s8662_s0 + $0x71] sm:$0xff]  ;;  %v150_v5 = vld [vmem:[%s8662_s0 + $0x121] sm:$0xff] }
  0x37   :  { %491 = vmatpush.msrb.mxu1 %v106_v6  ;;  %862 = vmatpush.msrb.mxu2 %v4862_v11  ;;  %v171_v6 = vld [vmem:[%s8662_s0 + $0x1c9] sm:$0xff] }
  0x38   :  { %1769 = vmatpush.msrb.mxu0 %v4895_v12  ;;  %1316 = vmatpush.msrb.mxu3 %v4878_v13  ;;  %v151_v11 = vld [vmem:[%s8662_s0 + $0x129] sm:$0xff]  ;;  %v172_v13 = vld [vmem:[%s8662_s0 + $0x1d1] sm:$0xff] }
  0x39   :  { %303 = vmatmul.f32.gmra.mxu1 %v138_v50  ;;  %366 = vmatmul.f32.gmra.mxu2 %v159_v51  ;;  %v4891_v50 = vld [vmem:[%s8661_s1 + $0x220] sm:$0xff] }
  0x3a   :  { %492 = vmatpush.msrb.mxu1 %v105_v17  ;;  %1770 = vmatpush.msrb.mxu0 %v4894_v19  ;;  %v189_v51 = vld [vmem:[%s8662_s0 + $0x259] sm:$0xff]  ;;  %v130_v19 = vld [vmem:[%s8662_s0 + $0x81] sm:$0xff] }
  0x3b   :  { %429 = vmatmul.f32.gmra.mxu3 %v180_v52  ;;  %863 = vmatpush.msrb.mxu2 %v4861_v20  ;;  %v4874_v52 = vld [vmem:[%s8661_s1 + $0x198] sm:$0xff]  ;;  %v4871_v17 = vld [vmem:[%s8661_s1 + $0x180] sm:$0xff] }
  0x3c   :  { %1317 = vmatpush.msrb.mxu3 %v4877_v24  ;;  %493 = vmatpush.msrb.mxu1 %v104_v26  ;;  %v98_v20 = vld [vmem:[%s8661_s1] sm:$0xff]  ;;  %v152_v24 = vld [vmem:[%s8662_s0 + $0x131] sm:$0xff] }
  0x3d   :  { %240 = vmatmul.f32.gmra.mxu0 %v117_v54  ;;  %864 = vmatpush.msrb.mxu2 %v4860_v30  ;;  %v101_v54 = vld [vmem:[%s8661_s1 + $0x18] sm:$0xff]  ;;  %v194_v26 = vld [vmem:[%s8662_s0 + $0x281] sm:$0xff]  ;;  %v131_v30 = vld [vmem:[%s8662_s0 + $0x89] sm:$0xff] }
  0x3e   :  { %1771 = vmatpush.msrb.mxu0 %v4893_v31  ;;  %1318 = vmatpush.msrb.mxu3 %v4876_v33  ;;  %v4950_v31 = vld [vmem:[%s8661_s1 + $0x3f8] sm:$0xff] }
  0x3f   :  { %494 = vmatpush.msrb.mxu1 %v103_v34  ;;  %865 = vmatpush.msrb.mxu2 %v4859_v40  ;;  %v4918_v33 = vld [vmem:[%s8661_s1 + $0x2f8] sm:$0xff] }
  0x40   :  { %1772 = vmatpush.msrb.mxu0 %v4892_v39  ;;  %1319 = vmatpush.msrb.mxu3 %v4875_v41  ;;  %v132_v40 = vld [vmem:[%s8662_s0 + $0x91] sm:$0xff] }
  0x41   :  { %306 = vmatmul.f32.gmra.mxu1 %v139_v57  ;;  %369 = vmatmul.f32.gmra.mxu2 %v160_v58  ;;  %v190_v57 = vld [vmem:[%s8662_s0 + $0x261] sm:$0xff]  ;;  %v4890_v58 = vld [vmem:[%s8661_s1 + $0x218] sm:$0xff] }
  0x42   :  { %495 = vmatpush.msrb.mxu1 %v102_v45  ;;  %866 = vmatpush.msrb.mxu2 %v4858_v49  ;;  %v4966_v41 = vld [vmem:[%s8661_s1 + $0x478] sm:$0xff]  ;;  %v154_v45 = vld [vmem:[%s8662_s0 + $0x141] sm:$0xff] }
  0x43   :  { %432 = vmatmul.f32.gmra.mxu3 %v181_v59  ;;  %1773 = vmatpush.msrb.mxu0 %v4891_v50  ;;  %v4857_v59 = vld [vmem:[%s8661_s1 + $0x110] sm:$0xff]  ;;  %v133_v49 = vld [vmem:[%s8662_s0 + $0x99] sm:$0xff] }
  0x44   :  { %1320 = vmatpush.msrb.mxu3 %v4874_v52  ;;  %496 = vmatpush.msrb.mxu1 %v101_v54  ;;  %v176_v54 = vld [vmem:[%s8662_s0 + $0x1f1] sm:$0xff] }
  0x45   :  { %243 = vmatmul.f32.gmra.mxu0 %v118_v61  ;;  %867 = vmatpush.msrb.mxu2 %v4857_v59  ;;  %v4873_v61 = vld [vmem:[%s8661_s1 + $0x190] sm:$0xff] }
  0x46   :  { %1774 = vmatpush.msrb.mxu0 %v4890_v58  ;;  %1321 = vmatpush.msrb.mxu3 %v4873_v61  ;;  %v14_v61 = vld [vmem:[%s8662_s0] sm:$0xff] }
  0x48   :  { %1775 = vmatpush.msrb.mxu0 %v4889_v4 }
  0x49   :  { %309 = vmatmul.f32.gmra.mxu1 %v140_v63  ;;  %372 = vmatmul.f32.gmra.mxu2 %v161_v0  ;;  %v170_v63 = vld [vmem:[%s8662_s0 + $0x1c1] sm:$0xff]  ;;  %v100_v0 = vld [vmem:[%s8661_s1 + $0x10] sm:$0xff] }
  0x4a   :  { %497 = vmatpush.msrb.mxu1 %v100_v0 }
  0x4b   :  { %435 = vmatmul.f32.gmra.mxu3 %v182_v1  ;;  %v191_v1 = vld [vmem:[%s8662_s0 + $0x269] sm:$0xff] }
  0x4d   :  { %246 = vmatmul.f32.gmra.mxu0 %v119_v3  ;;  %v4856_v3 = vld [vmem:[%s8661_s1 + $0x108] sm:$0xff] }
  0x4e   :  { %868 = vmatpush.msrb.mxu2 %v4856_v3 }
  0x51   :  { %312 = vmatmul.f32.gmra.mxu1 %v141_v7  ;;  %375 = vmatmul.f32.gmra.mxu2 %v162_v8  ;;  %v4872_v7 = vld [vmem:[%s8661_s1 + $0x188] sm:$0xff] }
  0x52   :  { %v99_v8 = vld [vmem:[%s8661_s1 + $0x8] sm:$0xff]  ;;  %1322 = vmatpush.msrb.mxu3 %v4872_v7  ;;  %v1208_v7 = vld [vmem:[%s8662_s0 + $0x1a] sm:$0xff] }
  0x53   :  { %438 = vmatmul.f32.gmra.mxu3 %v183_v9  ;;  %498 = vmatpush.msrb.mxu1 %v99_v8  ;;  %v192_v9 = vld [vmem:[%s8662_s0 + $0x271] sm:$0xff] }
  0x54   :  { %1323 = vmatpush.msrb.mxu3 %v4871_v17  ;;  %v4917_v17 = vld [vmem:[%s8661_s1 + $0x2f0] sm:$0xff] }
  0x55   :  { %249 = vmatmul.f32.gmra.mxu0 %v120_v10  ;;  %v129_v10 = vld [vmem:[%s8662_s0 + $0x79] sm:$0xff]  ;;  %499 = vmatpush.msrb.mxu1 %v98_v20 }
  0x56   :  { %3124 = vmatpush.msra.mxu3 %v4950_v31  ;;  %v1210_v31 = vld [vmem:[%s8662_s0 + $0x2a] sm:$0xff] }
  0x57   :  { %2216 = vmatpush.msra.mxu1 %v4918_v33 }
  0x59   :  { %315 = vmatmul.f32.gmra.mxu1 %v142_v14  ;;  %378 = vmatmul.f32.gmra.mxu2 %v163_v15  ;;  %v4888_v14 = vld [vmem:[%s8661_s1 + $0x208] sm:$0xff]  ;;  %v4855_v15 = vld [vmem:[%s8661_s1 + $0x100] sm:$0xff] }
  0x5a   :  { %1776 = vmatpush.msrb.mxu0 %v4888_v14  ;;  %869 = vmatpush.msrb.mxu2 %v4855_v15 }
  0x5b   :  { %441 = vmatmul.f32.gmra.mxu3 %v184_v16  ;;  %v193_v16 = vld [vmem:[%s8662_s0 + $0x279] sm:$0xff]  ;;  %2217 = vmatpush.msra.mxu1 %v4917_v17 }
  0x5d   :  { %252 = vmatmul.f32.gmra.mxu0 %v121_v18 }
  0x61   :  { %318 = vmatmul.f32.gmra.mxu1 %v143_v21  ;;  %381 = vmatmul.f32.gmra.mxu2 %v164_v22 }
  0x63   :  { %444 = vmatmul.f32.gmra.mxu3 %v185_v23 }
  0x65   :  { %255 = vmatmul.f32.gmra.mxu0 %v122_v25  ;;  %v173_v25 = vld [vmem:[%s8662_s0 + $0x1d9] sm:$0xff] }
  0x69   :  { %321 = vmatmul.f32.gmra.mxu1 %v144_v27  ;;  %384 = vmatmul.f32.gmra.mxu2 %v165_v28  ;;  %v4887_v27 = vld [vmem:[%s8661_s1 + $0x200] sm:$0xff]  ;;  %v4934_v28 = vld [vmem:[%s8661_s1 + $0x378] sm:$0xff] }
  0x6a   :  { %1777 = vmatpush.msrb.mxu0 %v4887_v27  ;;  %2670 = vmatpush.msra.mxu2 %v4934_v28 }
  0x6b   :  { %447 = vmatmul.f32.gmra.mxu3 %v186_v29 }
  0x6c   :  { %3578 = vmatpush.msra.mxu0 %v4966_v41  ;;  %v18_v41 = vld [vmem:[%s8662_s0 + $0x20] sm:$0xff] }
  0x6d   :  { %258 = vmatmul.f32.gmra.mxu0 %v123_v32 }
  0x71   :  { %324 = vmatmul.f32.gmra.mxu1 %v145_v35  ;;  %387 = vmatmul.f32.gmra.mxu2 %v166_v36  ;;  %v153_v36 = vld [vmem:[%s8662_s0 + $0x139] sm:$0xff] }
  0x73   :  { %450 = vmatmul.f32.gmra.mxu3 %v187_v37  ;;  %v174_v37 = vld [vmem:[%s8662_s0 + $0x1e1] sm:$0xff] }
  0x75   :  { %261 = vmatmul.f32.gmra.mxu0 %v124_v38  ;;  %v195_v38 = vld [vmem:[%s8662_s0 + $0x289] sm:$0xff] }
  0x79   :  { %327 = vmatmul.f32.gmra.mxu1 %v146_v42  ;;  %390 = vmatmul.f32.gmra.mxu2 %v167_v43 }
  0x7b   :  { %453 = vmatmul.f32.gmra.mxu3 %v188_v44 }
  0x7d   :  { %264 = vmatmul.f32.gmra.mxu0 %v125_v46  ;;  %v175_v46 = vld [vmem:[%s8662_s0 + $0x1e9] sm:$0xff] }
  0x81   :  { %330 = vmatmul.f32.gmra.mxu1 %v147_v47  ;;  %393 = vmatmul.f32.gmra.mxu2 %v168_v48  ;;  %v196_v47 = vld [vmem:[%s8662_s0 + $0x291] sm:$0xff] }
  0x83   :  { %456 = vmatmul.f32.gmra.mxu3 %v189_v51 }
  0x85   :  { %267 = vmatmul.f32.gmra.mxu0 %v126_v53  ;;  %v155_v53 = vld [vmem:[%s8662_s0 + $0x149] sm:$0xff] }
  0x89   :  { %333 = vmatmul.f32.gmra.mxu1 %v148_v55  ;;  %396 = vmatmul.f32.gmra.mxu2 %v169_v56  ;;  %v197_v55 = vld [vmem:[%s8662_s0 + $0x299] sm:$0xff] }
  0x8b   :  { %459 = vmatmul.f32.gmra.mxu3 %v190_v57  ;;  %v134_v57 = vld [vmem:[%s8662_s0 + $0xa1] sm:$0xff] }
  0x8d   :  { %270 = vmatmul.f32.gmra.mxu0 %v127_v60 }
  0x91   :  { %336 = vmatmul.f32.gmra.mxu1 %v149_v62  ;;  %399 = vmatmul.f32.gmra.mxu2 %v170_v63  ;;  %v753_v62 = vld [vmem:[%s8662_s0 + $0x2] sm:$0xff]  ;;  %v1207_v63 = vld [vmem:[%s8662_s0 + $0x12] sm:$0xff] }
  0x93   :  { %462 = vmatmul.f32.gmra.mxu3 %v191_v1  ;;  %v1661_v1 = vld [vmem:[%s8662_s0 + $0x13] sm:$0xff] }
  0x95   :  { %273 = vmatmul.f32.gmra.mxu0 %v128_v2 }
  0x99   :  { %339 = vmatmul.f32.gmra.mxu1 %v150_v5  ;;  %402 = vmatmul.f32.gmra.mxu2 %v171_v6  ;;  %v15_v5 = vld [vmem:[%s8662_s0 + $0x8] sm:$0xff] }
  0x9a   :  { %v754_v6 = vld [vmem:[%s8662_s0 + $0xa] sm:$0xff] }
  0x9b   :  { %465 = vmatmul.f32.gmra.mxu3 %v192_v9  ;;  %v1662_v9 = vld [vmem:[%s8662_s0 + $0x1b] sm:$0xff] }
  0x9d   :  { %276 = vmatmul.f32.gmra.mxu0 %v129_v10  ;;  %v4933_v10 = vld [vmem:[%s8661_s1 + $0x370] sm:$0xff] }
  0x9e   :  { %v5459_v12 = vpop.f32.mrf.mxu1  ;;  %2671 = vmatpush.msra.mxu2 %v4933_v10  ;;  %v1667_v10 = vld [vmem:[%s8662_s0 + $0x43] sm:$0xff] }
  0xa1   :  { %342 = vmatmul.f32.gmra.mxu1 %v151_v11  ;;  %405 = vmatmul.f32.gmra.mxu2 %v172_v13  ;;  %v4949_v13 = vld [vmem:[%s8661_s1 + $0x3f0] sm:$0xff] }
  0xa2   :  { %v5476_v18 = vpop.f32.mrf.mxu0  ;;  %3125 = vmatpush.msra.mxu3 %v4949_v13 }
  0xa3   :  { %468 = vmatmul.f32.gmra.mxu3 %v193_v16  ;;  %v16_v16 = vld [vmem:[%s8662_s0 + $0x10] sm:$0xff] }
  0xa4   :  { %v5484_v21 = vpop.f32.mrf.mxu2 }
  0xa5   :  { %279 = vmatmul.f32.gmra.mxu0 %v130_v19  ;;  %v1209_v19 = vld [vmem:[%s8662_s0 + $0x22] sm:$0xff] }
  0xa6   :  { %v5486_v22 = vpop.f32.mrf.mxu1  ;;  %v5488_v23 = vpop.f32.mrf.mxu3 }
  0xa7   :  { %8670 = vst [vmem:[#allocation3_spill] sm:$0xff] %v5488_v23 }
  0xa9   :  { %345 = vmatmul.f32.gmra.mxu1 %v152_v24  ;;  %408 = vmatmul.f32.gmra.mxu2 %v173_v25  ;;  %v1663_v24 = vld [vmem:[%s8662_s0 + $0x23] sm:$0xff] }
  0xaa   :  { %v5505_v29 = vpop.f32.mrf.mxu0 }
  0xab   :  { %471 = vmatmul.f32.gmra.mxu3 %v194_v26  ;;  %v4965_v26 = vld [vmem:[%s8661_s1 + $0x470] sm:$0xff] }
  0xac   :  { %v5513_v32 = vpop.f32.mrf.mxu2  ;;  %3579 = vmatpush.msra.mxu0 %v4965_v26  ;;  %v4948_v26 = vld [vmem:[%s8661_s1 + $0x3e8] sm:$0xff] }
  0xad   :  { %282 = vmatmul.f32.gmra.mxu0 %v131_v30  ;;  %v17_v30 = vld [vmem:[%s8662_s0 + $0x18] sm:$0xff]  ;;  %3126 = vmatpush.msra.mxu3 %v4948_v26 }
  0xae   :  { %v5518_v34 = vpop.f32.mrf.mxu1  ;;  %v5520_v35 = vpop.f32.mrf.mxu3 }
  0xaf   :  { %8671 = vst [vmem:[#allocation4_spill] sm:$0xff] %v5520_v35  ;;  %v4963_v35 = vld [vmem:[%s8661_s1 + $0x460] sm:$0xff] }
  0xb1   :  { %348 = vmatmul.f32.gmra.mxu1 %v153_v36  ;;  %411 = vmatmul.f32.gmra.mxu2 %v174_v37  ;;  %v1664_v36 = vld [vmem:[%s8662_s0 + $0x2b] sm:$0xff] }
  0xb2   :  { %v5531_v39 = vpop.f32.mrf.mxu0 }
  0xb3   :  { %474 = vmatmul.f32.gmra.mxu3 %v195_v38 }
  0xb4   :  { %v5539_v42 = vpop.f32.mrf.mxu2 }
  0xb5   :  { %285 = vmatmul.f32.gmra.mxu0 %v132_v40 }
  0xb6   :  { %v5541_v43 = vpop.f32.mrf.mxu1  ;;  %v5543_v44 = vpop.f32.mrf.mxu3 }
  0xb7   :  { %8672 = vst [vmem:[#allocation5_spill] sm:$0xff] %v5543_v44 }
  0xb9   :  { %351 = vmatmul.f32.gmra.mxu1 %v154_v45  ;;  %414 = vmatmul.f32.gmra.mxu2 %v175_v46  ;;  %v1211_v45 = vld [vmem:[%s8662_s0 + $0x32] sm:$0xff] }
  0xba   :  { %v5554_v48 = vpop.f32.mrf.mxu0 }
  0xbb   :  { %477 = vmatmul.f32.gmra.mxu3 %v196_v47  ;;  %v1665_v47 = vld [vmem:[%s8662_s0 + $0x33] sm:$0xff] }
  0xbc   :  { %v5559_v50 = vpop.f32.mrf.mxu2 }
  0xbd   :  { %288 = vmatmul.f32.gmra.mxu0 %v133_v49 }
  0xbe   :  { %v5561_v51 = vpop.f32.mrf.mxu1  ;;  %v5563_v52 = vpop.f32.mrf.mxu3 }
  0xbf   :  { %8673 = vst [vmem:[#allocation6_spill] sm:$0xff] %v5563_v52  ;;  %v4915_v52 = vld [vmem:[%s8661_s1 + $0x2e0] sm:$0xff] }
  0xc1   :  { %354 = vmatmul.f32.gmra.mxu1 %v155_v53  ;;  %417 = vmatmul.f32.gmra.mxu2 %v176_v54 }
  0xc2   :  { %v5574_v56 = vpop.f32.mrf.mxu0 }
  0xc3   :  { %480 = vmatmul.f32.gmra.mxu3 %v197_v55  ;;  %v19_v55 = vld [vmem:[%s8662_s0 + $0x28] sm:$0xff] }
  0xc4   :  { %v5579_v58 = vpop.f32.mrf.mxu2 }
  0xc5   :  { %291 = vmatmul.f32.gmra.mxu0 %v134_v57  ;;  %v1212_v57 = vld [vmem:[%s8662_s0 + $0x3a] sm:$0xff] }
  0xc6   :  { %v5581_v59 = vpop.f32.mrf.mxu1  ;;  %v5583_v60 = vpop.f32.mrf.mxu3 }
  0xc7   :  { %8674 = vst [vmem:[#allocation7_spill] sm:$0xff] %v5583_v60  ;;  %v1673_v60 = vld [vmem:[%s8662_s0 + $0x73] sm:$0xff] }
  0xc9   :  { %500 = vmatmul.f32.vlgmr.msrb.gmra.mxu1 %v14_v61  ;;  %870 = vmatmul.f32.vlgmr.msrb.gmra.mxu2 %v753_v62  ;;  %v1666_v62 = vld [vmem:[%s8662_s0 + $0x3b] sm:$0xff] }
  0xca   :  { %v5594_v0 = vpop.f32.mrf.mxu0 }
  0xcb   :  { %1324 = vmatmul.f32.vlgmr.msrb.gmra.mxu3 %v1207_v63 }
  0xcc   :  { %v5599_v2 = vpop.f32.mrf.mxu2 }
  0xcd   :  { %1778 = vmatmul.f32.vlgmr.msrb.gmra.mxu0 %v1661_v1 }
  0xce   :  { %v5601_v3 = vpop.f32.mrf.mxu1  ;;  %v5603_v4 = vpop.f32.mrf.mxu3 }
  0xcf   :  { %8675 = vst [vmem:[#allocation8_spill] sm:$0xff] %v5603_v4  ;;  %v26_v4 = vld [vmem:[%s8662_s0 + $0x60] sm:$0xff] }
  0xd1   :  { %503 = vmatmul.f32.gmra.mxu1 %v15_v5  ;;  %873 = vmatmul.f32.gmra.mxu2 %v754_v6  ;;  %v20_v6 = vld [vmem:[%s8662_s0 + $0x30] sm:$0xff] }
  0xd2   :  { %v5614_v8 = vpop.f32.mrf.mxu0 }
  0xd3   :  { %1327 = vmatmul.f32.gmra.mxu3 %v1208_v7 }
  0xd4   :  { %v5622_v11 = vpop.f32.mrf.mxu2 }
  0xd5   :  { %1781 = vmatmul.f32.gmra.mxu0 %v1662_v9 }
  0xd6   :  { %v5627_v14 = vpop.f32.mrf.mxu1  ;;  %v5629_v15 = vpop.f32.mrf.mxu3 }
  0xd7   :  { %8676 = vst [vmem:[#allocation9_spill] sm:$0xff] %v5629_v15 }
  0xd9   :  { %506 = vmatmul.f32.gmra.mxu1 %v16_v16  ;;  %876 = vmatmul.f32.gmra.mxu2 %v1207_v63  ;;  %v4932_v16 = vld [vmem:[%s8661_s1 + $0x368] sm:$0xff] }
  0xda   :  { %v5640_v20 = vpop.f32.mrf.mxu0  ;;  %2672 = vmatpush.msra.mxu2 %v4932_v16  ;;  %v1669_v16 = vld [vmem:[%s8662_s0 + $0x53] sm:$0xff] }
  0xdb   :  { %1330 = vmatmul.f32.gmra.mxu3 %v1209_v19 }
  0xdc   :  { %v5645_v25 = vpop.f32.mrf.mxu2 }
  0xdd   :  { %1784 = vmatmul.f32.gmra.mxu0 %v1663_v24  ;;  %v21_v24 = vld [vmem:[%s8662_s0 + $0x38] sm:$0xff] }
  0xde   :  { %v5650_v27 = vpop.f32.mrf.mxu1  ;;  %v5652_v28 = vpop.f32.mrf.mxu3 }
  0xdf   :  { %8677 = vst [vmem:[#allocation10_spill] sm:$0xff] %v5652_v28 }
  0xe1   :  { %509 = vmatmul.f32.gmra.mxu1 %v17_v30  ;;  %879 = vmatmul.f32.gmra.mxu2 %v1208_v7  ;;  %v1213_v7 = vld [vmem:[%s8662_s0 + $0x42] sm:$0xff]  ;;  %v1214_v30 = vld [vmem:[%s8662_s0 + $0x4a] sm:$0xff] }
  0xe2   :  { %v5660_v33 = vpop.f32.mrf.mxu0 }
  0xe3   :  { %1333 = vmatmul.f32.gmra.mxu3 %v1210_v31 }
  0xe4   :  { %v5665_v37 = vpop.f32.mrf.mxu2 }
  0xe5   :  { %8678 = vst [vmem:[#allocation11_spill] sm:$0xff] %v5665_v37  ;;  %1787 = vmatmul.f32.gmra.mxu0 %v1664_v36 }
  0xe6   :  { %v5667_v38 = vpop.f32.mrf.mxu1  ;;  %v5669_v40 = vpop.f32.mrf.mxu3 }
  0xe7   :  { %8679 = vst [vmem:[#allocation12_spill] sm:$0xff] %v5669_v40  ;;  %v25_v40 = vld [vmem:[%s8662_s0 + $0x58] sm:$0xff] }
  0xe9   :  { %512 = vmatmul.f32.gmra.mxu1 %v18_v41  ;;  %882 = vmatmul.f32.gmra.mxu2 %v1209_v19  ;;  %v1668_v41 = vld [vmem:[%s8662_s0 + $0x4b] sm:$0xff] }
  0xea   :  { %v5677_v46 = vpop.f32.mrf.mxu0 }
  0xeb   :  { %1336 = vmatmul.f32.gmra.mxu3 %v1211_v45 }
  0xec   :  { %v5682_v49 = vpop.f32.mrf.mxu2 }
  0xed   :  { %8680 = vst [vmem:[#allocation13_spill] sm:$0xff] %v5682_v49  ;;  %1790 = vmatmul.f32.gmra.mxu0 %v1665_v47  ;;  %v31_v49 = vld [vmem:[%s8662_s0 + $0x88] sm:$0xff] }
  0xee   :  { %v5684_v53 = vpop.f32.mrf.mxu1  ;;  %v5686_v54 = vpop.f32.mrf.mxu3 }
  0xef   :  { %8681 = vst [vmem:[#allocation14_spill] sm:$0xff] %v5686_v54 }
  0xf1   :  { %515 = vmatmul.f32.gmra.mxu1 %v19_v55  ;;  %885 = vmatmul.f32.gmra.mxu2 %v1210_v31  ;;  %v4916_v31 = vld [vmem:[%s8661_s1 + $0x2e8] sm:$0xff] }
  0xf2   :  { %v5694_v61 = vpop.f32.mrf.mxu0  ;;  %2218 = vmatpush.msra.mxu1 %v4916_v31 }
  0xf3   :  { %1339 = vmatmul.f32.gmra.mxu3 %v1212_v57 }
  0xf4   :  { %v5699_v63 = vpop.f32.mrf.mxu2  ;;  %2219 = vmatpush.msra.mxu1 %v4915_v52 }
  0xf5   :  { %8682 = vst [vmem:[#allocation15_spill] sm:$0xff] %v5699_v63  ;;  %1793 = vmatmul.f32.gmra.mxu0 %v1666_v62  ;;  %v4964_v62 = vld [vmem:[%s8661_s1 + $0x468] sm:$0xff] }
  0xf6   :  { %v5701_v1 = vpop.f32.mrf.mxu1  ;;  %v5703_v5 = vpop.f32.mrf.mxu3  ;;  %3580 = vmatpush.msra.mxu0 %v4964_v62  ;;  %v1670_v62 = vld [vmem:[%s8662_s0 + $0x5b] sm:$0xff] }
  0xf7   :  { %8683 = vst [vmem:[#allocation16_spill] sm:$0xff] %v5703_v5 }
  0xf8   :  { %3581 = vmatpush.msra.mxu0 %v4963_v35  ;;  %v1675_v35 = vld [vmem:[%s8662_s0 + $0x83] sm:$0xff] }
  0xf9   :  { %518 = vmatmul.f32.gmra.mxu1 %v20_v6  ;;  %888 = vmatmul.f32.gmra.mxu2 %v1211_v45  ;;  %v1215_v6 = vld [vmem:[%s8662_s0 + $0x52] sm:$0xff] }
  0xfa   :  { %v5711_v9 = vpop.f32.mrf.mxu0 }
  0xfb   :  { %1342 = vmatmul.f32.gmra.mxu3 %v1213_v7 }
  0xfc   :  { %v5716_v13 = vpop.f32.mrf.mxu2 }
  0xfd   :  { %8684 = vst [vmem:[#allocation17_spill] sm:$0xff] %v5716_v13  ;;  %1796 = vmatmul.f32.gmra.mxu0 %v1667_v10 }
  0xfe   :  { %v5721_v17 = vpop.f32.mrf.mxu1  ;;  %v5723_v19 = vpop.f32.mrf.mxu3 }
  0xff   :  { %8685 = vst [vmem:[#allocation18_spill] sm:$0xff] %v5723_v19  ;;  %v24_v19 = vld [vmem:[%s8662_s0 + $0x50] sm:$0xff] }
 0x101   :  { %521 = vmatmul.f32.gmra.mxu1 %v21_v24  ;;  %891 = vmatmul.f32.gmra.mxu2 %v1212_v57  ;;  %v22_v57 = vld [vmem:[%s8662_s0 + $0x40] sm:$0xff] }
 0x102   :  { %v5737_v36 = vpop.f32.mrf.mxu0 }
 0x103   :  { %1345 = vmatmul.f32.gmra.mxu3 %v1214_v30 }
 0x104   :  { %v5742_v45 = vpop.f32.mrf.mxu2 }
 0x105   :  { %8686 = vst [vmem:[#allocation19_spill] sm:$0xff] %v5742_v45  ;;  %1799 = vmatmul.f32.gmra.mxu0 %v1668_v41  ;;  %v23_v41 = vld [vmem:[%s8662_s0 + $0x48] sm:$0xff]  ;;  %v1677_v45 = vld [vmem:[%s8662_s0 + $0x93] sm:$0xff] }
 0x106   :  { %v5744_v47 = vpop.f32.mrf.mxu1  ;;  %v5746_v55 = vpop.f32.mrf.mxu3 }
 0x107   :  { %8687 = vst [vmem:[#allocation20_spill] sm:$0xff] %v5746_v55 }
 0x109   :  { %524 = vmatmul.f32.gmra.mxu1 %v22_v57  ;;  %894 = vmatmul.f32.gmra.mxu2 %v1213_v7  ;;  %v1216_v7 = vld [vmem:[%s8662_s0 + $0x5a] sm:$0xff] }
 0x10a   :  { %v5757_v10 = vpop.f32.mrf.mxu0 }
 0x10b   :  { %1348 = vmatmul.f32.gmra.mxu3 %v1215_v6 }
 0x10c   :  { %v5762_v24 = vpop.f32.mrf.mxu2 }
 0x10d   :  { %8688 = vst [vmem:[#allocation21_spill] sm:$0xff] %v5762_v24  ;;  %1802 = vmatmul.f32.gmra.mxu0 %v1669_v16  ;;  %v30_v24 = vld [vmem:[%s8662_s0 + $0x80] sm:$0xff] }
 0x10e   :  { %v5764_v26 = vpop.f32.mrf.mxu1  ;;  %v5766_v31 = vpop.f32.mrf.mxu3 }
 0x10f   :  { %8689 = vst [vmem:[#allocation22_spill] sm:$0xff] %v5766_v31 }
 0x111   :  { %527 = vmatmul.f32.gmra.mxu1 %v23_v41  ;;  %897 = vmatmul.f32.gmra.mxu2 %v1214_v30  ;;  %v1217_v30 = vld [vmem:[%s8662_s0 + $0x62] sm:$0xff] }
 0x112   :  { %v5774_v57 = vpop.f32.mrf.mxu0 }
 0x113   :  { %1351 = vmatmul.f32.gmra.mxu3 %v1216_v7 }
 0x114   :  { %v5779_v16 = vpop.f32.mrf.mxu2 }
 0x115   :  { %8690 = vst [vmem:[#allocation23_spill] sm:$0xff] %v5779_v16  ;;  %1805 = vmatmul.f32.gmra.mxu0 %v1670_v62  ;;  %v1671_v62 = vld [vmem:[%s8662_s0 + $0x63] sm:$0xff] }
 0x116   :  { %v5781_v31 = vpop.f32.mrf.mxu1  ;;  %v5783_v55 = vpop.f32.mrf.mxu3 }
 0x117   :  { %8691 = vst [vmem:[#allocation24_spill] sm:$0xff] %v5783_v55 }
 0x119   :  { %530 = vmatmul.f32.gmra.mxu1 %v24_v19  ;;  %900 = vmatmul.f32.gmra.mxu2 %v1215_v6  ;;  %v1218_v19 = vld [vmem:[%s8662_s0 + $0x6a] sm:$0xff] }
 0x11a   :  { %v5791_v41 = vpop.f32.mrf.mxu0 }
 0x11b   :  { %1354 = vmatmul.f32.gmra.mxu3 %v1217_v30 }
 0x11c   :  { %v5796_v5 = vpop.f32.mrf.mxu2 }
 0x11d   :  { %8692 = vst [vmem:[#allocation25_spill] sm:$0xff] %v5796_v5  ;;  %1808 = vmatmul.f32.gmra.mxu0 %v1671_v62  ;;  %v1672_v62 = vld [vmem:[%s8662_s0 + $0x6b] sm:$0xff]  ;;  %v29_v5 = vld [vmem:[%s8662_s0 + $0x78] sm:$0xff] }
 0x11e   :  { %v5798_v55 = vpop.f32.mrf.mxu1  ;;  %v5800_v54 = vpop.f32.mrf.mxu3 }
 0x11f   :  { %8693 = vst [vmem:[#allocation26_spill] sm:$0xff] %v5800_v54 }
 0x121   :  { %533 = vmatmul.f32.gmra.mxu1 %v25_v40  ;;  %903 = vmatmul.f32.gmra.mxu2 %v1216_v7  ;;  %v4931_v40 = vld [vmem:[%s8661_s1 + $0x360] sm:$0xff]  ;;  %v1219_v7 = vld [vmem:[%s8662_s0 + $0x72] sm:$0xff] }
 0x122   :  { %v5808_v6 = vpop.f32.mrf.mxu0  ;;  %2673 = vmatpush.msra.mxu2 %v4931_v40  ;;  %v27_v40 = vld [vmem:[%s8662_s0 + $0x68] sm:$0xff] }
 0x123   :  { %1357 = vmatmul.f32.gmra.mxu3 %v1218_v19 }
 0x124   :  { %v5813_v28 = vpop.f32.mrf.mxu2 }
 0x125   :  { %8694 = vst [vmem:[#allocation27_spill] sm:$0xff] %v5813_v28  ;;  %1811 = vmatmul.f32.gmra.mxu0 %v1672_v62  ;;  %v4947_v62 = vld [vmem:[%s8661_s1 + $0x3e0] sm:$0xff] }
 0x126   :  { %v5815_v54 = vpop.f32.mrf.mxu1  ;;  %v5817_v15 = vpop.f32.mrf.mxu3  ;;  %3127 = vmatpush.msra.mxu3 %v4947_v62  ;;  %v1220_v62 = vld [vmem:[%s8662_s0 + $0x7a] sm:$0xff] }
 0x127   :  { %8695 = vst [vmem:[#allocation28_spill] sm:$0xff] %v5817_v15 }
 0x129   :  { %536 = vmatmul.f32.gmra.mxu1 %v26_v4  ;;  %906 = vmatmul.f32.gmra.mxu2 %v1217_v30 }
 0x12a   :  { %v5831_v15 = vpop.f32.mrf.mxu0 }
 0x12b   :  { %1360 = vmatmul.f32.gmra.mxu3 %v1219_v7 }
 0x12c   :  { %v5839_v44 = vpop.f32.mrf.mxu2 }
 0x12d   :  { %8696 = vst [vmem:[#allocation29_spill] sm:$0xff] %v5839_v44  ;;  %1814 = vmatmul.f32.gmra.mxu0 %v1673_v60  ;;  %v1674_v60 = vld [vmem:[%s8662_s0 + $0x7b] sm:$0xff] }
 0x12e   :  { %v5841_v4 = vpop.f32.mrf.mxu1  ;;  %v5843_v30 = vpop.f32.mrf.mxu3 }
 0x12f   :  { %8697 = vst [vmem:[#allocation30_spill] sm:$0xff] %v5843_v30 }
 0x131   :  { %539 = vmatmul.f32.gmra.mxu1 %v27_v40  ;;  %909 = vmatmul.f32.gmra.mxu2 %v1218_v19  ;;  %v28_v19 = vld [vmem:[%s8662_s0 + $0x70] sm:$0xff]  ;;  %v1221_v40 = vld [vmem:[%s8662_s0 + $0x82] sm:$0xff] }
 0x132   :  { %v5854_v52 = vpop.f32.mrf.mxu0 }
 0x133   :  { %1363 = vmatmul.f32.gmra.mxu3 %v1220_v62 }
 0x134   :  { %v5859_v30 = vpop.f32.mrf.mxu2 }
 0x135   :  { %8698 = vst [vmem:[#allocation31_spill] sm:$0xff] %v5859_v30  ;;  %1817 = vmatmul.f32.gmra.mxu0 %v1674_v60 }
 0x136   :  { %v5861_v23 = vpop.f32.mrf.mxu1  ;;  %v5863_v44 = vpop.f32.mrf.mxu3 }
 0x137   :  { %8699 = vst [vmem:[#allocation32_spill] sm:$0xff] %v5863_v44 }
 0x139   :  { %542 = vmatmul.f32.gmra.mxu1 %v28_v19  ;;  %912 = vmatmul.f32.gmra.mxu2 %v1219_v7  ;;  %v1222_v7 = vld [vmem:[%s8662_s0 + $0x8a] sm:$0xff] }
 0x13a   :  { %v5871_v28 = vpop.f32.mrf.mxu0 }
 0x13b   :  { %1366 = vmatmul.f32.gmra.mxu3 %v1221_v40 }
 0x13c   :  { %v5876_v60 = vpop.f32.mrf.mxu2 }
 0x13d   :  { %8700 = vst [vmem:[#allocation33_spill] sm:$0xff] %v5876_v60  ;;  %1820 = vmatmul.f32.gmra.mxu0 %v1675_v35  ;;  %v1676_v35 = vld [vmem:[%s8662_s0 + $0x8b] sm:$0xff] }
 0x13e   :  { %v5878_v44 = vpop.f32.mrf.mxu1  ;;  %v5880_v30 = vpop.f32.mrf.mxu3 }
 0x13f   :  { %8701 = vst [vmem:[#allocation34_spill] sm:$0xff] %v5880_v30 }
 0x141   :  { %545 = vmatmul.f32.gmra.mxu1 %v29_v5  ;;  %915 = vmatmul.f32.gmra.mxu2 %v1220_v62  ;;  %v1223_v5 = vld [vmem:[%s8662_s0 + $0x92] sm:$0xff] }
 0x142   :  { %v5888_v19 = vpop.f32.mrf.mxu0 }
 0x143   :  { %1369 = vmatmul.f32.gmra.mxu3 %v1222_v7 }
 0x144   :  { %v5893_v60 = vpop.f32.mrf.mxu2 }
 0x145   :  { %8702 = vst [vmem:[#allocation35_spill] sm:$0xff] %v5893_v60  ;;  %1823 = vmatmul.f32.gmra.mxu0 %v1676_v35 }
 0x146   :  { %v5895_v30 = vpop.f32.mrf.mxu3  ;;  %v501_v16 = vpop.f32.mrf.mxu1 }
 0x147   :  { %8703 = vst [vmem:[#allocation36_spill] sm:$0xff] %v5895_v30  ;;  %v502_v35 = vadd.f32 %v501_v16, %v5476_v18  ;;  %v4930_v18 = vld [vmem:[%s8661_s1 + $0x358] sm:$0xff] }
 0x148   :  { %v1678_v16 = vld [vmem:[%s8662_s0 + $0x9b] sm:$0xff]  ;;  %2674 = vmatpush.msra.mxu2 %v4930_v18 }
 0x149   :  { %548 = vmatmul.f32.gmra.mxu1 %v30_v24  ;;  %918 = vmatmul.f32.gmra.mxu2 %v1221_v40  ;;  %v1224_v24 = vld [vmem:[%s8662_s0 + $0x9a] sm:$0xff] }
 0x14a   :  { %v1779_v62 = vpop.f32.mrf.mxu0 }
 0x14b   :  { %1372 = vmatmul.f32.gmra.mxu3 %v1223_v5 }
 0x14c   :  { %v871_v30 = vpop.f32.mrf.mxu2 }
 0x14d   :  { %v1123_v60 = vadd.f32 %v871_v30, %v502_v35  ;;  %1826 = vmatmul.f32.gmra.mxu0 %v1677_v45  ;;  %v32_v35 = vld [vmem:[%s8662_s0 + $0x90] sm:$0xff] }
 0x14e   :  { %v504_v13 = vpop.f32.mrf.mxu1  ;;  %v1325_v63 = vpop.f32.mrf.mxu3 }
 0x14f   :  { %v1577_v37 = vadd.f32 %v1325_v63, %v1123_v60  ;;  %v505_v63 = vadd.f32 %v504_v13, %v5505_v29  ;;  %v4914_v60 = vld [vmem:[%s8661_s1 + $0x2d8] sm:$0xff]  ;;  %v1225_v13 = vld [vmem:[%s8662_s0 + $0xa2] sm:$0xff] }
 0x150   :  { %2220 = vmatpush.msra.mxu1 %v4914_v60 }
 0x151   :  { %v5913_v40 = vadd.f32 %v1779_v62, %v1577_v37  ;;  %551 = vmatmul.f32.gmra.mxu1 %v31_v49  ;;  %921 = vmatmul.f32.gmra.mxu2 %v1222_v7  ;;  %v4946_v37 = vld [vmem:[%s8661_s1 + $0x3d8] sm:$0xff] }
 0x152   :  { %v1782_v45 = vpop.f32.mrf.mxu0  ;;  %3128 = vmatpush.msra.mxu3 %v4946_v37 }
 0x153   :  { %1375 = vmatmul.f32.gmra.mxu3 %v1224_v24 }
 0x154   :  { %v874_v30 = vpop.f32.mrf.mxu2 }
 0x155   :  { %v1124_v49 = vadd.f32 %v874_v30, %v505_v63  ;;  %1829 = vmatmul.f32.gmra.mxu0 %v1678_v16  ;;  %v1679_v63 = vld [vmem:[%s8662_s0 + $0xa3] sm:$0xff]  ;;  %v4962_v30 = vld [vmem:[%s8661_s1 + $0x458] sm:$0xff] }
 0x156   :  { %v507_v7 = vpop.f32.mrf.mxu1  ;;  %v1328_v62 = vpop.f32.mrf.mxu3  ;;  %3582 = vmatpush.msra.mxu0 %v4962_v30 }
 0x157   :  { %v1578_v29 = vadd.f32 %v1328_v62, %v1124_v49  ;;  %v508_v37 = vadd.f32 %v507_v7, %v5531_v39  ;;  %v1226_v39 = vld [vmem:[%s8662_s0 + $0xaa] sm:$0xff] }
 0x159   :  { %v5934_v18 = vadd.f32 %v1782_v45, %v1578_v29  ;;  %554 = vmatmul.f32.gmra.mxu1 %v32_v35  ;;  %924 = vmatmul.f32.gmra.mxu2 %v1223_v5  ;;  %v33_v5 = vld [vmem:[%s8662_s0 + $0x98] sm:$0xff] }
 0x15a   :  { %v1785_v16 = vpop.f32.mrf.mxu0 }
 0x15b   :  { %1378 = vmatmul.f32.gmra.mxu3 %v1225_v13 }
 0x15c   :  { %v877_v49 = vpop.f32.mrf.mxu2 }
 0x15d   :  { %v1125_v60 = vadd.f32 %v877_v49, %v508_v37  ;;  %1832 = vmatmul.f32.gmra.mxu0 %v1679_v63  ;;  %v1680_v63 = vld [vmem:[%s8662_s0 + $0xab] sm:$0xff] }
 0x15e   :  { %v510_v45 = vpop.f32.mrf.mxu1  ;;  %v1331_v62 = vpop.f32.mrf.mxu3 }
 0x15f   :  { %v1579_v35 = vadd.f32 %v1331_v62, %v1125_v60  ;;  %v511_v37 = vadd.f32 %v510_v45, %v5554_v48  ;;  %v1681_v45 = vld [vmem:[%s8662_s0 + $0xb3] sm:$0xff] }
 0x161   :  { %v5949_v7 = vadd.f32 %v1785_v16, %v1579_v35  ;;  %557 = vmatmul.f32.gmra.mxu1 %v33_v5  ;;  %927 = vmatmul.f32.gmra.mxu2 %v1224_v24  ;;  %v34_v16 = vld [vmem:[%s8662_s0 + $0xa0] sm:$0xff]  ;;  %v1227_v24 = vld [vmem:[%s8662_s0 + $0xb2] sm:$0xff] }
 0x162   :  { %v1788_v29 = vpop.f32.mrf.mxu0 }
 0x163   :  { %1381 = vmatmul.f32.gmra.mxu3 %v1226_v39 }
 0x164   :  { %v880_v30 = vpop.f32.mrf.mxu2 }
 0x165   :  { %v1126_v49 = vadd.f32 %v880_v30, %v511_v37  ;;  %1835 = vmatmul.f32.gmra.mxu0 %v1680_v63 }
 0x166   :  { %v513_v60 = vpop.f32.mrf.mxu1  ;;  %v1334_v62 = vpop.f32.mrf.mxu3 }
 0x167   :  { %v1580_v35 = vadd.f32 %v1334_v62, %v1126_v49  ;;  %v514_v63 = vadd.f32 %v513_v60, %v5574_v56  ;;  %v1682_v60 = vld [vmem:[%s8662_s0 + $0xbb] sm:$0xff] }
 0x169   :  { %v5961_v5 = vadd.f32 %v1788_v29, %v1580_v35  ;;  %560 = vmatmul.f32.gmra.mxu1 %v34_v16  ;;  %930 = vmatmul.f32.gmra.mxu2 %v1225_v13  ;;  %v35_v29 = vld [vmem:[%s8662_s0 + $0xa8] sm:$0xff]  ;;  %v1228_v13 = vld [vmem:[%s8662_s0 + $0xba] sm:$0xff] }
 0x16a   :  { %v1791_v48 = vpop.f32.mrf.mxu0 }
 0x16b   :  { %1384 = vmatmul.f32.gmra.mxu3 %v1227_v24 }
 0x16c   :  { %v883_v37 = vpop.f32.mrf.mxu2 }
 0x16d   :  { %v1127_v30 = vadd.f32 %v883_v37, %v514_v63  ;;  %1838 = vmatmul.f32.gmra.mxu0 %v1681_v45 }
 0x16e   :  { %v516_v49 = vpop.f32.mrf.mxu1  ;;  %v1337_v62 = vpop.f32.mrf.mxu3 }
 0x16f   :  { %v1581_v35 = vadd.f32 %v1337_v62, %v1127_v30  ;;  %v517_v45 = vadd.f32 %v516_v49, %v5594_v0  ;;  %v1683_v49 = vld [vmem:[%s8662_s0 + $0xc3] sm:$0xff] }
 0x171   :  { %v5973_v16 = vadd.f32 %v1791_v48, %v1581_v35  ;;  %563 = vmatmul.f32.gmra.mxu1 %v35_v29  ;;  %933 = vmatmul.f32.gmra.mxu2 %v1226_v39  ;;  %v36_v48 = vld [vmem:[%s8662_s0 + $0xb0] sm:$0xff]  ;;  %v1229_v39 = vld [vmem:[%s8662_s0 + $0xc2] sm:$0xff] }
 0x172   :  { %v1794_v56 = vpop.f32.mrf.mxu0 }
 0x173   :  { %1387 = vmatmul.f32.gmra.mxu3 %v1228_v13 }
 0x174   :  { %v886_v63 = vpop.f32.mrf.mxu2 }
 0x175   :  { %v1128_v37 = vadd.f32 %v886_v63, %v517_v45  ;;  %1841 = vmatmul.f32.gmra.mxu0 %v1682_v60  ;;  %v4929_v45 = vld [vmem:[%s8661_s1 + $0x350] sm:$0xff] }
 0x176   :  { %v519_v30 = vpop.f32.mrf.mxu1  ;;  %v1340_v62 = vpop.f32.mrf.mxu3  ;;  %2675 = vmatpush.msra.mxu2 %v4929_v45  ;;  %v1684_v45 = vld [vmem:[%s8662_s0 + $0xcb] sm:$0xff] }
 0x177   :  { %v1582_v35 = vadd.f32 %v1340_v62, %v1128_v37  ;;  %v520_v60 = vadd.f32 %v519_v30, %v5614_v8  ;;  %v4913_v30 = vld [vmem:[%s8661_s1 + $0x2d0] sm:$0xff] }
 0x178   :  { %2221 = vmatpush.msra.mxu1 %v4913_v30 }
 0x179   :  { %v5985_v29 = vadd.f32 %v1794_v56, %v1582_v35  ;;  %566 = vmatmul.f32.gmra.mxu1 %v36_v48  ;;  %936 = vmatmul.f32.gmra.mxu2 %v1227_v24  ;;  %v4945_v24 = vld [vmem:[%s8661_s1 + $0x3d0] sm:$0xff]  ;;  %v37_v48 = vld [vmem:[%s8662_s0 + $0xb8] sm:$0xff] }
 0x17a   :  { %v1797_v0 = vpop.f32.mrf.mxu0  ;;  %3129 = vmatpush.msra.mxu3 %v4945_v24  ;;  %v1230_v35 = vld [vmem:[%s8662_s0 + $0xca] sm:$0xff] }
 0x17b   :  { %1390 = vmatmul.f32.gmra.mxu3 %v1229_v39 }
 0x17c   :  { %v889_v63 = vpop.f32.mrf.mxu2 }
 0x17d   :  { %v1129_v37 = vadd.f32 %v889_v63, %v520_v60  ;;  %1844 = vmatmul.f32.gmra.mxu0 %v1683_v49 }
 0x17e   :  { %v522_v56 = vpop.f32.mrf.mxu1  ;;  %v1343_v62 = vpop.f32.mrf.mxu3 }
 0x17f   :  { %v1583_v8 = vadd.f32 %v1343_v62, %v1129_v37  ;;  %v523_v63 = vadd.f32 %v522_v56, %v5640_v20  ;;  %v4961_v62 = vld [vmem:[%s8661_s1 + $0x450] sm:$0xff] }
 0x180   :  { %3583 = vmatpush.msra.mxu0 %v4961_v62  ;;  %v1231_v20 = vld [vmem:[%s8662_s0 + $0xd2] sm:$0xff] }
 0x181   :  { %v6006_v49 = vadd.f32 %v1797_v0, %v1583_v8  ;;  %569 = vmatmul.f32.gmra.mxu1 %v37_v48  ;;  %939 = vmatmul.f32.gmra.mxu2 %v1228_v13  ;;  %v38_v13 = vld [vmem:[%s8662_s0 + $0xc0] sm:$0xff] }
 0x182   :  { %v1800_v60 = vpop.f32.mrf.mxu0 }
 0x183   :  { %8704 = vst [vmem:[#allocation37_spill] sm:$0xff] %v6006_v49  ;;  %1393 = vmatmul.f32.gmra.mxu3 %v1230_v35 }
 0x184   :  { %v892_v37 = vpop.f32.mrf.mxu2 }
 0x185   :  { %v1130_v24 = vadd.f32 %v892_v37, %v523_v63  ;;  %1847 = vmatmul.f32.gmra.mxu0 %v1684_v45  ;;  %v1685_v45 = vld [vmem:[%s8662_s0 + $0xd3] sm:$0xff] }
 0x186   :  { %v525_v30 = vpop.f32.mrf.mxu1  ;;  %v1346_v0 = vpop.f32.mrf.mxu3 }
 0x187   :  { %v1584_v48 = vadd.f32 %v1346_v0, %v1130_v24  ;;  %v526_v63 = vadd.f32 %v525_v30, %v5660_v33  ;;  %v1686_v30 = vld [vmem:[%s8662_s0 + $0xdb] sm:$0xff] }
 0x189   :  { %v6021_v56 = vadd.f32 %v1800_v60, %v1584_v48  ;;  %572 = vmatmul.f32.gmra.mxu1 %v38_v13  ;;  %942 = vmatmul.f32.gmra.mxu2 %v1229_v39  ;;  %v39_v60 = vld [vmem:[%s8662_s0 + $0xc8] sm:$0xff]  ;;  %v1232_v39 = vld [vmem:[%s8662_s0 + $0xda] sm:$0xff] }
 0x18a   :  { %v1803_v8 = vpop.f32.mrf.mxu0 }
 0x18b   :  { %1396 = vmatmul.f32.gmra.mxu3 %v1231_v20 }
 0x18c   :  { %v895_v37 = vpop.f32.mrf.mxu2 }
 0x18d   :  { %v1131_v49 = vadd.f32 %v895_v37, %v526_v63  ;;  %1850 = vmatmul.f32.gmra.mxu0 %v1685_v45 }
 0x18e   :  { %v528_v24 = vpop.f32.mrf.mxu1  ;;  %v1349_v62 = vpop.f32.mrf.mxu3 }
 0x18f   :  { %v1585_v0 = vadd.f32 %v1349_v62, %v1131_v49  ;;  %v529_v48 = vadd.f32 %v528_v24, %v5677_v46  ;;  %v1687_v24 = vld [vmem:[%s8662_s0 + $0xe3] sm:$0xff] }
 0x191   :  { %v6033_v13 = vadd.f32 %v1803_v8, %v1585_v0  ;;  %575 = vmatmul.f32.gmra.mxu1 %v39_v60  ;;  %945 = vmatmul.f32.gmra.mxu2 %v1230_v35  ;;  %v40_v8 = vld [vmem:[%s8662_s0 + $0xd0] sm:$0xff]  ;;  %v1233_v35 = vld [vmem:[%s8662_s0 + $0xe2] sm:$0xff] }
 0x192   :  { %v1806_v33 = vpop.f32.mrf.mxu0 }
 0x193   :  { %1399 = vmatmul.f32.gmra.mxu3 %v1232_v39 }
 0x194   :  { %v898_v45 = vpop.f32.mrf.mxu2 }
 0x195   :  { %v1132_v63 = vadd.f32 %v898_v45, %v529_v48  ;;  %1853 = vmatmul.f32.gmra.mxu0 %v1686_v30 }
 0x196   :  { %v531_v49 = vpop.f32.mrf.mxu1  ;;  %v1352_v37 = vpop.f32.mrf.mxu3 }
 0x197   :  { %v1586_v62 = vadd.f32 %v1352_v37, %v1132_v63  ;;  %v532_v0 = vadd.f32 %v531_v49, %v5694_v61  ;;  %v1688_v49 = vld [vmem:[%s8662_s0 + $0xeb] sm:$0xff] }
 0x199   :  { %v6045_v60 = vadd.f32 %v1806_v33, %v1586_v62  ;;  %578 = vmatmul.f32.gmra.mxu1 %v40_v8  ;;  %948 = vmatmul.f32.gmra.mxu2 %v1231_v20  ;;  %v41_v33 = vld [vmem:[%s8662_s0 + $0xd8] sm:$0xff]  ;;  %v1234_v20 = vld [vmem:[%s8662_s0 + $0xea] sm:$0xff] }
 0x19a   :  { %v1809_v46 = vpop.f32.mrf.mxu0 }
 0x19b   :  { %1402 = vmatmul.f32.gmra.mxu3 %v1233_v35 }
 0x19c   :  { %v901_v30 = vpop.f32.mrf.mxu2 }
 0x19d   :  { %v1133_v48 = vadd.f32 %v901_v30, %v532_v0  ;;  %1856 = vmatmul.f32.gmra.mxu0 %v1687_v24  ;;  %v4928_v30 = vld [vmem:[%s8661_s1 + $0x348] sm:$0xff] }
 0x19e   :  { %v534_v45 = vpop.f32.mrf.mxu1  ;;  %v1355_v63 = vpop.f32.mrf.mxu3  ;;  %2676 = vmatpush.msra.mxu2 %v4928_v30 }
 0x19f   :  { %v1587_v37 = vadd.f32 %v1355_v63, %v1133_v48  ;;  %v535_v62 = vadd.f32 %v534_v45, %v5711_v9  ;;  %v4944_v9 = vld [vmem:[%s8661_s1 + $0x3c8] sm:$0xff]  ;;  %v1235_v45 = vld [vmem:[%s8662_s0 + $0xf2] sm:$0xff] }
 0x1a0   :  { %3130 = vmatpush.msra.mxu3 %v4944_v9  ;;  %v1236_v9 = vld [vmem:[%s8662_s0 + $0xfa] sm:$0xff] }
 0x1a1   :  { %v6057_v8 = vadd.f32 %v1809_v46, %v1587_v37  ;;  %581 = vmatmul.f32.gmra.mxu1 %v41_v33  ;;  %951 = vmatmul.f32.gmra.mxu2 %v1232_v39  ;;  %v42_v39 = vld [vmem:[%s8662_s0 + $0xe0] sm:$0xff]  ;;  %v4912_v37 = vld [vmem:[%s8661_s1 + $0x2c8] sm:$0xff] }
 0x1a2   :  { %v1812_v61 = vpop.f32.mrf.mxu0  ;;  %2222 = vmatpush.msra.mxu1 %v4912_v37  ;;  %v1690_v37 = vld [vmem:[%s8662_s0 + $0xfb] sm:$0xff] }
 0x1a3   :  { %1405 = vmatmul.f32.gmra.mxu3 %v1234_v20 }
 0x1a4   :  { %v904_v24 = vpop.f32.mrf.mxu2 }
 0x1a5   :  { %v1134_v0 = vadd.f32 %v904_v24, %v535_v62  ;;  %1859 = vmatmul.f32.gmra.mxu0 %v1688_v49  ;;  %v1689_v62 = vld [vmem:[%s8662_s0 + $0xf3] sm:$0xff] }
 0x1a6   :  { %v537_v48 = vpop.f32.mrf.mxu1  ;;  %v1358_v46 = vpop.f32.mrf.mxu3 }
 0x1a7   :  { %v1588_v63 = vadd.f32 %v1358_v46, %v1134_v0  ;;  %v538_v24 = vadd.f32 %v537_v48, %v5737_v36 }
 0x1a9   :  { %v6075_v33 = vadd.f32 %v1812_v61, %v1588_v63  ;;  %584 = vmatmul.f32.gmra.mxu1 %v42_v39  ;;  %954 = vmatmul.f32.gmra.mxu2 %v1233_v35  ;;  %v43_v35 = vld [vmem:[%s8662_s0 + $0xe8] sm:$0xff] }
 0x1aa   :  { %v1815_v49 = vpop.f32.mrf.mxu0  ;;  %v4960_v63 = vld [vmem:[%s8661_s1 + $0x448] sm:$0xff] }
 0x1ab   :  { %1408 = vmatmul.f32.gmra.mxu3 %v1235_v45  ;;  %3584 = vmatpush.msra.mxu0 %v4960_v63 }
 0x1ac   :  { %v907_v0 = vpop.f32.mrf.mxu2 }
 0x1ad   :  { %v1135_v30 = vadd.f32 %v907_v0, %v538_v24  ;;  %1862 = vmatmul.f32.gmra.mxu0 %v1689_v62 }
 0x1ae   :  { %v540_v61 = vpop.f32.mrf.mxu1  ;;  %v1361_v46 = vpop.f32.mrf.mxu3 }
 0x1af   :  { %v1589_v39 = vadd.f32 %v1361_v46, %v1135_v30  ;;  %v541_v62 = vadd.f32 %v540_v61, %v5757_v10  ;;  %v1691_v61 = vld [vmem:[%s8662_s0 + $0x103] sm:$0xff] }
 0x1b1   :  { %v6093_v36 = vadd.f32 %v1815_v49, %v1589_v39  ;;  %587 = vmatmul.f32.gmra.mxu1 %v43_v35  ;;  %957 = vmatmul.f32.gmra.mxu2 %v1234_v20  ;;  %v44_v49 = vld [vmem:[%s8662_s0 + $0xf0] sm:$0xff]  ;;  %v1237_v20 = vld [vmem:[%s8662_s0 + $0x102] sm:$0xff] }
 0x1b2   :  { %v1818_v48 = vpop.f32.mrf.mxu0 }
 0x1b3   :  { %1411 = vmatmul.f32.gmra.mxu3 %v1236_v9 }
 0x1b4   :  { %v910_v24 = vpop.f32.mrf.mxu2 }
 0x1b5   :  { %v1136_v0 = vadd.f32 %v910_v24, %v541_v62  ;;  %1865 = vmatmul.f32.gmra.mxu0 %v1690_v37 }
 0x1b6   :  { %v543_v30 = vpop.f32.mrf.mxu1  ;;  %v1364_v46 = vpop.f32.mrf.mxu3 }
 0x1b7   :  { %v1590_v39 = vadd.f32 %v1364_v46, %v1136_v0  ;;  %v544_v63 = vadd.f32 %v543_v30, %v5774_v57  ;;  %v1692_v30 = vld [vmem:[%s8662_s0 + $0x10b] sm:$0xff] }
 0x1b9   :  { %v6105_v35 = vadd.f32 %v1818_v48, %v1590_v39  ;;  %590 = vmatmul.f32.gmra.mxu1 %v44_v49  ;;  %960 = vmatmul.f32.gmra.mxu2 %v1235_v45  ;;  %v45_v48 = vld [vmem:[%s8662_s0 + $0xf8] sm:$0xff]  ;;  %v1238_v45 = vld [vmem:[%s8662_s0 + $0x10a] sm:$0xff] }
 0x1ba   :  { %v1821_v10 = vpop.f32.mrf.mxu0 }
 0x1bb   :  { %1414 = vmatmul.f32.gmra.mxu3 %v1237_v20 }
 0x1bc   :  { %v913_v37 = vpop.f32.mrf.mxu2 }
 0x1bd   :  { %v1137_v62 = vadd.f32 %v913_v37, %v544_v63  ;;  %1868 = vmatmul.f32.gmra.mxu0 %v1691_v61 }
 0x1be   :  { %v546_v24 = vpop.f32.mrf.mxu1  ;;  %v1367_v0 = vpop.f32.mrf.mxu3 }
 0x1bf   :  { %v1591_v46 = vadd.f32 %v1367_v0, %v1137_v62  ;;  %v547_v39 = vadd.f32 %v546_v24, %v5791_v41  ;;  %v1693_v24 = vld [vmem:[%s8662_s0 + $0x113] sm:$0xff] }
 0x1c1   :  { %v6117_v49 = vadd.f32 %v1821_v10, %v1591_v46  ;;  %593 = vmatmul.f32.gmra.mxu1 %v45_v48  ;;  %963 = vmatmul.f32.gmra.mxu2 %v1236_v9  ;;  %v46_v10 = vld [vmem:[%s8662_s0 + $0x100] sm:$0xff]  ;;  %v1239_v9 = vld [vmem:[%s8662_s0 + $0x112] sm:$0xff] }
 0x1c2   :  { %v1824_v57 = vpop.f32.mrf.mxu0 }
 0x1c3   :  { %1417 = vmatmul.f32.gmra.mxu3 %v1238_v45 }
 0x1c4   :  { %v916_v61 = vpop.f32.mrf.mxu2 }
 0x1c5   :  { %v1138_v63 = vadd.f32 %v916_v61, %v547_v39  ;;  %1871 = vmatmul.f32.gmra.mxu0 %v1692_v30 }
 0x1c6   :  { %v549_v37 = vpop.f32.mrf.mxu1  ;;  %v1370_v62 = vpop.f32.mrf.mxu3 }
 0x1c7   :  { %v1592_v0 = vadd.f32 %v1370_v62, %v1138_v63  ;;  %v550_v46 = vadd.f32 %v549_v37, %v5808_v6  ;;  %v4943_v37 = vld [vmem:[%s8661_s1 + $0x3c0] sm:$0xff] }
 0x1c8   :  { %3131 = vmatpush.msra.mxu3 %v4943_v37 }
 0x1c9   :  { %v6129_v48 = vadd.f32 %v1824_v57, %v1592_v0  ;;  %596 = vmatmul.f32.gmra.mxu1 %v46_v10  ;;  %966 = vmatmul.f32.gmra.mxu2 %v1237_v20  ;;  %v47_v57 = vld [vmem:[%s8662_s0 + $0x108] sm:$0xff]  ;;  %v4927_v20 = vld [vmem:[%s8661_s1 + $0x340] sm:$0xff] }
 0x1ca   :  { %v1827_v41 = vpop.f32.mrf.mxu0  ;;  %v1240_v10 = vld [vmem:[%s8662_s0 + $0x11a] sm:$0xff]  ;;  %2677 = vmatpush.msra.mxu2 %v4927_v20 }
 0x1cb   :  { %1420 = vmatmul.f32.gmra.mxu3 %v1239_v9  ;;  %v4959_v20 = vld [vmem:[%s8661_s1 + $0x440] sm:$0xff] }
 0x1cc   :  { %v919_v30 = vpop.f32.mrf.mxu2  ;;  %3585 = vmatpush.msra.mxu0 %v4959_v20 }
 0x1cd   :  { %v1139_v39 = vadd.f32 %v919_v30, %v550_v46  ;;  %1874 = vmatmul.f32.gmra.mxu0 %v1693_v24  ;;  %v1694_v24 = vld [vmem:[%s8662_s0 + $0x11b] sm:$0xff] }
 0x1ce   :  { %v552_v61 = vpop.f32.mrf.mxu1  ;;  %v1373_v63 = vpop.f32.mrf.mxu3 }
 0x1cf   :  { %v1593_v62 = vadd.f32 %v1373_v63, %v1139_v39  ;;  %v553_v46 = vadd.f32 %v552_v61, %v5831_v15  ;;  %v1241_v15 = vld [vmem:[%s8662_s0 + $0x122] sm:$0xff] }
 0x1d1   :  { %v6144_v6 = vadd.f32 %v1827_v41, %v1593_v62  ;;  %599 = vmatmul.f32.gmra.mxu1 %v47_v57  ;;  %969 = vmatmul.f32.gmra.mxu2 %v1238_v45  ;;  %v4911_v41 = vld [vmem:[%s8661_s1 + $0x2c0] sm:$0xff]  ;;  %v48_v57 = vld [vmem:[%s8662_s0 + $0x110] sm:$0xff] }
 0x1d2   :  { %v1830_v0 = vpop.f32.mrf.mxu0  ;;  %2223 = vmatpush.msra.mxu1 %v4911_v41 }
 0x1d3   :  { %1423 = vmatmul.f32.gmra.mxu3 %v1240_v10 }
 0x1d4   :  { %v922_v30 = vpop.f32.mrf.mxu2 }
 0x1d5   :  { %v1140_v45 = vadd.f32 %v922_v30, %v553_v46  ;;  %1877 = vmatmul.f32.gmra.mxu0 %v1694_v24  ;;  %v1695_v24 = vld [vmem:[%s8662_s0 + $0x123] sm:$0xff] }
 0x1d6   :  { %v555_v39 = vpop.f32.mrf.mxu1  ;;  %v1376_v63 = vpop.f32.mrf.mxu3 }
 0x1d7   :  { %v1594_v62 = vadd.f32 %v1376_v63, %v1140_v45  ;;  %v556_v46 = vadd.f32 %v555_v39, %v5854_v52  ;;  %v1696_v39 = vld [vmem:[%s8662_s0 + $0x12b] sm:$0xff] }
 0x1d9   :  { %v6162_v61 = vadd.f32 %v1830_v0, %v1594_v62  ;;  %602 = vmatmul.f32.gmra.mxu1 %v48_v57  ;;  %972 = vmatmul.f32.gmra.mxu2 %v1239_v9  ;;  %v49_v9 = vld [vmem:[%s8662_s0 + $0x118] sm:$0xff]  ;;  %v1242_v57 = vld [vmem:[%s8662_s0 + $0x12a] sm:$0xff] }
 0x1da   :  { %v1833_v37 = vpop.f32.mrf.mxu0 }
 0x1db   :  { %1426 = vmatmul.f32.gmra.mxu3 %v1241_v15 }
 0x1dc   :  { %v925_v41 = vpop.f32.mrf.mxu2 }
 0x1dd   :  { %v1141_v30 = vadd.f32 %v925_v41, %v556_v46  ;;  %1880 = vmatmul.f32.gmra.mxu0 %v1695_v24 }
 0x1de   :  { %v558_v0 = vpop.f32.mrf.mxu1  ;;  %v1379_v45 = vpop.f32.mrf.mxu3 }
 0x1df   :  { %v1595_v63 = vadd.f32 %v1379_v45, %v1141_v30  ;;  %v559_v20 = vadd.f32 %v558_v0, %v5871_v28  ;;  %v1697_v0 = vld [vmem:[%s8662_s0 + $0x133] sm:$0xff] }
 0x1e1   :  { %v6177_v62 = vadd.f32 %v1833_v37, %v1595_v63  ;;  %605 = vmatmul.f32.gmra.mxu1 %v49_v9  ;;  %975 = vmatmul.f32.gmra.mxu2 %v1240_v10  ;;  %v50_v37 = vld [vmem:[%s8662_s0 + $0x120] sm:$0xff]  ;;  %v1243_v10 = vld [vmem:[%s8662_s0 + $0x132] sm:$0xff] }
 0x1e2   :  { %v1836_v52 = vpop.f32.mrf.mxu0 }
 0x1e3   :  { %1429 = vmatmul.f32.gmra.mxu3 %v1242_v57 }
 0x1e4   :  { %v928_v24 = vpop.f32.mrf.mxu2 }
 0x1e5   :  { %v1142_v46 = vadd.f32 %v928_v24, %v559_v20  ;;  %1883 = vmatmul.f32.gmra.mxu0 %v1696_v39 }
 0x1e6   :  { %v561_v41 = vpop.f32.mrf.mxu1  ;;  %v1382_v30 = vpop.f32.mrf.mxu3 }
 0x1e7   :  { %v1596_v45 = vadd.f32 %v1382_v30, %v1142_v46  ;;  %v562_v63 = vadd.f32 %v561_v41, %v5888_v19  ;;  %v1698_v41 = vld [vmem:[%s8662_s0 + $0x13b] sm:$0xff] }
 0x1e9   :  { %v6189_v9 = vadd.f32 %v1836_v52, %v1596_v45  ;;  %608 = vmatmul.f32.gmra.mxu1 %v50_v37  ;;  %978 = vmatmul.f32.gmra.mxu2 %v1241_v15  ;;  %v51_v52 = vld [vmem:[%s8662_s0 + $0x128] sm:$0xff]  ;;  %v1244_v15 = vld [vmem:[%s8662_s0 + $0x13a] sm:$0xff] }
 0x1ea   :  { %v1839_v28 = vpop.f32.mrf.mxu0 }
 0x1eb   :  { %1432 = vmatmul.f32.gmra.mxu3 %v1243_v10 }
 0x1ec   :  { %v931_v39 = vpop.f32.mrf.mxu2 }
 0x1ed   :  { %v1143_v20 = vadd.f32 %v931_v39, %v562_v63  ;;  %1886 = vmatmul.f32.gmra.mxu0 %v1697_v0 }
 0x1ee   :  { %v564_v24 = vpop.f32.mrf.mxu1  ;;  %v1385_v46 = vpop.f32.mrf.mxu3 }
 0x1ef   :  { %v1597_v30 = vadd.f32 %v1385_v46, %v1143_v20  ;;  %v565_v45 = vadd.f32 %v564_v24, %v5459_v12  ;;  %v4926_v12 = vld [vmem:[%s8661_s1 + $0x338] sm:$0xff] }
 0x1f0   :  { %2678 = vmatpush.msra.mxu2 %v4926_v12 }
 0x1f1   :  { %v6201_v37 = vadd.f32 %v1839_v28, %v1597_v30  ;;  %611 = vmatmul.f32.gmra.mxu1 %v51_v52  ;;  %981 = vmatmul.f32.gmra.mxu2 %v1242_v57  ;;  %v52_v28 = vld [vmem:[%s8662_s0 + $0x130] sm:$0xff]  ;;  %v1245_v57 = vld [vmem:[%s8662_s0 + $0x142] sm:$0xff] }
 0x1f2   :  { %v1842_v19 = vpop.f32.mrf.mxu0  ;;  %v1699_v30 = vld [vmem:[%s8662_s0 + $0x143] sm:$0xff] }
 0x1f3   :  { %1435 = vmatmul.f32.gmra.mxu3 %v1244_v15 }
 0x1f4   :  { %v934_v0 = vpop.f32.mrf.mxu2 }
 0x1f5   :  { %v1144_v63 = vadd.f32 %v934_v0, %v565_v45  ;;  %1889 = vmatmul.f32.gmra.mxu0 %v1698_v41  ;;  %v4910_v0 = vld [vmem:[%s8661_s1 + $0x2b8] sm:$0xff] }
 0x1f6   :  { %v567_v39 = vpop.f32.mrf.mxu1  ;;  %v1388_v20 = vpop.f32.mrf.mxu3  ;;  %2224 = vmatpush.msra.mxu1 %v4910_v0 }
 0x1f7   :  { %v1598_v46 = vadd.f32 %v1388_v20, %v1144_v63  ;;  %v568_v41 = vadd.f32 %v567_v39, %v5486_v22  ;;  %v1246_v39 = vld [vmem:[%s8662_s0 + $0x14a] sm:$0xff] }
 0x1f9   :  { %v6213_v52 = vadd.f32 %v1842_v19, %v1598_v46  ;;  %614 = vmatmul.f32.gmra.mxu1 %v52_v28  ;;  %984 = vmatmul.f32.gmra.mxu2 %v1243_v10  ;;  %v4942_v19 = vld [vmem:[%s8661_s1 + $0x3b8] sm:$0xff] }
 0x1fa   :  { %v1845_v24 = vpop.f32.mrf.mxu0  ;;  %3132 = vmatpush.msra.mxu3 %v4942_v19  ;;  %v53_v28 = vld [vmem:[%s8662_s0 + $0x138] sm:$0xff] }
 0x1fb   :  { %1438 = vmatmul.f32.gmra.mxu3 %v1245_v57  ;;  %v4958_v19 = vld [vmem:[%s8661_s1 + $0x438] sm:$0xff] }
 0x1fc   :  { %v937_v45 = vpop.f32.mrf.mxu2  ;;  %3586 = vmatpush.msra.mxu0 %v4958_v19 }
 0x1fd   :  { %v1145_v10 = vadd.f32 %v937_v45, %v568_v41  ;;  %1892 = vmatmul.f32.gmra.mxu0 %v1699_v30  ;;  %v1700_v30 = vld [vmem:[%s8662_s0 + $0x14b] sm:$0xff] }
 0x1fe   :  { %v570_v63 = vpop.f32.mrf.mxu1  ;;  %v1391_v20 = vpop.f32.mrf.mxu3 }
 0x1ff   :  { %v1599_v22 = vadd.f32 %v1391_v20, %v1145_v10  ;;  %v571_v41 = vadd.f32 %v570_v63, %v5518_v34  ;;  %v1247_v34 = vld [vmem:[%s8662_s0 + $0x152] sm:$0xff] }
 0x201   :  { %v6234_v46 = vadd.f32 %v1845_v24, %v1599_v22  ;;  %617 = vmatmul.f32.gmra.mxu1 %v53_v28  ;;  %987 = vmatmul.f32.gmra.mxu2 %v1244_v15  ;;  %v54_v15 = vld [vmem:[%s8662_s0 + $0x140] sm:$0xff]  ;;  %v1701_v22 = vld [vmem:[%s8662_s0 + $0x153] sm:$0xff] }
 0x202   :  { %v1848_v12 = vpop.f32.mrf.mxu0 }
 0x203   :  { %1441 = vmatmul.f32.gmra.mxu3 %v1246_v39 }
 0x204   :  { %v940_v45 = vpop.f32.mrf.mxu2 }
 0x205   :  { %v1146_v10 = vadd.f32 %v940_v45, %v571_v41  ;;  %1895 = vmatmul.f32.gmra.mxu0 %v1700_v30 }
 0x206   :  { %v573_v24 = vpop.f32.mrf.mxu1  ;;  %v1394_v0 = vpop.f32.mrf.mxu3 }
 0x207   :  { %v1600_v20 = vadd.f32 %v1394_v0, %v1146_v10  ;;  %v574_v30 = vadd.f32 %v573_v24, %v5541_v43  ;;  %v1702_v24 = vld [vmem:[%s8662_s0 + $0x15b] sm:$0xff] }
 0x209   :  { %v6249_v63 = vadd.f32 %v1848_v12, %v1600_v20  ;;  %620 = vmatmul.f32.gmra.mxu1 %v54_v15  ;;  %990 = vmatmul.f32.gmra.mxu2 %v1245_v57  ;;  %v55_v12 = vld [vmem:[%s8662_s0 + $0x148] sm:$0xff]  ;;  %v1248_v57 = vld [vmem:[%s8662_s0 + $0x15a] sm:$0xff] }
 0x20a   :  { %v1851_v28 = vpop.f32.mrf.mxu0 }
 0x20b   :  { %1444 = vmatmul.f32.gmra.mxu3 %v1247_v34 }
 0x20c   :  { %v943_v41 = vpop.f32.mrf.mxu2 }
 0x20d   :  { %v1147_v19 = vadd.f32 %v943_v41, %v574_v30  ;;  %1898 = vmatmul.f32.gmra.mxu0 %v1701_v22 }
 0x20e   :  { %v576_v45 = vpop.f32.mrf.mxu1  ;;  %v1397_v10 = vpop.f32.mrf.mxu3 }
 0x20f   :  { %v1601_v0 = vadd.f32 %v1397_v10, %v1147_v19  ;;  %v577_v20 = vadd.f32 %v576_v45, %v5561_v51  ;;  %v1703_v45 = vld [vmem:[%s8662_s0 + $0x163] sm:$0xff] }
 0x211   :  { %v6261_v15 = vadd.f32 %v1851_v28, %v1601_v0  ;;  %623 = vmatmul.f32.gmra.mxu1 %v55_v12  ;;  %993 = vmatmul.f32.gmra.mxu2 %v1246_v39  ;;  %v56_v28 = vld [vmem:[%s8662_s0 + $0x150] sm:$0xff]  ;;  %v1249_v39 = vld [vmem:[%s8662_s0 + $0x162] sm:$0xff] }
 0x212   :  { %v1854_v43 = vpop.f32.mrf.mxu0 }
 0x213   :  { %1447 = vmatmul.f32.gmra.mxu3 %v1248_v57 }
 0x214   :  { %v946_v22 = vpop.f32.mrf.mxu2 }
 0x215   :  { %v1148_v30 = vadd.f32 %v946_v22, %v577_v20  ;;  %1901 = vmatmul.f32.gmra.mxu0 %v1702_v24 }
 0x216   :  { %v579_v41 = vpop.f32.mrf.mxu1  ;;  %v1400_v19 = vpop.f32.mrf.mxu3 }
 0x217   :  { %v1602_v10 = vadd.f32 %v1400_v19, %v1148_v30  ;;  %v580_v0 = vadd.f32 %v579_v41, %v5581_v59  ;;  %v1704_v41 = vld [vmem:[%s8662_s0 + $0x16b] sm:$0xff] }
 0x219   :  { %v6273_v12 = vadd.f32 %v1854_v43, %v1602_v10  ;;  %626 = vmatmul.f32.gmra.mxu1 %v56_v28  ;;  %996 = vmatmul.f32.gmra.mxu2 %v1247_v34  ;;  %v57_v43 = vld [vmem:[%s8662_s0 + $0x158] sm:$0xff]  ;;  %v1250_v34 = vld [vmem:[%s8662_s0 + $0x16a] sm:$0xff] }
 0x21a   :  { %v1857_v51 = vpop.f32.mrf.mxu0 }
 0x21b   :  { %1450 = vmatmul.f32.gmra.mxu3 %v1249_v39 }
 0x21c   :  { %v949_v24 = vpop.f32.mrf.mxu2 }
 0x21d   :  { %v1149_v20 = vadd.f32 %v949_v24, %v580_v0  ;;  %1904 = vmatmul.f32.gmra.mxu0 %v1703_v45  ;;  %v4925_v45 = vld [vmem:[%s8661_s1 + $0x330] sm:$0xff] }
 0x21e   :  { %v582_v22 = vpop.f32.mrf.mxu1  ;;  %v1403_v30 = vpop.f32.mrf.mxu3  ;;  %2679 = vmatpush.msra.mxu2 %v4925_v45 }
 0x21f   :  { %v1603_v19 = vadd.f32 %v1403_v30, %v1149_v20  ;;  %v583_v10 = vadd.f32 %v582_v22, %v5601_v3  ;;  %v58_v30 = vld [vmem:[%s8662_s0 + $0x160] sm:$0xff]  ;;  %v4909_v22 = vld [vmem:[%s8661_s1 + $0x2b0] sm:$0xff] }
 0x220   :  { %2225 = vmatpush.msra.mxu1 %v4909_v22  ;;  %v1706_v22 = vld [vmem:[%s8662_s0 + $0x17b] sm:$0xff] }
 0x221   :  { %v6285_v28 = vadd.f32 %v1857_v51, %v1603_v19  ;;  %629 = vmatmul.f32.gmra.mxu1 %v57_v43  ;;  %999 = vmatmul.f32.gmra.mxu2 %v1248_v57  ;;  %v4941_v57 = vld [vmem:[%s8661_s1 + $0x3b0] sm:$0xff] }
 0x222   :  { %v1860_v59 = vpop.f32.mrf.mxu0  ;;  %3133 = vmatpush.msra.mxu3 %v4941_v57  ;;  %v1251_v43 = vld [vmem:[%s8662_s0 + $0x172] sm:$0xff] }
 0x223   :  { %1453 = vmatmul.f32.gmra.mxu3 %v1250_v34  ;;  %v4957_v57 = vld [vmem:[%s8661_s1 + $0x430] sm:$0xff] }
 0x224   :  { %v952_v0 = vpop.f32.mrf.mxu2  ;;  %3587 = vmatpush.msra.mxu0 %v4957_v57 }
 0x225   :  { %v1150_v24 = vadd.f32 %v952_v0, %v583_v10  ;;  %1907 = vmatmul.f32.gmra.mxu0 %v1704_v41  ;;  %v1705_v10 = vld [vmem:[%s8662_s0 + $0x173] sm:$0xff] }
 0x226   :  { %v585_v51 = vpop.f32.mrf.mxu1  ;;  %v1406_v20 = vpop.f32.mrf.mxu3 }
 0x227   :  { %v1604_v3 = vadd.f32 %v1406_v20, %v1150_v24  ;;  %v586_v45 = vadd.f32 %v585_v51, %v5627_v14  ;;  %v1252_v14 = vld [vmem:[%s8662_s0 + $0x17a] sm:$0xff] }
 0x229   :  { %v6306_v19 = vadd.f32 %v1860_v59, %v1604_v3  ;;  %632 = vmatmul.f32.gmra.mxu1 %v58_v30  ;;  %1002 = vmatmul.f32.gmra.mxu2 %v1249_v39  ;;  %v59_v39 = vld [vmem:[%s8662_s0 + $0x168] sm:$0xff] }
 0x22a   :  { %v1863_v41 = vpop.f32.mrf.mxu0 }
 0x22b   :  { %1456 = vmatmul.f32.gmra.mxu3 %v1251_v43 }
 0x22c   :  { %v955_v0 = vpop.f32.mrf.mxu2 }
 0x22d   :  { %v1151_v24 = vadd.f32 %v955_v0, %v586_v45  ;;  %1910 = vmatmul.f32.gmra.mxu0 %v1705_v10 }
 0x22e   :  { %v588_v20 = vpop.f32.mrf.mxu1  ;;  %v1409_v59 = vpop.f32.mrf.mxu3 }
 0x22f   :  { %v1605_v30 = vadd.f32 %v1409_v59, %v1151_v24  ;;  %v589_v10 = vadd.f32 %v588_v20, %v5650_v27  ;;  %v1707_v20 = vld [vmem:[%s8662_s0 + $0x183] sm:$0xff] }
 0x231   :  { %v6321_v51 = vadd.f32 %v1863_v41, %v1605_v30  ;;  %635 = vmatmul.f32.gmra.mxu1 %v59_v39  ;;  %1005 = vmatmul.f32.gmra.mxu2 %v1250_v34  ;;  %v60_v41 = vld [vmem:[%s8662_s0 + $0x170] sm:$0xff]  ;;  %v1253_v34 = vld [vmem:[%s8662_s0 + $0x182] sm:$0xff] }
 0x232   :  { %v1866_v3 = vpop.f32.mrf.mxu0 }
 0x233   :  { %1459 = vmatmul.f32.gmra.mxu3 %v1252_v14 }
 0x234   :  { %v958_v45 = vpop.f32.mrf.mxu2 }
 0x235   :  { %v1152_v0 = vadd.f32 %v958_v45, %v589_v10  ;;  %1913 = vmatmul.f32.gmra.mxu0 %v1706_v22 }
 0x236   :  { %v591_v24 = vpop.f32.mrf.mxu1  ;;  %v1412_v57 = vpop.f32.mrf.mxu3 }
 0x237   :  { %v1606_v59 = vadd.f32 %v1412_v57, %v1152_v0  ;;  %v592_v30 = vadd.f32 %v591_v24, %v5667_v38  ;;  %v1708_v24 = vld [vmem:[%s8662_s0 + $0x18b] sm:$0xff] }
 0x239   :  { %v6333_v39 = vadd.f32 %v1866_v3, %v1606_v59  ;;  %638 = vmatmul.f32.gmra.mxu1 %v60_v41  ;;  %1008 = vmatmul.f32.gmra.mxu2 %v1251_v43  ;;  %v61_v3 = vld [vmem:[%s8662_s0 + $0x178] sm:$0xff]  ;;  %v1254_v43 = vld [vmem:[%s8662_s0 + $0x18a] sm:$0xff] }
 0x23a   :  { %v1869_v27 = vpop.f32.mrf.mxu0 }
 0x23b   :  { %1462 = vmatmul.f32.gmra.mxu3 %v1253_v34 }
 0x23c   :  { %v961_v22 = vpop.f32.mrf.mxu2 }
 0x23d   :  { %v1153_v10 = vadd.f32 %v961_v22, %v592_v30  ;;  %1916 = vmatmul.f32.gmra.mxu0 %v1707_v20 }
 0x23e   :  { %v594_v45 = vpop.f32.mrf.mxu1  ;;  %v1415_v0 = vpop.f32.mrf.mxu3 }
 0x23f   :  { %v1607_v57 = vadd.f32 %v1415_v0, %v1153_v10  ;;  %v595_v59 = vadd.f32 %v594_v45, %v5684_v53  ;;  %v1709_v45 = vld [vmem:[%s8662_s0 + $0x193] sm:$0xff] }
 0x241   :  { %v6345_v41 = vadd.f32 %v1869_v27, %v1607_v57  ;;  %641 = vmatmul.f32.gmra.mxu1 %v61_v3  ;;  %1011 = vmatmul.f32.gmra.mxu2 %v1252_v14  ;;  %v62_v27 = vld [vmem:[%s8662_s0 + $0x180] sm:$0xff]  ;;  %v1255_v14 = vld [vmem:[%s8662_s0 + $0x192] sm:$0xff] }
 0x242   :  { %v1872_v38 = vpop.f32.mrf.mxu0 }
 0x243   :  { %1465 = vmatmul.f32.gmra.mxu3 %v1254_v43 }
 0x244   :  { %v964_v20 = vpop.f32.mrf.mxu2 }
 0x245   :  { %v1154_v30 = vadd.f32 %v964_v20, %v595_v59  ;;  %1919 = vmatmul.f32.gmra.mxu0 %v1708_v24  ;;  %v4924_v20 = vld [vmem:[%s8661_s1 + $0x328] sm:$0xff] }
 0x246   :  { %v597_v22 = vpop.f32.mrf.mxu1  ;;  %v1418_v10 = vpop.f32.mrf.mxu3  ;;  %2680 = vmatpush.msra.mxu2 %v4924_v20 }
 0x247   :  { %v1608_v0 = vadd.f32 %v1418_v10, %v1154_v30  ;;  %v598_v57 = vadd.f32 %v597_v22, %v5701_v1  ;;  %v4940_v1 = vld [vmem:[%s8661_s1 + $0x3a8] sm:$0xff]  ;;  %v1256_v22 = vld [vmem:[%s8662_s0 + $0x19a] sm:$0xff] }
 0x248   :  { %3134 = vmatpush.msra.mxu3 %v4940_v1  ;;  %v1257_v1 = vld [vmem:[%s8662_s0 + $0x1a2] sm:$0xff] }
 0x249   :  { %v6357_v3 = vadd.f32 %v1872_v38, %v1608_v0  ;;  %644 = vmatmul.f32.gmra.mxu1 %v62_v27  ;;  %1014 = vmatmul.f32.gmra.mxu2 %v1253_v34  ;;  %v63_v34 = vld [vmem:[%s8662_s0 + $0x188] sm:$0xff] }
 0x24a   :  { %v1875_v53 = vpop.f32.mrf.mxu0  ;;  %v4908_v0 = vld [vmem:[%s8661_s1 + $0x2a8] sm:$0xff] }
 0x24b   :  { %1468 = vmatmul.f32.gmra.mxu3 %v1255_v14  ;;  %2226 = vmatpush.msra.mxu1 %v4908_v0  ;;  %v1711_v0 = vld [vmem:[%s8662_s0 + $0x1a3] sm:$0xff] }
 0x24c   :  { %v967_v24 = vpop.f32.mrf.mxu2 }
 0x24d   :  { %v1155_v59 = vadd.f32 %v967_v24, %v598_v57  ;;  %1922 = vmatmul.f32.gmra.mxu0 %v1709_v45  ;;  %v1710_v57 = vld [vmem:[%s8662_s0 + $0x19b] sm:$0xff] }
 0x24e   :  { %v600_v30 = vpop.f32.mrf.mxu1  ;;  %v1421_v38 = vpop.f32.mrf.mxu3 }
 0x24f   :  { %v1609_v10 = vadd.f32 %v1421_v38, %v1155_v59  ;;  %v601_v24 = vadd.f32 %v600_v30, %v5721_v17 }
 0x251   :  { %v6375_v27 = vadd.f32 %v1875_v53, %v1609_v10  ;;  %647 = vmatmul.f32.gmra.mxu1 %v63_v34  ;;  %1017 = vmatmul.f32.gmra.mxu2 %v1254_v43  ;;  %v64_v43 = vld [vmem:[%s8662_s0 + $0x190] sm:$0xff]  ;;  %v4956_v10 = vld [vmem:[%s8661_s1 + $0x428] sm:$0xff] }
 0x252   :  { %v1878_v45 = vpop.f32.mrf.mxu0  ;;  %3588 = vmatpush.msra.mxu0 %v4956_v10 }
 0x253   :  { %1471 = vmatmul.f32.gmra.mxu3 %v1256_v22 }
 0x254   :  { %v970_v59 = vpop.f32.mrf.mxu2 }
 0x255   :  { %v1156_v20 = vadd.f32 %v970_v59, %v601_v24  ;;  %1925 = vmatmul.f32.gmra.mxu0 %v1710_v57 }
 0x256   :  { %v603_v53 = vpop.f32.mrf.mxu1  ;;  %v1424_v38 = vpop.f32.mrf.mxu3 }
 0x257   :  { %v1610_v34 = vadd.f32 %v1424_v38, %v1156_v20  ;;  %v604_v57 = vadd.f32 %v603_v53, %v5744_v47  ;;  %v1712_v53 = vld [vmem:[%s8662_s0 + $0x1ab] sm:$0xff] }
 0x259   :  { %v6393_v17 = vadd.f32 %v1878_v45, %v1610_v34  ;;  %650 = vmatmul.f32.gmra.mxu1 %v64_v43  ;;  %1020 = vmatmul.f32.gmra.mxu2 %v1255_v14  ;;  %v65_v45 = vld [vmem:[%s8662_s0 + $0x198] sm:$0xff]  ;;  %v1258_v14 = vld [vmem:[%s8662_s0 + $0x1aa] sm:$0xff] }
 0x25a   :  { %v1881_v30 = vpop.f32.mrf.mxu0 }
 0x25b   :  { %1474 = vmatmul.f32.gmra.mxu3 %v1257_v1 }
 0x25c   :  { %v973_v24 = vpop.f32.mrf.mxu2 }
 0x25d   :  { %v1157_v59 = vadd.f32 %v973_v24, %v604_v57  ;;  %1928 = vmatmul.f32.gmra.mxu0 %v1711_v0 }
 0x25e   :  { %v606_v20 = vpop.f32.mrf.mxu1  ;;  %v1427_v38 = vpop.f32.mrf.mxu3 }
 0x25f   :  { %v1611_v34 = vadd.f32 %v1427_v38, %v1157_v59  ;;  %v607_v10 = vadd.f32 %v606_v20, %v5764_v26  ;;  %v1713_v20 = vld [vmem:[%s8662_s0 + $0x1b3] sm:$0xff] }
 0x261   :  { %v6405_v43 = vadd.f32 %v1881_v30, %v1611_v34  ;;  %653 = vmatmul.f32.gmra.mxu1 %v65_v45  ;;  %1023 = vmatmul.f32.gmra.mxu2 %v1256_v22  ;;  %v66_v30 = vld [vmem:[%s8662_s0 + $0x1a0] sm:$0xff]  ;;  %v1259_v22 = vld [vmem:[%s8662_s0 + $0x1b2] sm:$0xff] }
 0x262   :  { %v1884_v47 = vpop.f32.mrf.mxu0 }
 0x263   :  { %1477 = vmatmul.f32.gmra.mxu3 %v1258_v14 }
 0x264   :  { %v976_v0 = vpop.f32.mrf.mxu2 }
 0x265   :  { %v1158_v57 = vadd.f32 %v976_v0, %v607_v10  ;;  %1931 = vmatmul.f32.gmra.mxu0 %v1712_v53 }
 0x266   :  { %v609_v24 = vpop.f32.mrf.mxu1  ;;  %v1430_v59 = vpop.f32.mrf.mxu3 }
 0x267   :  { %v1612_v38 = vadd.f32 %v1430_v59, %v1158_v57  ;;  %v610_v34 = vadd.f32 %v609_v24, %v5781_v31  ;;  %v1714_v24 = vld [vmem:[%s8662_s0 + $0x1bb] sm:$0xff] }
 0x269   :  { %v6417_v45 = vadd.f32 %v1884_v47, %v1612_v38  ;;  %656 = vmatmul.f32.gmra.mxu1 %v66_v30  ;;  %1026 = vmatmul.f32.gmra.mxu2 %v1257_v1  ;;  %v67_v47 = vld [vmem:[%s8662_s0 + $0x1a8] sm:$0xff]  ;;  %v1260_v1 = vld [vmem:[%s8662_s0 + $0x1ba] sm:$0xff] }
 0x26a   :  { %v1887_v26 = vpop.f32.mrf.mxu0 }
 0x26b   :  { %1480 = vmatmul.f32.gmra.mxu3 %v1259_v22 }
 0x26c   :  { %v979_v53 = vpop.f32.mrf.mxu2 }
 0x26d   :  { %v1159_v10 = vadd.f32 %v979_v53, %v610_v34  ;;  %1934 = vmatmul.f32.gmra.mxu0 %v1713_v20 }
 0x26e   :  { %v612_v0 = vpop.f32.mrf.mxu1  ;;  %v1433_v57 = vpop.f32.mrf.mxu3 }
 0x26f   :  { %v1613_v59 = vadd.f32 %v1433_v57, %v1159_v10  ;;  %v613_v38 = vadd.f32 %v612_v0, %v5798_v55  ;;  %v4939_v0 = vld [vmem:[%s8661_s1 + $0x3a0] sm:$0xff] }
 0x270   :  { %3135 = vmatpush.msra.mxu3 %v4939_v0 }
 0x271   :  { %v6429_v30 = vadd.f32 %v1887_v26, %v1613_v59  ;;  %659 = vmatmul.f32.gmra.mxu1 %v67_v47  ;;  %1029 = vmatmul.f32.gmra.mxu2 %v1258_v14  ;;  %v68_v26 = vld [vmem:[%s8662_s0 + $0x1b0] sm:$0xff]  ;;  %v4923_v14 = vld [vmem:[%s8661_s1 + $0x320] sm:$0xff] }
 0x272   :  { %v1890_v31 = vpop.f32.mrf.mxu0  ;;  %v1261_v47 = vld [vmem:[%s8662_s0 + $0x1c2] sm:$0xff]  ;;  %2681 = vmatpush.msra.mxu2 %v4923_v14 }
 0x273   :  { %1483 = vmatmul.f32.gmra.mxu3 %v1260_v1  ;;  %v4955_v14 = vld [vmem:[%s8661_s1 + $0x420] sm:$0xff] }
 0x274   :  { %v982_v20 = vpop.f32.mrf.mxu2  ;;  %3589 = vmatpush.msra.mxu0 %v4955_v14 }
 0x275   :  { %v1160_v34 = vadd.f32 %v982_v20, %v613_v38  ;;  %1937 = vmatmul.f32.gmra.mxu0 %v1714_v24  ;;  %v1715_v24 = vld [vmem:[%s8662_s0 + $0x1c3] sm:$0xff] }
 0x276   :  { %v615_v53 = vpop.f32.mrf.mxu1  ;;  %v1436_v10 = vpop.f32.mrf.mxu3 }
 0x277   :  { %v1614_v57 = vadd.f32 %v1436_v10, %v1160_v34  ;;  %v616_v38 = vadd.f32 %v615_v53, %v5815_v54  ;;  %v1262_v54 = vld [vmem:[%s8662_s0 + $0x1ca] sm:$0xff] }
 0x279   :  { %v6444_v55 = vadd.f32 %v1890_v31, %v1614_v57  ;;  %662 = vmatmul.f32.gmra.mxu1 %v68_v26  ;;  %1032 = vmatmul.f32.gmra.mxu2 %v1259_v22  ;;  %v4907_v31 = vld [vmem:[%s8661_s1 + $0x2a0] sm:$0xff]  ;;  %v69_v26 = vld [vmem:[%s8662_s0 + $0x1b8] sm:$0xff] }
 0x27a   :  { %v1893_v59 = vpop.f32.mrf.mxu0  ;;  %2227 = vmatpush.msra.mxu1 %v4907_v31 }
 0x27b   :  { %1486 = vmatmul.f32.gmra.mxu3 %v1261_v47 }
 0x27c   :  { %v985_v20 = vpop.f32.mrf.mxu2 }
 0x27d   :  { %v1161_v22 = vadd.f32 %v985_v20, %v616_v38  ;;  %1940 = vmatmul.f32.gmra.mxu0 %v1715_v24  ;;  %v1716_v24 = vld [vmem:[%s8662_s0 + $0x1cb] sm:$0xff] }
 0x27e   :  { %v618_v34 = vpop.f32.mrf.mxu1  ;;  %v1439_v10 = vpop.f32.mrf.mxu3 }
 0x27f   :  { %v1615_v57 = vadd.f32 %v1439_v10, %v1161_v22  ;;  %v619_v38 = vadd.f32 %v618_v34, %v5841_v4  ;;  %v1717_v34 = vld [vmem:[%s8662_s0 + $0x1d3] sm:$0xff] }
 0x281   :  { %v6462_v53 = vadd.f32 %v1893_v59, %v1615_v57  ;;  %665 = vmatmul.f32.gmra.mxu1 %v69_v26  ;;  %1035 = vmatmul.f32.gmra.mxu2 %v1260_v1  ;;  %v70_v1 = vld [vmem:[%s8662_s0 + $0x1c0] sm:$0xff]  ;;  %v1263_v26 = vld [vmem:[%s8662_s0 + $0x1d2] sm:$0xff] }
 0x282   :  { %v1896_v0 = vpop.f32.mrf.mxu0 }
 0x283   :  { %1489 = vmatmul.f32.gmra.mxu3 %v1262_v54 }
 0x284   :  { %v988_v31 = vpop.f32.mrf.mxu2 }
 0x285   :  { %v1162_v20 = vadd.f32 %v988_v31, %v619_v38  ;;  %1943 = vmatmul.f32.gmra.mxu0 %v1716_v24 }
 0x286   :  { %v621_v59 = vpop.f32.mrf.mxu1  ;;  %v1442_v22 = vpop.f32.mrf.mxu3 }
 0x287   :  { %v1616_v10 = vadd.f32 %v1442_v22, %v1162_v20  ;;  %v622_v14 = vadd.f32 %v621_v59, %v5861_v23  ;;  %v1718_v59 = vld [vmem:[%s8662_s0 + $0x1db] sm:$0xff] }
 0x289   :  { %v6477_v57 = vadd.f32 %v1896_v0, %v1616_v10  ;;  %668 = vmatmul.f32.gmra.mxu1 %v70_v1  ;;  %1038 = vmatmul.f32.gmra.mxu2 %v1261_v47  ;;  %v71_v0 = vld [vmem:[%s8662_s0 + $0x1c8] sm:$0xff]  ;;  %v1264_v47 = vld [vmem:[%s8662_s0 + $0x1da] sm:$0xff] }
 0x28a   :  { %v1899_v4 = vpop.f32.mrf.mxu0 }
 0x28b   :  { %1492 = vmatmul.f32.gmra.mxu3 %v1263_v26 }
 0x28c   :  { %v991_v24 = vpop.f32.mrf.mxu2 }
 0x28d   :  { %v1163_v38 = vadd.f32 %v991_v24, %v622_v14  ;;  %1946 = vmatmul.f32.gmra.mxu0 %v1717_v34 }
 0x28e   :  { %v624_v31 = vpop.f32.mrf.mxu1  ;;  %v1445_v20 = vpop.f32.mrf.mxu3 }
 0x28f   :  { %v1617_v22 = vadd.f32 %v1445_v20, %v1163_v38  ;;  %v625_v10 = vadd.f32 %v624_v31, %v5878_v44  ;;  %v1719_v31 = vld [vmem:[%s8662_s0 + $0x1e3] sm:$0xff] }
 0x291   :  { %v6489_v1 = vadd.f32 %v1899_v4, %v1617_v22  ;;  %671 = vmatmul.f32.gmra.mxu1 %v71_v0  ;;  %1041 = vmatmul.f32.gmra.mxu2 %v1262_v54  ;;  %v72_v4 = vld [vmem:[%s8662_s0 + $0x1d0] sm:$0xff]  ;;  %v1265_v54 = vld [vmem:[%s8662_s0 + $0x1e2] sm:$0xff] }
 0x292   :  { %v1902_v23 = vpop.f32.mrf.mxu0 }
 0x293   :  { %1495 = vmatmul.f32.gmra.mxu3 %v1264_v47 }
 0x294   :  { %v994_v34 = vpop.f32.mrf.mxu2 }
 0x295   :  { %v1164_v14 = vadd.f32 %v994_v34, %v625_v10  ;;  %1949 = vmatmul.f32.gmra.mxu0 %v1718_v59 }
 0x296   :  { %v627_v24 = vpop.f32.mrf.mxu1  ;;  %v1448_v38 = vpop.f32.mrf.mxu3 }
 0x297   :  { %v1618_v20 = vadd.f32 %v1448_v38, %v1164_v14  ;;  %v628_v22 = vadd.f32 %v627_v24, %v5484_v21  ;;  %v4922_v21 = vld [vmem:[%s8661_s1 + $0x318] sm:$0xff] }
 0x298   :  { %2682 = vmatpush.msra.mxu2 %v4922_v21 }
 0x299   :  { %v6501_v0 = vadd.f32 %v1902_v23, %v1618_v20  ;;  %674 = vmatmul.f32.gmra.mxu1 %v72_v4  ;;  %1044 = vmatmul.f32.gmra.mxu2 %v1263_v26  ;;  %v73_v23 = vld [vmem:[%s8662_s0 + $0x1d8] sm:$0xff]  ;;  %v1266_v26 = vld [vmem:[%s8662_s0 + $0x1ea] sm:$0xff] }
 0x29a   :  { %v1905_v44 = vpop.f32.mrf.mxu0  ;;  %v1720_v20 = vld [vmem:[%s8662_s0 + $0x1eb] sm:$0xff] }
 0x29b   :  { %1498 = vmatmul.f32.gmra.mxu3 %v1265_v54 }
 0x29c   :  { %v997_v59 = vpop.f32.mrf.mxu2 }
 0x29d   :  { %v1165_v10 = vadd.f32 %v997_v59, %v628_v22  ;;  %1952 = vmatmul.f32.gmra.mxu0 %v1719_v31  ;;  %v4906_v59 = vld [vmem:[%s8661_s1 + $0x298] sm:$0xff] }
 0x29e   :  { %v630_v34 = vpop.f32.mrf.mxu1  ;;  %v1451_v14 = vpop.f32.mrf.mxu3  ;;  %2228 = vmatpush.msra.mxu1 %v4906_v59 }
 0x29f   :  { %v1619_v38 = vadd.f32 %v1451_v14, %v1165_v10  ;;  %v631_v31 = vadd.f32 %v630_v34, %v5513_v32  ;;  %v1267_v34 = vld [vmem:[%s8662_s0 + $0x1f2] sm:$0xff] }
 0x2a1   :  { %v6513_v4 = vadd.f32 %v1905_v44, %v1619_v38  ;;  %677 = vmatmul.f32.gmra.mxu1 %v73_v23  ;;  %1047 = vmatmul.f32.gmra.mxu2 %v1264_v47  ;;  %v4938_v44 = vld [vmem:[%s8661_s1 + $0x398] sm:$0xff]  ;;  %v74_v23 = vld [vmem:[%s8662_s0 + $0x1e0] sm:$0xff] }
 0x2a2   :  { %v1908_v24 = vpop.f32.mrf.mxu0  ;;  %3136 = vmatpush.msra.mxu3 %v4938_v44  ;;  %v4954_v44 = vld [vmem:[%s8661_s1 + $0x418] sm:$0xff] }
 0x2a3   :  { %1501 = vmatmul.f32.gmra.mxu3 %v1266_v26  ;;  %3590 = vmatpush.msra.mxu0 %v4954_v44 }
 0x2a4   :  { %v1000_v22 = vpop.f32.mrf.mxu2 }
 0x2a5   :  { %v1166_v47 = vadd.f32 %v1000_v22, %v631_v31  ;;  %1955 = vmatmul.f32.gmra.mxu0 %v1720_v20  ;;  %v1721_v20 = vld [vmem:[%s8662_s0 + $0x1f3] sm:$0xff] }
 0x2a6   :  { %v633_v10 = vpop.f32.mrf.mxu1  ;;  %v1454_v14 = vpop.f32.mrf.mxu3 }
 0x2a7   :  { %v1620_v32 = vadd.f32 %v1454_v14, %v1166_v47  ;;  %v634_v31 = vadd.f32 %v633_v10, %v5539_v42  ;;  %v1268_v42 = vld [vmem:[%s8662_s0 + $0x1fa] sm:$0xff] }
 0x2a9   :  { %v6534_v38 = vadd.f32 %v1908_v24, %v1620_v32  ;;  %680 = vmatmul.f32.gmra.mxu1 %v74_v23  ;;  %1050 = vmatmul.f32.gmra.mxu2 %v1265_v54  ;;  %v75_v54 = vld [vmem:[%s8662_s0 + $0x1e8] sm:$0xff]  ;;  %v1722_v32 = vld [vmem:[%s8662_s0 + $0x1fb] sm:$0xff] }
 0x2aa   :  { %v1911_v21 = vpop.f32.mrf.mxu0 }
 0x2ab   :  { %1504 = vmatmul.f32.gmra.mxu3 %v1267_v34 }
 0x2ac   :  { %v1003_v22 = vpop.f32.mrf.mxu2 }
 0x2ad   :  { %v1167_v47 = vadd.f32 %v1003_v22, %v634_v31  ;;  %1958 = vmatmul.f32.gmra.mxu0 %v1721_v20 }
 0x2ae   :  { %v636_v24 = vpop.f32.mrf.mxu1  ;;  %v1457_v59 = vpop.f32.mrf.mxu3 }
 0x2af   :  { %v1621_v14 = vadd.f32 %v1457_v59, %v1167_v47  ;;  %v637_v20 = vadd.f32 %v636_v24, %v5559_v50  ;;  %v1723_v24 = vld [vmem:[%s8662_s0 + $0x203] sm:$0xff] }
 0x2b1   :  { %v6549_v10 = vadd.f32 %v1911_v21, %v1621_v14  ;;  %683 = vmatmul.f32.gmra.mxu1 %v75_v54  ;;  %1053 = vmatmul.f32.gmra.mxu2 %v1266_v26  ;;  %v76_v21 = vld [vmem:[%s8662_s0 + $0x1f0] sm:$0xff]  ;;  %v1269_v26 = vld [vmem:[%s8662_s0 + $0x202] sm:$0xff] }
 0x2b2   :  { %v1914_v23 = vpop.f32.mrf.mxu0 }
 0x2b3   :  { %1507 = vmatmul.f32.gmra.mxu3 %v1268_v42 }
 0x2b4   :  { %v1006_v31 = vpop.f32.mrf.mxu2 }
 0x2b5   :  { %v1168_v44 = vadd.f32 %v1006_v31, %v637_v20  ;;  %1961 = vmatmul.f32.gmra.mxu0 %v1722_v32 }
 0x2b6   :  { %v639_v22 = vpop.f32.mrf.mxu1  ;;  %v1460_v47 = vpop.f32.mrf.mxu3 }
 0x2b7   :  { %v1622_v59 = vadd.f32 %v1460_v47, %v1168_v44  ;;  %v640_v14 = vadd.f32 %v639_v22, %v5579_v58  ;;  %v1724_v22 = vld [vmem:[%s8662_s0 + $0x20b] sm:$0xff] }
 0x2b9   :  { %v6561_v54 = vadd.f32 %v1914_v23, %v1622_v59  ;;  %686 = vmatmul.f32.gmra.mxu1 %v76_v21  ;;  %1056 = vmatmul.f32.gmra.mxu2 %v1267_v34  ;;  %v77_v23 = vld [vmem:[%s8662_s0 + $0x1f8] sm:$0xff]  ;;  %v1270_v34 = vld [vmem:[%s8662_s0 + $0x20a] sm:$0xff] }
 0x2ba   :  { %v1917_v50 = vpop.f32.mrf.mxu0 }
 0x2bb   :  { %8705 = vst [vmem:[#allocation38_spill] sm:$0xff] %v6561_v54  ;;  %1510 = vmatmul.f32.gmra.mxu3 %v1269_v26  ;;  %v3499_v54 = vld [vmem:[%s8662_s0 + $0xd6] sm:$0xff] }
 0x2bc   :  { %v1009_v32 = vpop.f32.mrf.mxu2 }
 0x2bd   :  { %v1169_v20 = vadd.f32 %v1009_v32, %v640_v14  ;;  %1964 = vmatmul.f32.gmra.mxu0 %v1723_v24 }
 0x2be   :  { %v642_v31 = vpop.f32.mrf.mxu1  ;;  %v1463_v44 = vpop.f32.mrf.mxu3 }
 0x2bf   :  { %v1623_v47 = vadd.f32 %v1463_v44, %v1169_v20  ;;  %v643_v59 = vadd.f32 %v642_v31, %v5599_v2  ;;  %v1725_v31 = vld [vmem:[%s8662_s0 + $0x213] sm:$0xff] }
 0x2c1   :  { %v6573_v21 = vadd.f32 %v1917_v50, %v1623_v47  ;;  %689 = vmatmul.f32.gmra.mxu1 %v77_v23  ;;  %1059 = vmatmul.f32.gmra.mxu2 %v1268_v42  ;;  %v78_v50 = vld [vmem:[%s8662_s0 + $0x200] sm:$0xff]  ;;  %v1271_v42 = vld [vmem:[%s8662_s0 + $0x212] sm:$0xff] }
 0x2c2   :  { %v1920_v58 = vpop.f32.mrf.mxu0 }
 0x2c3   :  { %8706 = vst [vmem:[#allocation39_spill] sm:$0xff] %v6573_v21  ;;  %1513 = vmatmul.f32.gmra.mxu3 %v1270_v34 }
 0x2c4   :  { %v1012_v24 = vpop.f32.mrf.mxu2 }
 0x2c5   :  { %v1170_v14 = vadd.f32 %v1012_v24, %v643_v59  ;;  %1967 = vmatmul.f32.gmra.mxu0 %v1724_v22  ;;  %v4921_v22 = vld [vmem:[%s8661_s1 + $0x310] sm:$0xff] }
 0x2c6   :  { %v645_v32 = vpop.f32.mrf.mxu1  ;;  %v1466_v20 = vpop.f32.mrf.mxu3  ;;  %2683 = vmatpush.msra.mxu2 %v4921_v22 }
 0x2c7   :  { %v1624_v44 = vadd.f32 %v1466_v20, %v1170_v14  ;;  %v646_v47 = vadd.f32 %v645_v32, %v5622_v11  ;;  %v79_v20 = vld [vmem:[%s8662_s0 + $0x208] sm:$0xff]  ;;  %v4905_v32 = vld [vmem:[%s8661_s1 + $0x290] sm:$0xff] }
 0x2c8   :  { %2229 = vmatpush.msra.mxu1 %v4905_v32  ;;  %v1727_v32 = vld [vmem:[%s8662_s0 + $0x223] sm:$0xff] }
 0x2c9   :  { %v6585_v23 = vadd.f32 %v1920_v58, %v1624_v44  ;;  %692 = vmatmul.f32.gmra.mxu1 %v78_v50  ;;  %1062 = vmatmul.f32.gmra.mxu2 %v1269_v26  ;;  %v4937_v26 = vld [vmem:[%s8661_s1 + $0x390] sm:$0xff]  ;;  %v1272_v50 = vld [vmem:[%s8662_s0 + $0x21a] sm:$0xff] }
 0x2ca   :  { %v1923_v2 = vpop.f32.mrf.mxu0  ;;  %3137 = vmatpush.msra.mxu3 %v4937_v26  ;;  %v4953_v26 = vld [vmem:[%s8661_s1 + $0x410] sm:$0xff] }
 0x2cb   :  { %8707 = vst [vmem:[#allocation40_spill] sm:$0xff] %v6585_v23  ;;  %1516 = vmatmul.f32.gmra.mxu3 %v1271_v42  ;;  %3591 = vmatpush.msra.mxu0 %v4953_v26  ;;  %v2591_v23 = vld [vmem:[%s8662_s0 + $0xd4] sm:$0xff] }
 0x2cc   :  { %v1015_v59 = vpop.f32.mrf.mxu2 }
 0x2cd   :  { %v1171_v24 = vadd.f32 %v1015_v59, %v646_v47  ;;  %1970 = vmatmul.f32.gmra.mxu0 %v1725_v31  ;;  %v1726_v47 = vld [vmem:[%s8662_s0 + $0x21b] sm:$0xff] }
 0x2ce   :  { %v648_v58 = vpop.f32.mrf.mxu1  ;;  %v1469_v14 = vpop.f32.mrf.mxu3 }
 0x2cf   :  { %v1625_v11 = vadd.f32 %v1469_v14, %v1171_v24  ;;  %v649_v22 = vadd.f32 %v648_v58, %v5645_v25  ;;  %v1273_v25 = vld [vmem:[%s8662_s0 + $0x222] sm:$0xff] }
 0x2d1   :  { %v6606_v44 = vadd.f32 %v1923_v2, %v1625_v11  ;;  %695 = vmatmul.f32.gmra.mxu1 %v79_v20  ;;  %1065 = vmatmul.f32.gmra.mxu2 %v1270_v34  ;;  %v80_v34 = vld [vmem:[%s8662_s0 + $0x210] sm:$0xff] }
 0x2d2   :  { %v1926_v31 = vpop.f32.mrf.mxu0 }
 0x2d3   :  { %8708 = vst [vmem:[#allocation41_spill] sm:$0xff] %v6606_v44  ;;  %1519 = vmatmul.f32.gmra.mxu3 %v1272_v50 }
 0x2d4   :  { %v1018_v59 = vpop.f32.mrf.mxu2 }
 0x2d5   :  { %v1172_v24 = vadd.f32 %v1018_v59, %v649_v22  ;;  %1973 = vmatmul.f32.gmra.mxu0 %v1726_v47  ;;  %v8710_v47 = vld [vmem:[#allocation11_spill] sm:$0xff] }
 0x2d6   :  { %v651_v14 = vpop.f32.mrf.mxu1  ;;  %v1472_v2 = vpop.f32.mrf.mxu3 }
 0x2d7   :  { %v1626_v20 = vadd.f32 %v1472_v2, %v1172_v24  ;;  %v652_v22 = vadd.f32 %v651_v14, %v8710_v47 }
 0x2d9   :  { %v6621_v58 = vadd.f32 %v1926_v31, %v1626_v20  ;;  %698 = vmatmul.f32.gmra.mxu1 %v80_v34  ;;  %1068 = vmatmul.f32.gmra.mxu2 %v1271_v42  ;;  %v81_v31 = vld [vmem:[%s8662_s0 + $0x218] sm:$0xff]  ;;  %v1274_v42 = vld [vmem:[%s8662_s0 + $0x22a] sm:$0xff] }
 0x2da   :  { %v1929_v11 = vpop.f32.mrf.mxu0  ;;  %v1728_v20 = vld [vmem:[%s8662_s0 + $0x22b] sm:$0xff] }
 0x2db   :  { %8709 = vst [vmem:[#allocation42_spill] sm:$0xff] %v6621_v58  ;;  %1522 = vmatmul.f32.gmra.mxu3 %v1273_v25 }
 0x2dc   :  { %v1021_v59 = vpop.f32.mrf.mxu2 }
 0x2dd   :  { %v1173_v44 = vadd.f32 %v1021_v59, %v652_v22  ;;  %1976 = vmatmul.f32.gmra.mxu0 %v1727_v32  ;;  %v8712_v32 = vld [vmem:[#allocation13_spill] sm:$0xff] }
 0x2de   :  { %v654_v24 = vpop.f32.mrf.mxu1  ;;  %v1475_v26 = vpop.f32.mrf.mxu3 }
 0x2df   :  { %v1627_v2 = vadd.f32 %v1475_v26, %v1173_v44  ;;  %v655_v47 = vadd.f32 %v654_v24, %v8712_v32  ;;  %v8714_v32 = vld [vmem:[#allocation15_spill] sm:$0xff] }
 0x2e1   :  { %v6633_v34 = vadd.f32 %v1929_v11, %v1627_v2  ;;  %701 = vmatmul.f32.gmra.mxu1 %v81_v31  ;;  %1071 = vmatmul.f32.gmra.mxu2 %v1272_v50  ;;  %v82_v11 = vld [vmem:[%s8662_s0 + $0x220] sm:$0xff]  ;;  %v1275_v50 = vld [vmem:[%s8662_s0 + $0x232] sm:$0xff] }
 0x2e2   :  { %v1932_v14 = vpop.f32.mrf.mxu0 }
 0x2e3   :  { %8711 = vst [vmem:[#allocation11_spill] sm:$0xff] %v6633_v34  ;;  %1525 = vmatmul.f32.gmra.mxu3 %v1274_v42 }
 0x2e4   :  { %v1024_v22 = vpop.f32.mrf.mxu2 }
 0x2e5   :  { %v1174_v59 = vadd.f32 %v1024_v22, %v655_v47  ;;  %1979 = vmatmul.f32.gmra.mxu0 %v1728_v20  ;;  %v1729_v20 = vld [vmem:[%s8662_s0 + $0x233] sm:$0xff] }
 0x2e6   :  { %v657_v44 = vpop.f32.mrf.mxu1  ;;  %v1478_v26 = vpop.f32.mrf.mxu3 }
 0x2e7   :  { %v1628_v2 = vadd.f32 %v1478_v26, %v1174_v59  ;;  %v658_v47 = vadd.f32 %v657_v44, %v8714_v32  ;;  %v8716_v32 = vld [vmem:[#allocation17_spill] sm:$0xff] }
 0x2e9   :  { %v6645_v31 = vadd.f32 %v1932_v14, %v1628_v2  ;;  %704 = vmatmul.f32.gmra.mxu1 %v82_v11  ;;  %1074 = vmatmul.f32.gmra.mxu2 %v1273_v25  ;;  %v83_v14 = vld [vmem:[%s8662_s0 + $0x228] sm:$0xff]  ;;  %v1276_v25 = vld [vmem:[%s8662_s0 + $0x23a] sm:$0xff] }
 0x2ea   :  { %v1935_v24 = vpop.f32.mrf.mxu0 }
 0x2eb   :  { %8713 = vst [vmem:[#allocation13_spill] sm:$0xff] %v6645_v31  ;;  %1528 = vmatmul.f32.gmra.mxu3 %v1275_v50 }
 0x2ec   :  { %v1027_v22 = vpop.f32.mrf.mxu2 }
 0x2ed   :  { %v1175_v34 = vadd.f32 %v1027_v22, %v658_v47  ;;  %1982 = vmatmul.f32.gmra.mxu0 %v1729_v20  ;;  %v1730_v20 = vld [vmem:[%s8662_s0 + $0x23b] sm:$0xff] }
 0x2ee   :  { %v660_v59 = vpop.f32.mrf.mxu1  ;;  %v1481_v26 = vpop.f32.mrf.mxu3 }
 0x2ef   :  { %v1629_v2 = vadd.f32 %v1481_v26, %v1175_v34  ;;  %v661_v47 = vadd.f32 %v660_v59, %v8716_v32  ;;  %v4920_v34 = vld [vmem:[%s8661_s1 + $0x308] sm:$0xff] }
 0x2f0   :  { %2684 = vmatpush.msra.mxu2 %v4920_v34  ;;  %v4936_v59 = vld [vmem:[%s8661_s1 + $0x388] sm:$0xff] }
 0x2f1   :  { %v6657_v11 = vadd.f32 %v1935_v24, %v1629_v2  ;;  %707 = vmatmul.f32.gmra.mxu1 %v83_v14  ;;  %1077 = vmatmul.f32.gmra.mxu2 %v1274_v42  ;;  %v84_v42 = vld [vmem:[%s8662_s0 + $0x230] sm:$0xff]  ;;  %v1277_v2 = vld [vmem:[%s8662_s0 + $0x242] sm:$0xff] }
 0x2f2   :  { %v1938_v44 = vpop.f32.mrf.mxu0  ;;  %3138 = vmatpush.msra.mxu3 %v4936_v59  ;;  %v4904_v32 = vld [vmem:[%s8661_s1 + $0x288] sm:$0xff] }
 0x2f3   :  { %8715 = vst [vmem:[#allocation15_spill] sm:$0xff] %v6657_v11  ;;  %1531 = vmatmul.f32.gmra.mxu3 %v1276_v25  ;;  %2230 = vmatpush.msra.mxu1 %v4904_v32  ;;  %v4952_v59 = vld [vmem:[%s8661_s1 + $0x408] sm:$0xff] }
 0x2f4   :  { %v1030_v22 = vpop.f32.mrf.mxu2  ;;  %v1278_v32 = vld [vmem:[%s8662_s0 + $0x24a] sm:$0xff]  ;;  %3592 = vmatpush.msra.mxu0 %v4952_v59  ;;  %v1733_v59 = vld [vmem:[%s8662_s0 + $0x253] sm:$0xff] }
 0x2f5   :  { %v1176_v31 = vadd.f32 %v1030_v22, %v661_v47  ;;  %1985 = vmatmul.f32.gmra.mxu0 %v1730_v20  ;;  %v8718_v22 = vld [vmem:[#allocation19_spill] sm:$0xff] }
 0x2f6   :  { %v663_v26 = vpop.f32.mrf.mxu1  ;;  %v1484_v24 = vpop.f32.mrf.mxu3 }
 0x2f7   :  { %v1630_v14 = vadd.f32 %v1484_v24, %v1176_v31  ;;  %v1731_v31 = vld [vmem:[%s8662_s0 + $0x243] sm:$0xff]  ;;  %v664_v34 = vadd.f32 %v663_v26, %v8718_v22  ;;  %v1732_v22 = vld [vmem:[%s8662_s0 + $0x24b] sm:$0xff] }
 0x2f9   :  { %v6675_v20 = vadd.f32 %v1938_v44, %v1630_v14  ;;  %710 = vmatmul.f32.gmra.mxu1 %v84_v42  ;;  %1080 = vmatmul.f32.gmra.mxu2 %v1275_v50  ;;  %v85_v50 = vld [vmem:[%s8662_s0 + $0x238] sm:$0xff] }
 0x2fa   :  { %v1941_v47 = vpop.f32.mrf.mxu0 }
 0x2fb   :  { %8717 = vst [vmem:[#allocation17_spill] sm:$0xff] %v6675_v20  ;;  %1534 = vmatmul.f32.gmra.mxu3 %v1277_v2 }
 0x2fc   :  { %v1033_v24 = vpop.f32.mrf.mxu2 }
 0x2fd   :  { %v1177_v11 = vadd.f32 %v1033_v24, %v664_v34  ;;  %1988 = vmatmul.f32.gmra.mxu0 %v1731_v31  ;;  %v8720_v34 = vld [vmem:[#allocation21_spill] sm:$0xff] }
 0x2fe   :  { %v666_v44 = vpop.f32.mrf.mxu1  ;;  %v1487_v14 = vpop.f32.mrf.mxu3 }
 0x2ff   :  { %v1631_v42 = vadd.f32 %v1487_v14, %v1177_v11  ;;  %v667_v11 = vadd.f32 %v666_v44, %v8720_v34 }
 0x301   :  { %v6693_v26 = vadd.f32 %v1941_v47, %v1631_v42  ;;  %713 = vmatmul.f32.gmra.mxu1 %v85_v50  ;;  %1083 = vmatmul.f32.gmra.mxu2 %v1276_v25  ;;  %v86_v47 = vld [vmem:[%s8662_s0 + $0x240] sm:$0xff]  ;;  %v1279_v25 = vld [vmem:[%s8662_s0 + $0x252] sm:$0xff] }
 0x302   :  { %v1944_v31 = vpop.f32.mrf.mxu0 }
 0x303   :  { %8719 = vst [vmem:[#allocation19_spill] sm:$0xff] %v6693_v26  ;;  %1537 = vmatmul.f32.gmra.mxu3 %v1278_v32 }
 0x304   :  { %v1036_v24 = vpop.f32.mrf.mxu2 }
 0x305   :  { %v1178_v14 = vadd.f32 %v1036_v24, %v667_v11  ;;  %1991 = vmatmul.f32.gmra.mxu0 %v1732_v22  ;;  %v8722_v22 = vld [vmem:[#allocation23_spill] sm:$0xff] }
 0x306   :  { %v669_v20 = vpop.f32.mrf.mxu1  ;;  %v1490_v58 = vpop.f32.mrf.mxu3 }
 0x307   :  { %v1632_v42 = vadd.f32 %v1490_v58, %v1178_v14  ;;  %v670_v34 = vadd.f32 %v669_v20, %v8722_v22  ;;  %v8724_v22 = vld [vmem:[#allocation25_spill] sm:$0xff] }
 0x309   :  { %v6705_v50 = vadd.f32 %v1944_v31, %v1632_v42  ;;  %716 = vmatmul.f32.gmra.mxu1 %v86_v47  ;;  %1086 = vmatmul.f32.gmra.mxu2 %v1277_v2  ;;  %v87_v31 = vld [vmem:[%s8662_s0 + $0x248] sm:$0xff]  ;;  %v1280_v2 = vld [vmem:[%s8662_s0 + $0x25a] sm:$0xff] }
 0x30a   :  { %v1947_v44 = vpop.f32.mrf.mxu0 }
 0x30b   :  { %8721 = vst [vmem:[#allocation21_spill] sm:$0xff] %v6705_v50  ;;  %1540 = vmatmul.f32.gmra.mxu3 %v1279_v25 }
 0x30c   :  { %v1039_v11 = vpop.f32.mrf.mxu2 }
 0x30d   :  { %v1179_v24 = vadd.f32 %v1039_v11, %v670_v34  ;;  %1994 = vmatmul.f32.gmra.mxu0 %v1733_v59  ;;  %v1734_v59 = vld [vmem:[%s8662_s0 + $0x25b] sm:$0xff] }
 0x30e   :  { %v672_v58 = vpop.f32.mrf.mxu1  ;;  %v1493_v14 = vpop.f32.mrf.mxu3 }
 0x30f   :  { %v1633_v42 = vadd.f32 %v1493_v14, %v1179_v24  ;;  %v673_v34 = vadd.f32 %v672_v58, %v8724_v22  ;;  %v8726_v22 = vld [vmem:[#allocation27_spill] sm:$0xff] }
 0x311   :  { %v6717_v47 = vadd.f32 %v1947_v44, %v1633_v42  ;;  %719 = vmatmul.f32.gmra.mxu1 %v87_v31  ;;  %1089 = vmatmul.f32.gmra.mxu2 %v1278_v32  ;;  %v88_v44 = vld [vmem:[%s8662_s0 + $0x250] sm:$0xff]  ;;  %v1281_v32 = vld [vmem:[%s8662_s0 + $0x262] sm:$0xff] }
 0x312   :  { %v1950_v20 = vpop.f32.mrf.mxu0 }
 0x313   :  { %8723 = vst [vmem:[#allocation23_spill] sm:$0xff] %v6717_v47  ;;  %1543 = vmatmul.f32.gmra.mxu3 %v1280_v2 }
 0x314   :  { %v1042_v11 = vpop.f32.mrf.mxu2 }
 0x315   :  { %v1180_v50 = vadd.f32 %v1042_v11, %v673_v34  ;;  %1997 = vmatmul.f32.gmra.mxu0 %v1734_v59  ;;  %v1735_v59 = vld [vmem:[%s8662_s0 + $0x263] sm:$0xff] }
 0x316   :  { %v675_v24 = vpop.f32.mrf.mxu1  ;;  %v1496_v14 = vpop.f32.mrf.mxu3 }
 0x317   :  { %v1634_v42 = vadd.f32 %v1496_v14, %v1180_v50  ;;  %v676_v34 = vadd.f32 %v675_v24, %v8726_v22 }
 0x319   :  { %v6729_v31 = vadd.f32 %v1950_v20, %v1634_v42  ;;  %722 = vmatmul.f32.gmra.mxu1 %v88_v44  ;;  %1092 = vmatmul.f32.gmra.mxu2 %v1279_v25  ;;  %v89_v20 = vld [vmem:[%s8662_s0 + $0x258] sm:$0xff]  ;;  %v4919_v25 = vld [vmem:[%s8661_s1 + $0x300] sm:$0xff]  ;;  %v1282_v44 = vld [vmem:[%s8662_s0 + $0x26a] sm:$0xff] }
 0x31a   :  { %v1953_v58 = vpop.f32.mrf.mxu0  ;;  %2685 = vmatpush.msra.mxu2 %v4919_v25  ;;  %v90_v25 = vld [vmem:[%s8662_s0 + $0x260] sm:$0xff] }
 0x31b   :  { %8725 = vst [vmem:[#allocation25_spill] sm:$0xff] %v6729_v31  ;;  %1546 = vmatmul.f32.gmra.mxu3 %v1281_v32 }
 0x31c   :  { %v1045_v11 = vpop.f32.mrf.mxu2 }
 0x31d   :  { %v1181_v47 = vadd.f32 %v1045_v11, %v676_v34  ;;  %2000 = vmatmul.f32.gmra.mxu0 %v1735_v59  ;;  %v4935_v59 = vld [vmem:[%s8661_s1 + $0x380] sm:$0xff]  ;;  %v8728_v34 = vld [vmem:[#allocation29_spill] sm:$0xff] }
 0x31e   :  { %v678_v50 = vpop.f32.mrf.mxu1  ;;  %v1499_v14 = vpop.f32.mrf.mxu3  ;;  %3139 = vmatpush.msra.mxu3 %v4935_v59 }
 0x31f   :  { %v1635_v42 = vadd.f32 %v1499_v14, %v1181_v47  ;;  %v1736_v47 = vld [vmem:[%s8662_s0 + $0x26b] sm:$0xff]  ;;  %v679_v11 = vadd.f32 %v678_v50, %v8728_v34  ;;  %v4951_v34 = vld [vmem:[%s8661_s1 + $0x400] sm:$0xff] }
 0x320   :  { %v1283_v50 = vld [vmem:[%s8662_s0 + $0x272] sm:$0xff]  ;;  %3593 = vmatpush.msra.mxu0 %v4951_v34  ;;  %v1738_v34 = vld [vmem:[%s8662_s0 + $0x27b] sm:$0xff] }
 0x321   :  { %v6744_v24 = vadd.f32 %v1953_v58, %v1635_v42  ;;  %725 = vmatmul.f32.gmra.mxu1 %v89_v20  ;;  %1095 = vmatmul.f32.gmra.mxu2 %v1280_v2  ;;  %v4903_v58 = vld [vmem:[%s8661_s1 + $0x280] sm:$0xff] }
 0x322   :  { %v1956_v22 = vpop.f32.mrf.mxu0  ;;  %2231 = vmatpush.msra.mxu1 %v4903_v58  ;;  %v8730_v58 = vld [vmem:[#allocation31_spill] sm:$0xff] }
 0x323   :  { %8727 = vst [vmem:[#allocation27_spill] sm:$0xff] %v6744_v24  ;;  %1549 = vmatmul.f32.gmra.mxu3 %v1282_v44 }
 0x324   :  { %v1048_v14 = vpop.f32.mrf.mxu2 }
 0x325   :  { %v1182_v2 = vadd.f32 %v1048_v14, %v679_v11  ;;  %2003 = vmatmul.f32.gmra.mxu0 %v1736_v47  ;;  %v1737_v11 = vld [vmem:[%s8662_s0 + $0x273] sm:$0xff] }
 0x326   :  { %v681_v20 = vpop.f32.mrf.mxu1  ;;  %v1502_v42 = vpop.f32.mrf.mxu3 }
 0x327   :  { %v1636_v24 = vadd.f32 %v1502_v42, %v1182_v2  ;;  %v682_v14 = vadd.f32 %v681_v20, %v8730_v58 }
 0x329   :  { %v6762_v59 = vadd.f32 %v1956_v22, %v1636_v24  ;;  %728 = vmatmul.f32.gmra.mxu1 %v90_v25  ;;  %1098 = vmatmul.f32.gmra.mxu2 %v1281_v32  ;;  %v91_v32 = vld [vmem:[%s8662_s0 + $0x268] sm:$0xff] }
 0x32a   :  { %v1959_v47 = vpop.f32.mrf.mxu0 }
 0x32b   :  { %8729 = vst [vmem:[#allocation29_spill] sm:$0xff] %v6762_v59  ;;  %1552 = vmatmul.f32.gmra.mxu3 %v1283_v50  ;;  %v1284_v59 = vld [vmem:[%s8662_s0 + $0x27a] sm:$0xff] }
 0x32c   :  { %v1051_v2 = vpop.f32.mrf.mxu2 }
 0x32d   :  { %v1183_v42 = vadd.f32 %v1051_v2, %v682_v14  ;;  %2006 = vmatmul.f32.gmra.mxu0 %v1737_v11  ;;  %v8732_v11 = vld [vmem:[#allocation33_spill] sm:$0xff] }
 0x32e   :  { %v684_v24 = vpop.f32.mrf.mxu1  ;;  %v1505_v22 = vpop.f32.mrf.mxu3 }
 0x32f   :  { %v1637_v25 = vadd.f32 %v1505_v22, %v1183_v42  ;;  %v685_v58 = vadd.f32 %v684_v24, %v8732_v11  ;;  %v8734_v11 = vld [vmem:[#allocation35_spill] sm:$0xff] }
 0x331   :  { %v6777_v31 = vadd.f32 %v1959_v47, %v1637_v25  ;;  %731 = vmatmul.f32.gmra.mxu1 %v91_v32  ;;  %1101 = vmatmul.f32.gmra.mxu2 %v1282_v44  ;;  %v92_v47 = vld [vmem:[%s8662_s0 + $0x270] sm:$0xff]  ;;  %v1285_v44 = vld [vmem:[%s8662_s0 + $0x282] sm:$0xff] }
 0x332   :  { %v1962_v20 = vpop.f32.mrf.mxu0 }
 0x333   :  { %8731 = vst [vmem:[#allocation31_spill] sm:$0xff] %v6777_v31  ;;  %1555 = vmatmul.f32.gmra.mxu3 %v1284_v59 }
 0x334   :  { %v1054_v14 = vpop.f32.mrf.mxu2 }
 0x335   :  { %v1184_v2 = vadd.f32 %v1054_v14, %v685_v58  ;;  %2009 = vmatmul.f32.gmra.mxu0 %v1738_v34  ;;  %v1739_v34 = vld [vmem:[%s8662_s0 + $0x283] sm:$0xff] }
 0x336   :  { %v687_v42 = vpop.f32.mrf.mxu1  ;;  %v1508_v22 = vpop.f32.mrf.mxu3 }
 0x337   :  { %v1638_v25 = vadd.f32 %v1508_v22, %v1184_v2  ;;  %v688_v58 = vadd.f32 %v687_v42, %v8734_v11  ;;  %v8736_v11 = vld [vmem:[#allocation3_spill] sm:$0xff] }
 0x339   :  { %v6789_v32 = vadd.f32 %v1962_v20, %v1638_v25  ;;  %734 = vmatmul.f32.gmra.mxu1 %v92_v47  ;;  %1104 = vmatmul.f32.gmra.mxu2 %v1283_v50  ;;  %v93_v20 = vld [vmem:[%s8662_s0 + $0x278] sm:$0xff]  ;;  %v1286_v50 = vld [vmem:[%s8662_s0 + $0x28a] sm:$0xff] }
 0x33a   :  { %v1965_v24 = vpop.f32.mrf.mxu0 }
 0x33b   :  { %8733 = vst [vmem:[#allocation33_spill] sm:$0xff] %v6789_v32  ;;  %1558 = vmatmul.f32.gmra.mxu3 %v1285_v44 }
 0x33c   :  { %v1057_v14 = vpop.f32.mrf.mxu2 }
 0x33d   :  { %v1185_v31 = vadd.f32 %v1057_v14, %v688_v58  ;;  %2012 = vmatmul.f32.gmra.mxu0 %v1739_v34  ;;  %v1740_v34 = vld [vmem:[%s8662_s0 + $0x28b] sm:$0xff] }
 0x33e   :  { %v690_v2 = vpop.f32.mrf.mxu1  ;;  %v1511_v22 = vpop.f32.mrf.mxu3 }
 0x33f   :  { %v1639_v25 = vadd.f32 %v1511_v22, %v1185_v31  ;;  %v691_v58 = vadd.f32 %v690_v2, %v8736_v11  ;;  %v8738_v11 = vld [vmem:[#allocation4_spill] sm:$0xff] }
 0x341   :  { %v6801_v47 = vadd.f32 %v1965_v24, %v1639_v25  ;;  %737 = vmatmul.f32.gmra.mxu1 %v93_v20  ;;  %1107 = vmatmul.f32.gmra.mxu2 %v1284_v59  ;;  %v94_v24 = vld [vmem:[%s8662_s0 + $0x280] sm:$0xff]  ;;  %v1287_v59 = vld [vmem:[%s8662_s0 + $0x292] sm:$0xff] }
 0x342   :  { %v1968_v42 = vpop.f32.mrf.mxu0 }
 0x343   :  { %8735 = vst [vmem:[#allocation35_spill] sm:$0xff] %v6801_v47  ;;  %1561 = vmatmul.f32.gmra.mxu3 %v1286_v50 }
 0x344   :  { %v1060_v14 = vpop.f32.mrf.mxu2 }
 0x345   :  { %v1186_v32 = vadd.f32 %v1060_v14, %v691_v58  ;;  %2015 = vmatmul.f32.gmra.mxu0 %v1740_v34  ;;  %v1741_v34 = vld [vmem:[%s8662_s0 + $0x293] sm:$0xff] }
 0x346   :  { %v693_v31 = vpop.f32.mrf.mxu1  ;;  %v1514_v22 = vpop.f32.mrf.mxu3 }
 0x347   :  { %v1640_v25 = vadd.f32 %v1514_v22, %v1186_v32  ;;  %v694_v58 = vadd.f32 %v693_v31, %v8738_v11  ;;  %v8740_v11 = vld [vmem:[#allocation5_spill] sm:$0xff] }
 0x349   :  { %v6813_v20 = vadd.f32 %v1968_v42, %v1640_v25  ;;  %740 = vmatmul.f32.gmra.mxu1 %v94_v24  ;;  %1110 = vmatmul.f32.gmra.mxu2 %v1285_v44  ;;  %v95_v42 = vld [vmem:[%s8662_s0 + $0x288] sm:$0xff]  ;;  %v1288_v44 = vld [vmem:[%s8662_s0 + $0x29a] sm:$0xff] }
 0x34a   :  { %v1971_v2 = vpop.f32.mrf.mxu0 }
 0x34b   :  { %8737 = vst [vmem:[#allocation3_spill] sm:$0xff] %v6813_v20  ;;  %1564 = vmatmul.f32.gmra.mxu3 %v1287_v59 }
 0x34c   :  { %v1063_v14 = vpop.f32.mrf.mxu2 }
 0x34d   :  { %v1187_v47 = vadd.f32 %v1063_v14, %v694_v58  ;;  %2018 = vmatmul.f32.gmra.mxu0 %v1741_v34  ;;  %v1742_v34 = vld [vmem:[%s8662_s0 + $0x29b] sm:$0xff] }
 0x34e   :  { %v696_v32 = vpop.f32.mrf.mxu1  ;;  %v1517_v22 = vpop.f32.mrf.mxu3 }
 0x34f   :  { %v1641_v25 = vadd.f32 %v1517_v22, %v1187_v47  ;;  %v697_v58 = vadd.f32 %v696_v32, %v8740_v11  ;;  %v8742_v11 = vld [vmem:[#allocation6_spill] sm:$0xff] }
 0x351   :  { %v6825_v24 = vadd.f32 %v1971_v2, %v1641_v25  ;;  %743 = vmatmul.f32.gmra.mxu1 %v95_v42  ;;  %1113 = vmatmul.f32.gmra.mxu2 %v1286_v50  ;;  %v96_v2 = vld [vmem:[%s8662_s0 + $0x290] sm:$0xff]  ;;  %v1289_v50 = vld [vmem:[%s8662_s0 + $0x2a2] sm:$0xff] }
 0x352   :  { %v1974_v31 = vpop.f32.mrf.mxu0 }
 0x353   :  { %8739 = vst [vmem:[#allocation4_spill] sm:$0xff] %v6825_v24  ;;  %1567 = vmatmul.f32.gmra.mxu3 %v1288_v44 }
 0x354   :  { %v1066_v14 = vpop.f32.mrf.mxu2 }
 0x355   :  { %v1188_v20 = vadd.f32 %v1066_v14, %v697_v58  ;;  %2021 = vmatmul.f32.gmra.mxu0 %v1742_v34  ;;  %v1743_v34 = vld [vmem:[%s8662_s0 + $0x2a3] sm:$0xff] }
 0x356   :  { %v699_v47 = vpop.f32.mrf.mxu1  ;;  %v1520_v22 = vpop.f32.mrf.mxu3 }
 0x357   :  { %v1642_v25 = vadd.f32 %v1520_v22, %v1188_v20  ;;  %v700_v58 = vadd.f32 %v699_v47, %v8742_v11 }
 0x359   :  { %v6837_v42 = vadd.f32 %v1974_v31, %v1642_v25  ;;  %746 = vmatmul.f32.gmra.mxu1 %v96_v2  ;;  %1116 = vmatmul.f32.gmra.mxu2 %v1287_v59  ;;  %v97_v31 = vld [vmem:[%s8662_s0 + $0x298] sm:$0xff]  ;;  %v1290_v59 = vld [vmem:[%s8662_s0 + $0x2aa] sm:$0xff] }
 0x35a   :  { %v1977_v32 = vpop.f32.mrf.mxu0 }
 0x35b   :  { %8741 = vst [vmem:[#allocation5_spill] sm:$0xff] %v6837_v42  ;;  %1570 = vmatmul.f32.gmra.mxu3 %v1289_v50  ;;  %v1744_v50 = vld [vmem:[%s8662_s0 + $0x2ab] sm:$0xff] }
 0x35c   :  { %v1069_v14 = vpop.f32.mrf.mxu2 }
 0x35d   :  { %v1189_v24 = vadd.f32 %v1069_v14, %v700_v58  ;;  %2024 = vmatmul.f32.gmra.mxu0 %v1743_v34  ;;  %v8744_v34 = vld [vmem:[#allocation7_spill] sm:$0xff] }
 0x35e   :  { %v702_v20 = vpop.f32.mrf.mxu1  ;;  %v1523_v22 = vpop.f32.mrf.mxu3 }
 0x35f   :  { %v1643_v25 = vadd.f32 %v1523_v22, %v1189_v24  ;;  %v703_v11 = vadd.f32 %v702_v20, %v8744_v34  ;;  %v8746_v34 = vld [vmem:[#allocation8_spill] sm:$0xff] }
 0x361   :  { %v6849_v2 = vadd.f32 %v1977_v32, %v1643_v25  ;;  %749 = vmatmul.f32.gmra.mxu1 %v97_v31  ;;  %1119 = vmatmul.f32.gmra.mxu2 %v1288_v44  ;;  %v2115_v32 = vld [vmem:[%s8662_s0 + $0x14] sm:$0xff]  ;;  %v2569_v44 = vld [vmem:[%s8662_s0 + $0x24] sm:$0xff] }
 0x362   :  { %v1980_v47 = vpop.f32.mrf.mxu0  ;;  %v3023_v25 = vld [vmem:[%s8662_s0 + $0x25] sm:$0xff] }
 0x363   :  { %8743 = vst [vmem:[#allocation6_spill] sm:$0xff] %v6849_v2  ;;  %1573 = vmatmul.f32.gmra.mxu3 %v1290_v59 }
 0x364   :  { %v1072_v58 = vpop.f32.mrf.mxu2 }
 0x365   :  { %v1190_v14 = vadd.f32 %v1072_v58, %v703_v11  ;;  %2027 = vmatmul.f32.gmra.mxu0 %v1744_v50  ;;  %v3477_v50 = vld [vmem:[%s8662_s0 + $0x26] sm:$0xff] }
 0x366   :  { %v705_v24 = vpop.f32.mrf.mxu1  ;;  %v1526_v22 = vpop.f32.mrf.mxu3 }
 0x367   :  { %v1644_v31 = vadd.f32 %v1526_v22, %v1190_v14  ;;  %v706_v11 = vadd.f32 %v705_v24, %v8746_v34  ;;  %v8748_v34 = vld [vmem:[#allocation9_spill] sm:$0xff] }
 0x369   :  { %v6864_v20 = vadd.f32 %v1980_v47, %v1644_v31  ;;  %2232 = vmatmul.f32.vlgmr.msra.gmra.mxu1 %v2115_v32  ;;  %2686 = vmatmul.f32.vlgmr.msra.gmra.mxu2 %v2569_v44  ;;  %v2116_v47 = vld [vmem:[%s8662_s0 + $0x1c] sm:$0xff]  ;;  %v2570_v32 = vld [vmem:[%s8662_s0 + $0x2c] sm:$0xff] }
 0x36a   :  { %v1983_v59 = vpop.f32.mrf.mxu0 }
 0x36b   :  { %8745 = vst [vmem:[#allocation7_spill] sm:$0xff] %v6864_v20  ;;  %3140 = vmatmul.f32.vlgmr.msra.gmra.mxu3 %v3023_v25  ;;  %v3024_v20 = vld [vmem:[%s8662_s0 + $0x2d] sm:$0xff] }
 0x36c   :  { %v1075_v58 = vpop.f32.mrf.mxu2 }
 0x36d   :  { %v1191_v2 = vadd.f32 %v1075_v58, %v706_v11  ;;  %3594 = vmatmul.f32.vlgmr.msra.gmra.mxu0 %v3477_v50  ;;  %v3478_v50 = vld [vmem:[%s8662_s0 + $0x2e] sm:$0xff] }
 0x36e   :  { %v708_v14 = vpop.f32.mrf.mxu1  ;;  %v1529_v22 = vpop.f32.mrf.mxu3 }
 0x36f   :  { %v1645_v31 = vadd.f32 %v1529_v22, %v1191_v2  ;;  %v709_v11 = vadd.f32 %v708_v14, %v8748_v34 }
 0x371   :  { %v6879_v24 = vadd.f32 %v1983_v59, %v1645_v31  ;;  %2235 = vmatmul.f32.gmra.mxu1 %v2116_v47  ;;  %2689 = vmatmul.f32.gmra.mxu2 %v2570_v32  ;;  %v2571_v59 = vld [vmem:[%s8662_s0 + $0x34] sm:$0xff] }
 0x372   :  { %v1986_v25 = vpop.f32.mrf.mxu0  ;;  %v3025_v47 = vld [vmem:[%s8662_s0 + $0x35] sm:$0xff] }
 0x373   :  { %8747 = vst [vmem:[#allocation8_spill] sm:$0xff] %v6879_v24  ;;  %3143 = vmatmul.f32.gmra.mxu3 %v3024_v20  ;;  %v3479_v20 = vld [vmem:[%s8662_s0 + $0x36] sm:$0xff] }
 0x374   :  { %v1078_v58 = vpop.f32.mrf.mxu2 }
 0x375   :  { %v1192_v42 = vadd.f32 %v1078_v58, %v709_v11  ;;  %3597 = vmatmul.f32.gmra.mxu0 %v3478_v50  ;;  %v8750_v50 = vld [vmem:[#allocation10_spill] sm:$0xff] }
 0x376   :  { %v711_v2 = vpop.f32.mrf.mxu1  ;;  %v1532_v22 = vpop.f32.mrf.mxu3 }
 0x377   :  { %v1646_v31 = vadd.f32 %v1532_v22, %v1192_v42  ;;  %v712_v34 = vadd.f32 %v711_v2, %v8750_v50 }
 0x379   :  { %v6891_v24 = vadd.f32 %v1986_v25, %v1646_v31  ;;  %2238 = vmatmul.f32.gmra.mxu1 %v2569_v44  ;;  %2692 = vmatmul.f32.gmra.mxu2 %v2571_v59  ;;  %v2572_v25 = vld [vmem:[%s8662_s0 + $0x3c] sm:$0xff] }
 0x37a   :  { %v1989_v14 = vpop.f32.mrf.mxu0  ;;  %v3026_v44 = vld [vmem:[%s8662_s0 + $0x3d] sm:$0xff] }
 0x37b   :  { %8749 = vst [vmem:[#allocation9_spill] sm:$0xff] %v6891_v24  ;;  %3146 = vmatmul.f32.gmra.mxu3 %v3025_v47  ;;  %v3480_v47 = vld [vmem:[%s8662_s0 + $0x3e] sm:$0xff] }
 0x37c   :  { %v1081_v11 = vpop.f32.mrf.mxu2 }
 0x37d   :  { %v1193_v58 = vadd.f32 %v1081_v11, %v712_v34  ;;  %3600 = vmatmul.f32.gmra.mxu0 %v3479_v20  ;;  %v8752_v20 = vld [vmem:[#allocation12_spill] sm:$0xff] }
 0x37e   :  { %v714_v42 = vpop.f32.mrf.mxu1  ;;  %v1535_v22 = vpop.f32.mrf.mxu3 }
 0x37f   :  { %v1647_v31 = vadd.f32 %v1535_v22, %v1193_v58  ;;  %v715_v50 = vadd.f32 %v714_v42, %v8752_v20 }
 0x381   :  { %v6903_v24 = vadd.f32 %v1989_v14, %v1647_v31  ;;  %2241 = vmatmul.f32.gmra.mxu1 %v2570_v32  ;;  %2695 = vmatmul.f32.gmra.mxu2 %v2572_v25  ;;  %v2573_v14 = vld [vmem:[%s8662_s0 + $0x44] sm:$0xff] }
 0x382   :  { %v1992_v2 = vpop.f32.mrf.mxu0  ;;  %v3027_v32 = vld [vmem:[%s8662_s0 + $0x45] sm:$0xff] }
 0x383   :  { %8751 = vst [vmem:[#allocation10_spill] sm:$0xff] %v6903_v24  ;;  %3149 = vmatmul.f32.gmra.mxu3 %v3026_v44  ;;  %v3481_v44 = vld [vmem:[%s8662_s0 + $0x46] sm:$0xff] }
 0x384   :  { %v1084_v34 = vpop.f32.mrf.mxu2 }
 0x385   :  { %v1194_v11 = vadd.f32 %v1084_v34, %v715_v50  ;;  %3603 = vmatmul.f32.gmra.mxu0 %v3480_v47  ;;  %v8754_v47 = vld [vmem:[#allocation14_spill] sm:$0xff] }
 0x386   :  { %v717_v58 = vpop.f32.mrf.mxu1  ;;  %v1538_v22 = vpop.f32.mrf.mxu3 }
 0x387   :  { %v1648_v31 = vadd.f32 %v1538_v22, %v1194_v11  ;;  %v718_v20 = vadd.f32 %v717_v58, %v8754_v47 }
 0x389   :  { %v6915_v24 = vadd.f32 %v1992_v2, %v1648_v31  ;;  %2244 = vmatmul.f32.gmra.mxu1 %v2571_v59  ;;  %2698 = vmatmul.f32.gmra.mxu2 %v2573_v14  ;;  %v2574_v2 = vld [vmem:[%s8662_s0 + $0x4c] sm:$0xff] }
 0x38a   :  { %v1995_v42 = vpop.f32.mrf.mxu0  ;;  %v3028_v59 = vld [vmem:[%s8662_s0 + $0x4d] sm:$0xff] }
 0x38b   :  { %8753 = vst [vmem:[#allocation12_spill] sm:$0xff] %v6915_v24  ;;  %3152 = vmatmul.f32.gmra.mxu3 %v3027_v32  ;;  %v3482_v32 = vld [vmem:[%s8662_s0 + $0x4e] sm:$0xff] }
 0x38c   :  { %v1087_v50 = vpop.f32.mrf.mxu2 }
 0x38d   :  { %v1195_v34 = vadd.f32 %v1087_v50, %v718_v20  ;;  %3606 = vmatmul.f32.gmra.mxu0 %v3481_v44  ;;  %v8756_v44 = vld [vmem:[#allocation16_spill] sm:$0xff] }
 0x38e   :  { %v720_v11 = vpop.f32.mrf.mxu1  ;;  %v1541_v22 = vpop.f32.mrf.mxu3 }
 0x38f   :  { %v1649_v31 = vadd.f32 %v1541_v22, %v1195_v34  ;;  %v721_v47 = vadd.f32 %v720_v11, %v8756_v44 }
 0x391   :  { %v6927_v24 = vadd.f32 %v1995_v42, %v1649_v31  ;;  %2247 = vmatmul.f32.gmra.mxu1 %v2572_v25  ;;  %2701 = vmatmul.f32.gmra.mxu2 %v2574_v2  ;;  %v2575_v42 = vld [vmem:[%s8662_s0 + $0x54] sm:$0xff] }
 0x392   :  { %v1998_v58 = vpop.f32.mrf.mxu0  ;;  %v3029_v25 = vld [vmem:[%s8662_s0 + $0x55] sm:$0xff] }
 0x393   :  { %8755 = vst [vmem:[#allocation14_spill] sm:$0xff] %v6927_v24  ;;  %3155 = vmatmul.f32.gmra.mxu3 %v3028_v59  ;;  %v3483_v59 = vld [vmem:[%s8662_s0 + $0x56] sm:$0xff] }
 0x394   :  { %v1090_v20 = vpop.f32.mrf.mxu2 }
 0x395   :  { %v1196_v50 = vadd.f32 %v1090_v20, %v721_v47  ;;  %3609 = vmatmul.f32.gmra.mxu0 %v3482_v32  ;;  %v8758_v32 = vld [vmem:[#allocation18_spill] sm:$0xff] }
 0x396   :  { %v723_v34 = vpop.f32.mrf.mxu1  ;;  %v1544_v22 = vpop.f32.mrf.mxu3 }
 0x397   :  { %v1650_v31 = vadd.f32 %v1544_v22, %v1196_v50  ;;  %v724_v44 = vadd.f32 %v723_v34, %v8758_v32 }
 0x399   :  { %v6939_v24 = vadd.f32 %v1998_v58, %v1650_v31  ;;  %2250 = vmatmul.f32.gmra.mxu1 %v2573_v14  ;;  %2704 = vmatmul.f32.gmra.mxu2 %v2575_v42  ;;  %v2576_v58 = vld [vmem:[%s8662_s0 + $0x5c] sm:$0xff] }
 0x39a   :  { %v2001_v11 = vpop.f32.mrf.mxu0  ;;  %v3030_v14 = vld [vmem:[%s8662_s0 + $0x5d] sm:$0xff] }
 0x39b   :  { %8757 = vst [vmem:[#allocation16_spill] sm:$0xff] %v6939_v24  ;;  %3158 = vmatmul.f32.gmra.mxu3 %v3029_v25  ;;  %v3484_v25 = vld [vmem:[%s8662_s0 + $0x5e] sm:$0xff] }
 0x39c   :  { %v1093_v47 = vpop.f32.mrf.mxu2 }
 0x39d   :  { %v1197_v20 = vadd.f32 %v1093_v47, %v724_v44  ;;  %3612 = vmatmul.f32.gmra.mxu0 %v3483_v59  ;;  %v8760_v59 = vld [vmem:[#allocation20_spill] sm:$0xff] }
 0x39e   :  { %v726_v50 = vpop.f32.mrf.mxu1  ;;  %v1547_v22 = vpop.f32.mrf.mxu3 }
 0x39f   :  { %v1651_v31 = vadd.f32 %v1547_v22, %v1197_v20  ;;  %v727_v32 = vadd.f32 %v726_v50, %v8760_v59 }
 0x3a1   :  { %v6951_v24 = vadd.f32 %v2001_v11, %v1651_v31  ;;  %2253 = vmatmul.f32.gmra.mxu1 %v2574_v2  ;;  %2707 = vmatmul.f32.gmra.mxu2 %v2576_v58  ;;  %v2577_v11 = vld [vmem:[%s8662_s0 + $0x64] sm:$0xff] }
 0x3a2   :  { %v2004_v34 = vpop.f32.mrf.mxu0  ;;  %v3031_v2 = vld [vmem:[%s8662_s0 + $0x65] sm:$0xff] }
 0x3a3   :  { %8759 = vst [vmem:[#allocation18_spill] sm:$0xff] %v6951_v24  ;;  %3161 = vmatmul.f32.gmra.mxu3 %v3030_v14  ;;  %v3485_v14 = vld [vmem:[%s8662_s0 + $0x66] sm:$0xff] }
 0x3a4   :  { %v1096_v44 = vpop.f32.mrf.mxu2 }
 0x3a5   :  { %v1198_v47 = vadd.f32 %v1096_v44, %v727_v32  ;;  %3615 = vmatmul.f32.gmra.mxu0 %v3484_v25  ;;  %v8762_v25 = vld [vmem:[#allocation22_spill] sm:$0xff] }
 0x3a6   :  { %v729_v20 = vpop.f32.mrf.mxu1  ;;  %v1550_v22 = vpop.f32.mrf.mxu3 }
 0x3a7   :  { %v1652_v31 = vadd.f32 %v1550_v22, %v1198_v47  ;;  %v730_v59 = vadd.f32 %v729_v20, %v8762_v25 }
 0x3a9   :  { %v6963_v24 = vadd.f32 %v2004_v34, %v1652_v31  ;;  %2256 = vmatmul.f32.gmra.mxu1 %v2575_v42  ;;  %2710 = vmatmul.f32.gmra.mxu2 %v2577_v11  ;;  %v2578_v34 = vld [vmem:[%s8662_s0 + $0x6c] sm:$0xff] }
 0x3aa   :  { %v2007_v50 = vpop.f32.mrf.mxu0  ;;  %v3032_v42 = vld [vmem:[%s8662_s0 + $0x6d] sm:$0xff] }
 0x3ab   :  { %8761 = vst [vmem:[#allocation20_spill] sm:$0xff] %v6963_v24  ;;  %3164 = vmatmul.f32.gmra.mxu3 %v3031_v2  ;;  %v3486_v2 = vld [vmem:[%s8662_s0 + $0x6e] sm:$0xff] }
 0x3ac   :  { %v1099_v32 = vpop.f32.mrf.mxu2 }
 0x3ad   :  { %v1199_v44 = vadd.f32 %v1099_v32, %v730_v59  ;;  %3618 = vmatmul.f32.gmra.mxu0 %v3485_v14  ;;  %v8764_v14 = vld [vmem:[#allocation24_spill] sm:$0xff] }
 0x3ae   :  { %v732_v47 = vpop.f32.mrf.mxu1  ;;  %v1553_v22 = vpop.f32.mrf.mxu3 }
 0x3af   :  { %v1653_v31 = vadd.f32 %v1553_v22, %v1199_v44  ;;  %v733_v25 = vadd.f32 %v732_v47, %v8764_v14 }
 0x3b1   :  { %v6975_v24 = vadd.f32 %v2007_v50, %v1653_v31  ;;  %2259 = vmatmul.f32.gmra.mxu1 %v2576_v58  ;;  %2713 = vmatmul.f32.gmra.mxu2 %v2578_v34  ;;  %v2579_v50 = vld [vmem:[%s8662_s0 + $0x74] sm:$0xff] }
 0x3b2   :  { %v2010_v20 = vpop.f32.mrf.mxu0  ;;  %v3033_v58 = vld [vmem:[%s8662_s0 + $0x75] sm:$0xff] }
 0x3b3   :  { %8763 = vst [vmem:[#allocation22_spill] sm:$0xff] %v6975_v24  ;;  %3167 = vmatmul.f32.gmra.mxu3 %v3032_v42  ;;  %v3487_v42 = vld [vmem:[%s8662_s0 + $0x76] sm:$0xff] }
 0x3b4   :  { %v1102_v59 = vpop.f32.mrf.mxu2 }
 0x3b5   :  { %v1200_v32 = vadd.f32 %v1102_v59, %v733_v25  ;;  %3621 = vmatmul.f32.gmra.mxu0 %v3486_v2  ;;  %v8766_v2 = vld [vmem:[#allocation26_spill] sm:$0xff] }
 0x3b6   :  { %v735_v44 = vpop.f32.mrf.mxu1  ;;  %v1556_v22 = vpop.f32.mrf.mxu3 }
 0x3b7   :  { %v1654_v31 = vadd.f32 %v1556_v22, %v1200_v32  ;;  %v736_v14 = vadd.f32 %v735_v44, %v8766_v2 }
 0x3b9   :  { %v6987_v24 = vadd.f32 %v2010_v20, %v1654_v31  ;;  %2262 = vmatmul.f32.gmra.mxu1 %v2577_v11  ;;  %2716 = vmatmul.f32.gmra.mxu2 %v2579_v50  ;;  %v2580_v20 = vld [vmem:[%s8662_s0 + $0x7c] sm:$0xff] }
 0x3ba   :  { %v2013_v47 = vpop.f32.mrf.mxu0  ;;  %v3034_v11 = vld [vmem:[%s8662_s0 + $0x7d] sm:$0xff] }
 0x3bb   :  { %8765 = vst [vmem:[#allocation24_spill] sm:$0xff] %v6987_v24  ;;  %3170 = vmatmul.f32.gmra.mxu3 %v3033_v58  ;;  %v3488_v58 = vld [vmem:[%s8662_s0 + $0x7e] sm:$0xff] }
 0x3bc   :  { %v1105_v25 = vpop.f32.mrf.mxu2 }
 0x3bd   :  { %v1201_v59 = vadd.f32 %v1105_v25, %v736_v14  ;;  %3624 = vmatmul.f32.gmra.mxu0 %v3487_v42  ;;  %v8768_v42 = vld [vmem:[#allocation28_spill] sm:$0xff] }
 0x3be   :  { %v738_v32 = vpop.f32.mrf.mxu1  ;;  %v1559_v22 = vpop.f32.mrf.mxu3 }
 0x3bf   :  { %v1655_v31 = vadd.f32 %v1559_v22, %v1201_v59  ;;  %v739_v2 = vadd.f32 %v738_v32, %v8768_v42 }
 0x3c1   :  { %v6999_v24 = vadd.f32 %v2013_v47, %v1655_v31  ;;  %2265 = vmatmul.f32.gmra.mxu1 %v2578_v34  ;;  %2719 = vmatmul.f32.gmra.mxu2 %v2580_v20  ;;  %v2581_v47 = vld [vmem:[%s8662_s0 + $0x84] sm:$0xff] }
 0x3c2   :  { %v2016_v44 = vpop.f32.mrf.mxu0  ;;  %v3035_v34 = vld [vmem:[%s8662_s0 + $0x85] sm:$0xff] }
 0x3c3   :  { %8767 = vst [vmem:[#allocation26_spill] sm:$0xff] %v6999_v24  ;;  %3173 = vmatmul.f32.gmra.mxu3 %v3034_v11  ;;  %v3489_v11 = vld [vmem:[%s8662_s0 + $0x86] sm:$0xff] }
 0x3c4   :  { %v1108_v14 = vpop.f32.mrf.mxu2 }
 0x3c5   :  { %v1202_v25 = vadd.f32 %v1108_v14, %v739_v2  ;;  %3627 = vmatmul.f32.gmra.mxu0 %v3488_v58  ;;  %v8770_v58 = vld [vmem:[#allocation30_spill] sm:$0xff] }
 0x3c6   :  { %v741_v59 = vpop.f32.mrf.mxu1  ;;  %v1562_v22 = vpop.f32.mrf.mxu3 }
 0x3c7   :  { %v1656_v31 = vadd.f32 %v1562_v22, %v1202_v25  ;;  %v742_v42 = vadd.f32 %v741_v59, %v8770_v58 }
 0x3c9   :  { %v7011_v24 = vadd.f32 %v2016_v44, %v1656_v31  ;;  %2268 = vmatmul.f32.gmra.mxu1 %v2579_v50  ;;  %2722 = vmatmul.f32.gmra.mxu2 %v2581_v47  ;;  %v2582_v44 = vld [vmem:[%s8662_s0 + $0x8c] sm:$0xff] }
 0x3ca   :  { %v2019_v32 = vpop.f32.mrf.mxu0  ;;  %v3036_v50 = vld [vmem:[%s8662_s0 + $0x8d] sm:$0xff] }
 0x3cb   :  { %8769 = vst [vmem:[#allocation28_spill] sm:$0xff] %v7011_v24  ;;  %3176 = vmatmul.f32.gmra.mxu3 %v3035_v34  ;;  %v3490_v34 = vld [vmem:[%s8662_s0 + $0x8e] sm:$0xff] }
 0x3cc   :  { %v1111_v2 = vpop.f32.mrf.mxu2 }
 0x3cd   :  { %v1203_v14 = vadd.f32 %v1111_v2, %v742_v42  ;;  %3630 = vmatmul.f32.gmra.mxu0 %v3489_v11  ;;  %v8772_v11 = vld [vmem:[#allocation32_spill] sm:$0xff] }
 0x3ce   :  { %v744_v25 = vpop.f32.mrf.mxu1  ;;  %v1565_v22 = vpop.f32.mrf.mxu3 }
 0x3cf   :  { %v1657_v31 = vadd.f32 %v1565_v22, %v1203_v14  ;;  %v745_v58 = vadd.f32 %v744_v25, %v8772_v11 }
 0x3d1   :  { %v7023_v24 = vadd.f32 %v2019_v32, %v1657_v31  ;;  %2271 = vmatmul.f32.gmra.mxu1 %v2580_v20  ;;  %2725 = vmatmul.f32.gmra.mxu2 %v2582_v44  ;;  %v2583_v32 = vld [vmem:[%s8662_s0 + $0x94] sm:$0xff] }
 0x3d2   :  { %v2022_v59 = vpop.f32.mrf.mxu0  ;;  %v3037_v20 = vld [vmem:[%s8662_s0 + $0x95] sm:$0xff] }
 0x3d3   :  { %8771 = vst [vmem:[#allocation30_spill] sm:$0xff] %v7023_v24  ;;  %3179 = vmatmul.f32.gmra.mxu3 %v3036_v50  ;;  %v3491_v50 = vld [vmem:[%s8662_s0 + $0x96] sm:$0xff] }
 0x3d4   :  { %v1114_v42 = vpop.f32.mrf.mxu2 }
 0x3d5   :  { %v1204_v2 = vadd.f32 %v1114_v42, %v745_v58  ;;  %3633 = vmatmul.f32.gmra.mxu0 %v3490_v34  ;;  %v8774_v34 = vld [vmem:[#allocation34_spill] sm:$0xff] }
 0x3d6   :  { %v747_v14 = vpop.f32.mrf.mxu1  ;;  %v1568_v22 = vpop.f32.mrf.mxu3 }
 0x3d7   :  { %v1658_v31 = vadd.f32 %v1568_v22, %v1204_v2  ;;  %v748_v11 = vadd.f32 %v747_v14, %v8774_v34 }
 0x3d9   :  { %v7035_v24 = vadd.f32 %v2022_v59, %v1658_v31  ;;  %2274 = vmatmul.f32.gmra.mxu1 %v2581_v47  ;;  %2728 = vmatmul.f32.gmra.mxu2 %v2583_v32  ;;  %v2584_v59 = vld [vmem:[%s8662_s0 + $0x9c] sm:$0xff] }
 0x3da   :  { %v2025_v25 = vpop.f32.mrf.mxu0  ;;  %v3038_v47 = vld [vmem:[%s8662_s0 + $0x9d] sm:$0xff] }
 0x3db   :  { %8773 = vst [vmem:[#allocation32_spill] sm:$0xff] %v7035_v24  ;;  %3182 = vmatmul.f32.gmra.mxu3 %v3037_v20  ;;  %v3492_v20 = vld [vmem:[%s8662_s0 + $0x9e] sm:$0xff] }
 0x3dc   :  { %v1117_v58 = vpop.f32.mrf.mxu2 }
 0x3dd   :  { %v1205_v42 = vadd.f32 %v1117_v58, %v748_v11  ;;  %3636 = vmatmul.f32.gmra.mxu0 %v3491_v50  ;;  %v8776_v50 = vld [vmem:[#allocation36_spill] sm:$0xff] }
 0x3de   :  { %v750_v2 = vpop.f32.mrf.mxu1  ;;  %v1571_v22 = vpop.f32.mrf.mxu3 }
 0x3df   :  { %v1659_v31 = vadd.f32 %v1571_v22, %v1205_v42  ;;  %v751_v34 = vadd.f32 %v750_v2, %v8776_v50 }
 0x3e1   :  { %v7047_v24 = vadd.f32 %v2025_v25, %v1659_v31  ;;  %2277 = vmatmul.f32.gmra.mxu1 %v2582_v44  ;;  %2731 = vmatmul.f32.gmra.mxu2 %v2584_v59  ;;  %v2585_v25 = vld [vmem:[%s8662_s0 + $0xa4] sm:$0xff] }
 0x3e2   :  { %v2028_v14 = vpop.f32.mrf.mxu0  ;;  %v3039_v44 = vld [vmem:[%s8662_s0 + $0xa5] sm:$0xff] }
 0x3e3   :  { %8775 = vst [vmem:[#allocation34_spill] sm:$0xff] %v7047_v24  ;;  %3185 = vmatmul.f32.gmra.mxu3 %v3038_v47  ;;  %v3493_v47 = vld [vmem:[%s8662_s0 + $0xa6] sm:$0xff] }
 0x3e4   :  { %v1120_v11 = vpop.f32.mrf.mxu2 }
 0x3e5   :  { %v1206_v58 = vadd.f32 %v1120_v11, %v751_v34  ;;  %3639 = vmatmul.f32.gmra.mxu0 %v3492_v20 }
 0x3e6   :  { %v1574_v42 = vpop.f32.mrf.mxu3  ;;  %v2233_v22 = vpop.f32.mrf.mxu1 }
 0x3e7   :  { %v1660_v31 = vadd.f32 %v1574_v42, %v1206_v58  ;;  %v2485_v20 = vadd.f32 %v2233_v22, %v5913_v40  ;;  %v3040_v40 = vld [vmem:[%s8662_s0 + $0xad] sm:$0xff] }
 0x3e9   :  { %v7059_v24 = vadd.f32 %v2028_v14, %v1660_v31  ;;  %2280 = vmatmul.f32.gmra.mxu1 %v2583_v32  ;;  %2734 = vmatmul.f32.gmra.mxu2 %v2585_v25  ;;  %v2586_v14 = vld [vmem:[%s8662_s0 + $0xac] sm:$0xff]  ;;  %v7071_v32 = vld [vmem:[%s8663_s2] ss:$0 sm:$0xff] }
 0x3ea   :  { %v3595_v2 = vpop.f32.mrf.mxu0 }
 0x3eb   :  { %8777 = vst [vmem:[#allocation36_spill] sm:$0xff] %v7059_v24  ;;  %3188 = vmatmul.f32.gmra.mxu3 %v3039_v44  ;;  %v3494_v44 = vld [vmem:[%s8662_s0 + $0xae] sm:$0xff] }
 0x3ec   :  { %v2687_v50 = vpop.f32.mrf.mxu2 }
 0x3ed   :  { %v2939_v34 = vadd.f32 %v2687_v50, %v2485_v20  ;;  %3642 = vmatmul.f32.gmra.mxu0 %v3493_v47 }
 0x3ee   :  { %v2236_v11 = vpop.f32.mrf.mxu1  ;;  %v3141_v58 = vpop.f32.mrf.mxu3 }
 0x3ef   :  { %v3393_v42 = vadd.f32 %v3141_v58, %v2939_v34  ;;  %v2486_v47 = vadd.f32 %v2236_v11, %v5934_v18  ;;  %v3041_v18 = vld [vmem:[%s8662_s0 + $0xb5] sm:$0xff] }
 0x3f1   :  { %v3847_v22 = vadd.f32 %v3595_v2, %v3393_v42  ;;  %2283 = vmatmul.f32.gmra.mxu1 %v2584_v59  ;;  %2737 = vmatmul.f32.gmra.mxu2 %v2586_v14  ;;  %v2587_v59 = vld [vmem:[%s8662_s0 + $0xb4] sm:$0xff] }
 0x3f2   :  { %v3598_v31 = vpop.f32.mrf.mxu0 }
 0x3f3   :  { %v7081_v20 = vadd.f32 %v7071_v32, %v3847_v22  ;;  %3191 = vmatmul.f32.gmra.mxu3 %v3040_v40  ;;  %v3495_v22 = vld [vmem:[%s8662_s0 + $0xb6] sm:$0xff] }
 0x3f4   :  { %v2690_v50 = vpop.f32.mrf.mxu2 }
 0x3f5   :  { %v8665_v34 = vmax.f32 %v7081_v20, 0.0  ;;  %v2940_v58 = vadd.f32 %v2690_v50, %v2486_v47  ;;  %3645 = vmatmul.f32.gmra.mxu0 %v3494_v44 }
 0x3f6   :  { %v2239_v24 = vpop.f32.mrf.mxu1  ;;  %v3144_v2 = vpop.f32.mrf.mxu3 }
 0x3f7   :  { %4103 = vst [vmem:[#allocation2] sm:$0xff] %v8665_v34  ;;  %v3394_v42 = vadd.f32 %v3144_v2, %v2940_v58  ;;  %v2487_v44 = vadd.f32 %v2239_v24, %v5949_v7  ;;  %v3042_v7 = vld [vmem:[%s8662_s0 + $0xbd] sm:$0xff] }
 0x3f9   :  { %v3848_v11 = vadd.f32 %v3598_v31, %v3394_v42  ;;  %2286 = vmatmul.f32.gmra.mxu1 %v2585_v25  ;;  %2740 = vmatmul.f32.gmra.mxu2 %v2587_v59  ;;  %v2588_v25 = vld [vmem:[%s8662_s0 + $0xbc] sm:$0xff] }
 0x3fa   :  { %v3601_v40 = vpop.f32.mrf.mxu0 }
 0x3fb   :  { %v7097_v47 = vadd.f32 %v7071_v32, %v3848_v11  ;;  %3194 = vmatmul.f32.gmra.mxu3 %v3041_v18  ;;  %v3496_v11 = vld [vmem:[%s8662_s0 + $0xbe] sm:$0xff] }
 0x3fc   :  { %v2693_v50 = vpop.f32.mrf.mxu2 }
 0x3fd   :  { %v8666_v58 = vmax.f32 %v7097_v47, 0.0  ;;  %v2941_v2 = vadd.f32 %v2693_v50, %v2487_v44  ;;  %3648 = vmatmul.f32.gmra.mxu0 %v3495_v22 }
 0x3fe   :  { %v2242_v34 = vpop.f32.mrf.mxu1  ;;  %v3147_v31 = vpop.f32.mrf.mxu3 }
 0x3ff   :  { %4104 = vst [vmem:[#allocation2 + $0x8] sm:$0xff] %v8666_v58  ;;  %v3395_v42 = vadd.f32 %v3147_v31, %v2941_v2  ;;  %v2488_v22 = vadd.f32 %v2242_v34, %v5961_v5  ;;  %v3043_v5 = vld [vmem:[%s8662_s0 + $0xc5] sm:$0xff] }
 0x401   :  { %v3849_v24 = vadd.f32 %v3601_v40, %v3395_v42  ;;  %2289 = vmatmul.f32.gmra.mxu1 %v2586_v14  ;;  %2743 = vmatmul.f32.gmra.mxu2 %v2588_v25  ;;  %v2589_v14 = vld [vmem:[%s8662_s0 + $0xc4] sm:$0xff] }
 0x402   :  { %v3604_v18 = vpop.f32.mrf.mxu0 }
 0x403   :  { %v7113_v44 = vadd.f32 %v7071_v32, %v3849_v24  ;;  %3197 = vmatmul.f32.gmra.mxu3 %v3042_v7  ;;  %v3497_v24 = vld [vmem:[%s8662_s0 + $0xc6] sm:$0xff] }
 0x404   :  { %v2696_v50 = vpop.f32.mrf.mxu2 }
 0x405   :  { %v8667_v2 = vmax.f32 %v7113_v44, 0.0  ;;  %v2942_v31 = vadd.f32 %v2696_v50, %v2488_v22  ;;  %3651 = vmatmul.f32.gmra.mxu0 %v3496_v11 }
 0x406   :  { %v2245_v58 = vpop.f32.mrf.mxu1  ;;  %v3150_v40 = vpop.f32.mrf.mxu3 }
 0x407   :  { %4105 = vst [vmem:[#allocation2 + $0x10] sm:$0xff] %v8667_v2  ;;  %v3396_v42 = vadd.f32 %v3150_v40, %v2942_v31  ;;  %v2489_v11 = vadd.f32 %v2245_v58, %v5973_v16  ;;  %v3044_v16 = vld [vmem:[%s8662_s0 + $0xcd] sm:$0xff] }
 0x409   :  { %v3850_v34 = vadd.f32 %v3604_v18, %v3396_v42  ;;  %2292 = vmatmul.f32.gmra.mxu1 %v2587_v59  ;;  %2746 = vmatmul.f32.gmra.mxu2 %v2589_v14  ;;  %v2590_v59 = vld [vmem:[%s8662_s0 + $0xcc] sm:$0xff] }
 0x40a   :  { %v3607_v7 = vpop.f32.mrf.mxu0 }
 0x40b   :  { %v7129_v22 = vadd.f32 %v7071_v32, %v3850_v34  ;;  %3200 = vmatmul.f32.gmra.mxu3 %v3043_v5  ;;  %v3498_v34 = vld [vmem:[%s8662_s0 + $0xce] sm:$0xff] }
 0x40c   :  { %v2699_v50 = vpop.f32.mrf.mxu2 }
 0x40d   :  { %v8668_v31 = vmax.f32 %v7129_v22, 0.0  ;;  %v2943_v40 = vadd.f32 %v2699_v50, %v2489_v11  ;;  %3654 = vmatmul.f32.gmra.mxu0 %v3497_v24  ;;  %v4268_v50 = vld [vmem:[#allocation2 + $0x1] sm:$0xff] }
 0x40e   :  { %v2248_v2 = vpop.f32.mrf.mxu1  ;;  %v3153_v18 = vpop.f32.mrf.mxu3 }
 0x40f   :  { %4106 = vst [vmem:[#allocation2 + $0x18] sm:$0xff] %v8668_v31  ;;  %v3397_v42 = vadd.f32 %v3153_v18, %v2943_v40  ;;  %v2490_v24 = vadd.f32 %v2248_v2, %v5985_v29  ;;  %v8778_v29 = vmax.f32 %v7081_v20, 0.0  ;;  %v8779_v20 = vld [vmem:[#allocation37_spill] sm:$0xff] }
 0x411   :  { %v3851_v58 = vadd.f32 %v3607_v7, %v3397_v42  ;;  %2295 = vmatmul.f32.gmra.mxu1 %v2588_v25  ;;  %2749 = vmatmul.f32.gmra.mxu2 %v2590_v59  ;;  %v4349_v2 = vmax.f32 %v8778_v29, %v4268_v50 }
 0x412   :  { %v3610_v5 = vpop.f32.mrf.mxu0 }
 0x413   :  { %v7145_v11 = vadd.f32 %v7071_v32, %v3851_v58  ;;  %3203 = vmatmul.f32.gmra.mxu3 %v3044_v16 }
 0x414   :  { %v2702_v40 = vpop.f32.mrf.mxu2 }
 0x415   :  { %v8669_v18 = vmax.f32 %v7145_v11, 0.0  ;;  %v2944_v31 = vadd.f32 %v2702_v40, %v2490_v24  ;;  %3657 = vmatmul.f32.gmra.mxu0 %v3498_v34  ;;  %v3045_v34 = vld [vmem:[%s8662_s0 + $0xd5] sm:$0xff] }
 0x416   :  { %v4430_v7 = vld [vmem:[#allocation2 + $0x12] sm:$0xff]  ;;  %v2251_v42 = vpop.f32.mrf.mxu1  ;;  %v3156_v26 = vpop.f32.mrf.mxu3 }
 0x417   :  { %v4511_v25 = vld [vmem:[#allocation2 + $0x13] sm:$0xff]  ;;  %4107 = vst [vmem:[#allocation2 + $0x20] sm:$0xff] %v8669_v18  ;;  %v3398_v16 = vadd.f32 %v3156_v26, %v2944_v31  ;;  %v2491_v50 = vadd.f32 %v2251_v42, %v8779_v20  ;;  %v4269_v31 = vld [vmem:[#allocation2 + $0x9] sm:$0xff]  ;;  %v8780_v42 = vmax.f32 %v7097_v47, 0.0  ;;  %v3500_v18 = vld [vmem:[%s8662_s0 + $0xde] sm:$0xff] }
 0x418   :  { %v4592_v58 = vmax.f32 %v4430_v7, %v4511_v25 }
 0x419   :  { %v3852_v40 = vadd.f32 %v3610_v5, %v3398_v16  ;;  %2298 = vmatmul.f32.gmra.mxu1 %v2589_v14  ;;  %2752 = vmatmul.f32.gmra.mxu2 %v2591_v23  ;;  %v2592_v16 = vld [vmem:[%s8662_s0 + $0xdc] sm:$0xff] }
 0x41a   :  { %v4673_v24 = vmax.f32 %v4349_v2, %v4592_v58  ;;  %v3613_v21 = vpop.f32.mrf.mxu0 }
 0x41b   :  { %v7166_v26 = vadd.f32 %v7071_v32, %v3852_v40  ;;  %3206 = vmatmul.f32.gmra.mxu3 %v3045_v34 }
 0x41c   :  { %4754 = vst [vmem:[%s8664_s3] sm:$0xff] %v4673_v24  ;;  %v2705_v7 = vpop.f32.mrf.mxu2  ;;  %v4350_v24 = vmax.f32 %v8780_v42, %v4269_v31 }
 0x41d   :  { %v4024_v14 = vmax.f32 %v7166_v26, 0.0  ;;  %v2945_v5 = vadd.f32 %v2705_v7, %v2491_v50  ;;  %3660 = vmatmul.f32.gmra.mxu0 %v3499_v54  ;;  %v3046_v54 = vld [vmem:[%s8662_s0 + $0xdd] sm:$0xff] }
 0x41e   :  { %v4431_v25 = vld [vmem:[#allocation2 + $0x1a] sm:$0xff]  ;;  %v2254_v2 = vpop.f32.mrf.mxu1  ;;  %v3159_v58 = vpop.f32.mrf.mxu3 }
 0x41f   :  { %v4512_v29 = vld [vmem:[#allocation2 + $0x1b] sm:$0xff]  ;;  %4108 = vst [vmem:[#allocation2 + $0x28] sm:$0xff] %v4024_v14  ;;  %v3399_v34 = vadd.f32 %v3159_v58, %v2945_v5  ;;  %v2492_v47 = vadd.f32 %v2254_v2, %v6021_v56  ;;  %v4270_v5 = vld [vmem:[#allocation2 + $0x11] sm:$0xff]  ;;  %v8781_v56 = vmax.f32 %v7113_v44, 0.0 }
 0x420   :  { %v4593_v40 = vmax.f32 %v4431_v25, %v4512_v29 }
 0x421   :  { %v3853_v50 = vadd.f32 %v3613_v21, %v3399_v34  ;;  %2301 = vmatmul.f32.gmra.mxu1 %v2590_v59  ;;  %2755 = vmatmul.f32.gmra.mxu2 %v2592_v16  ;;  %v4351_v2 = vmax.f32 %v8781_v56, %v4270_v5 }
 0x422   :  { %v4674_v20 = vmax.f32 %v4350_v24, %v4593_v40  ;;  %v3616_v7 = vpop.f32.mrf.mxu0  ;;  %v2593_v40 = vld [vmem:[%s8662_s0 + $0xe4] sm:$0xff] }
 0x423   :  { %v7187_v31 = vadd.f32 %v7071_v32, %v3853_v50  ;;  %3209 = vmatmul.f32.gmra.mxu3 %v3046_v54 }
 0x424   :  { %4755 = vst [vmem:[%s8664_s3 + $0x8] sm:$0xff] %v4674_v20  ;;  %v2708_v25 = vpop.f32.mrf.mxu2 }
 0x425   :  { %v4025_v21 = vmax.f32 %v7187_v31, 0.0  ;;  %v2946_v59 = vadd.f32 %v2708_v25, %v2492_v47  ;;  %3663 = vmatmul.f32.gmra.mxu0 %v3500_v18  ;;  %v3047_v18 = vld [vmem:[%s8662_s0 + $0xe5] sm:$0xff] }
 0x426   :  { %v4432_v29 = vld [vmem:[#allocation2 + $0x22] sm:$0xff]  ;;  %v2257_v42 = vpop.f32.mrf.mxu1  ;;  %v3162_v24 = vpop.f32.mrf.mxu3 }
 0x427   :  { %v4513_v58 = vld [vmem:[#allocation2 + $0x23] sm:$0xff]  ;;  %4109 = vst [vmem:[#allocation2 + $0x30] sm:$0xff] %v4025_v21  ;;  %v3400_v54 = vadd.f32 %v3162_v24, %v2946_v59  ;;  %v2493_v44 = vadd.f32 %v2257_v42, %v6033_v13  ;;  %v4271_v59 = vld [vmem:[#allocation2 + $0x19] sm:$0xff]  ;;  %v8782_v13 = vmax.f32 %v7129_v22, 0.0 }
 0x428   :  { %v4594_v34 = vmax.f32 %v4432_v29, %v4513_v58  ;;  %v3501_v25 = vld [vmem:[%s8662_s0 + $0xe6] sm:$0xff] }
 0x429   :  { %v3854_v50 = vadd.f32 %v3616_v7, %v3400_v54  ;;  %2304 = vmatmul.f32.gmra.mxu1 %v2591_v23  ;;  %2758 = vmatmul.f32.gmra.mxu2 %v2593_v40  ;;  %v4352_v42 = vmax.f32 %v8782_v13, %v4271_v59 }
 0x42a   :  { %v4675_v20 = vmax.f32 %v4351_v2, %v4594_v34  ;;  %v3619_v47 = vpop.f32.mrf.mxu0  ;;  %v2594_v34 = vld [vmem:[%s8662_s0 + $0xec] sm:$0xff] }
 0x42b   :  { %v7208_v5 = vadd.f32 %v7071_v32, %v3854_v50  ;;  %3212 = vmatmul.f32.gmra.mxu3 %v3047_v18 }
 0x42c   :  { %4756 = vst [vmem:[%s8664_s3 + $0x10] sm:$0xff] %v4675_v20  ;;  %v2711_v29 = vpop.f32.mrf.mxu2  ;;  %v3048_v20 = vld [vmem:[%s8662_s0 + $0xed] sm:$0xff] }
 0x42d   :  { %v4026_v23 = vmax.f32 %v7208_v5, 0.0  ;;  %v2947_v7 = vadd.f32 %v2711_v29, %v2493_v44  ;;  %3666 = vmatmul.f32.gmra.mxu0 %v3501_v25  ;;  %v3502_v29 = vld [vmem:[%s8662_s0 + $0xee] sm:$0xff] }
 0x42e   :  { %v4433_v58 = vld [vmem:[#allocation2 + $0x2a] sm:$0xff]  ;;  %v2260_v56 = vpop.f32.mrf.mxu1  ;;  %v3165_v2 = vpop.f32.mrf.mxu3 }
 0x42f   :  { %v4514_v24 = vld [vmem:[#allocation2 + $0x2b] sm:$0xff]  ;;  %4110 = vst [vmem:[#allocation2 + $0x38] sm:$0xff] %v4026_v23  ;;  %v3401_v18 = vadd.f32 %v3165_v2, %v2947_v7  ;;  %v2494_v22 = vadd.f32 %v2260_v56, %v6045_v60  ;;  %v4272_v7 = vld [vmem:[#allocation2 + $0x21] sm:$0xff]  ;;  %v8783_v60 = vmax.f32 %v7145_v11, 0.0 }
 0x430   :  { %v4595_v54 = vmax.f32 %v4433_v58, %v4514_v24 }
 0x431   :  { %v3855_v25 = vadd.f32 %v3619_v47, %v3401_v18  ;;  %2307 = vmatmul.f32.gmra.mxu1 %v2592_v16  ;;  %2761 = vmatmul.f32.gmra.mxu2 %v2594_v34  ;;  %v4353_v56 = vmax.f32 %v8783_v60, %v4272_v7 }
 0x432   :  { %v4676_v50 = vmax.f32 %v4352_v42, %v4595_v54  ;;  %v3622_v44 = vpop.f32.mrf.mxu0  ;;  %v2595_v54 = vld [vmem:[%s8662_s0 + $0xf4] sm:$0xff] }
 0x433   :  { %v7229_v59 = vadd.f32 %v7071_v32, %v3855_v25  ;;  %3215 = vmatmul.f32.gmra.mxu3 %v3048_v20 }
 0x434   :  { %4757 = vst [vmem:[%s8664_s3 + $0x18] sm:$0xff] %v4676_v50  ;;  %v2714_v58 = vpop.f32.mrf.mxu2  ;;  %v3049_v50 = vld [vmem:[%s8662_s0 + $0xf5] sm:$0xff] }
 0x435   :  { %v4027_v16 = vmax.f32 %v7229_v59, 0.0  ;;  %v2948_v47 = vadd.f32 %v2714_v58, %v2494_v22  ;;  %3669 = vmatmul.f32.gmra.mxu0 %v3502_v29  ;;  %v3503_v58 = vld [vmem:[%s8662_s0 + $0xf6] sm:$0xff] }
 0x436   :  { %v4434_v24 = vld [vmem:[#allocation2 + $0x32] sm:$0xff]  ;;  %v2263_v13 = vpop.f32.mrf.mxu1  ;;  %v3168_v42 = vpop.f32.mrf.mxu3 }
 0x437   :  { %v4515_v2 = vld [vmem:[#allocation2 + $0x33] sm:$0xff]  ;;  %4111 = vst [vmem:[#allocation2 + $0x40] sm:$0xff] %v4027_v16  ;;  %v3402_v20 = vadd.f32 %v3168_v42, %v2948_v47  ;;  %v2495_v11 = vadd.f32 %v2263_v13, %v6057_v8  ;;  %v4273_v47 = vld [vmem:[#allocation2 + $0x29] sm:$0xff] }
 0x438   :  { %v4596_v18 = vmax.f32 %v4434_v24, %v4515_v2  ;;  %v4354_v8 = vmax.f32 %v4024_v14, %v4273_v47  ;;  %v4274_v47 = vld [vmem:[#allocation2 + $0x31] sm:$0xff] }
 0x439   :  { %v3856_v29 = vadd.f32 %v3622_v44, %v3402_v20  ;;  %2310 = vmatmul.f32.gmra.mxu1 %v2593_v40  ;;  %2764 = vmatmul.f32.gmra.mxu2 %v2595_v54 }
 0x43a   :  { %v4677_v25 = vmax.f32 %v4353_v56, %v4596_v18  ;;  %v3625_v22 = vpop.f32.mrf.mxu0  ;;  %v2596_v18 = vld [vmem:[%s8662_s0 + $0xfc] sm:$0xff] }
 0x43b   :  { %v7250_v7 = vadd.f32 %v7071_v32, %v3856_v29  ;;  %3218 = vmatmul.f32.gmra.mxu3 %v3049_v50  ;;  %v3050_v50 = vld [vmem:[%s8662_s0 + $0xfd] sm:$0xff] }
 0x43c   :  { %4758 = vst [vmem:[%s8664_s3 + $0x20] sm:$0xff] %v4677_v25  ;;  %v2717_v24 = vpop.f32.mrf.mxu2 }
 0x43d   :  { %v4028_v40 = vmax.f32 %v7250_v7, 0.0  ;;  %v2949_v44 = vadd.f32 %v2717_v24, %v2495_v11  ;;  %3672 = vmatmul.f32.gmra.mxu0 %v3503_v58  ;;  %v3504_v11 = vld [vmem:[%s8662_s0 + $0xfe] sm:$0xff] }
 0x43e   :  { %v4435_v2 = vld [vmem:[#allocation2 + $0x3a] sm:$0xff]  ;;  %v2266_v60 = vpop.f32.mrf.mxu1  ;;  %v3171_v56 = vpop.f32.mrf.mxu3 }
 0x43f   :  { %v4516_v42 = vld [vmem:[#allocation2 + $0x3b] sm:$0xff]  ;;  %4112 = vst [vmem:[#allocation2 + $0x48] sm:$0xff] %v4028_v40  ;;  %v3403_v20 = vadd.f32 %v3171_v56, %v2949_v44  ;;  %v2496_v26 = vadd.f32 %v2266_v60, %v6075_v33  ;;  %v4355_v33 = vmax.f32 %v4025_v21, %v4274_v47 }
 0x440   :  { %v4597_v13 = vmax.f32 %v4435_v2, %v4516_v42 }
 0x441   :  { %v3857_v29 = vadd.f32 %v3625_v22, %v3403_v20  ;;  %2313 = vmatmul.f32.gmra.mxu1 %v2594_v34  ;;  %2767 = vmatmul.f32.gmra.mxu2 %v2596_v18  ;;  %v3051_v20 = vld [vmem:[%s8662_s0 + $0x105] sm:$0xff] }
 0x442   :  { %v4678_v25 = vmax.f32 %v4354_v8, %v4597_v13  ;;  %v3628_v58 = vpop.f32.mrf.mxu0  ;;  %v2597_v8 = vld [vmem:[%s8662_s0 + $0x104] sm:$0xff] }
 0x443   :  { %v7271_v14 = vadd.f32 %v7071_v32, %v3857_v29  ;;  %3221 = vmatmul.f32.gmra.mxu3 %v3050_v50 }
 0x444   :  { %4759 = vst [vmem:[%s8664_s3 + $0x28] sm:$0xff] %v4678_v25  ;;  %v2720_v24 = vpop.f32.mrf.mxu2 }
 0x445   :  { %v4029_v34 = vmax.f32 %v7271_v14, 0.0  ;;  %v2950_v22 = vadd.f32 %v2720_v24, %v2496_v26  ;;  %3675 = vmatmul.f32.gmra.mxu0 %v3504_v11  ;;  %v3505_v11 = vld [vmem:[%s8662_s0 + $0x106] sm:$0xff]  ;;  %v4275_v26 = vld [vmem:[#allocation2 + $0x39] sm:$0xff] }
 0x446   :  { %v4436_v44 = vld [vmem:[#allocation2 + $0x42] sm:$0xff]  ;;  %v2269_v42 = vpop.f32.mrf.mxu1  ;;  %v3174_v56 = vpop.f32.mrf.mxu3 }
 0x447   :  { %v4517_v2 = vld [vmem:[#allocation2 + $0x43] sm:$0xff]  ;;  %4113 = vst [vmem:[#allocation2 + $0x50] sm:$0xff] %v4029_v34  ;;  %v3404_v13 = vadd.f32 %v3174_v56, %v2950_v22  ;;  %v2497_v31 = vadd.f32 %v2269_v42, %v6093_v36  ;;  %v2598_v56 = vld [vmem:[%s8662_s0 + $0x10c] sm:$0xff]  ;;  %v4356_v36 = vmax.f32 %v4026_v23, %v4275_v26 }
 0x448   :  { %v4598_v60 = vmax.f32 %v4436_v44, %v4517_v2 }
 0x449   :  { %v3858_v25 = vadd.f32 %v3628_v58, %v3404_v13  ;;  %2316 = vmatmul.f32.gmra.mxu1 %v2595_v54  ;;  %2770 = vmatmul.f32.gmra.mxu2 %v2597_v8 }
 0x44a   :  { %v4679_v50 = vmax.f32 %v4355_v33, %v4598_v60  ;;  %v3631_v29 = vpop.f32.mrf.mxu0  ;;  %v3052_v60 = vld [vmem:[%s8662_s0 + $0x10d] sm:$0xff] }
 0x44b   :  { %v7292_v21 = vadd.f32 %v7071_v32, %v3858_v25  ;;  %3224 = vmatmul.f32.gmra.mxu3 %v3051_v20  ;;  %v3506_v25 = vld [vmem:[%s8662_s0 + $0x10e] sm:$0xff] }
 0x44c   :  { %4760 = vst [vmem:[%s8664_s3 + $0x30] sm:$0xff] %v4679_v50  ;;  %v2723_v47 = vpop.f32.mrf.mxu2 }
 0x44d   :  { %v4030_v54 = vmax.f32 %v7292_v21, 0.0  ;;  %v2951_v58 = vadd.f32 %v2723_v47, %v2497_v31  ;;  %3678 = vmatmul.f32.gmra.mxu0 %v3505_v11  ;;  %v4276_v11 = vld [vmem:[#allocation2 + $0x41] sm:$0xff] }
 0x44e   :  { %v4437_v24 = vld [vmem:[#allocation2 + $0x4a] sm:$0xff]  ;;  %v2272_v44 = vpop.f32.mrf.mxu1  ;;  %v3177_v2 = vpop.f32.mrf.mxu3 }
 0x44f   :  { %v4518_v22 = vld [vmem:[#allocation2 + $0x4b] sm:$0xff]  ;;  %4114 = vst [vmem:[#allocation2 + $0x58] sm:$0xff] %v4030_v54  ;;  %v3405_v33 = vadd.f32 %v3177_v2, %v2951_v58  ;;  %v2498_v5 = vadd.f32 %v2272_v44, %v6105_v35  ;;  %v4357_v35 = vmax.f32 %v4027_v16, %v4276_v11 }
 0x450   :  { %v4599_v42 = vmax.f32 %v4437_v24, %v4518_v22  ;;  %v2599_v22 = vld [vmem:[%s8662_s0 + $0x114] sm:$0xff] }
 0x451   :  { %v3859_v20 = vadd.f32 %v3631_v29, %v3405_v33  ;;  %2319 = vmatmul.f32.gmra.mxu1 %v2596_v18  ;;  %2773 = vmatmul.f32.gmra.mxu2 %v2598_v56 }
 0x452   :  { %v4680_v13 = vmax.f32 %v4356_v36, %v4599_v42  ;;  %v3634_v50 = vpop.f32.mrf.mxu0  ;;  %v3053_v36 = vld [vmem:[%s8662_s0 + $0x115] sm:$0xff] }
 0x453   :  { %v7313_v23 = vadd.f32 %v7071_v32, %v3859_v20  ;;  %3227 = vmatmul.f32.gmra.mxu3 %v3052_v60  ;;  %v4277_v20 = vld [vmem:[#allocation2 + $0x49] sm:$0xff] }
 0x454   :  { %4761 = vst [vmem:[%s8664_s3 + $0x38] sm:$0xff] %v4680_v13  ;;  %v2726_v31 = vpop.f32.mrf.mxu2  ;;  %v3507_v13 = vld [vmem:[%s8662_s0 + $0x116] sm:$0xff] }
 0x455   :  { %v4031_v18 = vmax.f32 %v7313_v23, 0.0  ;;  %v2952_v29 = vadd.f32 %v2726_v31, %v2498_v5  ;;  %3681 = vmatmul.f32.gmra.mxu0 %v3506_v25 }
 0x456   :  { %v4438_v26 = vld [vmem:[#allocation2 + $0x52] sm:$0xff]  ;;  %v2275_v58 = vpop.f32.mrf.mxu1  ;;  %v3180_v24 = vpop.f32.mrf.mxu3 }
 0x457   :  { %v4519_v47 = vld [vmem:[#allocation2 + $0x53] sm:$0xff]  ;;  %4115 = vst [vmem:[#allocation2 + $0x60] sm:$0xff] %v4031_v18  ;;  %v3406_v2 = vadd.f32 %v3180_v24, %v2952_v29  ;;  %v2499_v59 = vadd.f32 %v2275_v58, %v6117_v49  ;;  %v4358_v49 = vmax.f32 %v4028_v40, %v4277_v20  ;;  %v3054_v24 = vld [vmem:[%s8662_s0 + $0x11d] sm:$0xff] }
 0x458   :  { %v4600_v44 = vmax.f32 %v4438_v26, %v4519_v47  ;;  %v2600_v26 = vld [vmem:[%s8662_s0 + $0x11c] sm:$0xff] }
 0x459   :  { %v3860_v33 = vadd.f32 %v3634_v50, %v3406_v2  ;;  %2322 = vmatmul.f32.gmra.mxu1 %v2597_v8  ;;  %2776 = vmatmul.f32.gmra.mxu2 %v2599_v22 }
 0x45a   :  { %v4681_v42 = vmax.f32 %v4357_v35, %v4600_v44  ;;  %v3637_v60 = vpop.f32.mrf.mxu0 }
 0x45b   :  { %v7334_v16 = vadd.f32 %v7071_v32, %v3860_v33  ;;  %3230 = vmatmul.f32.gmra.mxu3 %v3053_v36  ;;  %v3508_v36 = vld [vmem:[%s8662_s0 + $0x11e] sm:$0xff] }
 0x45c   :  { %4762 = vst [vmem:[%s8664_s3 + $0x40] sm:$0xff] %v4681_v42  ;;  %v2729_v25 = vpop.f32.mrf.mxu2  ;;  %v4278_v42 = vld [vmem:[#allocation2 + $0x51] sm:$0xff] }
 0x45d   :  { %v4032_v8 = vmax.f32 %v7334_v16, 0.0  ;;  %v2953_v50 = vadd.f32 %v2729_v25, %v2499_v59  ;;  %3684 = vmatmul.f32.gmra.mxu0 %v3507_v13 }
 0x45e   :  { %v4439_v5 = vld [vmem:[#allocation2 + $0x5a] sm:$0xff]  ;;  %v2278_v31 = vpop.f32.mrf.mxu1  ;;  %v3183_v29 = vpop.f32.mrf.mxu3 }
 0x45f   :  { %v4520_v11 = vld [vmem:[#allocation2 + $0x5b] sm:$0xff]  ;;  %4116 = vst [vmem:[#allocation2 + $0x68] sm:$0xff] %v4032_v8  ;;  %v3407_v58 = vadd.f32 %v3183_v29, %v2953_v50  ;;  %v2500_v7 = vadd.f32 %v2278_v31, %v6129_v48  ;;  %v2601_v50 = vld [vmem:[%s8662_s0 + $0x124] sm:$0xff]  ;;  %v4359_v48 = vmax.f32 %v4029_v34, %v4278_v42 }
 0x460   :  { %v4601_v47 = vmax.f32 %v4439_v5, %v4520_v11  ;;  %v3055_v31 = vld [vmem:[%s8662_s0 + $0x125] sm:$0xff] }
 0x461   :  { %v3861_v44 = vadd.f32 %v3637_v60, %v3407_v58  ;;  %2325 = vmatmul.f32.gmra.mxu1 %v2598_v56  ;;  %2779 = vmatmul.f32.gmra.mxu2 %v2600_v26  ;;  %v3509_v58 = vld [vmem:[%s8662_s0 + $0x126] sm:$0xff] }
 0x462   :  { %v4682_v35 = vmax.f32 %v4358_v49, %v4601_v47  ;;  %v3640_v2 = vpop.f32.mrf.mxu0 }
 0x463   :  { %v7355_v40 = vadd.f32 %v7071_v32, %v3861_v44  ;;  %3233 = vmatmul.f32.gmra.mxu3 %v3054_v24  ;;  %v4279_v24 = vld [vmem:[#allocation2 + $0x59] sm:$0xff] }
 0x464   :  { %4763 = vst [vmem:[%s8664_s3 + $0x48] sm:$0xff] %v4682_v35  ;;  %v2732_v33 = vpop.f32.mrf.mxu2 }
 0x465   :  { %v4033_v56 = vmax.f32 %v7355_v40, 0.0  ;;  %v2954_v60 = vadd.f32 %v2732_v33, %v2500_v7  ;;  %3687 = vmatmul.f32.gmra.mxu0 %v3508_v36  ;;  %v2602_v33 = vld [vmem:[%s8662_s0 + $0x12c] sm:$0xff] }
 0x466   :  { %v4440_v13 = vld [vmem:[#allocation2 + $0x62] sm:$0xff]  ;;  %v2281_v20 = vpop.f32.mrf.mxu1  ;;  %v3186_v25 = vpop.f32.mrf.mxu3 }
 0x467   :  { %v4521_v59 = vld [vmem:[#allocation2 + $0x63] sm:$0xff]  ;;  %4117 = vst [vmem:[#allocation2 + $0x70] sm:$0xff] %v4033_v56  ;;  %v3408_v11 = vadd.f32 %v3186_v25, %v2954_v60  ;;  %v2501_v14 = vadd.f32 %v2281_v20, %v6144_v6  ;;  %v4360_v6 = vmax.f32 %v4030_v54, %v4279_v24  ;;  %v2603_v24 = vld [vmem:[%s8662_s0 + $0x134] sm:$0xff] }
 0x468   :  { %v4602_v5 = vmax.f32 %v4440_v13, %v4521_v59  ;;  %v3056_v59 = vld [vmem:[%s8662_s0 + $0x12d] sm:$0xff] }
 0x469   :  { %v3862_v49 = vadd.f32 %v3640_v2, %v3408_v11  ;;  %2328 = vmatmul.f32.gmra.mxu1 %v2599_v22  ;;  %2782 = vmatmul.f32.gmra.mxu2 %v2601_v50  ;;  %v4280_v11 = vld [vmem:[#allocation2 + $0x61] sm:$0xff] }
 0x46a   :  { %v4683_v29 = vmax.f32 %v4359_v48, %v4602_v5  ;;  %v3643_v47 = vpop.f32.mrf.mxu0  ;;  %v3510_v5 = vld [vmem:[%s8662_s0 + $0x12e] sm:$0xff] }
 0x46b   :  { %v7376_v34 = vadd.f32 %v7071_v32, %v3862_v49  ;;  %3236 = vmatmul.f32.gmra.mxu3 %v3055_v31 }
 0x46c   :  { %4764 = vst [vmem:[%s8664_s3 + $0x50] sm:$0xff] %v4683_v29  ;;  %v2735_v35 = vpop.f32.mrf.mxu2 }
 0x46d   :  { %v4034_v22 = vmax.f32 %v7376_v34, 0.0  ;;  %v2955_v44 = vadd.f32 %v2735_v35, %v2501_v14  ;;  %3690 = vmatmul.f32.gmra.mxu0 %v3509_v58 }
 0x46e   :  { %v4441_v2 = vld [vmem:[#allocation2 + $0x6a] sm:$0xff]  ;;  %v2284_v7 = vpop.f32.mrf.mxu1  ;;  %v3189_v42 = vpop.f32.mrf.mxu3 }
 0x46f   :  { %v4522_v36 = vld [vmem:[#allocation2 + $0x6b] sm:$0xff]  ;;  %4118 = vst [vmem:[#allocation2 + $0x78] sm:$0xff] %v4034_v22  ;;  %v3409_v13 = vadd.f32 %v3189_v42, %v2955_v44  ;;  %v2502_v21 = vadd.f32 %v2284_v7, %v6162_v61  ;;  %v4361_v61 = vmax.f32 %v4031_v18, %v4280_v11 }
 0x470   :  { %v4603_v60 = vmax.f32 %v4441_v2, %v4522_v36  ;;  %v3057_v2 = vld [vmem:[%s8662_s0 + $0x135] sm:$0xff] }
 0x471   :  { %v3863_v25 = vadd.f32 %v3643_v47, %v3409_v13  ;;  %2331 = vmatmul.f32.gmra.mxu1 %v2600_v26  ;;  %2785 = vmatmul.f32.gmra.mxu2 %v2602_v33 }
 0x472   :  { %v4684_v20 = vmax.f32 %v4360_v6, %v4603_v60  ;;  %v3646_v48 = vpop.f32.mrf.mxu0  ;;  %v3511_v6 = vld [vmem:[%s8662_s0 + $0x136] sm:$0xff]  ;;  %v4281_v60 = vld [vmem:[#allocation2 + $0x69] sm:$0xff] }
 0x473   :  { %v7397_v54 = vadd.f32 %v7071_v32, %v3863_v25  ;;  %3239 = vmatmul.f32.gmra.mxu3 %v3056_v59 }
 0x474   :  { %4765 = vst [vmem:[%s8664_s3 + $0x58] sm:$0xff] %v4684_v20  ;;  %v2738_v31 = vpop.f32.mrf.mxu2 }
 0x475   :  { %v4035_v26 = vmax.f32 %v7397_v54, 0.0  ;;  %v2956_v29 = vadd.f32 %v2738_v31, %v2502_v21  ;;  %3693 = vmatmul.f32.gmra.mxu0 %v3510_v5  ;;  %v2604_v21 = vld [vmem:[%s8662_s0 + $0x13c] sm:$0xff] }
 0x476   :  { %v4442_v49 = vld [vmem:[#allocation2 + $0x72] sm:$0xff]  ;;  %v2287_v58 = vpop.f32.mrf.mxu1  ;;  %v3192_v14 = vpop.f32.mrf.mxu3 }
 0x477   :  { %v4523_v47 = vld [vmem:[#allocation2 + $0x73] sm:$0xff]  ;;  %4119 = vst [vmem:[#allocation2 + $0x80] sm:$0xff] %v4035_v26  ;;  %v3410_v44 = vadd.f32 %v3192_v14, %v2956_v29  ;;  %v2503_v23 = vadd.f32 %v2287_v58, %v6177_v62  ;;  %v4362_v62 = vmax.f32 %v4032_v8, %v4281_v60  ;;  %v3058_v29 = vld [vmem:[%s8662_s0 + $0x13d] sm:$0xff] }
 0x478   :  { %v4604_v35 = vmax.f32 %v4442_v49, %v4523_v47  ;;  %v3512_v14 = vld [vmem:[%s8662_s0 + $0x13e] sm:$0xff] }
 0x479   :  { %v3864_v7 = vadd.f32 %v3646_v48, %v3410_v44  ;;  %2334 = vmatmul.f32.gmra.mxu1 %v2601_v50  ;;  %2788 = vmatmul.f32.gmra.mxu2 %v2603_v24 }
 0x47a   :  { %v4685_v36 = vmax.f32 %v4361_v61, %v4604_v35  ;;  %v3649_v42 = vpop.f32.mrf.mxu0  ;;  %v4282_v61 = vld [vmem:[#allocation2 + $0x71] sm:$0xff] }
 0x47b   :  { %v7418_v18 = vadd.f32 %v7071_v32, %v3864_v7  ;;  %3242 = vmatmul.f32.gmra.mxu3 %v3057_v2 }
 0x47c   :  { %4766 = vst [vmem:[%s8664_s3 + $0x60] sm:$0xff] %v4685_v36  ;;  %v2741_v13 = vpop.f32.mrf.mxu2 }
 0x47d   :  { %v4036_v50 = vmax.f32 %v7418_v18, 0.0  ;;  %v2957_v59 = vadd.f32 %v2741_v13, %v2503_v23  ;;  %3696 = vmatmul.f32.gmra.mxu0 %v3511_v6  ;;  %v2605_v6 = vld [vmem:[%s8662_s0 + $0x144] sm:$0xff] }
 0x47e   :  { %v4443_v20 = vld [vmem:[#allocation2 + $0x7a] sm:$0xff]  ;;  %v2290_v48 = vpop.f32.mrf.mxu1  ;;  %v3195_v5 = vpop.f32.mrf.mxu3  ;;  %v3059_v13 = vld [vmem:[%s8662_s0 + $0x145] sm:$0xff] }
 0x47f   :  { %v4524_v25 = vld [vmem:[#allocation2 + $0x7b] sm:$0xff]  ;;  %4120 = vst [vmem:[#allocation2 + $0x88] sm:$0xff] %v4036_v50  ;;  %v3411_v31 = vadd.f32 %v3195_v5, %v2957_v59  ;;  %v2504_v16 = vadd.f32 %v2290_v48, %v6189_v9  ;;  %v4363_v9 = vmax.f32 %v4033_v56, %v4282_v61  ;;  %v3513_v48 = vld [vmem:[%s8662_s0 + $0x146] sm:$0xff] }
 0x480   :  { %v4605_v11 = vmax.f32 %v4443_v20, %v4524_v25  ;;  %v4283_v5 = vld [vmem:[#allocation2 + $0x79] sm:$0xff]  ;;  %v3060_v61 = vld [vmem:[%s8662_s0 + $0x14d] sm:$0xff] }
 0x481   :  { %v3865_v47 = vadd.f32 %v3649_v42, %v3411_v31  ;;  %2337 = vmatmul.f32.gmra.mxu1 %v2602_v33  ;;  %2791 = vmatmul.f32.gmra.mxu2 %v2604_v21 }
 0x482   :  { %v4686_v49 = vmax.f32 %v4362_v62, %v4605_v11  ;;  %v3652_v58 = vpop.f32.mrf.mxu0 }
 0x483   :  { %v7439_v8 = vadd.f32 %v7071_v32, %v3865_v47  ;;  %3245 = vmatmul.f32.gmra.mxu3 %v3058_v29 }
 0x484   :  { %4767 = vst [vmem:[%s8664_s3 + $0x68] sm:$0xff] %v4686_v49  ;;  %v2744_v35 = vpop.f32.mrf.mxu2 }
 0x485   :  { %v4037_v33 = vmax.f32 %v7439_v8, 0.0  ;;  %v2958_v44 = vadd.f32 %v2744_v35, %v2504_v16  ;;  %3699 = vmatmul.f32.gmra.mxu0 %v3512_v14 }
 0x486   :  { %v4444_v2 = vld [vmem:[#allocation2 + $0x82] sm:$0xff]  ;;  %v2293_v7 = vpop.f32.mrf.mxu1  ;;  %v3198_v42 = vpop.f32.mrf.mxu3 }
 0x487   :  { %v4525_v36 = vld [vmem:[#allocation2 + $0x83] sm:$0xff]  ;;  %4121 = vst [vmem:[#allocation2 + $0x90] sm:$0xff] %v4037_v33  ;;  %v3412_v60 = vadd.f32 %v3198_v42, %v2958_v44  ;;  %v2505_v40 = vadd.f32 %v2293_v7, %v6201_v37  ;;  %v4364_v37 = vmax.f32 %v4034_v22, %v4283_v5 }
 0x488   :  { %v4606_v23 = vmax.f32 %v4444_v2, %v4525_v36  ;;  %v3514_v36 = vld [vmem:[%s8662_s0 + $0x14e] sm:$0xff]  ;;  %v4284_v7 = vld [vmem:[#allocation2 + $0x81] sm:$0xff] }
 0x489   :  { %v3866_v20 = vadd.f32 %v3652_v58, %v3412_v60  ;;  %2340 = vmatmul.f32.gmra.mxu1 %v2603_v24  ;;  %2794 = vmatmul.f32.gmra.mxu2 %v2605_v6  ;;  %v2606_v58 = vld [vmem:[%s8662_s0 + $0x14c] sm:$0xff] }
 0x48a   :  { %v4687_v59 = vmax.f32 %v4363_v9, %v4606_v23  ;;  %v3655_v25 = vpop.f32.mrf.mxu0 }
 0x48b   :  { %v7460_v56 = vadd.f32 %v7071_v32, %v3866_v20  ;;  %3248 = vmatmul.f32.gmra.mxu3 %v3059_v13  ;;  %v2607_v20 = vld [vmem:[%s8662_s0 + $0x154] sm:$0xff] }
 0x48c   :  { %4768 = vst [vmem:[%s8664_s3 + $0x70] sm:$0xff] %v4687_v59  ;;  %v2747_v62 = vpop.f32.mrf.mxu2 }
 0x48d   :  { %v4038_v24 = vmax.f32 %v7460_v56, 0.0  ;;  %v2959_v11 = vadd.f32 %v2747_v62, %v2505_v40  ;;  %3702 = vmatmul.f32.gmra.mxu0 %v3513_v48  ;;  %v3061_v40 = vld [vmem:[%s8662_s0 + $0x155] sm:$0xff] }
 0x48e   :  { %v4445_v31 = vld [vmem:[#allocation2 + $0x8a] sm:$0xff]  ;;  %v2296_v49 = vpop.f32.mrf.mxu1  ;;  %v3201_v47 = vpop.f32.mrf.mxu3 }
 0x48f   :  { %v4526_v29 = vld [vmem:[#allocation2 + $0x8b] sm:$0xff]  ;;  %4122 = vst [vmem:[#allocation2 + $0x98] sm:$0xff] %v4038_v24  ;;  %v3413_v16 = vadd.f32 %v3201_v47, %v2959_v11  ;;  %v2506_v34 = vadd.f32 %v2296_v49, %v6213_v52  ;;  %v4365_v52 = vmax.f32 %v4035_v26, %v4284_v7 }
 0x490   :  { %v4607_v14 = vmax.f32 %v4445_v31, %v4526_v29  ;;  %v3515_v31 = vld [vmem:[%s8662_s0 + $0x156] sm:$0xff]  ;;  %v4285_v29 = vld [vmem:[#allocation2 + $0x89] sm:$0xff] }
 0x491   :  { %v3867_v44 = vadd.f32 %v3655_v25, %v3413_v16  ;;  %2343 = vmatmul.f32.gmra.mxu1 %v2604_v21  ;;  %2797 = vmatmul.f32.gmra.mxu2 %v2606_v58 }
 0x492   :  { %v4688_v35 = vmax.f32 %v4364_v37, %v4607_v14  ;;  %v3658_v2 = vpop.f32.mrf.mxu0 }
 0x493   :  { %v7481_v22 = vadd.f32 %v7071_v32, %v3867_v44  ;;  %3251 = vmatmul.f32.gmra.mxu3 %v3060_v61 }
 0x494   :  { %4769 = vst [vmem:[%s8664_s3 + $0x78] sm:$0xff] %v4688_v35  ;;  %v2750_v42 = vpop.f32.mrf.mxu2  ;;  %v2608_v35 = vld [vmem:[%s8662_s0 + $0x15c] sm:$0xff] }
 0x495   :  { %v4039_v21 = vmax.f32 %v7481_v22, 0.0  ;;  %v2960_v9 = vadd.f32 %v2750_v42, %v2506_v34  ;;  %3705 = vmatmul.f32.gmra.mxu0 %v3514_v36  ;;  %v3516_v42 = vld [vmem:[%s8662_s0 + $0x15e] sm:$0xff] }
 0x496   :  { %v4446_v23 = vld [vmem:[#allocation2 + $0x92] sm:$0xff]  ;;  %v2299_v13 = vpop.f32.mrf.mxu1  ;;  %v3204_v59 = vpop.f32.mrf.mxu3 }
 0x497   :  { %v4527_v60 = vld [vmem:[#allocation2 + $0x93] sm:$0xff]  ;;  %4123 = vst [vmem:[#allocation2 + $0xa0] sm:$0xff] %v4039_v21  ;;  %v3414_v48 = vadd.f32 %v3204_v59, %v2960_v9  ;;  %v2507_v54 = vadd.f32 %v2299_v13, %v6234_v46  ;;  %v4366_v46 = vmax.f32 %v4036_v50, %v4285_v29  ;;  %v7525_v50 = vld [vmem:[%s8663_s2] ss:$0 sm:$0xff] }
 0x498   :  { %v4608_v25 = vmax.f32 %v4446_v23, %v4527_v60 }
 0x499   :  { %v3868_v62 = vadd.f32 %v3658_v2, %v3414_v48  ;;  %2346 = vmatmul.f32.gmra.mxu1 %v2605_v6  ;;  %2800 = vmatmul.f32.gmra.mxu2 %v2607_v20  ;;  %v3062_v2 = vld [vmem:[%s8662_s0 + $0x15d] sm:$0xff] }
 0x49a   :  { %v4689_v5 = vmax.f32 %v4365_v52, %v4608_v25  ;;  %v3661_v11 = vpop.f32.mrf.mxu0 }
 0x49b   :  { %v7502_v26 = vadd.f32 %v7071_v32, %v3868_v62  ;;  %3254 = vmatmul.f32.gmra.mxu3 %v3061_v40 }
 0x49c   :  { %4770 = vst [vmem:[%s8664_s3 + $0x80] sm:$0xff] %v4689_v5  ;;  %v2753_v49 = vpop.f32.mrf.mxu2 }
 0x49d   :  { %v4040_v6 = vmax.f32 %v7502_v26, 0.0  ;;  %v2961_v47 = vadd.f32 %v2753_v49, %v2507_v54  ;;  %3708 = vmatmul.f32.gmra.mxu0 %v3515_v31  ;;  %v3517_v49 = vld [vmem:[%s8662_s0 + $0x166] sm:$0xff] }
 0x49e   :  { %v4447_v37 = vld [vmem:[#allocation2 + $0x9a] sm:$0xff]  ;;  %v2302_v16 = vpop.f32.mrf.mxu1  ;;  %v3207_v61 = vpop.f32.mrf.mxu3 }
 0x49f   :  { %v4528_v14 = vld [vmem:[#allocation2 + $0x9b] sm:$0xff]  ;;  %4124 = vst [vmem:[#allocation2 + $0xa8] sm:$0xff] %v4040_v6  ;;  %v3415_v44 = vadd.f32 %v3207_v61, %v2961_v47  ;;  %v2508_v18 = vadd.f32 %v2302_v16, %v6249_v63  ;;  %v2609_v63 = vld [vmem:[%s8662_s0 + $0x164] sm:$0xff] }
 0x4a0   :  { %v4609_v32 = vmax.f32 %v4447_v37, %v4528_v14  ;;  %v4287_v47 = vld [vmem:[#allocation2 + $0x99] sm:$0xff] }
 0x4a1   :  { %v3869_v34 = vadd.f32 %v3661_v11, %v3415_v44  ;;  %2349 = vmatmul.f32.gmra.mxu1 %v2606_v58  ;;  %2803 = vmatmul.f32.gmra.mxu2 %v2608_v35  ;;  %v4286_v58 = vld [vmem:[#allocation2 + $0x91] sm:$0xff]  ;;  %v3063_v11 = vld [vmem:[%s8662_s0 + $0x165] sm:$0xff] }
 0x4a2   :  { %v4690_v36 = vmax.f32 %v4366_v46, %v4609_v32  ;;  %v3664_v7 = vpop.f32.mrf.mxu0  ;;  %v4367_v40 = vmax.f32 %v4037_v33, %v4286_v58  ;;  %v2610_v44 = vld [vmem:[%s8662_s0 + $0x16c] sm:$0xff] }
 0x4a3   :  { %v7528_v9 = vadd.f32 %v7525_v50, %v3869_v34  ;;  %3257 = vmatmul.f32.gmra.mxu3 %v3062_v2  ;;  %v3064_v34 = vld [vmem:[%s8662_s0 + $0x16d] sm:$0xff] }
 0x4a4   :  { %4771 = vst [vmem:[%s8664_s3 + $0x88] sm:$0xff] %v4690_v36  ;;  %v2756_v23 = vpop.f32.mrf.mxu2  ;;  %v3518_v58 = vld [vmem:[%s8662_s0 + $0x16e] sm:$0xff] }
 0x4a5   :  { %v4041_v60 = vmax.f32 %v7528_v9, 0.0  ;;  %v2962_v13 = vadd.f32 %v2756_v23, %v2508_v18  ;;  %3711 = vmatmul.f32.gmra.mxu0 %v3516_v42 }
 0x4a6   :  { %v4448_v59 = vld [vmem:[#allocation2 + $0xa2] sm:$0xff]  ;;  %v2305_v25 = vpop.f32.mrf.mxu1  ;;  %v3210_v48 = vpop.f32.mrf.mxu3 }
 0x4a7   :  { %v4529_v52 = vld [vmem:[#allocation2 + $0xa3] sm:$0xff]  ;;  %4125 = vst [vmem:[#allocation2 + $0xb0] sm:$0xff] %v4041_v60  ;;  %v3416_v62 = vadd.f32 %v3210_v48, %v2962_v13  ;;  %v2509_v8 = vadd.f32 %v2305_v25, %v6261_v15  ;;  %v4368_v15 = vmax.f32 %v4038_v24, %v4287_v47 }
 0x4a8   :  { %v4610_v5 = vmax.f32 %v4448_v59, %v4529_v52  ;;  %v4288_v23 = vld [vmem:[#allocation2 + $0xa1] sm:$0xff] }
 0x4a9   :  { %v3870_v54 = vadd.f32 %v3664_v7, %v3416_v62  ;;  %2352 = vmatmul.f32.gmra.mxu1 %v2607_v20  ;;  %2806 = vmatmul.f32.gmra.mxu2 %v2609_v63 }
 0x4aa   :  { %v4691_v31 = vmax.f32 %v4367_v40, %v4610_v5  ;;  %v3667_v29 = vpop.f32.mrf.mxu0  ;;  %v2611_v5 = vld [vmem:[%s8662_s0 + $0x174] sm:$0xff] }
 0x4ab   :  { %v7549_v33 = vadd.f32 %v7525_v50, %v3870_v54  ;;  %3260 = vmatmul.f32.gmra.mxu3 %v3063_v11 }
 0x4ac   :  { %4772 = vst [vmem:[%s8664_s3 + $0x90] sm:$0xff] %v4691_v31  ;;  %v2759_v37 = vpop.f32.mrf.mxu2  ;;  %v3065_v31 = vld [vmem:[%s8662_s0 + $0x175] sm:$0xff] }
 0x4ad   :  { %v4042_v20 = vmax.f32 %v7549_v33, 0.0  ;;  %v2963_v14 = vadd.f32 %v2759_v37, %v2509_v8  ;;  %3714 = vmatmul.f32.gmra.mxu0 %v3517_v49  ;;  %v3519_v8 = vld [vmem:[%s8662_s0 + $0x176] sm:$0xff] }
 0x4ae   :  { %v4449_v16 = vld [vmem:[#allocation2 + $0xaa] sm:$0xff]  ;;  %v2308_v46 = vpop.f32.mrf.mxu1  ;;  %v3213_v32 = vpop.f32.mrf.mxu3 }
 0x4af   :  { %v4530_v61 = vld [vmem:[#allocation2 + $0xab] sm:$0xff]  ;;  %4126 = vst [vmem:[#allocation2 + $0xb8] sm:$0xff] %v4042_v20  ;;  %v3417_v36 = vadd.f32 %v3213_v32, %v2963_v14  ;;  %v2510_v56 = vadd.f32 %v2308_v46, %v6273_v12  ;;  %v4369_v12 = vmax.f32 %v4039_v21, %v4288_v23 }
 0x4b0   :  { %v4611_v2 = vmax.f32 %v4449_v16, %v4530_v61  ;;  %v4289_v47 = vld [vmem:[#allocation2 + $0xa9] sm:$0xff] }
 0x4b1   :  { %v3871_v42 = vadd.f32 %v3667_v29, %v3417_v36  ;;  %2355 = vmatmul.f32.gmra.mxu1 %v2608_v35  ;;  %2809 = vmatmul.f32.gmra.mxu2 %v2610_v44 }
 0x4b2   :  { %v4692_v7 = vmax.f32 %v4368_v15, %v4611_v2  ;;  %v3670_v18 = vpop.f32.mrf.mxu0  ;;  %v2612_v15 = vld [vmem:[%s8662_s0 + $0x17c] sm:$0xff] }
 0x4b3   :  { %v7570_v24 = vadd.f32 %v7525_v50, %v3871_v42  ;;  %3263 = vmatmul.f32.gmra.mxu3 %v3064_v34  ;;  %v3066_v34 = vld [vmem:[%s8662_s0 + $0x17d] sm:$0xff] }
 0x4b4   :  { %4773 = vst [vmem:[%s8664_s3 + $0x98] sm:$0xff] %v4692_v7  ;;  %v2762_v13 = vpop.f32.mrf.mxu2 }
 0x4b5   :  { %v4043_v35 = vmax.f32 %v7570_v24, 0.0  ;;  %v2964_v59 = vadd.f32 %v2762_v13, %v2510_v56  ;;  %3717 = vmatmul.f32.gmra.mxu0 %v3518_v58  ;;  %v3520_v58 = vld [vmem:[%s8662_s0 + $0x17e] sm:$0xff] }
 0x4b6   :  { %v4450_v52 = vld [vmem:[#allocation2 + $0xb2] sm:$0xff]  ;;  %v2311_v48 = vpop.f32.mrf.mxu1  ;;  %v3216_v40 = vpop.f32.mrf.mxu3 }
 0x4b7   :  { %v4531_v25 = vld [vmem:[#allocation2 + $0xb3] sm:$0xff]  ;;  %4127 = vst [vmem:[#allocation2 + $0xc0] sm:$0xff] %v4043_v35  ;;  %v3418_v11 = vadd.f32 %v3216_v40, %v2964_v59  ;;  %v2511_v22 = vadd.f32 %v2311_v48, %v6285_v28  ;;  %v4370_v28 = vmax.f32 %v4040_v6, %v4289_v47  ;;  %v2613_v40 = vld [vmem:[%s8662_s0 + $0x184] sm:$0xff] }
 0x4b8   :  { %v4612_v62 = vmax.f32 %v4450_v52, %v4531_v25  ;;  %v4290_v56 = vld [vmem:[#allocation2 + $0xb1] sm:$0xff] }
 0x4b9   :  { %v3872_v29 = vadd.f32 %v3670_v18, %v3418_v11  ;;  %2358 = vmatmul.f32.gmra.mxu1 %v2609_v63  ;;  %2812 = vmatmul.f32.gmra.mxu2 %v2611_v5  ;;  %v3067_v11 = vld [vmem:[%s8662_s0 + $0x185] sm:$0xff] }
 0x4ba   :  { %v4693_v54 = vmax.f32 %v4369_v12, %v4612_v62  ;;  %v3673_v49 = vpop.f32.mrf.mxu0 }
 0x4bb   :  { %v7591_v21 = vadd.f32 %v7525_v50, %v3872_v29  ;;  %3266 = vmatmul.f32.gmra.mxu3 %v3065_v31 }
 0x4bc   :  { %4774 = vst [vmem:[%s8664_s3 + $0xa0] sm:$0xff] %v4693_v54  ;;  %v2765_v37 = vpop.f32.mrf.mxu2 }
 0x4bd   :  { %v4044_v63 = vmax.f32 %v7591_v21, 0.0  ;;  %v2965_v14 = vadd.f32 %v2765_v37, %v2511_v22  ;;  %3720 = vmatmul.f32.gmra.mxu0 %v3519_v8 }
 0x4be   :  { %v4451_v16 = vld [vmem:[#allocation2 + $0xba] sm:$0xff]  ;;  %v2314_v46 = vpop.f32.mrf.mxu1  ;;  %v3219_v32 = vpop.f32.mrf.mxu3 }
 0x4bf   :  { %v4532_v61 = vld [vmem:[#allocation2 + $0xbb] sm:$0xff]  ;;  %4128 = vst [vmem:[#allocation2 + $0xc8] sm:$0xff] %v4044_v63  ;;  %v3419_v36 = vadd.f32 %v3219_v32, %v2965_v14  ;;  %v2512_v26 = vadd.f32 %v2314_v46, %v6306_v19  ;;  %v4371_v19 = vmax.f32 %v4041_v60, %v4290_v56  ;;  %v2614_v46 = vld [vmem:[%s8662_s0 + $0x18c] sm:$0xff] }
 0x4c0   :  { %v4613_v2 = vmax.f32 %v4451_v16, %v4532_v61  ;;  %v4291_v8 = vld [vmem:[#allocation2 + $0xb9] sm:$0xff] }
 0x4c1   :  { %v3873_v42 = vadd.f32 %v3673_v49, %v3419_v36  ;;  %2361 = vmatmul.f32.gmra.mxu1 %v2610_v44  ;;  %2815 = vmatmul.f32.gmra.mxu2 %v2612_v15  ;;  %v3521_v49 = vld [vmem:[%s8662_s0 + $0x186] sm:$0xff] }
 0x4c2   :  { %v4694_v7 = vmax.f32 %v4370_v28, %v4613_v2  ;;  %v3676_v18 = vpop.f32.mrf.mxu0  ;;  %v3068_v2 = vld [vmem:[%s8662_s0 + $0x18d] sm:$0xff] }
 0x4c3   :  { %v7612_v6 = vadd.f32 %v7525_v50, %v3873_v42  ;;  %3269 = vmatmul.f32.gmra.mxu3 %v3066_v34  ;;  %v3522_v42 = vld [vmem:[%s8662_s0 + $0x18e] sm:$0xff] }
 0x4c4   :  { %4775 = vst [vmem:[%s8664_s3 + $0xa8] sm:$0xff] %v4694_v7  ;;  %v2768_v23 = vpop.f32.mrf.mxu2 }
 0x4c5   :  { %v4045_v44 = vmax.f32 %v7612_v6, 0.0  ;;  %v2966_v13 = vadd.f32 %v2768_v23, %v2512_v26  ;;  %3723 = vmatmul.f32.gmra.mxu0 %v3520_v58 }
 0x4c6   :  { %v4452_v59 = vld [vmem:[#allocation2 + $0xc2] sm:$0xff]  ;;  %v2317_v25 = vpop.f32.mrf.mxu1  ;;  %v3222_v48 = vpop.f32.mrf.mxu3 }
 0x4c7   :  { %v4533_v52 = vld [vmem:[#allocation2 + $0xc3] sm:$0xff]  ;;  %4129 = vst [vmem:[#allocation2 + $0xd0] sm:$0xff] %v4045_v44  ;;  %v3420_v62 = vadd.f32 %v3222_v48, %v2966_v13  ;;  %v2513_v9 = vadd.f32 %v2317_v25, %v6321_v51  ;;  %v4372_v51 = vmax.f32 %v4042_v20, %v4291_v8 }
 0x4c8   :  { %v4614_v12 = vmax.f32 %v4452_v59, %v4533_v52  ;;  %v2615_v52 = vld [vmem:[%s8662_s0 + $0x194] sm:$0xff] }
 0x4c9   :  { %v3874_v54 = vadd.f32 %v3676_v18, %v3420_v62  ;;  %2364 = vmatmul.f32.gmra.mxu1 %v2611_v5  ;;  %2818 = vmatmul.f32.gmra.mxu2 %v2613_v40  ;;  %v4292_v18 = vld [vmem:[#allocation2 + $0xc1] sm:$0xff] }
 0x4ca   :  { %v4695_v31 = vmax.f32 %v4371_v19, %v4614_v12  ;;  %v3679_v29 = vpop.f32.mrf.mxu0  ;;  %v3069_v19 = vld [vmem:[%s8662_s0 + $0x195] sm:$0xff] }
 0x4cb   :  { %v7633_v60 = vadd.f32 %v7525_v50, %v3874_v54  ;;  %3272 = vmatmul.f32.gmra.mxu3 %v3067_v11 }
 0x4cc   :  { %4776 = vst [vmem:[%s8664_s3 + $0xb0] sm:$0xff] %v4695_v31  ;;  %v2771_v22 = vpop.f32.mrf.mxu2  ;;  %v3523_v31 = vld [vmem:[%s8662_s0 + $0x196] sm:$0xff] }
 0x4cd   :  { %v4046_v5 = vmax.f32 %v7633_v60, 0.0  ;;  %v2967_v47 = vadd.f32 %v2771_v22, %v2513_v9  ;;  %3726 = vmatmul.f32.gmra.mxu0 %v3521_v49 }
 0x4ce   :  { %v4453_v37 = vld [vmem:[#allocation2 + $0xca] sm:$0xff]  ;;  %v2320_v16 = vpop.f32.mrf.mxu1  ;;  %v3225_v61 = vpop.f32.mrf.mxu3 }
 0x4cf   :  { %v4534_v14 = vld [vmem:[#allocation2 + $0xcb] sm:$0xff]  ;;  %4130 = vst [vmem:[#allocation2 + $0xd8] sm:$0xff] %v4046_v5  ;;  %v3421_v28 = vadd.f32 %v3225_v61, %v2967_v47  ;;  %v2514_v33 = vadd.f32 %v2320_v16, %v6333_v39  ;;  %v4373_v39 = vmax.f32 %v4043_v35, %v4292_v18  ;;  %v3070_v61 = vld [vmem:[%s8662_s0 + $0x19d] sm:$0xff] }
 0x4d0   :  { %v4615_v32 = vmax.f32 %v4453_v37, %v4534_v14  ;;  %v4293_v54 = vld [vmem:[#allocation2 + $0xc9] sm:$0xff]  ;;  %v2616_v37 = vld [vmem:[%s8662_s0 + $0x19c] sm:$0xff] }
 0x4d1   :  { %v3875_v34 = vadd.f32 %v3679_v29, %v3421_v28  ;;  %2367 = vmatmul.f32.gmra.mxu1 %v2612_v15  ;;  %2821 = vmatmul.f32.gmra.mxu2 %v2614_v46 }
 0x4d2   :  { %v4696_v36 = vmax.f32 %v4372_v51, %v4615_v32  ;;  %v3682_v7 = vpop.f32.mrf.mxu0 }
 0x4d3   :  { %v7654_v20 = vadd.f32 %v7525_v50, %v3875_v34  ;;  %3275 = vmatmul.f32.gmra.mxu3 %v3068_v2  ;;  %v3524_v2 = vld [vmem:[%s8662_s0 + $0x19e] sm:$0xff] }
 0x4d4   :  { %4777 = vst [vmem:[%s8664_s3 + $0xb8] sm:$0xff] %v4696_v36  ;;  %v2774_v58 = vpop.f32.mrf.mxu2 }
 0x4d5   :  { %v4047_v15 = vmax.f32 %v7654_v20, 0.0  ;;  %v2968_v26 = vadd.f32 %v2774_v58, %v2514_v33  ;;  %3729 = vmatmul.f32.gmra.mxu0 %v3522_v42 }
 0x4d6   :  { %v4454_v56 = vld [vmem:[#allocation2 + $0xd2] sm:$0xff]  ;;  %v2323_v13 = vpop.f32.mrf.mxu1  ;;  %v3228_v59 = vpop.f32.mrf.mxu3 }
 0x4d7   :  { %v4535_v23 = vld [vmem:[#allocation2 + $0xd3] sm:$0xff]  ;;  %4131 = vst [vmem:[#allocation2 + $0xe0] sm:$0xff] %v4047_v15  ;;  %v3422_v48 = vadd.f32 %v3228_v59, %v2968_v26  ;;  %v2515_v24 = vadd.f32 %v2323_v13, %v6345_v41  ;;  %v4374_v41 = vmax.f32 %v4044_v63, %v4293_v54  ;;  %v2617_v26 = vld [vmem:[%s8662_s0 + $0x1a4] sm:$0xff] }
 0x4d8   :  { %v4616_v25 = vmax.f32 %v4454_v56, %v4535_v23  ;;  %v4294_v36 = vld [vmem:[#allocation2 + $0xd1] sm:$0xff]  ;;  %v3071_v13 = vld [vmem:[%s8662_s0 + $0x1a5] sm:$0xff] }
 0x4d9   :  { %v3876_v62 = vadd.f32 %v3682_v7, %v3422_v48  ;;  %2370 = vmatmul.f32.gmra.mxu1 %v2613_v40  ;;  %2824 = vmatmul.f32.gmra.mxu2 %v2615_v52  ;;  %v3525_v48 = vld [vmem:[%s8662_s0 + $0x1a6] sm:$0xff] }
 0x4da   :  { %v4697_v12 = vmax.f32 %v4373_v39, %v4616_v25  ;;  %v3685_v11 = vpop.f32.mrf.mxu0 }
 0x4db   :  { %v7675_v35 = vadd.f32 %v7525_v50, %v3876_v62  ;;  %3278 = vmatmul.f32.gmra.mxu3 %v3069_v19 }
 0x4dc   :  { %4778 = vst [vmem:[%s8664_s3 + $0xc0] sm:$0xff] %v4697_v12  ;;  %v2777_v29 = vpop.f32.mrf.mxu2 }
 0x4dd   :  { %v4048_v40 = vmax.f32 %v7675_v35, 0.0  ;;  %v2969_v49 = vadd.f32 %v2777_v29, %v2515_v24  ;;  %3732 = vmatmul.f32.gmra.mxu0 %v3523_v31  ;;  %v2618_v29 = vld [vmem:[%s8662_s0 + $0x1ac] sm:$0xff] }
 0x4de   :  { %v4455_v9 = vld [vmem:[#allocation2 + $0xda] sm:$0xff]  ;;  %v2326_v22 = vpop.f32.mrf.mxu1  ;;  %v3231_v47 = vpop.f32.mrf.mxu3 }
 0x4df   :  { %v4536_v8 = vld [vmem:[#allocation2 + $0xdb] sm:$0xff]  ;;  %4132 = vst [vmem:[#allocation2 + $0xe8] sm:$0xff] %v4048_v40  ;;  %v3423_v16 = vadd.f32 %v3231_v47, %v2969_v49  ;;  %v2516_v21 = vadd.f32 %v2326_v22, %v6357_v3  ;;  %v4375_v3 = vmax.f32 %v4045_v44, %v4294_v36 }
 0x4e0   :  { %v4617_v14 = vmax.f32 %v4455_v9, %v4536_v8  ;;  %v4295_v19 = vld [vmem:[#allocation2 + $0xd9] sm:$0xff]  ;;  %v3072_v8 = vld [vmem:[%s8662_s0 + $0x1ad] sm:$0xff] }
 0x4e1   :  { %v3877_v32 = vadd.f32 %v3685_v11, %v3423_v16  ;;  %2373 = vmatmul.f32.gmra.mxu1 %v2614_v46  ;;  %2827 = vmatmul.f32.gmra.mxu2 %v2616_v37  ;;  %v2619_v36 = vld [vmem:[%s8662_s0 + $0x1b4] sm:$0xff] }
 0x4e2   :  { %v4698_v51 = vmax.f32 %v4374_v41, %v4617_v14  ;;  %v3688_v28 = vpop.f32.mrf.mxu0  ;;  %v3526_v14 = vld [vmem:[%s8662_s0 + $0x1ae] sm:$0xff] }
 0x4e3   :  { %v7696_v63 = vadd.f32 %v7525_v50, %v3877_v32  ;;  %3281 = vmatmul.f32.gmra.mxu3 %v3070_v61 }
 0x4e4   :  { %4779 = vst [vmem:[%s8664_s3 + $0xc8] sm:$0xff] %v4698_v51  ;;  %v2780_v34 = vpop.f32.mrf.mxu2 }
 0x4e5   :  { %v4049_v46 = vmax.f32 %v7696_v63, 0.0  ;;  %v2970_v7 = vadd.f32 %v2780_v34, %v2516_v21  ;;  %3735 = vmatmul.f32.gmra.mxu0 %v3524_v2 }
 0x4e6   :  { %v4456_v42 = vld [vmem:[#allocation2 + $0xe2] sm:$0xff]  ;;  %v2329_v18 = vpop.f32.mrf.mxu1  ;;  %v3234_v58 = vpop.f32.mrf.mxu3 }
 0x4e7   :  { %v4537_v33 = vld [vmem:[#allocation2 + $0xe3] sm:$0xff]  ;;  %4133 = vst [vmem:[#allocation2 + $0xf0] sm:$0xff] %v4049_v46  ;;  %v3424_v23 = vadd.f32 %v3234_v58, %v2970_v7  ;;  %v2517_v6 = vadd.f32 %v2329_v18, %v6375_v27  ;;  %v4376_v27 = vmax.f32 %v4046_v5, %v4295_v19 }
 0x4e8   :  { %v4618_v56 = vmax.f32 %v4456_v42, %v4537_v33  ;;  %v4296_v16 = vld [vmem:[#allocation2 + $0xe1] sm:$0xff]  ;;  %v3073_v42 = vld [vmem:[%s8662_s0 + $0x1b5] sm:$0xff] }
 0x4e9   :  { %v3878_v39 = vadd.f32 %v3688_v28, %v3424_v23  ;;  %2376 = vmatmul.f32.gmra.mxu1 %v2615_v52  ;;  %2830 = vmatmul.f32.gmra.mxu2 %v2617_v26 }
 0x4ea   :  { %v4699_v59 = vmax.f32 %v4375_v3, %v4618_v56  ;;  %v3691_v25 = vpop.f32.mrf.mxu0  ;;  %v3527_v3 = vld [vmem:[%s8662_s0 + $0x1b6] sm:$0xff] }
 0x4eb   :  { %v7717_v44 = vadd.f32 %v7525_v50, %v3878_v39  ;;  %3284 = vmatmul.f32.gmra.mxu3 %v3071_v13 }
 0x4ec   :  { %4780 = vst [vmem:[%s8664_s3 + $0xd0] sm:$0xff] %v4699_v59  ;;  %v2783_v12 = vpop.f32.mrf.mxu2 }
 0x4ed   :  { %v4050_v52 = vmax.f32 %v7717_v44, 0.0  ;;  %v2971_v62 = vadd.f32 %v2783_v12, %v2517_v6  ;;  %3738 = vmatmul.f32.gmra.mxu0 %v3525_v48  ;;  %v2620_v6 = vld [vmem:[%s8662_s0 + $0x1bc] sm:$0xff] }
 0x4ee   :  { %v4457_v11 = vld [vmem:[#allocation2 + $0xea] sm:$0xff]  ;;  %v2332_v24 = vpop.f32.mrf.mxu1  ;;  %v3237_v54 = vpop.f32.mrf.mxu3 }
 0x4ef   :  { %v4538_v31 = vld [vmem:[#allocation2 + $0xeb] sm:$0xff]  ;;  %4134 = vst [vmem:[#allocation2 + $0xf8] sm:$0xff] %v4050_v52  ;;  %v3425_v9 = vadd.f32 %v3237_v54, %v2971_v62  ;;  %v2518_v60 = vadd.f32 %v2332_v24, %v6393_v17  ;;  %v4377_v17 = vmax.f32 %v4047_v15, %v4296_v16  ;;  %v3074_v62 = vld [vmem:[%s8662_s0 + $0x1bd] sm:$0xff] }
 0x4f0   :  { %v4619_v49 = vmax.f32 %v4457_v11, %v4538_v31  ;;  %v4297_v56 = vld [vmem:[#allocation2 + $0xe9] sm:$0xff]  ;;  %v3528_v54 = vld [vmem:[%s8662_s0 + $0x1be] sm:$0xff] }
 0x4f1   :  { %v3879_v47 = vadd.f32 %v3691_v25, %v3425_v9  ;;  %2379 = vmatmul.f32.gmra.mxu1 %v2616_v37  ;;  %2833 = vmatmul.f32.gmra.mxu2 %v2618_v29 }
 0x4f2   :  { %v4700_v22 = vmax.f32 %v4376_v27, %v4619_v49  ;;  %v3694_v41 = vpop.f32.mrf.mxu0 }
 0x4f3   :  { %v7738_v5 = vadd.f32 %v7525_v50, %v3879_v47  ;;  %3287 = vmatmul.f32.gmra.mxu3 %v3072_v8 }
 0x4f4   :  { %4781 = vst [vmem:[%s8664_s3 + $0xd8] sm:$0xff] %v4700_v22  ;;  %v2786_v61 = vpop.f32.mrf.mxu2 }
 0x4f5   :  { %v4051_v37 = vmax.f32 %v7738_v5, 0.0  ;;  %v2972_v51 = vadd.f32 %v2786_v61, %v2518_v60  ;;  %3741 = vmatmul.f32.gmra.mxu0 %v3526_v14  ;;  %v2621_v14 = vld [vmem:[%s8662_s0 + $0x1c4] sm:$0xff] }
 0x4f6   :  { %v4458_v32 = vld [vmem:[#allocation2 + $0xf2] sm:$0xff]  ;;  %v2335_v2 = vpop.f32.mrf.mxu1  ;;  %v3240_v21 = vpop.f32.mrf.mxu3  ;;  %v3075_v61 = vld [vmem:[%s8662_s0 + $0x1c5] sm:$0xff] }
 0x4f7   :  { %v4539_v28 = vld [vmem:[#allocation2 + $0xf3] sm:$0xff]  ;;  %4135 = vst [vmem:[#allocation2 + $0x100] sm:$0xff] %v4051_v37  ;;  %v3426_v7 = vadd.f32 %v3240_v21, %v2972_v51  ;;  %v2519_v20 = vadd.f32 %v2335_v2, %v6405_v43  ;;  %v4378_v43 = vmax.f32 %v4048_v40, %v4297_v56  ;;  %v3529_v2 = vld [vmem:[%s8662_s0 + $0x1c6] sm:$0xff] }
 0x4f8   :  { %v4620_v34 = vmax.f32 %v4458_v32, %v4539_v28  ;;  %v4298_v27 = vld [vmem:[#allocation2 + $0xf1] sm:$0xff] }
 0x4f9   :  { %v3880_v18 = vadd.f32 %v3694_v41, %v3426_v7  ;;  %2382 = vmatmul.f32.gmra.mxu1 %v2617_v26  ;;  %2836 = vmatmul.f32.gmra.mxu2 %v2619_v36  ;;  %v3076_v56 = vld [vmem:[%s8662_s0 + $0x1cd] sm:$0xff] }
 0x4fa   :  { %v4701_v33 = vmax.f32 %v4377_v17, %v4620_v34  ;;  %v3697_v58 = vpop.f32.mrf.mxu0 }
 0x4fb   :  { %v7759_v15 = vadd.f32 %v7525_v50, %v3880_v18  ;;  %3290 = vmatmul.f32.gmra.mxu3 %v3073_v42 }
 0x4fc   :  { %4782 = vst [vmem:[%s8664_s3 + $0xe0] sm:$0xff] %v4701_v33  ;;  %v2789_v23 = vpop.f32.mrf.mxu2 }
 0x4fd   :  { %v4052_v26 = vmax.f32 %v7759_v15, 0.0  ;;  %v2973_v13 = vadd.f32 %v2789_v23, %v2519_v20  ;;  %3744 = vmatmul.f32.gmra.mxu0 %v3527_v3 }
 0x4fe   :  { %v4459_v59 = vld [vmem:[#allocation2 + $0xfa] sm:$0xff]  ;;  %v2338_v25 = vpop.f32.mrf.mxu1  ;;  %v3243_v48 = vpop.f32.mrf.mxu3 }
 0x4ff   :  { %v4540_v39 = vld [vmem:[#allocation2 + $0xfb] sm:$0xff]  ;;  %4136 = vst [vmem:[#allocation2 + $0x108] sm:$0xff] %v4052_v26  ;;  %v3427_v12 = vadd.f32 %v3243_v48, %v2973_v13  ;;  %v2520_v35 = vadd.f32 %v2338_v25, %v6417_v45  ;;  %v4379_v45 = vmax.f32 %v4049_v46, %v4298_v27 }
 0x500   :  { %v4621_v19 = vmax.f32 %v4459_v59, %v4540_v39  ;;  %v4299_v21 = vld [vmem:[#allocation2 + $0xf9] sm:$0xff]  ;;  %v3530_v39 = vld [vmem:[%s8662_s0 + $0x1ce] sm:$0xff] }
 0x501   :  { %v3881_v31 = vadd.f32 %v3697_v58, %v3427_v12  ;;  %2385 = vmatmul.f32.gmra.mxu1 %v2618_v29  ;;  %2839 = vmatmul.f32.gmra.mxu2 %v2620_v6  ;;  %v2622_v58 = vld [vmem:[%s8662_s0 + $0x1cc] sm:$0xff] }
 0x502   :  { %v4702_v11 = vmax.f32 %v4378_v43, %v4621_v19  ;;  %v3700_v24 = vpop.f32.mrf.mxu0 }
 0x503   :  { %v7780_v40 = vadd.f32 %v7525_v50, %v3881_v31  ;;  %3293 = vmatmul.f32.gmra.mxu3 %v3074_v62  ;;  %v2623_v31 = vld [vmem:[%s8662_s0 + $0x1d4] sm:$0xff] }
 0x504   :  { %4783 = vst [vmem:[%s8664_s3 + $0xe8] sm:$0xff] %v4702_v11  ;;  %v2792_v49 = vpop.f32.mrf.mxu2 }
 0x505   :  { %v4053_v29 = vmax.f32 %v7780_v40, 0.0  ;;  %v2974_v9 = vadd.f32 %v2792_v49, %v2520_v35  ;;  %3747 = vmatmul.f32.gmra.mxu0 %v3528_v54  ;;  %v3077_v35 = vld [vmem:[%s8662_s0 + $0x1d5] sm:$0xff] }
 0x506   :  { %v4460_v8 = vld [vmem:[#allocation2 + $0x102] sm:$0xff]  ;;  %v2341_v47 = vpop.f32.mrf.mxu1  ;;  %v3246_v41 = vpop.f32.mrf.mxu3 }
 0x507   :  { %v4541_v22 = vld [vmem:[#allocation2 + $0x103] sm:$0xff]  ;;  %4137 = vst [vmem:[#allocation2 + $0x110] sm:$0xff] %v4053_v29  ;;  %v3428_v16 = vadd.f32 %v3246_v41, %v2974_v9  ;;  %v2521_v63 = vadd.f32 %v2341_v47, %v6429_v30  ;;  %v4380_v30 = vmax.f32 %v4050_v52, %v4299_v21 }
 0x508   :  { %v4622_v60 = vmax.f32 %v4460_v8, %v4541_v22  ;;  %v4300_v25 = vld [vmem:[#allocation2 + $0x101] sm:$0xff]  ;;  %v3531_v8 = vld [vmem:[%s8662_s0 + $0x1d6] sm:$0xff] }
 0x509   :  { %v3882_v32 = vadd.f32 %v3700_v24, %v3428_v16  ;;  %2388 = vmatmul.f32.gmra.mxu1 %v2619_v36  ;;  %2842 = vmatmul.f32.gmra.mxu2 %v2621_v14 }
 0x50a   :  { %v4703_v51 = vmax.f32 %v4379_v45, %v4622_v60  ;;  %v3703_v28 = vpop.f32.mrf.mxu0 }
 0x50b   :  { %v7801_v46 = vadd.f32 %v7525_v50, %v3882_v32  ;;  %3296 = vmatmul.f32.gmra.mxu3 %v3075_v61 }
 0x50c   :  { %4784 = vst [vmem:[%s8664_s3 + $0xf0] sm:$0xff] %v4703_v51  ;;  %v2795_v17 = vpop.f32.mrf.mxu2  ;;  %v2624_v51 = vld [vmem:[%s8662_s0 + $0x1dc] sm:$0xff] }
 0x50d   :  { %v4054_v36 = vmax.f32 %v7801_v46, 0.0  ;;  %v2975_v34 = vadd.f32 %v2795_v17, %v2521_v63  ;;  %3750 = vmatmul.f32.gmra.mxu0 %v3529_v2  ;;  %v3078_v2 = vld [vmem:[%s8662_s0 + $0x1dd] sm:$0xff] }
 0x50e   :  { %v4461_v7 = vld [vmem:[#allocation2 + $0x10a] sm:$0xff]  ;;  %v2344_v33 = vpop.f32.mrf.mxu1  ;;  %v3249_v18 = vpop.f32.mrf.mxu3 }
 0x50f   :  { %v4542_v42 = vld [vmem:[#allocation2 + $0x10b] sm:$0xff]  ;;  %4138 = vst [vmem:[#allocation2 + $0x118] sm:$0xff] %v4054_v36  ;;  %v3429_v20 = vadd.f32 %v3249_v18, %v2975_v34  ;;  %v2522_v44 = vadd.f32 %v2344_v33, %v6444_v55  ;;  %v4381_v55 = vmax.f32 %v4051_v37, %v4300_v25  ;;  %v3532_v34 = vld [vmem:[%s8662_s0 + $0x1de] sm:$0xff] }
 0x510   :  { %v4623_v3 = vmax.f32 %v4461_v7, %v4542_v42  ;;  %v4301_v22 = vld [vmem:[#allocation2 + $0x109] sm:$0xff] }
 0x511   :  { %v3883_v13 = vadd.f32 %v3703_v28, %v3429_v20  ;;  %2391 = vmatmul.f32.gmra.mxu1 %v2620_v6  ;;  %2845 = vmatmul.f32.gmra.mxu2 %v2622_v58 }
 0x512   :  { %v4704_v23 = vmax.f32 %v4380_v30, %v4623_v3  ;;  %v3706_v59 = vpop.f32.mrf.mxu0 }
 0x513   :  { %v7822_v52 = vadd.f32 %v7525_v50, %v3883_v13  ;;  %3299 = vmatmul.f32.gmra.mxu3 %v3076_v56  ;;  %v2625_v56 = vld [vmem:[%s8662_s0 + $0x1e4] sm:$0xff] }
 0x514   :  { %4785 = vst [vmem:[%s8664_s3 + $0xf8] sm:$0xff] %v4704_v23  ;;  %v2798_v48 = vpop.f32.mrf.mxu2 }
 0x515   :  { %v4055_v6 = vmax.f32 %v7822_v52, 0.0  ;;  %v2976_v43 = vadd.f32 %v2798_v48, %v2522_v44  ;;  %3753 = vmatmul.f32.gmra.mxu0 %v3530_v39  ;;  %v3533_v48 = vld [vmem:[%s8662_s0 + $0x1e6] sm:$0xff] }
 0x516   :  { %v4462_v19 = vld [vmem:[#allocation2 + $0x112] sm:$0xff]  ;;  %v2347_v62 = vpop.f32.mrf.mxu1  ;;  %v3252_v11 = vpop.f32.mrf.mxu3 }
 0x517   :  { %v4543_v12 = vld [vmem:[#allocation2 + $0x113] sm:$0xff]  ;;  %4139 = vst [vmem:[#allocation2 + $0x120] sm:$0xff] %v4055_v6  ;;  %v3430_v54 = vadd.f32 %v3252_v11, %v2976_v43  ;;  %v2523_v5 = vadd.f32 %v2347_v62, %v6462_v53  ;;  %v4382_v53 = vmax.f32 %v4052_v26, %v4301_v22 }
 0x518   :  { %v4624_v24 = vmax.f32 %v4462_v19, %v4543_v12  ;;  %v4302_v7 = vld [vmem:[#allocation2 + $0x111] sm:$0xff] }
 0x519   :  { %v3884_v49 = vadd.f32 %v3706_v59, %v3430_v54  ;;  %2394 = vmatmul.f32.gmra.mxu1 %v2621_v14  ;;  %2848 = vmatmul.f32.gmra.mxu2 %v2623_v31  ;;  %v3079_v59 = vld [vmem:[%s8662_s0 + $0x1e5] sm:$0xff]  ;;  %v3534_v22 = vld [vmem:[%s8662_s0 + $0x1ee] sm:$0xff] }
 0x51a   :  { %v4705_v27 = vmax.f32 %v4381_v55, %v4624_v24  ;;  %v3709_v9 = vpop.f32.mrf.mxu0  ;;  %v2626_v54 = vld [vmem:[%s8662_s0 + $0x1ec] sm:$0xff] }
 0x51b   :  { %v7843_v37 = vadd.f32 %v7525_v50, %v3884_v49  ;;  %3302 = vmatmul.f32.gmra.mxu3 %v3077_v35  ;;  %v3080_v49 = vld [vmem:[%s8662_s0 + $0x1ed] sm:$0xff] }
 0x51c   :  { %4786 = vst [vmem:[%s8664_s3 + $0x100] sm:$0xff] %v4705_v27  ;;  %v2801_v47 = vpop.f32.mrf.mxu2 }
 0x51d   :  { %v4056_v41 = vmax.f32 %v7843_v37, 0.0  ;;  %v2977_v14 = vadd.f32 %v2801_v47, %v2523_v5  ;;  %3756 = vmatmul.f32.gmra.mxu0 %v3531_v8 }
 0x51e   :  { %v4463_v45 = vld [vmem:[#allocation2 + $0x11a] sm:$0xff]  ;;  %v2350_v16 = vpop.f32.mrf.mxu1  ;;  %v3255_v61 = vpop.f32.mrf.mxu3 }
 0x51f   :  { %v4544_v60 = vld [vmem:[#allocation2 + $0x11b] sm:$0xff]  ;;  %4140 = vst [vmem:[#allocation2 + $0x128] sm:$0xff] %v4056_v41  ;;  %v3431_v28 = vadd.f32 %v3255_v61, %v2977_v14  ;;  %v2524_v15 = vadd.f32 %v2350_v16, %v6477_v57  ;;  %v4383_v57 = vmax.f32 %v4053_v29, %v4302_v7 }
 0x520   :  { %v4625_v32 = vmax.f32 %v4463_v45, %v4544_v60  ;;  %v4303_v43 = vld [vmem:[#allocation2 + $0x119] sm:$0xff] }
 0x521   :  { %v3885_v21 = vadd.f32 %v3709_v9, %v3431_v28  ;;  %2397 = vmatmul.f32.gmra.mxu1 %v2622_v58  ;;  %2851 = vmatmul.f32.gmra.mxu2 %v2624_v51 }
 0x522   :  { %v4706_v63 = vmax.f32 %v4382_v53, %v4625_v32  ;;  %v3712_v17 = vpop.f32.mrf.mxu0  ;;  %v2627_v32 = vld [vmem:[%s8662_s0 + $0x1f4] sm:$0xff] }
 0x523   :  { %v7864_v26 = vadd.f32 %v7525_v50, %v3885_v21  ;;  %3305 = vmatmul.f32.gmra.mxu3 %v3078_v2 }
 0x524   :  { %4787 = vst [vmem:[%s8664_s3 + $0x108] sm:$0xff] %v4706_v63  ;;  %v2804_v42 = vpop.f32.mrf.mxu2  ;;  %v3081_v63 = vld [vmem:[%s8662_s0 + $0x1f5] sm:$0xff] }
 0x525   :  { %v4057_v33 = vmax.f32 %v7864_v26, 0.0  ;;  %v2978_v18 = vadd.f32 %v2804_v42, %v2524_v15  ;;  %3759 = vmatmul.f32.gmra.mxu0 %v3532_v34  ;;  %v3535_v15 = vld [vmem:[%s8662_s0 + $0x1f6] sm:$0xff] }
 0x526   :  { %v4464_v58 = vld [vmem:[#allocation2 + $0x122] sm:$0xff]  ;;  %v2353_v3 = vpop.f32.mrf.mxu1  ;;  %v3258_v20 = vpop.f32.mrf.mxu3 }
 0x527   :  { %v4545_v30 = vld [vmem:[#allocation2 + $0x123] sm:$0xff]  ;;  %4141 = vst [vmem:[#allocation2 + $0x130] sm:$0xff] %v4057_v33  ;;  %v3432_v13 = vadd.f32 %v3258_v20, %v2978_v18  ;;  %v2525_v40 = vadd.f32 %v2353_v3, %v6489_v1  ;;  %v4384_v1 = vmax.f32 %v4054_v36, %v4303_v43 }
 0x528   :  { %v4626_v23 = vmax.f32 %v4464_v58, %v4545_v30  ;;  %v4304_v47 = vld [vmem:[#allocation2 + $0x121] sm:$0xff] }
 0x529   :  { %v3886_v44 = vadd.f32 %v3712_v17, %v3432_v13  ;;  %2400 = vmatmul.f32.gmra.mxu1 %v2623_v31  ;;  %2854 = vmatmul.f32.gmra.mxu2 %v2625_v56 }
 0x52a   :  { %v4707_v39 = vmax.f32 %v4383_v57, %v4626_v23  ;;  %v3715_v25 = vpop.f32.mrf.mxu0  ;;  %v2628_v57 = vld [vmem:[%s8662_s0 + $0x1fc] sm:$0xff] }
 0x52b   :  { %v7885_v29 = vadd.f32 %v7525_v50, %v3886_v44  ;;  %3308 = vmatmul.f32.gmra.mxu3 %v3079_v59  ;;  %v3082_v59 = vld [vmem:[%s8662_s0 + $0x1fd] sm:$0xff] }
 0x52c   :  { %4788 = vst [vmem:[%s8664_s3 + $0x110] sm:$0xff] %v4707_v39  ;;  %v2807_v19 = vpop.f32.mrf.mxu2 }
 0x52d   :  { %v4058_v12 = vmax.f32 %v7885_v29, 0.0  ;;  %v2979_v62 = vadd.f32 %v2807_v19, %v2525_v40  ;;  %3762 = vmatmul.f32.gmra.mxu0 %v3533_v48  ;;  %v3536_v48 = vld [vmem:[%s8662_s0 + $0x1fe] sm:$0xff] }
 0x52e   :  { %v4465_v11 = vld [vmem:[#allocation2 + $0x12a] sm:$0xff]  ;;  %v2356_v55 = vpop.f32.mrf.mxu1  ;;  %v3261_v24 = vpop.f32.mrf.mxu3  ;;  %v8784_v29 = vld [vmem:[#allocation38_spill] sm:$0xff] }
 0x52f   :  { %v4546_v31 = vld [vmem:[#allocation2 + $0x12b] sm:$0xff]  ;;  %4142 = vst [vmem:[#allocation2 + $0x138] sm:$0xff] %v4058_v12  ;;  %v3433_v27 = vadd.f32 %v3261_v24, %v2979_v62  ;;  %v2526_v46 = vadd.f32 %v2356_v55, %v6501_v0  ;;  %v4385_v0 = vmax.f32 %v4055_v6, %v4304_v47 }
 0x530   :  { %v4627_v35 = vmax.f32 %v4465_v11, %v4546_v31  ;;  %v4305_v7 = vld [vmem:[#allocation2 + $0x129] sm:$0xff] }
 0x531   :  { %v3887_v8 = vadd.f32 %v3715_v25, %v3433_v27  ;;  %2403 = vmatmul.f32.gmra.mxu1 %v2624_v51  ;;  %2857 = vmatmul.f32.gmra.mxu2 %v2626_v54 }
 0x532   :  { %v4708_v9 = vmax.f32 %v4384_v1, %v4627_v35  ;;  %v3718_v5 = vpop.f32.mrf.mxu0  ;;  %v3083_v35 = vld [vmem:[%s8662_s0 + $0x205] sm:$0xff] }
 0x533   :  { %v7906_v36 = vadd.f32 %v7525_v50, %v3887_v8  ;;  %3311 = vmatmul.f32.gmra.mxu3 %v3080_v49  ;;  %v3537_v8 = vld [vmem:[%s8662_s0 + $0x206] sm:$0xff] }
 0x534   :  { %4789 = vst [vmem:[%s8664_s3 + $0x118] sm:$0xff] %v4708_v9  ;;  %v2810_v14 = vpop.f32.mrf.mxu2 }
 0x535   :  { %v4059_v45 = vmax.f32 %v7906_v36, 0.0  ;;  %v2980_v60 = vadd.f32 %v2810_v14, %v2526_v46  ;;  %3765 = vmatmul.f32.gmra.mxu0 %v3534_v22  ;;  %v8785_v36 = vld [vmem:[#allocation39_spill] sm:$0xff] }
 0x536   :  { %v4466_v16 = vld [vmem:[#allocation2 + $0x132] sm:$0xff]  ;;  %v2359_v51 = vpop.f32.mrf.mxu1  ;;  %v3264_v53 = vpop.f32.mrf.mxu3 }
 0x537   :  { %v4547_v61 = vld [vmem:[#allocation2 + $0x133] sm:$0xff]  ;;  %4143 = vst [vmem:[#allocation2 + $0x140] sm:$0xff] %v4059_v45  ;;  %v3434_v2 = vadd.f32 %v3264_v53, %v2980_v60  ;;  %v2527_v52 = vadd.f32 %v2359_v51, %v6513_v4  ;;  %v4386_v4 = vmax.f32 %v4056_v41, %v4305_v7 }
 0x538   :  { %v4628_v28 = vmax.f32 %v4466_v16, %v4547_v61  ;;  %v4306_v40 = vld [vmem:[#allocation2 + $0x131] sm:$0xff] }
 0x539   :  { %v3888_v17 = vadd.f32 %v3718_v5, %v3434_v2  ;;  %2406 = vmatmul.f32.gmra.mxu1 %v2625_v56  ;;  %2860 = vmatmul.f32.gmra.mxu2 %v2627_v32 }
 0x53a   :  { %v4709_v21 = vmax.f32 %v4385_v0, %v4628_v28  ;;  %v3721_v34 = vpop.f32.mrf.mxu0  ;;  %v3084_v28 = vld [vmem:[%s8662_s0 + $0x20d] sm:$0xff] }
 0x53b   :  { %v7927_v6 = vadd.f32 %v7525_v50, %v3888_v17  ;;  %3314 = vmatmul.f32.gmra.mxu3 %v3081_v63  ;;  %v3538_v17 = vld [vmem:[%s8662_s0 + $0x20e] sm:$0xff] }
 0x53c   :  { %4790 = vst [vmem:[%s8664_s3 + $0x120] sm:$0xff] %v4709_v21  ;;  %v2813_v42 = vpop.f32.mrf.mxu2 }
 0x53d   :  { %v4060_v18 = vmax.f32 %v7927_v6, 0.0  ;;  %v2981_v58 = vadd.f32 %v2813_v42, %v2527_v52  ;;  %3768 = vmatmul.f32.gmra.mxu0 %v3535_v15  ;;  %v8786_v6 = vld [vmem:[#allocation40_spill] sm:$0xff] }
 0x53e   :  { %v4467_v30 = vld [vmem:[#allocation2 + $0x13a] sm:$0xff]  ;;  %v2362_v20 = vpop.f32.mrf.mxu1  ;;  %v3267_v56 = vpop.f32.mrf.mxu3 }
 0x53f   :  { %v4548_v3 = vld [vmem:[#allocation2 + $0x13b] sm:$0xff]  ;;  %4144 = vst [vmem:[#allocation2 + $0x148] sm:$0xff] %v4060_v18  ;;  %v3435_v13 = vadd.f32 %v3267_v56, %v2981_v58  ;;  %v2528_v37 = vadd.f32 %v2362_v20, %v6534_v38  ;;  %v4387_v38 = vmax.f32 %v4057_v33, %v4306_v40 }
 0x540   :  { %v4629_v23 = vmax.f32 %v4467_v30, %v4548_v3  ;;  %v7971_v33 = vld [vmem:[%s8663_s2] ss:$0 sm:$0xff]  ;;  %v2631_v56 = vld [vmem:[%s8662_s0 + $0x214] sm:$0xff] }
 0x541   :  { %v3889_v44 = vadd.f32 %v3721_v34, %v3435_v13  ;;  %2409 = vmatmul.f32.gmra.mxu1 %v2626_v54  ;;  %2863 = vmatmul.f32.gmra.mxu2 %v2628_v57  ;;  %v2629_v54 = vld [vmem:[%s8662_s0 + $0x204] sm:$0xff]  ;;  %v4307_v22 = vld [vmem:[#allocation2 + $0x139] sm:$0xff] }
 0x542   :  { %v4710_v39 = vmax.f32 %v4386_v4, %v4629_v23  ;;  %v3724_v25 = vpop.f32.mrf.mxu0  ;;  %v4388_v53 = vmax.f32 %v4058_v12, %v4307_v22  ;;  %v3085_v13 = vld [vmem:[%s8662_s0 + $0x215] sm:$0xff] }
 0x543   :  { %v7948_v41 = vadd.f32 %v7525_v50, %v3889_v44  ;;  %3317 = vmatmul.f32.gmra.mxu3 %v3082_v59 }
 0x544   :  { %4791 = vst [vmem:[%s8664_s3 + $0x128] sm:$0xff] %v4710_v39  ;;  %v2816_v43 = vpop.f32.mrf.mxu2 }
 0x545   :  { %v4061_v19 = vmax.f32 %v7948_v41, 0.0  ;;  %v2982_v62 = vadd.f32 %v2816_v43, %v2528_v37  ;;  %3771 = vmatmul.f32.gmra.mxu0 %v3536_v48  ;;  %v8787_v41 = vld [vmem:[#allocation41_spill] sm:$0xff] }
 0x546   :  { %v4468_v11 = vld [vmem:[#allocation2 + $0x142] sm:$0xff]  ;;  %v2365_v55 = vpop.f32.mrf.mxu1  ;;  %v3270_v24 = vpop.f32.mrf.mxu3 }
 0x547   :  { %v4549_v31 = vld [vmem:[#allocation2 + $0x143] sm:$0xff]  ;;  %4145 = vst [vmem:[#allocation2 + $0x150] sm:$0xff] %v4061_v19  ;;  %v3436_v1 = vadd.f32 %v3270_v24, %v2982_v62  ;;  %v2529_v26 = vadd.f32 %v2365_v55, %v6549_v10  ;;  %v2630_v10 = vld [vmem:[%s8662_s0 + $0x20c] sm:$0xff] }
 0x548   :  { %v4630_v50 = vmax.f32 %v4468_v11, %v4549_v31  ;;  %v4308_v15 = vld [vmem:[#allocation2 + $0x141] sm:$0xff] }
 0x549   :  { %v3890_v49 = vadd.f32 %v3724_v25, %v3436_v1  ;;  %2412 = vmatmul.f32.gmra.mxu1 %v2627_v32  ;;  %2866 = vmatmul.f32.gmra.mxu2 %v2629_v54  ;;  %v3539_v25 = vld [vmem:[%s8662_s0 + $0x216] sm:$0xff] }
 0x54a   :  { %v4711_v27 = vmax.f32 %v4387_v38, %v4630_v50  ;;  %v3727_v9 = vpop.f32.mrf.mxu0 }
 0x54b   :  { %v7974_v5 = vadd.f32 %v7971_v33, %v3890_v49  ;;  %3320 = vmatmul.f32.gmra.mxu3 %v3083_v35  ;;  %v3086_v35 = vld [vmem:[%s8662_s0 + $0x21d] sm:$0xff] }
 0x54c   :  { %4792 = vst [vmem:[%s8664_s3 + $0x130] sm:$0xff] %v4711_v27  ;;  %v2819_v46 = vpop.f32.mrf.mxu2 }
 0x54d   :  { %v4062_v47 = vmax.f32 %v7974_v5, 0.0  ;;  %v2983_v14 = vadd.f32 %v2819_v46, %v2529_v26  ;;  %3774 = vmatmul.f32.gmra.mxu0 %v3537_v8  ;;  %v3540_v8 = vld [vmem:[%s8662_s0 + $0x21e] sm:$0xff] }
 0x54e   :  { %v4469_v60 = vld [vmem:[#allocation2 + $0x14a] sm:$0xff]  ;;  %v2368_v61 = vpop.f32.mrf.mxu1  ;;  %v3273_v51 = vpop.f32.mrf.mxu3  ;;  %v8788_v5 = vld [vmem:[#allocation42_spill] sm:$0xff] }
 0x54f   :  { %v4550_v16 = vld [vmem:[#allocation2 + $0x14b] sm:$0xff]  ;;  %4146 = vst [vmem:[#allocation2 + $0x158] sm:$0xff] %v4062_v47  ;;  %v3437_v0 = vadd.f32 %v3273_v51, %v2983_v14  ;;  %v2530_v12 = vadd.f32 %v2368_v61, %v8784_v29 }
 0x550   :  { %v4631_v32 = vmax.f32 %v4469_v60, %v4550_v16  ;;  %v4309_v37 = vld [vmem:[#allocation2 + $0x149] sm:$0xff] }
 0x551   :  { %v3891_v63 = vadd.f32 %v3727_v9, %v3437_v0  ;;  %2415 = vmatmul.f32.gmra.mxu1 %v2628_v57  ;;  %2869 = vmatmul.f32.gmra.mxu2 %v2630_v10  ;;  %v4389_v57 = vmax.f32 %v4059_v45, %v4308_v15  ;;  %v4390_v38 = vmax.f32 %v4060_v18, %v4309_v37  ;;  %v3541_v29 = vld [vmem:[%s8662_s0 + $0x226] sm:$0xff] }
 0x552   :  { %v4712_v2 = vmax.f32 %v4388_v53, %v4631_v32  ;;  %v3730_v21 = vpop.f32.mrf.mxu0  ;;  %v2633_v53 = vld [vmem:[%s8662_s0 + $0x224] sm:$0xff] }
 0x553   :  { %v7995_v34 = vadd.f32 %v7971_v33, %v3891_v63  ;;  %3323 = vmatmul.f32.gmra.mxu3 %v3084_v28 }
 0x554   :  { %4793 = vst [vmem:[%s8664_s3 + $0x138] sm:$0xff] %v4712_v2  ;;  %v2822_v52 = vpop.f32.mrf.mxu2  ;;  %v3087_v2 = vld [vmem:[%s8662_s0 + $0x225] sm:$0xff] }
 0x555   :  { %v4063_v7 = vmax.f32 %v7995_v34, 0.0  ;;  %v2984_v42 = vadd.f32 %v2822_v52, %v2530_v12  ;;  %3777 = vmatmul.f32.gmra.mxu0 %v3538_v17  ;;  %v8789_v34 = vld [vmem:[#allocation11_spill] sm:$0xff] }
 0x556   :  { %v4470_v58 = vld [vmem:[#allocation2 + $0x152] sm:$0xff]  ;;  %v2371_v3 = vpop.f32.mrf.mxu1  ;;  %v3276_v20 = vpop.f32.mrf.mxu3 }
 0x557   :  { %v4551_v30 = vld [vmem:[#allocation2 + $0x153] sm:$0xff]  ;;  %4147 = vst [vmem:[#allocation2 + $0x160] sm:$0xff] %v4063_v7  ;;  %v3438_v23 = vadd.f32 %v3276_v20, %v2984_v42  ;;  %v2531_v45 = vadd.f32 %v2371_v3, %v8785_v36 }
 0x558   :  { %v4632_v4 = vmax.f32 %v4470_v58, %v4551_v30  ;;  %v4310_v22 = vld [vmem:[#allocation2 + $0x151] sm:$0xff] }
 0x559   :  { %v3892_v39 = vadd.f32 %v3730_v21, %v3438_v23  ;;  %2418 = vmatmul.f32.gmra.mxu1 %v2629_v54  ;;  %2872 = vmatmul.f32.gmra.mxu2 %v2631_v56  ;;  %v2632_v54 = vld [vmem:[%s8662_s0 + $0x21c] sm:$0xff]  ;;  %v4391_v32 = vmax.f32 %v4061_v19, %v4310_v22  ;;  %v3542_v36 = vld [vmem:[%s8662_s0 + $0x22e] sm:$0xff] }
 0x55a   :  { %v4713_v59 = vmax.f32 %v4389_v57, %v4632_v4  ;;  %v3733_v44 = vpop.f32.mrf.mxu0  ;;  %v2634_v57 = vld [vmem:[%s8662_s0 + $0x22c] sm:$0xff] }
 0x55b   :  { %v8016_v48 = vadd.f32 %v7971_v33, %v3892_v39  ;;  %3326 = vmatmul.f32.gmra.mxu3 %v3085_v13 }
 0x55c   :  { %4794 = vst [vmem:[%s8664_s3 + $0x140] sm:$0xff] %v4713_v59  ;;  %v2825_v40 = vpop.f32.mrf.mxu2  ;;  %v3088_v59 = vld [vmem:[%s8662_s0 + $0x22d] sm:$0xff] }
 0x55d   :  { %v4064_v43 = vmax.f32 %v8016_v48, 0.0  ;;  %v2985_v62 = vadd.f32 %v2825_v40, %v2531_v45  ;;  %3780 = vmatmul.f32.gmra.mxu0 %v3539_v25  ;;  %v8790_v48 = vld [vmem:[#allocation13_spill] sm:$0xff] }
 0x55e   :  { %v4471_v11 = vld [vmem:[#allocation2 + $0x15a] sm:$0xff]  ;;  %v2374_v55 = vpop.f32.mrf.mxu1  ;;  %v3279_v24 = vpop.f32.mrf.mxu3 }
 0x55f   :  { %v4552_v31 = vld [vmem:[#allocation2 + $0x15b] sm:$0xff]  ;;  %4148 = vst [vmem:[#allocation2 + $0x168] sm:$0xff] %v4064_v43  ;;  %v3439_v1 = vadd.f32 %v3279_v24, %v2985_v62  ;;  %v2532_v18 = vadd.f32 %v2374_v55, %v8786_v6 }
 0x560   :  { %v4633_v50 = vmax.f32 %v4471_v11, %v4552_v31  ;;  %v4311_v15 = vld [vmem:[#allocation2 + $0x159] sm:$0xff] }
 0x561   :  { %v3893_v49 = vadd.f32 %v3733_v44, %v3439_v1  ;;  %2421 = vmatmul.f32.gmra.mxu1 %v2630_v10  ;;  %2875 = vmatmul.f32.gmra.mxu2 %v2632_v54  ;;  %v4392_v4 = vmax.f32 %v4062_v47, %v4311_v15  ;;  %v3543_v6 = vld [vmem:[%s8662_s0 + $0x236] sm:$0xff] }
 0x562   :  { %v4714_v27 = vmax.f32 %v4390_v38, %v4633_v50  ;;  %v3736_v9 = vpop.f32.mrf.mxu0  ;;  %v2635_v38 = vld [vmem:[%s8662_s0 + $0x234] sm:$0xff] }
 0x563   :  { %v8037_v26 = vadd.f32 %v7971_v33, %v3893_v49  ;;  %3329 = vmatmul.f32.gmra.mxu3 %v3086_v35 }
 0x564   :  { %4795 = vst [vmem:[%s8664_s3 + $0x148] sm:$0xff] %v4714_v27  ;;  %v2828_v46 = vpop.f32.mrf.mxu2  ;;  %v3089_v27 = vld [vmem:[%s8662_s0 + $0x235] sm:$0xff] }
 0x565   :  { %v4065_v14 = vmax.f32 %v8037_v26, 0.0  ;;  %v2986_v60 = vadd.f32 %v2828_v46, %v2532_v18  ;;  %3783 = vmatmul.f32.gmra.mxu0 %v3540_v8  ;;  %v8791_v26 = vld [vmem:[#allocation15_spill] sm:$0xff] }
 0x566   :  { %v4472_v16 = vld [vmem:[#allocation2 + $0x162] sm:$0xff]  ;;  %v2377_v51 = vpop.f32.mrf.mxu1  ;;  %v3282_v10 = vpop.f32.mrf.mxu3 }
 0x567   :  { %v4553_v61 = vld [vmem:[#allocation2 + $0x163] sm:$0xff]  ;;  %4149 = vst [vmem:[#allocation2 + $0x170] sm:$0xff] %v4065_v14  ;;  %v3440_v28 = vadd.f32 %v3282_v10, %v2986_v60  ;;  %v2533_v19 = vadd.f32 %v2377_v51, %v8787_v41 }
 0x568   :  { %v4634_v0 = vmax.f32 %v4472_v16, %v4553_v61  ;;  %v4312_v37 = vld [vmem:[#allocation2 + $0x161] sm:$0xff] }
 0x569   :  { %v3894_v21 = vadd.f32 %v3736_v9, %v3440_v28  ;;  %2424 = vmatmul.f32.gmra.mxu1 %v2631_v56  ;;  %2878 = vmatmul.f32.gmra.mxu2 %v2633_v53  ;;  %v4393_v50 = vmax.f32 %v4063_v7, %v4312_v37  ;;  %v3544_v41 = vld [vmem:[%s8662_s0 + $0x23e] sm:$0xff] }
 0x56a   :  { %v4715_v63 = vmax.f32 %v4391_v32, %v4634_v0  ;;  %v3739_v17 = vpop.f32.mrf.mxu0  ;;  %v2636_v32 = vld [vmem:[%s8662_s0 + $0x23c] sm:$0xff] }
 0x56b   :  { %v8058_v12 = vadd.f32 %v7971_v33, %v3894_v21  ;;  %3332 = vmatmul.f32.gmra.mxu3 %v3087_v2 }
 0x56c   :  { %4796 = vst [vmem:[%s8664_s3 + $0x150] sm:$0xff] %v4715_v63  ;;  %v2831_v52 = vpop.f32.mrf.mxu2  ;;  %v3090_v63 = vld [vmem:[%s8662_s0 + $0x23d] sm:$0xff] }
 0x56d   :  { %v4066_v42 = vmax.f32 %v8058_v12, 0.0  ;;  %v2987_v58 = vadd.f32 %v2831_v52, %v2533_v19  ;;  %3786 = vmatmul.f32.gmra.mxu0 %v3541_v29  ;;  %v8792_v12 = vld [vmem:[#allocation17_spill] sm:$0xff] }
 0x56e   :  { %v4473_v30 = vld [vmem:[#allocation2 + $0x16a] sm:$0xff]  ;;  %v2380_v20 = vpop.f32.mrf.mxu1  ;;  %v3285_v56 = vpop.f32.mrf.mxu3 }
 0x56f   :  { %v4554_v3 = vld [vmem:[#allocation2 + $0x16b] sm:$0xff]  ;;  %4150 = vst [vmem:[#allocation2 + $0x178] sm:$0xff] %v4066_v42  ;;  %v3441_v13 = vadd.f32 %v3285_v56, %v2987_v58  ;;  %v2534_v47 = vadd.f32 %v2380_v20, %v8788_v5 }
 0x570   :  { %v4635_v23 = vmax.f32 %v4473_v30, %v4554_v3  ;;  %v4313_v22 = vld [vmem:[#allocation2 + $0x169] sm:$0xff] }
 0x571   :  { %v3895_v44 = vadd.f32 %v3739_v17, %v3441_v13  ;;  %2427 = vmatmul.f32.gmra.mxu1 %v2632_v54  ;;  %2881 = vmatmul.f32.gmra.mxu2 %v2634_v57  ;;  %v4394_v0 = vmax.f32 %v4064_v43, %v4313_v22  ;;  %v3545_v5 = vld [vmem:[%s8662_s0 + $0x246] sm:$0xff] }
 0x572   :  { %v4716_v39 = vmax.f32 %v4392_v4, %v4635_v23  ;;  %v3742_v25 = vpop.f32.mrf.mxu0  ;;  %v2637_v4 = vld [vmem:[%s8662_s0 + $0x244] sm:$0xff] }
 0x573   :  { %v8079_v45 = vadd.f32 %v7971_v33, %v3895_v44  ;;  %3335 = vmatmul.f32.gmra.mxu3 %v3088_v59 }
 0x574   :  { %4797 = vst [vmem:[%s8664_s3 + $0x158] sm:$0xff] %v4716_v39  ;;  %v2834_v40 = vpop.f32.mrf.mxu2  ;;  %v3091_v39 = vld [vmem:[%s8662_s0 + $0x245] sm:$0xff] }
 0x575   :  { %v4067_v62 = vmax.f32 %v8079_v45, 0.0  ;;  %v2988_v11 = vadd.f32 %v2834_v40, %v2534_v47  ;;  %3789 = vmatmul.f32.gmra.mxu0 %v3542_v36  ;;  %v8793_v45 = vld [vmem:[#allocation19_spill] sm:$0xff] }
 0x576   :  { %v4474_v31 = vld [vmem:[#allocation2 + $0x172] sm:$0xff]  ;;  %v2383_v24 = vpop.f32.mrf.mxu1  ;;  %v3288_v54 = vpop.f32.mrf.mxu3 }
 0x577   :  { %v4555_v55 = vld [vmem:[#allocation2 + $0x173] sm:$0xff]  ;;  %4151 = vst [vmem:[#allocation2 + $0x180] sm:$0xff] %v4067_v62  ;;  %v3442_v35 = vadd.f32 %v3288_v54, %v2988_v11  ;;  %v2535_v7 = vadd.f32 %v2383_v24, %v8789_v34 }
 0x578   :  { %v4636_v1 = vmax.f32 %v4474_v31, %v4555_v55  ;;  %v4314_v15 = vld [vmem:[#allocation2 + $0x171] sm:$0xff] }
 0x579   :  { %v3896_v9 = vadd.f32 %v3742_v25, %v3442_v35  ;;  %2430 = vmatmul.f32.gmra.mxu1 %v2633_v53  ;;  %2884 = vmatmul.f32.gmra.mxu2 %v2635_v38  ;;  %v4395_v23 = vmax.f32 %v4065_v14, %v4314_v15  ;;  %v3546_v34 = vld [vmem:[%s8662_s0 + $0x24e] sm:$0xff] }
 0x57a   :  { %v4717_v49 = vmax.f32 %v4393_v50, %v4636_v1  ;;  %v3745_v8 = vpop.f32.mrf.mxu0  ;;  %v2638_v50 = vld [vmem:[%s8662_s0 + $0x24c] sm:$0xff] }
 0x57b   :  { %v8100_v18 = vadd.f32 %v7971_v33, %v3896_v9  ;;  %3338 = vmatmul.f32.gmra.mxu3 %v3089_v27 }
 0x57c   :  { %4798 = vst [vmem:[%s8664_s3 + $0x160] sm:$0xff] %v4717_v49  ;;  %v2837_v46 = vpop.f32.mrf.mxu2  ;;  %v3092_v49 = vld [vmem:[%s8662_s0 + $0x24d] sm:$0xff] }
 0x57d   :  { %v4068_v60 = vmax.f32 %v8100_v18, 0.0  ;;  %v2989_v16 = vadd.f32 %v2837_v46, %v2535_v7  ;;  %3792 = vmatmul.f32.gmra.mxu0 %v3543_v6  ;;  %v8794_v18 = vld [vmem:[#allocation21_spill] sm:$0xff] }
 0x57e   :  { %v4475_v61 = vld [vmem:[#allocation2 + $0x17a] sm:$0xff]  ;;  %v2386_v10 = vpop.f32.mrf.mxu1  ;;  %v3291_v53 = vpop.f32.mrf.mxu3 }
 0x57f   :  { %v4556_v51 = vld [vmem:[#allocation2 + $0x17b] sm:$0xff]  ;;  %4152 = vst [vmem:[#allocation2 + $0x188] sm:$0xff] %v4068_v60  ;;  %v3443_v2 = vadd.f32 %v3291_v53, %v2989_v16  ;;  %v2536_v43 = vadd.f32 %v2386_v10, %v8790_v48 }
 0x580   :  { %v4637_v28 = vmax.f32 %v4475_v61, %v4556_v51  ;;  %v4315_v37 = vld [vmem:[#allocation2 + $0x179] sm:$0xff] }
 0x581   :  { %v3897_v17 = vadd.f32 %v3745_v8, %v3443_v2  ;;  %2433 = vmatmul.f32.gmra.mxu1 %v2634_v57  ;;  %2887 = vmatmul.f32.gmra.mxu2 %v2636_v32  ;;  %v4396_v1 = vmax.f32 %v4066_v42, %v4315_v37  ;;  %v3547_v48 = vld [vmem:[%s8662_s0 + $0x256] sm:$0xff] }
 0x582   :  { %v4718_v21 = vmax.f32 %v4394_v0, %v4637_v28  ;;  %v3748_v29 = vpop.f32.mrf.mxu0  ;;  %v2639_v0 = vld [vmem:[%s8662_s0 + $0x254] sm:$0xff] }
 0x583   :  { %v8121_v19 = vadd.f32 %v7971_v33, %v3897_v17  ;;  %3341 = vmatmul.f32.gmra.mxu3 %v3090_v63 }
 0x584   :  { %4799 = vst [vmem:[%s8664_s3 + $0x168] sm:$0xff] %v4718_v21  ;;  %v2840_v52 = vpop.f32.mrf.mxu2  ;;  %v3093_v21 = vld [vmem:[%s8662_s0 + $0x255] sm:$0xff] }
 0x585   :  { %v4069_v58 = vmax.f32 %v8121_v19, 0.0  ;;  %v2990_v30 = vadd.f32 %v2840_v52, %v2536_v43  ;;  %3795 = vmatmul.f32.gmra.mxu0 %v3544_v41  ;;  %v8795_v19 = vld [vmem:[#allocation23_spill] sm:$0xff] }
 0x586   :  { %v4476_v3 = vld [vmem:[#allocation2 + $0x182] sm:$0xff]  ;;  %v2389_v56 = vpop.f32.mrf.mxu1  ;;  %v3294_v57 = vpop.f32.mrf.mxu3 }
 0x587   :  { %v4557_v20 = vld [vmem:[#allocation2 + $0x183] sm:$0xff]  ;;  %4153 = vst [vmem:[#allocation2 + $0x190] sm:$0xff] %v4069_v58  ;;  %v3444_v59 = vadd.f32 %v3294_v57, %v2990_v30  ;;  %v2537_v14 = vadd.f32 %v2389_v56, %v8791_v26 }
 0x588   :  { %v4638_v13 = vmax.f32 %v4476_v3, %v4557_v20  ;;  %v4316_v22 = vld [vmem:[#allocation2 + $0x181] sm:$0xff] }
 0x589   :  { %v3898_v25 = vadd.f32 %v3748_v29, %v3444_v59  ;;  %2436 = vmatmul.f32.gmra.mxu1 %v2635_v38  ;;  %2890 = vmatmul.f32.gmra.mxu2 %v2637_v4  ;;  %v4397_v28 = vmax.f32 %v4067_v62, %v4316_v22  ;;  %v3548_v26 = vld [vmem:[%s8662_s0 + $0x25e] sm:$0xff] }
 0x58a   :  { %v4719_v44 = vmax.f32 %v4395_v23, %v4638_v13  ;;  %v3751_v36 = vpop.f32.mrf.mxu0  ;;  %v2640_v23 = vld [vmem:[%s8662_s0 + $0x25c] sm:$0xff] }
 0x58b   :  { %v8142_v47 = vadd.f32 %v7971_v33, %v3898_v25  ;;  %3344 = vmatmul.f32.gmra.mxu3 %v3091_v39 }
 0x58c   :  { %4800 = vst [vmem:[%s8664_s3 + $0x170] sm:$0xff] %v4719_v44  ;;  %v2843_v40 = vpop.f32.mrf.mxu2  ;;  %v3094_v44 = vld [vmem:[%s8662_s0 + $0x25d] sm:$0xff] }
 0x58d   :  { %v4070_v11 = vmax.f32 %v8142_v47, 0.0  ;;  %v2991_v31 = vadd.f32 %v2843_v40, %v2537_v14  ;;  %3798 = vmatmul.f32.gmra.mxu0 %v3545_v5  ;;  %v8796_v47 = vld [vmem:[#allocation25_spill] sm:$0xff] }
 0x58e   :  { %v4477_v55 = vld [vmem:[#allocation2 + $0x18a] sm:$0xff]  ;;  %v2392_v54 = vpop.f32.mrf.mxu1  ;;  %v3297_v38 = vpop.f32.mrf.mxu3 }
 0x58f   :  { %v4558_v24 = vld [vmem:[#allocation2 + $0x18b] sm:$0xff]  ;;  %4154 = vst [vmem:[#allocation2 + $0x198] sm:$0xff] %v4070_v11  ;;  %v3445_v27 = vadd.f32 %v3297_v38, %v2991_v31  ;;  %v2538_v42 = vadd.f32 %v2392_v54, %v8792_v12 }
 0x590   :  { %v4639_v35 = vmax.f32 %v4477_v55, %v4558_v24  ;;  %v4317_v15 = vld [vmem:[#allocation2 + $0x189] sm:$0xff] }
 0x591   :  { %v3899_v8 = vadd.f32 %v3751_v36, %v3445_v27  ;;  %2439 = vmatmul.f32.gmra.mxu1 %v2636_v32  ;;  %2893 = vmatmul.f32.gmra.mxu2 %v2638_v50  ;;  %v4398_v13 = vmax.f32 %v4068_v60, %v4317_v15  ;;  %v3549_v12 = vld [vmem:[%s8662_s0 + $0x266] sm:$0xff] }
 0x592   :  { %v4720_v9 = vmax.f32 %v4396_v1, %v4639_v35  ;;  %v3754_v6 = vpop.f32.mrf.mxu0  ;;  %v2641_v1 = vld [vmem:[%s8662_s0 + $0x264] sm:$0xff] }
 0x593   :  { %v8163_v7 = vadd.f32 %v7971_v33, %v3899_v8  ;;  %3347 = vmatmul.f32.gmra.mxu3 %v3092_v49 }
 0x594   :  { %4801 = vst [vmem:[%s8664_s3 + $0x178] sm:$0xff] %v4720_v9  ;;  %v2846_v46 = vpop.f32.mrf.mxu2  ;;  %v3095_v9 = vld [vmem:[%s8662_s0 + $0x265] sm:$0xff] }
 0x595   :  { %v4071_v16 = vmax.f32 %v8163_v7, 0.0  ;;  %v2992_v61 = vadd.f32 %v2846_v46, %v2538_v42  ;;  %3801 = vmatmul.f32.gmra.mxu0 %v3546_v34  ;;  %v8797_v7 = vld [vmem:[#allocation27_spill] sm:$0xff] }
 0x596   :  { %v4478_v51 = vld [vmem:[#allocation2 + $0x192] sm:$0xff]  ;;  %v2395_v53 = vpop.f32.mrf.mxu1  ;;  %v3300_v32 = vpop.f32.mrf.mxu3 }
 0x597   :  { %v4559_v10 = vld [vmem:[#allocation2 + $0x193] sm:$0xff]  ;;  %4155 = vst [vmem:[#allocation2 + $0x1a0] sm:$0xff] %v4071_v16  ;;  %v3446_v63 = vadd.f32 %v3300_v32, %v2992_v61  ;;  %v2539_v62 = vadd.f32 %v2395_v53, %v8793_v45 }
 0x598   :  { %v4640_v2 = vmax.f32 %v4478_v51, %v4559_v10  ;;  %v4318_v37 = vld [vmem:[#allocation2 + $0x191] sm:$0xff] }
 0x599   :  { %v3900_v29 = vadd.f32 %v3754_v6, %v3446_v63  ;;  %2442 = vmatmul.f32.gmra.mxu1 %v2637_v4  ;;  %2896 = vmatmul.f32.gmra.mxu2 %v2639_v0  ;;  %v4399_v35 = vmax.f32 %v4069_v58, %v4318_v37  ;;  %v3550_v45 = vld [vmem:[%s8662_s0 + $0x26e] sm:$0xff] }
 0x59a   :  { %v4721_v17 = vmax.f32 %v4397_v28, %v4640_v2  ;;  %v3757_v41 = vpop.f32.mrf.mxu0  ;;  %v2642_v28 = vld [vmem:[%s8662_s0 + $0x26c] sm:$0xff] }
 0x59b   :  { %v8184_v43 = vadd.f32 %v7971_v33, %v3900_v29  ;;  %3350 = vmatmul.f32.gmra.mxu3 %v3093_v21 }
 0x59c   :  { %4802 = vst [vmem:[%s8664_s3 + $0x180] sm:$0xff] %v4721_v17  ;;  %v2849_v52 = vpop.f32.mrf.mxu2  ;;  %v3096_v17 = vld [vmem:[%s8662_s0 + $0x26d] sm:$0xff] }
 0x59d   :  { %v4072_v30 = vmax.f32 %v8184_v43, 0.0  ;;  %v2993_v3 = vadd.f32 %v2849_v52, %v2539_v62  ;;  %3804 = vmatmul.f32.gmra.mxu0 %v3547_v48  ;;  %v8798_v43 = vld [vmem:[#allocation29_spill] sm:$0xff] }
 0x59e   :  { %v4479_v20 = vld [vmem:[#allocation2 + $0x19a] sm:$0xff]  ;;  %v2398_v57 = vpop.f32.mrf.mxu1  ;;  %v3303_v4 = vpop.f32.mrf.mxu3 }
 0x59f   :  { %v4560_v56 = vld [vmem:[#allocation2 + $0x19b] sm:$0xff]  ;;  %4156 = vst [vmem:[#allocation2 + $0x1a8] sm:$0xff] %v4072_v30  ;;  %v3447_v39 = vadd.f32 %v3303_v4, %v2993_v3  ;;  %v2540_v60 = vadd.f32 %v2398_v57, %v8794_v18 }
 0x5a0   :  { %v4641_v59 = vmax.f32 %v4479_v20, %v4560_v56  ;;  %v4319_v22 = vld [vmem:[#allocation2 + $0x199] sm:$0xff] }
 0x5a1   :  { %v3901_v36 = vadd.f32 %v3757_v41, %v3447_v39  ;;  %2445 = vmatmul.f32.gmra.mxu1 %v2638_v50  ;;  %2899 = vmatmul.f32.gmra.mxu2 %v2640_v23  ;;  %v4400_v2 = vmax.f32 %v4070_v11, %v4319_v22  ;;  %v3551_v18 = vld [vmem:[%s8662_s0 + $0x276] sm:$0xff] }
 0x5a2   :  { %v4722_v25 = vmax.f32 %v4398_v13, %v4641_v59  ;;  %v3760_v5 = vpop.f32.mrf.mxu0  ;;  %v2643_v13 = vld [vmem:[%s8662_s0 + $0x274] sm:$0xff] }
 0x5a3   :  { %v8205_v14 = vadd.f32 %v7971_v33, %v3901_v36  ;;  %3353 = vmatmul.f32.gmra.mxu3 %v3094_v44 }
 0x5a4   :  { %4803 = vst [vmem:[%s8664_s3 + $0x188] sm:$0xff] %v4722_v25  ;;  %v2852_v40 = vpop.f32.mrf.mxu2  ;;  %v3097_v25 = vld [vmem:[%s8662_s0 + $0x275] sm:$0xff] }
 0x5a5   :  { %v4073_v31 = vmax.f32 %v8205_v14, 0.0  ;;  %v2994_v55 = vadd.f32 %v2852_v40, %v2540_v60  ;;  %3807 = vmatmul.f32.gmra.mxu0 %v3548_v26  ;;  %v8799_v14 = vld [vmem:[#allocation31_spill] sm:$0xff] }
 0x5a6   :  { %v4480_v24 = vld [vmem:[#allocation2 + $0x1a2] sm:$0xff]  ;;  %v2401_v38 = vpop.f32.mrf.mxu1  ;;  %v3306_v50 = vpop.f32.mrf.mxu3 }
 0x5a7   :  { %v4561_v54 = vld [vmem:[#allocation2 + $0x1a3] sm:$0xff]  ;;  %4157 = vst [vmem:[#allocation2 + $0x1b0] sm:$0xff] %v4073_v31  ;;  %v3448_v49 = vadd.f32 %v3306_v50, %v2994_v55  ;;  %v2541_v58 = vadd.f32 %v2401_v38, %v8795_v19 }
 0x5a8   :  { %v4642_v27 = vmax.f32 %v4480_v24, %v4561_v54  ;;  %v4320_v15 = vld [vmem:[#allocation2 + $0x1a1] sm:$0xff] }
 0x5a9   :  { %v3902_v6 = vadd.f32 %v3760_v5, %v3448_v49  ;;  %2448 = vmatmul.f32.gmra.mxu1 %v2639_v0  ;;  %2902 = vmatmul.f32.gmra.mxu2 %v2641_v1  ;;  %v4401_v59 = vmax.f32 %v4071_v16, %v4320_v15  ;;  %v3552_v19 = vld [vmem:[%s8662_s0 + $0x27e] sm:$0xff] }
 0x5aa   :  { %v4723_v8 = vmax.f32 %v4399_v35, %v4642_v27  ;;  %v3763_v34 = vpop.f32.mrf.mxu0  ;;  %v2644_v35 = vld [vmem:[%s8662_s0 + $0x27c] sm:$0xff] }
 0x5ab   :  { %v8226_v42 = vadd.f32 %v7971_v33, %v3902_v6  ;;  %3356 = vmatmul.f32.gmra.mxu3 %v3095_v9 }
 0x5ac   :  { %4804 = vst [vmem:[%s8664_s3 + $0x190] sm:$0xff] %v4723_v8  ;;  %v2855_v46 = vpop.f32.mrf.mxu2  ;;  %v3098_v8 = vld [vmem:[%s8662_s0 + $0x27d] sm:$0xff] }
 0x5ad   :  { %v4074_v61 = vmax.f32 %v8226_v42, 0.0  ;;  %v2995_v51 = vadd.f32 %v2855_v46, %v2541_v58  ;;  %3810 = vmatmul.f32.gmra.mxu0 %v3549_v12  ;;  %v8800_v42 = vld [vmem:[#allocation33_spill] sm:$0xff] }
 0x5ae   :  { %v4481_v10 = vld [vmem:[#allocation2 + $0x1aa] sm:$0xff]  ;;  %v2404_v32 = vpop.f32.mrf.mxu1  ;;  %v3309_v0 = vpop.f32.mrf.mxu3 }
 0x5af   :  { %v4562_v53 = vld [vmem:[#allocation2 + $0x1ab] sm:$0xff]  ;;  %4158 = vst [vmem:[#allocation2 + $0x1b8] sm:$0xff] %v4074_v61  ;;  %v3449_v21 = vadd.f32 %v3309_v0, %v2995_v51  ;;  %v2542_v11 = vadd.f32 %v2404_v32, %v8796_v47 }
 0x5b0   :  { %v4643_v63 = vmax.f32 %v4481_v10, %v4562_v53  ;;  %v4321_v37 = vld [vmem:[#allocation2 + $0x1a9] sm:$0xff] }
 0x5b1   :  { %v3903_v41 = vadd.f32 %v3763_v34, %v3449_v21  ;;  %2451 = vmatmul.f32.gmra.mxu1 %v2640_v23  ;;  %2905 = vmatmul.f32.gmra.mxu2 %v2642_v28  ;;  %v4402_v27 = vmax.f32 %v4072_v30, %v4321_v37  ;;  %v3553_v47 = vld [vmem:[%s8662_s0 + $0x286] sm:$0xff] }
 0x5b2   :  { %v4724_v29 = vmax.f32 %v4400_v2, %v4643_v63  ;;  %v3766_v48 = vpop.f32.mrf.mxu0  ;;  %v2645_v2 = vld [vmem:[%s8662_s0 + $0x284] sm:$0xff] }
 0x5b3   :  { %v8247_v62 = vadd.f32 %v7971_v33, %v3903_v41  ;;  %3359 = vmatmul.f32.gmra.mxu3 %v3096_v17 }
 0x5b4   :  { %4805 = vst [vmem:[%s8664_s3 + $0x198] sm:$0xff] %v4724_v29  ;;  %v2858_v52 = vpop.f32.mrf.mxu2  ;;  %v3099_v29 = vld [vmem:[%s8662_s0 + $0x285] sm:$0xff] }
 0x5b5   :  { %v4075_v3 = vmax.f32 %v8247_v62, 0.0  ;;  %v2996_v20 = vadd.f32 %v2858_v52, %v2542_v11  ;;  %3813 = vmatmul.f32.gmra.mxu0 %v3550_v45  ;;  %v8801_v62 = vld [vmem:[#allocation35_spill] sm:$0xff] }
 0x5b6   :  { %v4482_v56 = vld [vmem:[#allocation2 + $0x1b2] sm:$0xff]  ;;  %v2407_v4 = vpop.f32.mrf.mxu1  ;;  %v3312_v23 = vpop.f32.mrf.mxu3 }
 0x5b7   :  { %v4563_v57 = vld [vmem:[#allocation2 + $0x1b3] sm:$0xff]  ;;  %4159 = vst [vmem:[#allocation2 + $0x1c0] sm:$0xff] %v4075_v3  ;;  %v3450_v44 = vadd.f32 %v3312_v23, %v2996_v20  ;;  %v2543_v16 = vadd.f32 %v2407_v4, %v8797_v7 }
 0x5b8   :  { %v4644_v39 = vmax.f32 %v4482_v56, %v4563_v57  ;;  %v4322_v22 = vld [vmem:[#allocation2 + $0x1b1] sm:$0xff] }
 0x5b9   :  { %v3904_v5 = vadd.f32 %v3766_v48, %v3450_v44  ;;  %2454 = vmatmul.f32.gmra.mxu1 %v2641_v1  ;;  %2908 = vmatmul.f32.gmra.mxu2 %v2643_v13  ;;  %v4403_v63 = vmax.f32 %v4073_v31, %v4322_v22  ;;  %v3554_v7 = vld [vmem:[%s8662_s0 + $0x28e] sm:$0xff] }
 0x5ba   :  { %v4725_v36 = vmax.f32 %v4401_v59, %v4644_v39  ;;  %v3769_v26 = vpop.f32.mrf.mxu0  ;;  %v2646_v59 = vld [vmem:[%s8662_s0 + $0x28c] sm:$0xff] }
 0x5bb   :  { %v8268_v60 = vadd.f32 %v7971_v33, %v3904_v5  ;;  %3362 = vmatmul.f32.gmra.mxu3 %v3097_v25 }
 0x5bc   :  { %4806 = vst [vmem:[%s8664_s3 + $0x1a0] sm:$0xff] %v4725_v36  ;;  %v2861_v40 = vpop.f32.mrf.mxu2  ;;  %v3100_v36 = vld [vmem:[%s8662_s0 + $0x28d] sm:$0xff] }
 0x5bd   :  { %v4076_v55 = vmax.f32 %v8268_v60, 0.0  ;;  %v2997_v24 = vadd.f32 %v2861_v40, %v2543_v16  ;;  %3816 = vmatmul.f32.gmra.mxu0 %v3551_v18  ;;  %v8802_v60 = vld [vmem:[#allocation3_spill] sm:$0xff] }
 0x5be   :  { %v4483_v54 = vld [vmem:[#allocation2 + $0x1ba] sm:$0xff]  ;;  %v2410_v50 = vpop.f32.mrf.mxu1  ;;  %v3315_v1 = vpop.f32.mrf.mxu3 }
 0x5bf   :  { %v4564_v38 = vld [vmem:[#allocation2 + $0x1bb] sm:$0xff]  ;;  %4160 = vst [vmem:[#allocation2 + $0x1c8] sm:$0xff] %v4076_v55  ;;  %v3451_v9 = vadd.f32 %v3315_v1, %v2997_v24  ;;  %v2544_v30 = vadd.f32 %v2410_v50, %v8798_v43 }
 0x5c0   :  { %v4645_v49 = vmax.f32 %v4483_v54, %v4564_v38  ;;  %v4323_v15 = vld [vmem:[#allocation2 + $0x1b9] sm:$0xff] }
 0x5c1   :  { %v3905_v34 = vadd.f32 %v3769_v26, %v3451_v9  ;;  %2457 = vmatmul.f32.gmra.mxu1 %v2642_v28  ;;  %2911 = vmatmul.f32.gmra.mxu2 %v2644_v35  ;;  %v4404_v39 = vmax.f32 %v4074_v61, %v4323_v15  ;;  %v3555_v43 = vld [vmem:[%s8662_s0 + $0x296] sm:$0xff] }
 0x5c2   :  { %v4726_v6 = vmax.f32 %v4402_v27, %v4645_v49  ;;  %v3772_v12 = vpop.f32.mrf.mxu0  ;;  %v2647_v27 = vld [vmem:[%s8662_s0 + $0x294] sm:$0xff] }
 0x5c3   :  { %v8289_v58 = vadd.f32 %v7971_v33, %v3905_v34  ;;  %3365 = vmatmul.f32.gmra.mxu3 %v3098_v8 }
 0x5c4   :  { %4807 = vst [vmem:[%s8664_s3 + $0x1a8] sm:$0xff] %v4726_v6  ;;  %v2864_v46 = vpop.f32.mrf.mxu2  ;;  %v3101_v6 = vld [vmem:[%s8662_s0 + $0x295] sm:$0xff] }
 0x5c5   :  { %v4077_v51 = vmax.f32 %v8289_v58, 0.0  ;;  %v2998_v10 = vadd.f32 %v2864_v46, %v2544_v30  ;;  %3819 = vmatmul.f32.gmra.mxu0 %v3552_v19  ;;  %v8803_v58 = vld [vmem:[#allocation4_spill] sm:$0xff] }
 0x5c6   :  { %v4484_v53 = vld [vmem:[#allocation2 + $0x1c2] sm:$0xff]  ;;  %v2413_v0 = vpop.f32.mrf.mxu1  ;;  %v3318_v28 = vpop.f32.mrf.mxu3 }
 0x5c7   :  { %v4565_v32 = vld [vmem:[#allocation2 + $0x1c3] sm:$0xff]  ;;  %4161 = vst [vmem:[#allocation2 + $0x1d0] sm:$0xff] %v4077_v51  ;;  %v3452_v17 = vadd.f32 %v3318_v28, %v2998_v10  ;;  %v2545_v31 = vadd.f32 %v2413_v0, %v8799_v14 }
 0x5c8   :  { %v4646_v21 = vmax.f32 %v4484_v53, %v4565_v32  ;;  %v4324_v37 = vld [vmem:[#allocation2 + $0x1c1] sm:$0xff] }
 0x5c9   :  { %v3906_v48 = vadd.f32 %v3772_v12, %v3452_v17  ;;  %2460 = vmatmul.f32.gmra.mxu1 %v2643_v13  ;;  %2914 = vmatmul.f32.gmra.mxu2 %v2645_v2  ;;  %v4405_v49 = vmax.f32 %v4075_v3, %v4324_v37  ;;  %v3556_v14 = vld [vmem:[%s8662_s0 + $0x29e] sm:$0xff] }
 0x5ca   :  { %v4727_v41 = vmax.f32 %v4403_v63, %v4646_v21  ;;  %v3775_v45 = vpop.f32.mrf.mxu0  ;;  %v2648_v63 = vld [vmem:[%s8662_s0 + $0x29c] sm:$0xff] }
 0x5cb   :  { %v8310_v11 = vadd.f32 %v7971_v33, %v3906_v48  ;;  %3368 = vmatmul.f32.gmra.mxu3 %v3099_v29 }
 0x5cc   :  { %4808 = vst [vmem:[%s8664_s3 + $0x1b0] sm:$0xff] %v4727_v41  ;;  %v2867_v52 = vpop.f32.mrf.mxu2  ;;  %v3102_v41 = vld [vmem:[%s8662_s0 + $0x29d] sm:$0xff] }
 0x5cd   :  { %v4078_v20 = vmax.f32 %v8310_v11, 0.0  ;;  %v2999_v56 = vadd.f32 %v2867_v52, %v2545_v31  ;;  %3822 = vmatmul.f32.gmra.mxu0 %v3553_v47  ;;  %v8804_v11 = vld [vmem:[#allocation5_spill] sm:$0xff] }
 0x5ce   :  { %v4485_v57 = vld [vmem:[#allocation2 + $0x1ca] sm:$0xff]  ;;  %v2416_v23 = vpop.f32.mrf.mxu1  ;;  %v3321_v13 = vpop.f32.mrf.mxu3 }
 0x5cf   :  { %v4566_v4 = vld [vmem:[#allocation2 + $0x1cb] sm:$0xff]  ;;  %4162 = vst [vmem:[#allocation2 + $0x1d8] sm:$0xff] %v4078_v20  ;;  %v3453_v25 = vadd.f32 %v3321_v13, %v2999_v56  ;;  %v2546_v61 = vadd.f32 %v2416_v23, %v8800_v42 }
 0x5d0   :  { %v4647_v44 = vmax.f32 %v4485_v57, %v4566_v4  ;;  %v4325_v22 = vld [vmem:[#allocation2 + $0x1c9] sm:$0xff] }
 0x5d1   :  { %v3907_v26 = vadd.f32 %v3775_v45, %v3453_v25  ;;  %2463 = vmatmul.f32.gmra.mxu1 %v2644_v35  ;;  %2917 = vmatmul.f32.gmra.mxu2 %v2646_v59  ;;  %v4406_v21 = vmax.f32 %v4076_v55, %v4325_v22  ;;  %v3557_v42 = vld [vmem:[%s8662_s0 + $0x2a6] sm:$0xff] }
 0x5d2   :  { %v4728_v5 = vmax.f32 %v4404_v39, %v4647_v44  ;;  %v3778_v18 = vpop.f32.mrf.mxu0  ;;  %v2649_v39 = vld [vmem:[%s8662_s0 + $0x2a4] sm:$0xff] }
 0x5d3   :  { %v8331_v16 = vadd.f32 %v7971_v33, %v3907_v26  ;;  %3371 = vmatmul.f32.gmra.mxu3 %v3100_v36 }
 0x5d4   :  { %4809 = vst [vmem:[%s8664_s3 + $0x1b8] sm:$0xff] %v4728_v5  ;;  %v2870_v40 = vpop.f32.mrf.mxu2  ;;  %v3103_v5 = vld [vmem:[%s8662_s0 + $0x2a5] sm:$0xff] }
 0x5d5   :  { %v4079_v24 = vmax.f32 %v8331_v16, 0.0  ;;  %v3000_v54 = vadd.f32 %v2870_v40, %v2546_v61  ;;  %3825 = vmatmul.f32.gmra.mxu0 %v3554_v7  ;;  %v8805_v16 = vld [vmem:[#allocation6_spill] sm:$0xff] }
 0x5d6   :  { %v4486_v38 = vld [vmem:[#allocation2 + $0x1d2] sm:$0xff]  ;;  %v2419_v1 = vpop.f32.mrf.mxu1  ;;  %v3324_v35 = vpop.f32.mrf.mxu3 }
 0x5d7   :  { %v4567_v50 = vld [vmem:[#allocation2 + $0x1d3] sm:$0xff]  ;;  %4163 = vst [vmem:[#allocation2 + $0x1e0] sm:$0xff] %v4079_v24  ;;  %v3454_v8 = vadd.f32 %v3324_v35, %v3000_v54  ;;  %v2547_v3 = vadd.f32 %v2419_v1, %v8801_v62  ;;  %v8417_v62 = vld [vmem:[%s8663_s2] ss:$0 sm:$0xff] }
 0x5d8   :  { %v4648_v9 = vmax.f32 %v4486_v38, %v4567_v50  ;;  %v4326_v15 = vld [vmem:[#allocation2 + $0x1d1] sm:$0xff] }
 0x5d9   :  { %v3908_v12 = vadd.f32 %v3778_v18, %v3454_v8  ;;  %2466 = vmatmul.f32.gmra.mxu1 %v2645_v2  ;;  %2920 = vmatmul.f32.gmra.mxu2 %v2647_v27  ;;  %v4407_v44 = vmax.f32 %v4077_v51, %v4326_v15 }
 0x5da   :  { %v4729_v34 = vmax.f32 %v4405_v49, %v4648_v9  ;;  %v3781_v19 = vpop.f32.mrf.mxu0  ;;  %v2650_v49 = vld [vmem:[%s8662_s0 + $0x2ac] sm:$0xff] }
 0x5db   :  { %v8352_v30 = vadd.f32 %v7971_v33, %v3908_v12  ;;  %3374 = vmatmul.f32.gmra.mxu3 %v3101_v6  ;;  %v3104_v6 = vld [vmem:[%s8662_s0 + $0x2ad] sm:$0xff] }
 0x5dc   :  { %4810 = vst [vmem:[%s8664_s3 + $0x1c0] sm:$0xff] %v4729_v34  ;;  %v2873_v46 = vpop.f32.mrf.mxu2 }
 0x5dd   :  { %v4080_v10 = vmax.f32 %v8352_v30, 0.0  ;;  %v3001_v53 = vadd.f32 %v2873_v46, %v2547_v3  ;;  %3828 = vmatmul.f32.gmra.mxu0 %v3555_v43  ;;  %v3558_v43 = vld [vmem:[%s8662_s0 + $0x2ae] sm:$0xff]  ;;  %v8806_v30 = vld [vmem:[#allocation7_spill] sm:$0xff] }
 0x5de   :  { %v4487_v32 = vld [vmem:[#allocation2 + $0x1da] sm:$0xff]  ;;  %v2422_v28 = vpop.f32.mrf.mxu1  ;;  %v3327_v2 = vpop.f32.mrf.mxu3 }
 0x5df   :  { %v4568_v0 = vld [vmem:[#allocation2 + $0x1db] sm:$0xff]  ;;  %4164 = vst [vmem:[#allocation2 + $0x1e8] sm:$0xff] %v4080_v10  ;;  %v3455_v29 = vadd.f32 %v3327_v2, %v3001_v53  ;;  %v2548_v55 = vadd.f32 %v2422_v28, %v8802_v60 }
 0x5e0   :  { %v4649_v17 = vmax.f32 %v4487_v32, %v4568_v0  ;;  %v4327_v37 = vld [vmem:[#allocation2 + $0x1d9] sm:$0xff] }
 0x5e1   :  { %v3909_v45 = vadd.f32 %v3781_v19, %v3455_v29  ;;  %2469 = vmatmul.f32.gmra.mxu1 %v2646_v59  ;;  %2923 = vmatmul.f32.gmra.mxu2 %v2648_v63  ;;  %v4408_v9 = vmax.f32 %v4078_v20, %v4327_v37  ;;  %v3559_v60 = vld [vmem:[%s8662_s0 + $0x2b6] sm:$0xff] }
 0x5e2   :  { %v4730_v48 = vmax.f32 %v4406_v21, %v4649_v17  ;;  %v3784_v47 = vpop.f32.mrf.mxu0  ;;  %v2651_v21 = vld [vmem:[%s8662_s0 + $0x2b4] sm:$0xff] }
 0x5e3   :  { %v8373_v31 = vadd.f32 %v7971_v33, %v3909_v45  ;;  %3377 = vmatmul.f32.gmra.mxu3 %v3102_v41 }
 0x5e4   :  { %4811 = vst [vmem:[%s8664_s3 + $0x1c8] sm:$0xff] %v4730_v48  ;;  %v2876_v52 = vpop.f32.mrf.mxu2  ;;  %v3105_v48 = vld [vmem:[%s8662_s0 + $0x2b5] sm:$0xff] }
 0x5e5   :  { %v4081_v56 = vmax.f32 %v8373_v31, 0.0  ;;  %v3002_v57 = vadd.f32 %v2876_v52, %v2548_v55  ;;  %3831 = vmatmul.f32.gmra.mxu0 %v3556_v14 }
 0x5e6   :  { %v4488_v4 = vld [vmem:[#allocation2 + $0x1e2] sm:$0xff]  ;;  %v2425_v13 = vpop.f32.mrf.mxu1  ;;  %v3330_v59 = vpop.f32.mrf.mxu3 }
 0x5e7   :  { %v4569_v23 = vld [vmem:[#allocation2 + $0x1e3] sm:$0xff]  ;;  %4165 = vst [vmem:[#allocation2 + $0x1f0] sm:$0xff] %v4081_v56  ;;  %v3456_v36 = vadd.f32 %v3330_v59, %v3002_v57  ;;  %v2549_v51 = vadd.f32 %v2425_v13, %v8803_v58 }
 0x5e8   :  { %v4650_v25 = vmax.f32 %v4488_v4, %v4569_v23  ;;  %v4328_v22 = vld [vmem:[#allocation2 + $0x1e1] sm:$0xff] }
 0x5e9   :  { %v3910_v18 = vadd.f32 %v3784_v47, %v3456_v36  ;;  %2472 = vmatmul.f32.gmra.mxu1 %v2647_v27  ;;  %2926 = vmatmul.f32.gmra.mxu2 %v2649_v39  ;;  %v4409_v17 = vmax.f32 %v4079_v24, %v4328_v22  ;;  %v3560_v58 = vld [vmem:[%s8662_s0 + $0x2be] sm:$0xff] }
 0x5ea   :  { %v4731_v26 = vmax.f32 %v4407_v44, %v4650_v25  ;;  %v3787_v7 = vpop.f32.mrf.mxu0  ;;  %v2652_v44 = vld [vmem:[%s8662_s0 + $0x2bc] sm:$0xff] }
 0x5eb   :  { %v8394_v61 = vadd.f32 %v7971_v33, %v3910_v18  ;;  %3380 = vmatmul.f32.gmra.mxu3 %v3103_v5 }
 0x5ec   :  { %4812 = vst [vmem:[%s8664_s3 + $0x1d0] sm:$0xff] %v4731_v26  ;;  %v2879_v40 = vpop.f32.mrf.mxu2  ;;  %v3106_v26 = vld [vmem:[%s8662_s0 + $0x2bd] sm:$0xff] }
 0x5ed   :  { %v4082_v54 = vmax.f32 %v8394_v61, 0.0  ;;  %v3003_v38 = vadd.f32 %v2879_v40, %v2549_v51  ;;  %3834 = vmatmul.f32.gmra.mxu0 %v3557_v42 }
 0x5ee   :  { %v4489_v50 = vld [vmem:[#allocation2 + $0x1ea] sm:$0xff]  ;;  %v2428_v35 = vpop.f32.mrf.mxu1  ;;  %v3333_v27 = vpop.f32.mrf.mxu3 }
 0x5ef   :  { %v4570_v1 = vld [vmem:[#allocation2 + $0x1eb] sm:$0xff]  ;;  %4166 = vst [vmem:[#allocation2 + $0x1f8] sm:$0xff] %v4082_v54  ;;  %v3457_v8 = vadd.f32 %v3333_v27, %v3003_v38  ;;  %v2550_v20 = vadd.f32 %v2428_v35, %v8804_v11 }
 0x5f0   :  { %v4651_v33 = vmax.f32 %v4489_v50, %v4570_v1  ;;  %v4329_v15 = vld [vmem:[#allocation2 + $0x1e9] sm:$0xff] }
 0x5f1   :  { %v3911_v12 = vadd.f32 %v3787_v7, %v3457_v8  ;;  %2475 = vmatmul.f32.gmra.mxu1 %v2648_v63  ;;  %2929 = vmatmul.f32.gmra.mxu2 %v2650_v49  ;;  %v4410_v25 = vmax.f32 %v4080_v10, %v4329_v15 }
 0x5f2   :  { %v4732_v34 = vmax.f32 %v4408_v9, %v4651_v33  ;;  %v3790_v19 = vpop.f32.mrf.mxu0 }
 0x5f3   :  { %v8420_v3 = vadd.f32 %v8417_v62, %v3911_v12  ;;  %3383 = vmatmul.f32.gmra.mxu3 %v3104_v6 }
 0x5f4   :  { %4813 = vst [vmem:[%s8664_s3 + $0x1d8] sm:$0xff] %v4732_v34  ;;  %v2882_v46 = vpop.f32.mrf.mxu2 }
 0x5f5   :  { %v4083_v53 = vmax.f32 %v8420_v3, 0.0  ;;  %v3004_v32 = vadd.f32 %v2882_v46, %v2550_v20  ;;  %3837 = vmatmul.f32.gmra.mxu0 %v3558_v43 }
 0x5f6   :  { %v4490_v0 = vld [vmem:[#allocation2 + $0x1f2] sm:$0xff]  ;;  %v2431_v2 = vpop.f32.mrf.mxu1  ;;  %v3336_v63 = vpop.f32.mrf.mxu3 }
 0x5f7   :  { %v4571_v28 = vld [vmem:[#allocation2 + $0x1f3] sm:$0xff]  ;;  %4167 = vst [vmem:[#allocation2 + $0x200] sm:$0xff] %v4083_v53  ;;  %v3458_v41 = vadd.f32 %v3336_v63, %v3004_v32  ;;  %v2551_v24 = vadd.f32 %v2431_v2, %v8805_v16 }
 0x5f8   :  { %v4652_v29 = vmax.f32 %v4490_v0, %v4571_v28  ;;  %v4330_v37 = vld [vmem:[#allocation2 + $0x1f1] sm:$0xff] }
 0x5f9   :  { %v3912_v47 = vadd.f32 %v3790_v19, %v3458_v41  ;;  %2478 = vmatmul.f32.gmra.mxu1 %v2649_v39  ;;  %2932 = vmatmul.f32.gmra.mxu2 %v2651_v21  ;;  %v4411_v9 = vmax.f32 %v4081_v56, %v4330_v37  ;;  %v8807_v19 = vld [vmem:[#allocation8_spill] sm:$0xff] }
 0x5fa   :  { %v4733_v45 = vmax.f32 %v4409_v17, %v4652_v29  ;;  %v3793_v14 = vpop.f32.mrf.mxu0 }
 0x5fb   :  { %v8441_v55 = vadd.f32 %v8417_v62, %v3912_v47  ;;  %3386 = vmatmul.f32.gmra.mxu3 %v3105_v48  ;;  %v8808_v48 = vld [vmem:[#allocation9_spill] sm:$0xff] }
 0x5fc   :  { %4814 = vst [vmem:[%s8664_s3 + $0x1e0] sm:$0xff] %v4733_v45  ;;  %v2885_v52 = vpop.f32.mrf.mxu2 }
 0x5fd   :  { %v4084_v57 = vmax.f32 %v8441_v55, 0.0  ;;  %v3005_v4 = vadd.f32 %v2885_v52, %v2551_v24  ;;  %3840 = vmatmul.f32.gmra.mxu0 %v3559_v60 }
 0x5fe   :  { %v4491_v23 = vld [vmem:[#allocation2 + $0x1fa] sm:$0xff]  ;;  %v2434_v59 = vpop.f32.mrf.mxu1  ;;  %v3339_v39 = vpop.f32.mrf.mxu3 }
 0x5ff   :  { %v4572_v13 = vld [vmem:[#allocation2 + $0x1fb] sm:$0xff]  ;;  %4168 = vst [vmem:[#allocation2 + $0x208] sm:$0xff] %v4084_v57  ;;  %v3459_v5 = vadd.f32 %v3339_v39, %v3005_v4  ;;  %v2552_v10 = vadd.f32 %v2434_v59, %v8806_v30 }
 0x600   :  { %v4653_v36 = vmax.f32 %v4491_v23, %v4572_v13  ;;  %v4331_v20 = vld [vmem:[#allocation2 + $0x1f9] sm:$0xff] }
 0x601   :  { %v3913_v7 = vadd.f32 %v3793_v14, %v3459_v5  ;;  %2481 = vmatmul.f32.gmra.mxu1 %v2650_v49  ;;  %2935 = vmatmul.f32.gmra.mxu2 %v2652_v44  ;;  %v4412_v2 = vmax.f32 %v4082_v54, %v4331_v20 }
 0x602   :  { %v4734_v18 = vmax.f32 %v4410_v25, %v4653_v36  ;;  %v3796_v42 = vpop.f32.mrf.mxu0  ;;  %v8809_v25 = vld [vmem:[#allocation10_spill] sm:$0xff] }
 0x603   :  { %v8462_v51 = vadd.f32 %v8417_v62, %v3913_v7  ;;  %3389 = vmatmul.f32.gmra.mxu3 %v3106_v26 }
 0x604   :  { %4815 = vst [vmem:[%s8664_s3 + $0x1e8] sm:$0xff] %v4734_v18  ;;  %v2888_v40 = vpop.f32.mrf.mxu2 }
 0x605   :  { %v4085_v38 = vmax.f32 %v8462_v51, 0.0  ;;  %v3006_v50 = vadd.f32 %v2888_v40, %v2552_v10  ;;  %3843 = vmatmul.f32.gmra.mxu0 %v3560_v58 }
 0x606   :  { %v4492_v1 = vld [vmem:[#allocation2 + $0x202] sm:$0xff]  ;;  %v2437_v27 = vpop.f32.mrf.mxu1  ;;  %v3342_v49 = vpop.f32.mrf.mxu3 }
 0x607   :  { %v4573_v35 = vld [vmem:[#allocation2 + $0x203] sm:$0xff]  ;;  %4169 = vst [vmem:[#allocation2 + $0x210] sm:$0xff] %v4085_v38  ;;  %v3460_v8 = vadd.f32 %v3342_v49, %v3006_v50  ;;  %v2553_v43 = vadd.f32 %v2437_v27, %v8807_v19 }
 0x608   :  { %v4654_v33 = vmax.f32 %v4492_v1, %v4573_v35  ;;  %v4332_v14 = vld [vmem:[#allocation2 + $0x201] sm:$0xff] }
 0x609   :  { %v3914_v34 = vadd.f32 %v3796_v42, %v3460_v8  ;;  %v4413_v4 = vmax.f32 %v4083_v53, %v4332_v14  ;;  %v8810_v27 = vld [vmem:[#allocation12_spill] sm:$0xff] }
 0x60a   :  { %v4735_v6 = vmax.f32 %v4411_v9, %v4654_v33  ;;  %v3799_v12 = vpop.f32.mrf.mxu0 }
 0x60b   :  { %v8474_v11 = vadd.f32 %v8417_v62, %v3914_v34 }
 0x60c   :  { %4816 = vst [vmem:[%s8664_s3 + $0x1f0] sm:$0xff] %v4735_v6  ;;  %v2891_v31 = vpop.f32.mrf.mxu2 }
 0x60d   :  { %v4086_v56 = vmax.f32 %v8474_v11, 0.0  ;;  %v3007_v22 = vadd.f32 %v2891_v31, %v2553_v43 }
 0x60e   :  { %v4493_v46 = vld [vmem:[#allocation2 + $0x20a] sm:$0xff]  ;;  %v2440_v0 = vpop.f32.mrf.mxu1  ;;  %v3345_v28 = vpop.f32.mrf.mxu3 }
 0x60f   :  { %v4574_v32 = vld [vmem:[#allocation2 + $0x20b] sm:$0xff]  ;;  %4170 = vst [vmem:[#allocation2 + $0x218] sm:$0xff] %v4086_v56  ;;  %v3461_v21 = vadd.f32 %v3345_v28, %v3007_v22  ;;  %v2554_v45 = vadd.f32 %v2440_v0, %v8808_v48  ;;  %v8811_v0 = vld [vmem:[#allocation14_spill] sm:$0xff] }
 0x610   :  { %v4655_v63 = vmax.f32 %v4493_v46, %v4574_v32  ;;  %v4333_v26 = vld [vmem:[#allocation2 + $0x209] sm:$0xff] }
 0x611   :  { %v3915_v29 = vadd.f32 %v3799_v12, %v3461_v21  ;;  %v4414_v10 = vmax.f32 %v4084_v57, %v4333_v26 }
 0x612   :  { %v4736_v17 = vmax.f32 %v4412_v2, %v4655_v63  ;;  %v3802_v41 = vpop.f32.mrf.mxu0 }
 0x613   :  { %v8486_v47 = vadd.f32 %v8417_v62, %v3915_v29 }
 0x614   :  { %4817 = vst [vmem:[%s8664_s3 + $0x1f8] sm:$0xff] %v4736_v17  ;;  %v2894_v61 = vpop.f32.mrf.mxu2 }
 0x615   :  { %v4087_v54 = vmax.f32 %v8486_v47, 0.0  ;;  %v3008_v60 = vadd.f32 %v2894_v61, %v2554_v45 }
 0x616   :  { %v4494_v16 = vld [vmem:[#allocation2 + $0x212] sm:$0xff]  ;;  %v2443_v15 = vpop.f32.mrf.mxu1  ;;  %v3348_v52 = vpop.f32.mrf.mxu3 }
 0x617   :  { %v4575_v24 = vld [vmem:[#allocation2 + $0x213] sm:$0xff]  ;;  %4171 = vst [vmem:[#allocation2 + $0x220] sm:$0xff] %v4087_v54  ;;  %v3462_v13 = vadd.f32 %v3348_v52, %v3008_v60  ;;  %v2555_v36 = vadd.f32 %v2443_v15, %v8809_v25  ;;  %v8812_v15 = vld [vmem:[#allocation16_spill] sm:$0xff] }
 0x618   :  { %v4656_v23 = vmax.f32 %v4494_v16, %v4575_v24  ;;  %v4334_v33 = vld [vmem:[#allocation2 + $0x211] sm:$0xff] }
 0x619   :  { %v3916_v39 = vadd.f32 %v3802_v41, %v3462_v13  ;;  %v4415_v43 = vmax.f32 %v4085_v38, %v4334_v33 }
 0x61a   :  { %v4737_v59 = vmax.f32 %v4413_v4, %v4656_v23  ;;  %v3805_v44 = vpop.f32.mrf.mxu0 }
 0x61b   :  { %v8498_v5 = vadd.f32 %v8417_v62, %v3916_v39 }
 0x61c   :  { %4818 = vst [vmem:[%s8664_s3 + $0x200] sm:$0xff] %v4737_v59  ;;  %v2897_v3 = vpop.f32.mrf.mxu2 }
 0x61d   :  { %v4088_v53 = vmax.f32 %v8498_v5, 0.0  ;;  %v3009_v18 = vadd.f32 %v2897_v3, %v2555_v36 }
 0x61e   :  { %v4495_v7 = vld [vmem:[#allocation2 + $0x21a] sm:$0xff]  ;;  %v2446_v58 = vpop.f32.mrf.mxu1  ;;  %v3351_v30 = vpop.f32.mrf.mxu3 }
 0x61f   :  { %v4576_v42 = vld [vmem:[#allocation2 + $0x21b] sm:$0xff]  ;;  %4172 = vst [vmem:[#allocation2 + $0x228] sm:$0xff] %v4088_v53  ;;  %v3463_v40 = vadd.f32 %v3351_v30, %v3009_v18  ;;  %v2556_v49 = vadd.f32 %v2446_v58, %v8810_v27 }
 0x620   :  { %v4657_v37 = vmax.f32 %v4495_v7, %v4576_v42  ;;  %v4335_v63 = vld [vmem:[#allocation2 + $0x219] sm:$0xff] }
 0x621   :  { %v3917_v1 = vadd.f32 %v3805_v44, %v3463_v40  ;;  %v4416_v45 = vmax.f32 %v4086_v56, %v4335_v63  ;;  %v8813_v58 = vld [vmem:[#allocation18_spill] sm:$0xff] }
 0x622   :  { %v4738_v50 = vmax.f32 %v4414_v10, %v4657_v37  ;;  %v3808_v35 = vpop.f32.mrf.mxu0 }
 0x623   :  { %v8510_v9 = vadd.f32 %v8417_v62, %v3917_v1 }
 0x624   :  { %4819 = vst [vmem:[%s8664_s3 + $0x208] sm:$0xff] %v4738_v50  ;;  %v2900_v55 = vpop.f32.mrf.mxu2 }
 0x625   :  { %v4089_v57 = vmax.f32 %v8510_v9, 0.0  ;;  %v3010_v8 = vadd.f32 %v2900_v55, %v2556_v49 }
 0x626   :  { %v4496_v6 = vld [vmem:[#allocation2 + $0x222] sm:$0xff]  ;;  %v2449_v12 = vpop.f32.mrf.mxu1  ;;  %v3354_v19 = vpop.f32.mrf.mxu3 }
 0x627   :  { %v4577_v34 = vld [vmem:[#allocation2 + $0x223] sm:$0xff]  ;;  %4173 = vst [vmem:[#allocation2 + $0x230] sm:$0xff] %v4089_v57  ;;  %v3464_v31 = vadd.f32 %v3354_v19, %v3010_v8  ;;  %v2557_v28 = vadd.f32 %v2449_v12, %v8811_v0 }
 0x628   :  { %v4658_v20 = vmax.f32 %v4496_v6, %v4577_v34  ;;  %v4336_v23 = vld [vmem:[#allocation2 + $0x221] sm:$0xff] }
 0x629   :  { %v3918_v46 = vadd.f32 %v3808_v35, %v3464_v31  ;;  %v4417_v36 = vmax.f32 %v4087_v54, %v4336_v23  ;;  %v8814_v12 = vld [vmem:[#allocation20_spill] sm:$0xff] }
 0x62a   :  { %v4739_v22 = vmax.f32 %v4415_v43, %v4658_v20  ;;  %v3811_v32 = vpop.f32.mrf.mxu0 }
 0x62b   :  { %v8522_v2 = vadd.f32 %v8417_v62, %v3918_v46 }
 0x62c   :  { %4820 = vst [vmem:[%s8664_s3 + $0x210] sm:$0xff] %v4739_v22  ;;  %v2903_v51 = vpop.f32.mrf.mxu2 }
 0x62d   :  { %v4090_v38 = vmax.f32 %v8522_v2, 0.0  ;;  %v3011_v21 = vadd.f32 %v2903_v51, %v2557_v28 }
 0x62e   :  { %v4497_v17 = vld [vmem:[#allocation2 + $0x22a] sm:$0xff]  ;;  %v2452_v41 = vpop.f32.mrf.mxu1  ;;  %v3357_v48 = vpop.f32.mrf.mxu3 }
 0x62f   :  { %v4578_v29 = vld [vmem:[#allocation2 + $0x22b] sm:$0xff]  ;;  %4174 = vst [vmem:[#allocation2 + $0x238] sm:$0xff] %v4090_v38  ;;  %v3465_v61 = vadd.f32 %v3357_v48, %v3011_v21  ;;  %v2558_v52 = vadd.f32 %v2452_v41, %v8812_v15  ;;  %v8815_v41 = vld [vmem:[#allocation22_spill] sm:$0xff] }
 0x630   :  { %v4659_v14 = vmax.f32 %v4497_v17, %v4578_v29  ;;  %v4337_v37 = vld [vmem:[#allocation2 + $0x229] sm:$0xff] }
 0x631   :  { %v3919_v16 = vadd.f32 %v3811_v32, %v3465_v61  ;;  %v4418_v49 = vmax.f32 %v4088_v53, %v4337_v37 }
 0x632   :  { %v4740_v60 = vmax.f32 %v4416_v45, %v4659_v14  ;;  %v3814_v24 = vpop.f32.mrf.mxu0 }
 0x633   :  { %v8534_v4 = vadd.f32 %v8417_v62, %v3919_v16 }
 0x634   :  { %4821 = vst [vmem:[%s8664_s3 + $0x218] sm:$0xff] %v4740_v60  ;;  %v2906_v11 = vpop.f32.mrf.mxu2 }
 0x635   :  { %v4091_v56 = vmax.f32 %v8534_v4, 0.0  ;;  %v3012_v13 = vadd.f32 %v2906_v11, %v2558_v52 }
 0x636   :  { %v4498_v59 = vld [vmem:[#allocation2 + $0x232] sm:$0xff]  ;;  %v2455_v44 = vpop.f32.mrf.mxu1  ;;  %v3360_v25 = vpop.f32.mrf.mxu3 }
 0x637   :  { %v4579_v39 = vld [vmem:[#allocation2 + $0x233] sm:$0xff]  ;;  %4175 = vst [vmem:[#allocation2 + $0x240] sm:$0xff] %v4091_v56  ;;  %v3466_v3 = vadd.f32 %v3360_v25, %v3012_v13  ;;  %v2559_v30 = vadd.f32 %v2455_v44, %v8813_v58  ;;  %v8816_v44 = vld [vmem:[#allocation24_spill] sm:$0xff] }
 0x638   :  { %v4660_v26 = vmax.f32 %v4498_v59, %v4579_v39  ;;  %v4338_v20 = vld [vmem:[#allocation2 + $0x231] sm:$0xff] }
 0x639   :  { %v3920_v7 = vadd.f32 %v3814_v24, %v3466_v3  ;;  %v4419_v28 = vmax.f32 %v4089_v57, %v4338_v20 }
 0x63a   :  { %v4741_v18 = vmax.f32 %v4417_v36, %v4660_v26  ;;  %v3817_v42 = vpop.f32.mrf.mxu0 }
 0x63b   :  { %v8546_v10 = vadd.f32 %v8417_v62, %v3920_v7 }
 0x63c   :  { %4822 = vst [vmem:[%s8664_s3 + $0x220] sm:$0xff] %v4741_v18  ;;  %v2909_v47 = vpop.f32.mrf.mxu2 }
 0x63d   :  { %v4092_v54 = vmax.f32 %v8546_v10, 0.0  ;;  %v3013_v40 = vadd.f32 %v2909_v47, %v2559_v30 }
 0x63e   :  { %v4499_v50 = vld [vmem:[#allocation2 + $0x23a] sm:$0xff]  ;;  %v2458_v35 = vpop.f32.mrf.mxu1  ;;  %v3363_v27 = vpop.f32.mrf.mxu3 }
 0x63f   :  { %v4580_v1 = vld [vmem:[#allocation2 + $0x23b] sm:$0xff]  ;;  %4176 = vst [vmem:[#allocation2 + $0x248] sm:$0xff] %v4092_v54  ;;  %v3467_v55 = vadd.f32 %v3363_v27, %v3013_v40  ;;  %v2560_v19 = vadd.f32 %v2458_v35, %v8814_v12 }
 0x640   :  { %v4661_v33 = vmax.f32 %v4499_v50, %v4580_v1  ;;  %v4339_v14 = vld [vmem:[#allocation2 + $0x239] sm:$0xff] }
 0x641   :  { %v3921_v6 = vadd.f32 %v3817_v42, %v3467_v55  ;;  %v4420_v52 = vmax.f32 %v4090_v38, %v4339_v14  ;;  %v8817_v35 = vld [vmem:[#allocation26_spill] sm:$0xff] }
 0x642   :  { %v4742_v8 = vmax.f32 %v4418_v49, %v4661_v33  ;;  %v3820_v34 = vpop.f32.mrf.mxu0 }
 0x643   :  { %v8558_v43 = vadd.f32 %v8417_v62, %v3921_v6 }
 0x644   :  { %4823 = vst [vmem:[%s8664_s3 + $0x228] sm:$0xff] %v4742_v8  ;;  %v2912_v5 = vpop.f32.mrf.mxu2 }
 0x645   :  { %v4093_v53 = vmax.f32 %v8558_v43, 0.0  ;;  %v3014_v31 = vadd.f32 %v2912_v5, %v2560_v19 }
 0x646   :  { %v4500_v22 = vld [vmem:[#allocation2 + $0x242] sm:$0xff]  ;;  %v2461_v32 = vpop.f32.mrf.mxu1  ;;  %v3366_v0 = vpop.f32.mrf.mxu3 }
 0x647   :  { %v4581_v46 = vld [vmem:[#allocation2 + $0x243] sm:$0xff]  ;;  %4177 = vst [vmem:[#allocation2 + $0x250] sm:$0xff] %v4093_v53  ;;  %v3468_v51 = vadd.f32 %v3366_v0, %v3014_v31  ;;  %v2561_v48 = vadd.f32 %v2461_v32, %v8815_v41 }
 0x648   :  { %v4662_v63 = vmax.f32 %v4500_v22, %v4581_v46  ;;  %v4340_v26 = vld [vmem:[#allocation2 + $0x241] sm:$0xff] }
 0x649   :  { %v3922_v17 = vadd.f32 %v3820_v34, %v3468_v51  ;;  %v4421_v30 = vmax.f32 %v4091_v56, %v4340_v26  ;;  %v8818_v32 = vld [vmem:[#allocation28_spill] sm:$0xff] }
 0x64a   :  { %v4743_v21 = vmax.f32 %v4419_v28, %v4662_v63  ;;  %v3823_v29 = vpop.f32.mrf.mxu0 }
 0x64b   :  { %v8570_v45 = vadd.f32 %v8417_v62, %v3922_v17 }
 0x64c   :  { %4824 = vst [vmem:[%s8664_s3 + $0x230] sm:$0xff] %v4743_v21  ;;  %v2915_v9 = vpop.f32.mrf.mxu2 }
 0x64d   :  { %v4094_v57 = vmax.f32 %v8570_v45, 0.0  ;;  %v3015_v61 = vadd.f32 %v2915_v9, %v2561_v48 }
 0x64e   :  { %v4501_v60 = vld [vmem:[#allocation2 + $0x24a] sm:$0xff]  ;;  %v2464_v24 = vpop.f32.mrf.mxu1  ;;  %v3369_v15 = vpop.f32.mrf.mxu3 }
 0x64f   :  { %v4582_v16 = vld [vmem:[#allocation2 + $0x24b] sm:$0xff]  ;;  %4178 = vst [vmem:[#allocation2 + $0x258] sm:$0xff] %v4094_v57  ;;  %v3469_v11 = vadd.f32 %v3369_v15, %v3015_v61  ;;  %v2562_v25 = vadd.f32 %v2464_v24, %v8816_v44  ;;  %v8819_v24 = vld [vmem:[#allocation30_spill] sm:$0xff] }
 0x650   :  { %v4663_v23 = vmax.f32 %v4501_v60, %v4582_v16  ;;  %v4341_v33 = vld [vmem:[#allocation2 + $0x249] sm:$0xff] }
 0x651   :  { %v3923_v59 = vadd.f32 %v3823_v29, %v3469_v11  ;;  %v4422_v19 = vmax.f32 %v4092_v54, %v4341_v33 }
 0x652   :  { %v4744_v13 = vmax.f32 %v4420_v52, %v4663_v23  ;;  %v3826_v39 = vpop.f32.mrf.mxu0 }
 0x653   :  { %v8582_v36 = vadd.f32 %v8417_v62, %v3923_v59 }
 0x654   :  { %4825 = vst [vmem:[%s8664_s3 + $0x238] sm:$0xff] %v4744_v13  ;;  %v2918_v2 = vpop.f32.mrf.mxu2 }
 0x655   :  { %v4095_v38 = vmax.f32 %v8582_v36, 0.0  ;;  %v3016_v3 = vadd.f32 %v2918_v2, %v2562_v25 }
 0x656   :  { %v4502_v18 = vld [vmem:[#allocation2 + $0x252] sm:$0xff]  ;;  %v2467_v42 = vpop.f32.mrf.mxu1  ;;  %v3372_v58 = vpop.f32.mrf.mxu3 }
 0x657   :  { %v4583_v7 = vld [vmem:[#allocation2 + $0x253] sm:$0xff]  ;;  %4179 = vst [vmem:[#allocation2 + $0x260] sm:$0xff] %v4095_v38  ;;  %v3470_v47 = vadd.f32 %v3372_v58, %v3016_v3  ;;  %v2563_v27 = vadd.f32 %v2467_v42, %v8817_v35  ;;  %v8820_v42 = vld [vmem:[#allocation32_spill] sm:$0xff] }
 0x658   :  { %v4664_v37 = vmax.f32 %v4502_v18, %v4583_v7  ;;  %v4342_v63 = vld [vmem:[#allocation2 + $0x251] sm:$0xff] }
 0x659   :  { %v3924_v50 = vadd.f32 %v3826_v39, %v3470_v47  ;;  %v4423_v48 = vmax.f32 %v4093_v53, %v4342_v63 }
 0x65a   :  { %v4745_v40 = vmax.f32 %v4421_v30, %v4664_v37  ;;  %v3829_v1 = vpop.f32.mrf.mxu0 }
 0x65b   :  { %v8594_v49 = vadd.f32 %v8417_v62, %v3924_v50 }
 0x65c   :  { %4826 = vst [vmem:[%s8664_s3 + $0x240] sm:$0xff] %v4745_v40  ;;  %v2921_v4 = vpop.f32.mrf.mxu2 }
 0x65d   :  { %v4096_v56 = vmax.f32 %v8594_v49, 0.0  ;;  %v3017_v55 = vadd.f32 %v2921_v4, %v2563_v27 }
 0x65e   :  { %v4503_v8 = vld [vmem:[#allocation2 + $0x25a] sm:$0xff]  ;;  %v2470_v34 = vpop.f32.mrf.mxu1  ;;  %v3375_v12 = vpop.f32.mrf.mxu3 }
 0x65f   :  { %v4584_v6 = vld [vmem:[#allocation2 + $0x25b] sm:$0xff]  ;;  %4180 = vst [vmem:[#allocation2 + $0x268] sm:$0xff] %v4096_v56  ;;  %v3471_v5 = vadd.f32 %v3375_v12, %v3017_v55  ;;  %v2564_v0 = vadd.f32 %v2470_v34, %v8818_v32 }
 0x660   :  { %v4665_v20 = vmax.f32 %v4503_v8, %v4584_v6  ;;  %v4343_v23 = vld [vmem:[#allocation2 + $0x259] sm:$0xff] }
 0x661   :  { %v3925_v22 = vadd.f32 %v3829_v1, %v3471_v5  ;;  %v4424_v25 = vmax.f32 %v4094_v57, %v4343_v23  ;;  %v8821_v6 = vld [vmem:[#allocation34_spill] sm:$0xff] }
 0x662   :  { %v4746_v31 = vmax.f32 %v4422_v19, %v4665_v20  ;;  %v3832_v46 = vpop.f32.mrf.mxu0 }
 0x663   :  { %v8606_v28 = vadd.f32 %v8417_v62, %v3925_v22 }
 0x664   :  { %4827 = vst [vmem:[%s8664_s3 + $0x248] sm:$0xff] %v4746_v31  ;;  %v2924_v10 = vpop.f32.mrf.mxu2 }
 0x665   :  { %v4097_v54 = vmax.f32 %v8606_v28, 0.0  ;;  %v3018_v51 = vadd.f32 %v2924_v10, %v2564_v0 }
 0x666   :  { %v4504_v21 = vld [vmem:[#allocation2 + $0x262] sm:$0xff]  ;;  %v2473_v29 = vpop.f32.mrf.mxu1  ;;  %v3378_v41 = vpop.f32.mrf.mxu3 }
 0x667   :  { %v4585_v17 = vld [vmem:[#allocation2 + $0x263] sm:$0xff]  ;;  %4181 = vst [vmem:[#allocation2 + $0x270] sm:$0xff] %v4097_v54  ;;  %v3472_v9 = vadd.f32 %v3378_v41, %v3018_v51  ;;  %v2565_v15 = vadd.f32 %v2473_v29, %v8819_v24 }
 0x668   :  { %v4666_v14 = vmax.f32 %v4504_v21, %v4585_v17  ;;  %v4344_v37 = vld [vmem:[#allocation2 + $0x261] sm:$0xff] }
 0x669   :  { %v3926_v60 = vadd.f32 %v3832_v46, %v3472_v9  ;;  %v4425_v27 = vmax.f32 %v4095_v38, %v4344_v37  ;;  %v8822_v17 = vld [vmem:[#allocation36_spill] sm:$0xff] }
 0x66a   :  { %v4747_v61 = vmax.f32 %v4423_v48, %v4666_v14  ;;  %v3835_v16 = vpop.f32.mrf.mxu0 }
 0x66b   :  { %v8618_v52 = vadd.f32 %v8417_v62, %v3926_v60 }
 0x66c   :  { %4828 = vst [vmem:[%s8664_s3 + $0x250] sm:$0xff] %v4747_v61  ;;  %v2927_v43 = vpop.f32.mrf.mxu2 }
 0x66d   :  { %v4098_v53 = vmax.f32 %v8618_v52, 0.0  ;;  %v3019_v11 = vadd.f32 %v2927_v43, %v2565_v15 }
 0x66e   :  { %v4505_v13 = vld [vmem:[#allocation2 + $0x26a] sm:$0xff]  ;;  %v2476_v39 = vpop.f32.mrf.mxu1  ;;  %v3381_v44 = vpop.f32.mrf.mxu3 }
 0x66f   :  { %v4586_v59 = vld [vmem:[#allocation2 + $0x26b] sm:$0xff]  ;;  %4182 = vst [vmem:[#allocation2 + $0x278] sm:$0xff] %v4098_v53  ;;  %v3473_v2 = vadd.f32 %v3381_v44, %v3019_v11  ;;  %v2566_v58 = vadd.f32 %v2476_v39, %v8820_v42 }
 0x670   :  { %v4667_v26 = vmax.f32 %v4505_v13, %v4586_v59  ;;  %v4345_v19 = vld [vmem:[#allocation2 + $0x269] sm:$0xff] }
 0x671   :  { %v3927_v18 = vadd.f32 %v3835_v16, %v3473_v2  ;;  %v4426_v32 = vmax.f32 %v4096_v56, %v4345_v19 }
 0x672   :  { %v4748_v3 = vmax.f32 %v4424_v25, %v4667_v26  ;;  %v3838_v7 = vpop.f32.mrf.mxu0 }
 0x673   :  { %v8630_v30 = vadd.f32 %v8417_v62, %v3927_v18 }
 0x674   :  { %4829 = vst [vmem:[%s8664_s3 + $0x258] sm:$0xff] %v4748_v3  ;;  %v2930_v45 = vpop.f32.mrf.mxu2 }
 0x675   :  { %v4099_v57 = vmax.f32 %v8630_v30, 0.0  ;;  %v3020_v47 = vadd.f32 %v2930_v45, %v2566_v58 }
 0x676   :  { %v4506_v40 = vld [vmem:[#allocation2 + $0x272] sm:$0xff]  ;;  %v2479_v1 = vpop.f32.mrf.mxu1  ;;  %v3384_v35 = vpop.f32.mrf.mxu3 }
 0x677   :  { %v4587_v50 = vld [vmem:[#allocation2 + $0x273] sm:$0xff]  ;;  %4183 = vst [vmem:[#allocation2 + $0x280] sm:$0xff] %v4099_v57  ;;  %v3474_v4 = vadd.f32 %v3384_v35, %v3020_v47  ;;  %v2567_v34 = vadd.f32 %v2479_v1, %v8821_v6 }
 0x678   :  { %v4668_v33 = vmax.f32 %v4506_v40, %v4587_v50  ;;  %v4346_v48 = vld [vmem:[#allocation2 + $0x271] sm:$0xff] }
 0x679   :  { %v3928_v8 = vadd.f32 %v3838_v7, %v3474_v4  ;;  %v4427_v24 = vmax.f32 %v4097_v54, %v4346_v48 }
 0x67a   :  { %v4749_v55 = vmax.f32 %v4425_v27, %v4668_v33  ;;  %v3841_v5 = vpop.f32.mrf.mxu0 }
 0x67b   :  { %v4016_v12 = vadd.f32 %v8417_v62, %v3928_v8 }
 0x67c   :  { %4830 = vst [vmem:[%s8664_s3 + $0x260] sm:$0xff] %v4749_v55  ;;  %v2933_v20 = vpop.f32.mrf.mxu2 }
 0x67d   :  { %v4100_v31 = vmax.f32 %v4016_v12, 0.0  ;;  %v3021_v22 = vadd.f32 %v2933_v20, %v2567_v34 }
 0x67e   :  { %v4507_v36 = vld [vmem:[#allocation2 + $0x27a] sm:$0xff]  ;;  %v3387_v46 = vpop.f32.mrf.mxu3  ;;  %v2482_v10 = vpop.f32.mrf.mxu1 }
 0x67f   :  { %v4588_v38 = vld [vmem:[#allocation2 + $0x27b] sm:$0xff]  ;;  %4184 = vst [vmem:[#allocation2 + $0x288] sm:$0xff] %v4100_v31  ;;  %v3475_v63 = vadd.f32 %v3387_v46, %v3021_v22  ;;  %v2568_v29 = vadd.f32 %v2482_v10, %v8822_v17 }
 0x680   :  { %v4669_v0 = vmax.f32 %v4507_v36, %v4588_v38  ;;  %v4347_v59 = vld [vmem:[#allocation2 + $0x279] sm:$0xff] }
 0x681   :  { %v3929_v21 = vadd.f32 %v3841_v5, %v3475_v63  ;;  %v4428_v26 = vmax.f32 %v4098_v53, %v4347_v59 }
 0x682   :  { %v4750_v51 = vmax.f32 %v4426_v32, %v4669_v0  ;;  %v3844_v16 = vpop.f32.mrf.mxu0 }
 0x683   :  { %v4017_v41 = vadd.f32 %v8417_v62, %v3929_v21 }
 0x684   :  { %4831 = vst [vmem:[%s8664_s3 + $0x268] sm:$0xff] %v4750_v51  ;;  %v2936_v14 = vpop.f32.mrf.mxu2 }
 0x685   :  { %v4101_v9 = vmax.f32 %v4017_v41, 0.0  ;;  %v3022_v61 = vadd.f32 %v2936_v14, %v2568_v29 }
 0x686   :  { %v4508_v49 = vld [vmem:[#allocation2 + $0x282] sm:$0xff]  ;;  %v3390_v60 = vpop.f32.mrf.mxu3 }
 0x687   :  { %v4589_v56 = vld [vmem:[#allocation2 + $0x283] sm:$0xff]  ;;  %4185 = vst [vmem:[#allocation2 + $0x290] sm:$0xff] %v4101_v9  ;;  %v3476_v23 = vadd.f32 %v3390_v60, %v3022_v61 }
 0x688   :  { %v4670_v15 = vmax.f32 %v4508_v49, %v4589_v56  ;;  %v4348_v2 = vld [vmem:[#allocation2 + $0x281] sm:$0xff] }
 0x689   :  { %v3930_v11 = vadd.f32 %v3844_v16, %v3476_v23  ;;  %v4429_v7 = vmax.f32 %v4099_v57, %v4348_v2 }
 0x68a   :  { %v4751_v43 = vmax.f32 %v4427_v24, %v4670_v15 }
 0x68b   :  { %v4018_v13 = vadd.f32 %v8417_v62, %v3930_v11 }
 0x68c   :  { %4832 = vst [vmem:[%s8664_s3 + $0x270] sm:$0xff] %v4751_v43 }
 0x68d   :  { %v4102_v39 = vmax.f32 %v4018_v13, 0.0 }
 0x68e   :  { %v4509_v44 = vld [vmem:[#allocation2 + $0x28a] sm:$0xff] }
 0x68f   :  { %v4590_v25 = vld [vmem:[#allocation2 + $0x28b] sm:$0xff]  ;;  %4186 = vst [vmem:[#allocation2 + $0x298] sm:$0xff] %v4102_v39 }
 0x690   :  { %v4671_v28 = vmax.f32 %v4509_v44, %v4590_v25 }
 0x692   :  { %v4752_v54 = vmax.f32 %v4428_v26, %v4671_v28 }
 0x694   :  { %4833 = vst [vmem:[%s8664_s3 + $0x278] sm:$0xff] %v4752_v54 }
 0x696   :  { %v4510_v3 = vld [vmem:[#allocation2 + $0x292] sm:$0xff] }
 0x697   :  { %v4591_v18 = vld [vmem:[#allocation2 + $0x293] sm:$0xff] }
 0x698   :  { %v4672_v42 = vmax.f32 %v4510_v3, %v4591_v18 }
 0x69a   :  { %v4753_v62 = vmax.f32 %v4429_v7, %v4672_v42 }
 0x69c   :  { %4834 = vst [vmem:[%s8664_s3 + $0x280] sm:$0xff] %v4753_v62 }

</bundles_post_ra>
